<compile_context>
chip_gen: v7x
topology: tpu7x:2x2x1
jax: 0.10.0
libtpu: 0.0.40
codegen_flags: <defaults>
</compile_context>

<pallas_src>
import functools

import jax
import jax.numpy as jnp
from jax.experimental import pallas as pl
from jax.experimental.pallas import tpu as pltpu

# ----------------------------- model hyper-params -----------------------------
BATCH = 2
IMG_RES = 16
PATCH = 8
VISION_WIDTH = 64
VISION_HEADS = 4
VISION_LAYERS = 2

CTX_DIM = 64          # text transformer width (== ln_final.weight.shape[0])
TEXT_HEADS = 4
TEXT_LAYERS = 2
CONTEXT_LEN = 16
VOCAB = 128

EMBED_DIM = 32        # shared CLIP embedding dim
N_CLS = 4
N_CTX = 4
NAME_LENS = [1, 2, 1, 3]

TEXT_GROUP = 2        # prompts handled per grid step of the fused text kernel
assert N_CLS % TEXT_GROUP == 0


# ------------------------- in-kernel math (traced helpers) ---------------------
def _layernorm(x, g, b):
    # f32 statistics, CLIP eps=1e-5
    mu = jnp.mean(x, axis=-1, keepdims=True)
    var = jnp.mean(jnp.square(x - mu), axis=-1, keepdims=True)
    return (x - mu) * jax.lax.rsqrt(var + 1e-5) * g + b


def _mha(x, qkv_w, qkv_b, out_w, out_b, n_seq, seq_len, n_heads, head_dim, attn_bias):
    """Multi-head attention on a (n_seq*seq_len, D) activation, all in VMEM.

    Fused QKV matmul (lane-dense 3*D output); heads are split with static lane
    slices; softmax normalization uses the approximate EUP reciprocal.
    """
    d_model = n_heads * head_dim
    scale = float(head_dim) ** -0.5
    qkv = jnp.dot(x.astype(jnp.bfloat16), qkv_w,
                  preferred_element_type=jnp.float32) + qkv_b      # (n_seq*T, 3D) f32
    seq_outs = []
    for si in range(n_seq):
        blk = qkv[si * seq_len:(si + 1) * seq_len]                 # (T, 3D)
        heads = []
        for h in range(n_heads):
            q = blk[:, h * head_dim:(h + 1) * head_dim].astype(jnp.bfloat16)
            k = blk[:, d_model + h * head_dim:
                    d_model + (h + 1) * head_dim].astype(jnp.bfloat16)
            v = blk[:, 2 * d_model + h * head_dim:
                    2 * d_model + (h + 1) * head_dim].astype(jnp.bfloat16)
            s_qk = jax.lax.dot_general(
                q, k, (((1,), (1,)), ((), ())),
                preferred_element_type=jnp.float32) * scale        # (T, T) f32
            if attn_bias is not None:
                s_qk = s_qk + attn_bias
            s_qk = s_qk - jnp.max(s_qk, axis=-1, keepdims=True)
            p = jnp.exp(s_qk)
            p = p * pl.reciprocal(jnp.sum(p, axis=-1, keepdims=True), approx=True)
            heads.append(jnp.dot(p.astype(jnp.bfloat16), v,
                                 preferred_element_type=jnp.float32))   # (T, Dh)
        seq_outs.append(jnp.concatenate(heads, axis=-1))           # (T, D)
    attn = seq_outs[0] if n_seq == 1 else jnp.concatenate(seq_outs, axis=0)
    return jnp.dot(attn.astype(jnp.bfloat16), out_w,
                   preferred_element_type=jnp.float32) + out_b


def _mlp(x, w1, b1, w2, b2):
    h = jnp.dot(x.astype(jnp.bfloat16), w1,
                preferred_element_type=jnp.float32) + b1
    h = h * jax.nn.sigmoid(1.702 * h)          # QuickGELU (CLIP), f32
    return jnp.dot(h.astype(jnp.bfloat16), w2,
                   preferred_element_type=jnp.float32) + b2


def _run_layers(x, lyr, n_seq, seq_len, n_heads, attn_bias):
    """CLIP ResidualAttentionBlock stack; `lyr` holds stacked per-layer refs."""
    n_layers = lyr['ln1_g'].shape[0]
    head_dim = x.shape[-1] // n_heads
    for l in range(n_layers):
        h = _layernorm(x, lyr['ln1_g'][l], lyr['ln1_b'][l])
        x = x + _mha(h, lyr['qkv_w'][l], lyr['qkv_b'][l],
                     lyr['out_w'][l], lyr['out_b'][l],
                     n_seq, seq_len, n_heads, head_dim, attn_bias)
        h = _layernorm(x, lyr['ln2_g'][l], lyr['ln2_b'][l])
        x = x + _mlp(h, lyr['mlp_w1'][l], lyr['mlp_b1'][l],
                     lyr['mlp_w2'][l], lyr['mlp_b2'][l])
    return x


# ------------------------------- fused kernels ---------------------------------
def _vision_kernel(patches_ref, conv_w_ref, tok_bias_ref,
                   ln_pre_g_ref, ln_pre_b_ref,
                   ln1_g_ref, ln1_b_ref, qkv_w_ref, qkv_b_ref,
                   out_w_ref, out_b_ref, ln2_g_ref, ln2_b_ref,
                   mlp_w1_ref, mlp_b1_ref, mlp_w2_ref, mlp_b2_ref,
                   ln_post_g_ref, ln_post_b_ref, proj_ref,
                   o_ref, *, n_heads):
    # patches_ref block: (1, T, 3*P*P) bf16; row 0 is zero (class-token slot).
    patches = patches_ref[0]
    # Patch embedding (no bias in CLIP conv) + [class_emb | 0] + pos_emb in one add.
    x = jnp.dot(patches, conv_w_ref[...],
                preferred_element_type=jnp.float32) + tok_bias_ref[...]   # (T, D)
    x = _layernorm(x, ln_pre_g_ref[...], ln_pre_b_ref[...])
    lyr = dict(ln1_g=ln1_g_ref, ln1_b=ln1_b_ref, qkv_w=qkv_w_ref, qkv_b=qkv_b_ref,
               out_w=out_w_ref, out_b=out_b_ref, ln2_g=ln2_g_ref, ln2_b=ln2_b_ref,
               mlp_w1=mlp_w1_ref, mlp_b1=mlp_b1_ref,
               mlp_w2=mlp_w2_ref, mlp_b2=mlp_b2_ref)
    x = _run_layers(x, lyr, n_seq=1, seq_len=x.shape[0],
                    n_heads=n_heads, attn_bias=None)
    x0 = _layernorm(x[0:1, :], ln_post_g_ref[...], ln_post_b_ref[...])    # class tok
    o_ref[0] = jnp.dot(x0.astype(jnp.bfloat16), proj_ref[...],
                       preferred_element_type=jnp.float32)                # (1, E)


def _text_kernel(prompts_ref, eot_ref,
                 ln1_g_ref, ln1_b_ref, qkv_w_ref, qkv_b_ref,
                 out_w_ref, out_b_ref, ln2_g_ref, ln2_b_ref,
                 mlp_w1_ref, mlp_b1_ref, mlp_w2_ref, mlp_b2_ref,
                 ln_final_g_ref, ln_final_b_ref, proj_ref,
                 o_ref, *, n_heads):
    gsz = eot_ref.shape[0]
    seq_len = eot_ref.shape[2]
    x = prompts_ref[...]                                                   # (gsz*T, D)
    # Causal additive bias generated in-kernel (no (T,T) operand DMA).
    ri = jax.lax.broadcasted_iota(jnp.int32, (seq_len, seq_len), 0)
    ci = jax.lax.broadcasted_iota(jnp.int32, (seq_len, seq_len), 1)
    causal = jnp.where(ci <= ri, 0.0, -1e9).astype(jnp.float32)
    lyr = dict(ln1_g=ln1_g_ref, ln1_b=ln1_b_ref, qkv_w=qkv_w_ref, qkv_b=qkv_b_ref,
               out_w=out_w_ref, out_b=out_b_ref, ln2_g=ln2_g_ref, ln2_b=ln2_b_ref,
               mlp_w1=mlp_w1_ref, mlp_b1=mlp_b1_ref,
               mlp_w2=mlp_w2_ref, mlp_b2=mlp_b2_ref)
    x = _run_layers(x, lyr, n_seq=gsz, seq_len=seq_len,
                    n_heads=n_heads, attn_bias=causal)
    x = _layernorm(x, ln_final_g_ref[...], ln_final_b_ref[...])           # (gsz*T, D)
    feats = []
    for i in range(gsz):
        xi = x[i * seq_len:(i + 1) * seq_len]                              # (T, D)
        feats.append(jnp.dot(eot_ref[i], xi,
                             preferred_element_type=jnp.float32))          # (1, D)
    feats = jnp.concatenate(feats, axis=0)                                 # (gsz, D)
    o_ref[0] = jnp.dot(feats.astype(jnp.bfloat16), proj_ref[...],
                       preferred_element_type=jnp.float32)                 # (gsz, E)


def _logits_kernel(scale_ref, img_ref, txt_ref, o_ref):
    img = img_ref[...]
    txt = txt_ref[...]
    img = img * jax.lax.rsqrt(jnp.sum(img * img, axis=-1, keepdims=True) + 1e-12)
    txt = txt * jax.lax.rsqrt(jnp.sum(txt * txt, axis=-1, keepdims=True) + 1e-12)
    o_ref[...] = scale_ref[0] * jax.lax.dot_general(
        img, txt, (((1,), (1,)), ((), ())), preferred_element_type=jnp.float32)


# --------------------------------- wrappers ------------------------------------
def _full_spec(arr):
    zeros = (0,) * arr.ndim
    return pl.BlockSpec(arr.shape, lambda *_: zeros)


def extract_patches(image, patch):
    # NCHW -> (B, num_patches, C*patch*patch), channel-major like Conv2d weights.
    b, c, h, w = image.shape
    gy, gx = h // patch, w // patch
    x = image.reshape(b, c, gy, patch, gx, patch)
    x = x.transpose(0, 2, 4, 1, 3, 5)          # B, gy, gx, C, ph, pw
    return x.reshape(b, gy * gx, c * patch * patch)


def encode_image(image, vp):
    b = image.shape[0]
    patches = extract_patches(image.astype(jnp.float32), PATCH)       # (B, G, PD)
    g, pd = patches.shape[1], patches.shape[2]
    n_tok = g + 1
    # Zero row 0 (class-token slot) so one matmul covers all tokens; the class
    # embedding + positional embedding are folded into a single additive bias.
    patches = jnp.pad(patches, ((0, 0), (1, 0), (0, 0))).astype(jnp.bfloat16)
    tok_bias = (jnp.concatenate(
        [vp['class_emb'], jnp.zeros((g, VISION_WIDTH), jnp.float32)], axis=0)
        + vp['pos_emb'])                                               # (T, D) f32

    weights = [vp['conv_w'], tok_bias, vp['ln_pre_g'], vp['ln_pre_b'],
               vp['ln1_g'], vp['ln1_b'], vp['qkv_w'], vp['qkv_b'],
               vp['out_w'], vp['out_b'], vp['ln2_g'], vp['ln2_b'],
               vp['mlp_w1'], vp['mlp_b1'], vp['mlp_w2'], vp['mlp_b2'],
               vp['ln_post_g'], vp['ln_post_b'], vp['proj']]

    out = pl.pallas_call(
        functools.partial(_vision_kernel, n_heads=VISION_HEADS),
        grid=(b,),
        out_shape=jax.ShapeDtypeStruct((b, 1, EMBED_DIM), jnp.float32),
        in_specs=[pl.BlockSpec((1, n_tok, pd), lambda i: (i, 0, 0))]
                 + [_full_spec(w) for w in weights],
        out_specs=pl.BlockSpec((1, 1, EMBED_DIM), lambda i: (i, 0, 0)),
        compiler_params=pltpu.CompilerParams(dimension_semantics=("parallel",)),
    )(patches, *weights)
    return out.reshape(b, EMBED_DIM)


def prompt_learner_forward(plp):
    # CLASS_TOKEN_POSITION == 'end', generic (non-CSC) context.
    ctx = plp['ctx']                                                   # (n_ctx, D)
    n_cls = plp['token_prefix'].shape[0]
    ctx = jnp.broadcast_to(ctx[None], (n_cls,) + ctx.shape)
    return jnp.concatenate([plp['token_prefix'], ctx, plp['token_suffix']], axis=1)


def encode_text(prompts, tokenized_prompts, tp):
    n, t, d = prompts.shape
    # positional add folds into the XLA fusion that builds `prompts`
    prompts2d = (prompts + tp['pos_emb'][None]).reshape(n * t, d).astype(jnp.float32)
    eot = jnp.argmax(tokenized_prompts, axis=-1)                       # (N,)
    eot_onehot = jax.nn.one_hot(eot, t, dtype=jnp.float32).reshape(n, 1, t)
    n_grp = n // TEXT_GROUP

    weights = [tp['ln1_g'], tp['ln1_b'], tp['qkv_w'], tp['qkv_b'],
               tp['out_w'], tp['out_b'], tp['ln2_g'], tp['ln2_b'],
               tp['mlp_w1'], tp['mlp_b1'], tp['mlp_w2'], tp['mlp_b2'],
               tp['ln_final_g'], tp['ln_final_b'], tp['text_projection']]

    out = pl.pallas_call(
        functools.partial(_text_kernel, n_heads=TEXT_HEADS),
        grid=(n_grp,),
        out_shape=jax.ShapeDtypeStruct((n_grp, TEXT_GROUP, EMBED_DIM), jnp.float32),
        in_specs=[pl.BlockSpec((TEXT_GROUP * t, d), lambda i: (i, 0)),
                  pl.BlockSpec((TEXT_GROUP, 1, t), lambda i: (i, 0, 0))]
                 + [_full_spec(w) for w in weights],
        out_specs=pl.BlockSpec((1, TEXT_GROUP, EMBED_DIM), lambda i: (i, 0, 0)),
        compiler_params=pltpu.CompilerParams(dimension_semantics=("parallel",)),
    )(prompts2d, eot_onehot, *weights)
    return out.reshape(n, EMBED_DIM)


def clip_logits(img_feat, txt_feat, logit_scale):
    b, n_cls = img_feat.shape[0], txt_feat.shape[0]
    scale = jnp.exp(logit_scale).reshape(1).astype(jnp.float32)        # scalar exp outside
    return pl.pallas_call(
        _logits_kernel,
        out_shape=jax.ShapeDtypeStruct((b, n_cls), jnp.float32),
        in_specs=[pl.BlockSpec(memory_space=pltpu.MemorySpace.SMEM),
                  pl.BlockSpec(memory_space=pltpu.MemorySpace.VMEM),
                  pl.BlockSpec(memory_space=pltpu.MemorySpace.VMEM)],
        out_specs=pl.BlockSpec(memory_space=pltpu.MemorySpace.VMEM),
    )(scale, img_feat, txt_feat)


def custom_clip_forward(params, image, get_feature=False):
    image_features = encode_image(image, params['visual'])
    prompts = prompt_learner_forward(params['prompt_learner'])
    text_features = encode_text(prompts, params['tokenized_prompts'], params['text'])
    logits = clip_logits(image_features, text_features, params['logit_scale'])
    if get_feature:
        img_norm = image_features * jax.lax.rsqrt(
            jnp.sum(image_features * image_features, axis=-1, keepdims=True) + 1e-12)
        return logits, img_norm
    return logits


# ------------------------------ parameter setup --------------------------------
def init_params(key):
    keys = iter(jax.random.split(key, 64))

    def nrm(shape, std=0.02, dtype=jnp.float32):
        return (jax.random.normal(next(keys), shape) * std).astype(dtype)

    def stacked_layers(n_layers, d):
        # Per-layer weights stacked on a leading axis; matmul weights in bf16,
        # biases / LayerNorm params in f32.  QKV is pre-fused to (d, 3d).
        return dict(
            ln1_g=jnp.ones((n_layers, 1, d), jnp.float32),
            ln1_b=jnp.zeros((n_layers, 1, d), jnp.float32),
            qkv_w=nrm((n_layers, d, 3 * d), dtype=jnp.bfloat16),
            qkv_b=jnp.zeros((n_layers, 1, 3 * d), jnp.float32),
            out_w=nrm((n_layers, d, d), dtype=jnp.bfloat16),
            out_b=jnp.zeros((n_layers, 1, d), jnp.float32),
            ln2_g=jnp.ones((n_layers, 1, d), jnp.float32),
            ln2_b=jnp.zeros((n_layers, 1, d), jnp.float32),
            mlp_w1=nrm((n_layers, d, 4 * d), dtype=jnp.bfloat16),
            mlp_b1=jnp.zeros((n_layers, 1, 4 * d), jnp.float32),
            mlp_w2=nrm((n_layers, 4 * d, d), dtype=jnp.bfloat16),
            mlp_b2=jnp.zeros((n_layers, 1, d), jnp.float32),
        )

    grid_tokens = (IMG_RES // PATCH) ** 2 + 1
    visual = dict(
        conv_w=nrm((3 * PATCH * PATCH, VISION_WIDTH), dtype=jnp.bfloat16),
        class_emb=nrm((1, VISION_WIDTH)),
        pos_emb=nrm((grid_tokens, VISION_WIDTH)),
        ln_pre_g=jnp.ones((1, VISION_WIDTH), jnp.float32),
        ln_pre_b=jnp.zeros((1, VISION_WIDTH), jnp.float32),
        ln_post_g=jnp.ones((1, VISION_WIDTH), jnp.float32),
        ln_post_b=jnp.zeros((1, VISION_WIDTH), jnp.float32),
        proj=nrm((VISION_WIDTH, EMBED_DIM), dtype=jnp.bfloat16),
        **stacked_layers(VISION_LAYERS, VISION_WIDTH),
    )

    text = dict(
        pos_emb=nrm((CONTEXT_LEN, CTX_DIM)),
        ln_final_g=jnp.ones((1, CTX_DIM), jnp.float32),
        ln_final_b=jnp.zeros((1, CTX_DIM), jnp.float32),
        text_projection=nrm((CTX_DIM, EMBED_DIM), dtype=jnp.bfloat16),
        **stacked_layers(TEXT_LAYERS, CTX_DIM),
    )

    # --- PromptLearner buffers (synthetic tokenization + token embedding) ---
    rows = []
    for i, nl in enumerate(NAME_LENS):
        row = ([1] + [2] * N_CTX + [3 + i] * nl + [VOCAB - 1]
               + [0] * (CONTEXT_LEN - 2 - N_CTX - nl))
        rows.append(row)
    tokenized_prompts = jnp.array(rows, dtype=jnp.int32)               # (n_cls, 16)
    token_embedding = nrm((VOCAB, CTX_DIM))
    embedding = token_embedding[tokenized_prompts]                     # (n_cls, 16, D)

    prompt_learner = dict(
        token_prefix=embedding[:, :1, :],
        token_suffix=embedding[:, 1 + N_CTX:, :],
        ctx=nrm((N_CTX, CTX_DIM)),                                     # generic context
    )

    return dict(
        visual=visual,
        text=text,
        prompt_learner=prompt_learner,
        tokenized_prompts=tokenized_prompts,
        logit_scale=jnp.array(jnp.log(1.0 / 0.07), jnp.float32),
    )


# ------------------------------------ main -------------------------------------
if __name__ == "__main__":
    key = jax.random.PRNGKey(0)
    pkey, ikey = jax.random.split(key)
    params = init_params(pkey)
    image = jax.random.normal(ikey, (BATCH, 3, IMG_RES, IMG_RES), dtype=jnp.float32)

    fwd = jax.jit(custom_clip_forward)
    logits = jax.block_until_ready(fwd(params, image))
    assert logits.shape == (BATCH, N_CLS), logits.shape
    assert bool(jnp.all(jnp.isfinite(logits)))
    print("KERNEL_OK")
</pallas_src>

<mosaic_0001>
module attributes {stable_mosaic.version = 11 : i64} {
  func.func @_logits_kernel(%arg0: memref<1xf32, #tpu.memory_space<smem>>, %arg1: memref<2x32xf32, #tpu.memory_space<vmem>>, %arg2: memref<4x32xf32, #tpu.memory_space<vmem>>, %arg3: memref<2x4xf32, #tpu.memory_space<vmem>>) attributes {dimension_semantics = [], scalar_prefetch = 0 : i64, scratch_operands = 0 : i64, tpu.core_type = #tpu.core_type<tc>} {
    %c0 = arith.constant 0 : index
    %c0_0 = arith.constant 0 : index
    %0 = vector.load %arg1[%c0, %c0_0] : memref<2x32xf32, #tpu.memory_space<vmem>>, vector<2x32xf32>
    %c0_1 = arith.constant 0 : index
    %c0_2 = arith.constant 0 : index
    %1 = vector.load %arg2[%c0_1, %c0_2] : memref<4x32xf32, #tpu.memory_space<vmem>>, vector<4x32xf32>
    %2 = arith.mulf %0, %0 : vector<2x32xf32>
    %cst = arith.constant dense<0.000000e+00> : vector<2xf32>
    %3 = vector.multi_reduction <add>, %2, %cst [1] : vector<2x32xf32> to vector<2xf32>
    %4 = vector.shape_cast %3 : vector<2xf32> to vector<2x1xf32>
    %cst_3 = arith.constant 9.99999996E-13 : f32
    %5 = vector.broadcast %cst_3 : f32 to vector<2x1xf32>
    %6 = arith.addf %4, %5 : vector<2x1xf32>
    %7 = math.rsqrt %6 : vector<2x1xf32>
    %8 = vector.broadcast %7 : vector<2x1xf32> to vector<2x32xf32>
    %9 = arith.mulf %0, %8 : vector<2x32xf32>
    %10 = arith.mulf %1, %1 : vector<4x32xf32>
    %cst_4 = arith.constant dense<0.000000e+00> : vector<4xf32>
    %11 = vector.multi_reduction <add>, %10, %cst_4 [1] : vector<4x32xf32> to vector<4xf32>
    %12 = vector.shape_cast %11 : vector<4xf32> to vector<4x1xf32>
    %cst_5 = arith.constant 9.99999996E-13 : f32
    %13 = vector.broadcast %cst_5 : f32 to vector<4x1xf32>
    %14 = arith.addf %12, %13 : vector<4x1xf32>
    %15 = math.rsqrt %14 : vector<4x1xf32>
    %16 = vector.broadcast %15 : vector<4x1xf32> to vector<4x32xf32>
    %17 = arith.mulf %1, %16 : vector<4x32xf32>
    %c0_6 = arith.constant 0 : index
    %18 = memref.load %arg0[%c0_6] : memref<1xf32, #tpu.memory_space<smem>>
    %cst_7 = arith.constant dense<0.000000e+00> : vector<2x4xf32>
    %19 = tpu.matmul %9, %17, %cst_7 {dimension_numbers = #tpu.dot_dimension_numbers<[1], [1], [0], [0], [0, 0, 1, 0], [], []>} : vector<2x32xf32>, vector<4x32xf32>, vector<2x4xf32> -> vector<2x4xf32>
    %20 = vector.broadcast %18 : f32 to vector<2x4xf32>
    %21 = arith.mulf %20, %19 : vector<2x4xf32>
    %c0_8 = arith.constant 0 : index
    %c0_9 = arith.constant 0 : index
    %22 = vector.load %arg3[%c0_8, %c0_9] : memref<2x4xf32, #tpu.memory_space<vmem>>, vector<2x4xf32>
    tpu.vector_store %arg3[%c0_8, %c0_9], %21 {strides = array<i32>} : memref<2x4xf32, #tpu.memory_space<vmem>>, vector<2x4xf32>,
    return
  }
}

module attributes {stable_mosaic.version = 11 : i64} {
  func.func @_vision_kernel(%arg0: i32, %arg1: memref<1x5x192xbf16, #tpu.memory_space<vmem>>, %arg2: memref<192x64xbf16, #tpu.memory_space<vmem>>, %arg3: memref<5x64xf32, #tpu.memory_space<vmem>>, %arg4: memref<1x64xf32, #tpu.memory_space<vmem>>, %arg5: memref<1x64xf32, #tpu.memory_space<vmem>>, %arg6: memref<2x1x64xf32, #tpu.memory_space<vmem>>, %arg7: memref<2x1x64xf32, #tpu.memory_space<vmem>>, %arg8: memref<2x64x192xbf16, #tpu.memory_space<vmem>>, %arg9: memref<2x1x192xf32, #tpu.memory_space<vmem>>, %arg10: memref<2x64x64xbf16, #tpu.memory_space<vmem>>, %arg11: memref<2x1x64xf32, #tpu.memory_space<vmem>>, %arg12: memref<2x1x64xf32, #tpu.memory_space<vmem>>, %arg13: memref<2x1x64xf32, #tpu.memory_space<vmem>>, %arg14: memref<2x64x256xbf16, #tpu.memory_space<vmem>>, %arg15: memref<2x1x256xf32, #tpu.memory_space<vmem>>, %arg16: memref<2x256x64xbf16, #tpu.memory_space<vmem>>, %arg17: memref<2x1x64xf32, #tpu.memory_space<vmem>>, %arg18: memref<1x64xf32, #tpu.memory_space<vmem>>, %arg19: memref<1x64xf32, #tpu.memory_space<vmem>>, %arg20: memref<64x32xbf16, #tpu.memory_space<vmem>>, %arg21: memref<1x1x32xf32, #tpu.memory_space<vmem>>) attributes {dimension_semantics = [#tpu.dimension_semantics<parallel>], iteration_bounds = array<i64: 2>, scalar_prefetch = 0 : i64, scratch_operands = 0 : i64, tpu.core_type = #tpu.core_type<tc>, window_params = [{transform_indices = @transform_0, window_bounds = array<i64: 1, 5, 192>}, {pipeline_mode = #tpu.pipeline_mode<synchronous>, transform_indices = @transform_1, window_bounds = array<i64: 192, 64>}, {pipeline_mode = #tpu.pipeline_mode<synchronous>, transform_indices = @transform_2, window_bounds = array<i64: 5, 64>}, {pipeline_mode = #tpu.pipeline_mode<synchronous>, transform_indices = @transform_3, window_bounds = array<i64: 1, 64>}, {pipeline_mode = #tpu.pipeline_mode<synchronous>, transform_indices = @transform_4, window_bounds = array<i64: 1, 64>}, {pipeline_mode = #tpu.pipeline_mode<synchronous>, transform_indices = @transform_5, window_bounds = array<i64: 2, 1, 64>}, {pipeline_mode = #tpu.pipeline_mode<synchronous>, transform_indices = @transform_6, window_bounds = array<i64: 2, 1, 64>}, {pipeline_mode = #tpu.pipeline_mode<synchronous>, transform_indices = @transform_7, window_bounds = array<i64: 2, 64, 192>}, {pipeline_mode = #tpu.pipeline_mode<synchronous>, transform_indices = @transform_8, window_bounds = array<i64: 2, 1, 192>}, {pipeline_mode = #tpu.pipeline_mode<synchronous>, transform_indices = @transform_9, window_bounds = array<i64: 2, 64, 64>}, {pipeline_mode = #tpu.pipeline_mode<synchronous>, transform_indices = @transform_10, window_bounds = array<i64: 2, 1, 64>}, {pipeline_mode = #tpu.pipeline_mode<synchronous>, transform_indices = @transform_11, window_bounds = array<i64: 2, 1, 64>}, {pipeline_mode = #tpu.pipeline_mode<synchronous>, transform_indices = @transform_12, window_bounds = array<i64: 2, 1, 64>}, {pipeline_mode = #tpu.pipeline_mode<synchronous>, transform_indices = @transform_13, window_bounds = array<i64: 2, 64, 256>}, {pipeline_mode = #tpu.pipeline_mode<synchronous>, transform_indices = @transform_14, window_bounds = array<i64: 2, 1, 256>}, {pipeline_mode = #tpu.pipeline_mode<synchronous>, transform_indices = @transform_15, window_bounds = array<i64: 2, 256, 64>}, {pipeline_mode = #tpu.pipeline_mode<synchronous>, transform_indices = @transform_16, window_bounds = array<i64: 2, 1, 64>}, {pipeline_mode = #tpu.pipeline_mode<synchronous>, transform_indices = @transform_17, window_bounds = array<i64: 1, 64>}, {pipeline_mode = #tpu.pipeline_mode<synchronous>, transform_indices = @transform_18, window_bounds = array<i64: 1, 64>}, {pipeline_mode = #tpu.pipeline_mode<synchronous>, transform_indices = @transform_19, window_bounds = array<i64: 64, 32>}, {transform_indices = @transform_20, window_bounds = array<i64: 1, 1, 32>}]} {
    %c0 = arith.constant 0 : index
    %c0_0 = arith.constant 0 : index
    %c0_1 = arith.constant 0 : index
    %0 = vector.load %arg1[%c0, %c0_0, %c0_1] : memref<1x5x192xbf16, #tpu.memory_space<vmem>>, vector<1x5x192xbf16>
    %1 = vector.shape_cast %0 : vector<1x5x192xbf16> to vector<5x192xbf16>
    %c0_2 = arith.constant 0 : index
    %c0_3 = arith.constant 0 : index
    %2 = vector.load %arg2[%c0_2, %c0_3] : memref<192x64xbf16, #tpu.memory_space<vmem>>, vector<192x64xbf16>
    %cst = arith.constant dense<0.000000e+00> : vector<5x64xf32>
    %3 = tpu.matmul %1, %2, %cst {dimension_numbers = #tpu.dot_dimension_numbers<[1], [0], [0], [1], [0, 0, 1, 1], [], []>} : vector<5x192xbf16>, vector<192x64xbf16>, vector<5x64xf32> -> vector<5x64xf32>
    %c0_4 = arith.constant 0 : index
    %c0_5 = arith.constant 0 : index
    %4 = vector.load %arg3[%c0_4, %c0_5] : memref<5x64xf32, #tpu.memory_space<vmem>>, vector<5x64xf32>
    %5 = arith.addf %3, %4 : vector<5x64xf32>
    %c0_6 = arith.constant 0 : index
    %c0_7 = arith.constant 0 : index
    %6 = vector.load %arg4[%c0_6, %c0_7] : memref<1x64xf32, #tpu.memory_space<vmem>>, vector<1x64xf32>
    %c0_8 = arith.constant 0 : index
    %c0_9 = arith.constant 0 : index
    %7 = vector.load %arg5[%c0_8, %c0_9] : memref<1x64xf32, #tpu.memory_space<vmem>>, vector<1x64xf32>
    %cst_10 = arith.constant dense<0.000000e+00> : vector<5xf32>
    %8 = vector.multi_reduction <add>, %5, %cst_10 [1] : vector<5x64xf32> to vector<5xf32>
    %9 = vector.shape_cast %8 : vector<5xf32> to vector<5x1xf32>
    %cst_11 = arith.constant 6.400000e+01 : f32
    %10 = vector.broadcast %cst_11 : f32 to vector<5x1xf32>
    %11 = arith.divf %9, %10 : vector<5x1xf32>
    %12 = vector.broadcast %11 : vector<5x1xf32> to vector<5x64xf32>
    %13 = arith.subf %5, %12 : vector<5x64xf32>
    %14 = arith.mulf %13, %13 : vector<5x64xf32>
    %cst_12 = arith.constant dense<0.000000e+00> : vector<5xf32>
    %15 = vector.multi_reduction <add>, %14, %cst_12 [1] : vector<5x64xf32> to vector<5xf32>
    %16 = vector.shape_cast %15 : vector<5xf32> to vector<5x1xf32>
    %cst_13 = arith.constant 6.400000e+01 : f32
    %17 = vector.broadcast %cst_13 : f32 to vector<5x1xf32>
    %18 = arith.divf %16, %17 : vector<5x1xf32>
    %19 = vector.broadcast %11 : vector<5x1xf32> to vector<5x64xf32>
    %20 = arith.subf %5, %19 : vector<5x64xf32>
    %cst_14 = arith.constant 9.99999974E-6 : f32
    %21 = vector.broadcast %cst_14 : f32 to vector<5x1xf32>
    %22 = arith.addf %18, %21 : vector<5x1xf32>
    %23 = math.rsqrt %22 : vector<5x1xf32>
    %24 = vector.broadcast %23 : vector<5x1xf32> to vector<5x64xf32>
    %25 = arith.mulf %20, %24 : vector<5x64xf32>
    %26 = vector.broadcast %6 : vector<1x64xf32> to vector<5x64xf32>
    %27 = arith.mulf %25, %26 : vector<5x64xf32>
    %28 = vector.broadcast %7 : vector<1x64xf32> to vector<5x64xf32>
    %29 = arith.addf %27, %28 : vector<5x64xf32>
    %c0_15 = arith.constant 0 : index
    %c0_16 = arith.constant 0 : index
    %c0_17 = arith.constant 0 : index
    %30 = vector.load %arg6[%c0_15, %c0_16, %c0_17] : memref<2x1x64xf32, #tpu.memory_space<vmem>>, vector<1x1x64xf32>
    %31 = vector.shape_cast %30 : vector<1x1x64xf32> to vector<1x64xf32>
    %c0_18 = arith.constant 0 : index
    %c0_19 = arith.constant 0 : index
    %c0_20 = arith.constant 0 : index
    %32 = vector.load %arg7[%c0_18, %c0_19, %c0_20] : memref<2x1x64xf32, #tpu.memory_space<vmem>>, vector<1x1x64xf32>
    %33 = vector.shape_cast %32 : vector<1x1x64xf32> to vector<1x64xf32>
    %cst_21 = arith.constant dense<0.000000e+00> : vector<5xf32>
    %34 = vector.multi_reduction <add>, %29, %cst_21 [1] : vector<5x64xf32> to vector<5xf32>
    %35 = vector.shape_cast %34 : vector<5xf32> to vector<5x1xf32>
    %cst_22 = arith.constant 6.400000e+01 : f32
    %36 = vector.broadcast %cst_22 : f32 to vector<5x1xf32>
    %37 = arith.divf %35, %36 : vector<5x1xf32>
    %38 = vector.broadcast %37 : vector<5x1xf32> to vector<5x64xf32>
    %39 = arith.subf %29, %38 : vector<5x64xf32>
    %40 = arith.mulf %39, %39 : vector<5x64xf32>
    %cst_23 = arith.constant dense<0.000000e+00> : vector<5xf32>
    %41 = vector.multi_reduction <add>, %40, %cst_23 [1] : vector<5x64xf32> to vector<5xf32>
    %42 = vector.shape_cast %41 : vector<5xf32> to vector<5x1xf32>
    %cst_24 = arith.constant 6.400000e+01 : f32
    %43 = vector.broadcast %cst_24 : f32 to vector<5x1xf32>
    %44 = arith.divf %42, %43 : vector<5x1xf32>
    %45 = vector.broadcast %37 : vector<5x1xf32> to vector<5x64xf32>
    %46 = arith.subf %29, %45 : vector<5x64xf32>
    %cst_25 = arith.constant 9.99999974E-6 : f32
    %47 = vector.broadcast %cst_25 : f32 to vector<5x1xf32>
    %48 = arith.addf %44, %47 : vector<5x1xf32>
    %49 = math.rsqrt %48 : vector<5x1xf32>
    %50 = vector.broadcast %49 : vector<5x1xf32> to vector<5x64xf32>
    %51 = arith.mulf %46, %50 : vector<5x64xf32>
    %52 = vector.broadcast %31 : vector<1x64xf32> to vector<5x64xf32>
    %53 = arith.mulf %51, %52 : vector<5x64xf32>
    %54 = vector.broadcast %33 : vector<1x64xf32> to vector<5x64xf32>
    %55 = arith.addf %53, %54 : vector<5x64xf32>
    %c0_26 = arith.constant 0 : index
    %c0_27 = arith.constant 0 : index
    %c0_28 = arith.constant 0 : index
    %56 = vector.load %arg8[%c0_26, %c0_27, %c0_28] : memref<2x64x192xbf16, #tpu.memory_space<vmem>>, vector<1x64x192xbf16>
    %57 = vector.shape_cast %56 : vector<1x64x192xbf16> to vector<64x192xbf16>
    %c0_29 = arith.constant 0 : index
    %c0_30 = arith.constant 0 : index
    %c0_31 = arith.constant 0 : index
    %58 = vector.load %arg9[%c0_29, %c0_30, %c0_31] : memref<2x1x192xf32, #tpu.memory_space<vmem>>, vector<1x1x192xf32>
    %59 = vector.shape_cast %58 : vector<1x1x192xf32> to vector<1x192xf32>
    %c0_32 = arith.constant 0 : index
    %c0_33 = arith.constant 0 : index
    %c0_34 = arith.constant 0 : index
    %60 = vector.load %arg10[%c0_32, %c0_33, %c0_34] : memref<2x64x64xbf16, #tpu.memory_space<vmem>>, vector<1x64x64xbf16>
    %61 = vector.shape_cast %60 : vector<1x64x64xbf16> to vector<64x64xbf16>
    %c0_35 = arith.constant 0 : index
    %c0_36 = arith.constant 0 : index
    %c0_37 = arith.constant 0 : index
    %62 = vector.load %arg11[%c0_35, %c0_36, %c0_37] : memref<2x1x64xf32, #tpu.memory_space<vmem>>, vector<1x1x64xf32>
    %63 = vector.shape_cast %62 : vector<1x1x64xf32> to vector<1x64xf32>
    %64 = arith.truncf %55 : vector<5x64xf32> to vector<5x64xbf16>
    %cst_38 = arith.constant dense<0.000000e+00> : vector<5x192xf32>
    %65 = tpu.matmul %64, %57, %cst_38 {dimension_numbers = #tpu.dot_dimension_numbers<[1], [0], [0], [1], [0, 0, 1, 1], [], []>} : vector<5x64xbf16>, vector<64x192xbf16>, vector<5x192xf32> -> vector<5x192xf32>
    %66 = vector.broadcast %59 : vector<1x192xf32> to vector<5x192xf32>
    %67 = arith.addf %65, %66 : vector<5x192xf32>
    %68 = vector.extract_strided_slice %67 {offsets = [0, 0], sizes = [5, 16], strides = [1, 1]} : vector<5x192xf32> to vector<5x16xf32>
    %69 = arith.truncf %68 : vector<5x16xf32> to vector<5x16xbf16>
    %70 = vector.extract_strided_slice %67 {offsets = [0, 64], sizes = [5, 16], strides = [1, 1]} : vector<5x192xf32> to vector<5x16xf32>
    %71 = arith.truncf %70 : vector<5x16xf32> to vector<5x16xbf16>
    %72 = vector.extract_strided_slice %67 {offsets = [0, 128], sizes = [5, 16], strides = [1, 1]} : vector<5x192xf32> to vector<5x16xf32>
    %73 = arith.truncf %72 : vector<5x16xf32> to vector<5x16xbf16>
    %cst_39 = arith.constant dense<0.000000e+00> : vector<5x5xf32>
    %74 = tpu.matmul %69, %71, %cst_39 {dimension_numbers = #tpu.dot_dimension_numbers<[1], [1], [0], [0], [0, 0, 1, 0], [], []>} : vector<5x16xbf16>, vector<5x16xbf16>, vector<5x5xf32> -> vector<5x5xf32>
    %cst_40 = arith.constant 2.500000e-01 : f32
    %75 = vector.broadcast %cst_40 : f32 to vector<5x5xf32>
    %76 = arith.mulf %74, %75 : vector<5x5xf32>
    %cst_41 = arith.constant dense<0xFF800000> : vector<5xf32>
    %77 = vector.multi_reduction <maximumf>, %76, %cst_41 [1] : vector<5x5xf32> to vector<5xf32>
    %78 = vector.shape_cast %77 : vector<5xf32> to vector<5x1xf32>
    %79 = vector.broadcast %78 : vector<5x1xf32> to vector<5x5xf32>
    %80 = arith.subf %76, %79 : vector<5x5xf32>
    %81 = math.exp %80 : vector<5x5xf32>
    %cst_42 = arith.constant dense<0.000000e+00> : vector<5xf32>
    %82 = vector.multi_reduction <add>, %81, %cst_42 [1] : vector<5x5xf32> to vector<5xf32>
    %83 = vector.shape_cast %82 : vector<5xf32> to vector<5x1xf32>
    %84 = tpu.reciprocal %83 {approx = true} : vector<5x1xf32> -> vector<5x1xf32>
    %85 = vector.broadcast %84 : vector<5x1xf32> to vector<5x5xf32>
    %86 = arith.mulf %81, %85 : vector<5x5xf32>
    %87 = arith.truncf %86 : vector<5x5xf32> to vector<5x5xbf16>
    %cst_43 = arith.constant dense<0.000000e+00> : vector<5x16xf32>
    %88 = tpu.matmul %87, %73, %cst_43 {dimension_numbers = #tpu.dot_dimension_numbers<[1], [0], [0], [1], [0, 0, 1, 1], [], []>} : vector<5x5xbf16>, vector<5x16xbf16>, vector<5x16xf32> -> vector<5x16xf32>
    %89 = vector.extract_strided_slice %67 {offsets = [0, 16], sizes = [5, 16], strides = [1, 1]} : vector<5x192xf32> to vector<5x16xf32>
    %90 = arith.truncf %89 : vector<5x16xf32> to vector<5x16xbf16>
    %91 = vector.extract_strided_slice %67 {offsets = [0, 80], sizes = [5, 16], strides = [1, 1]} : vector<5x192xf32> to vector<5x16xf32>
    %92 = arith.truncf %91 : vector<5x16xf32> to vector<5x16xbf16>
    %93 = vector.extract_strided_slice %67 {offsets = [0, 144], sizes = [5, 16], strides = [1, 1]} : vector<5x192xf32> to vector<5x16xf32>
    %94 = arith.truncf %93 : vector<5x16xf32> to vector<5x16xbf16>
    %cst_44 = arith.constant dense<0.000000e+00> : vector<5x5xf32>
    %95 = tpu.matmul %90, %92, %cst_44 {dimension_numbers = #tpu.dot_dimension_numbers<[1], [1], [0], [0], [0, 0, 1, 0], [], []>} : vector<5x16xbf16>, vector<5x16xbf16>, vector<5x5xf32> -> vector<5x5xf32>
    %cst_45 = arith.constant 2.500000e-01 : f32
    %96 = vector.broadcast %cst_45 : f32 to vector<5x5xf32>
    %97 = arith.mulf %95, %96 : vector<5x5xf32>
    %cst_46 = arith.constant dense<0xFF800000> : vector<5xf32>
    %98 = vector.multi_reduction <maximumf>, %97, %cst_46 [1] : vector<5x5xf32> to vector<5xf32>
    %99 = vector.shape_cast %98 : vector<5xf32> to vector<5x1xf32>
    %100 = vector.broadcast %99 : vector<5x1xf32> to vector<5x5xf32>
    %101 = arith.subf %97, %100 : vector<5x5xf32>
    %102 = math.exp %101 : vector<5x5xf32>
    %cst_47 = arith.constant dense<0.000000e+00> : vector<5xf32>
    %103 = vector.multi_reduction <add>, %102, %cst_47 [1] : vector<5x5xf32> to vector<5xf32>
    %104 = vector.shape_cast %103 : vector<5xf32> to vector<5x1xf32>
    %105 = tpu.reciprocal %104 {approx = true} : vector<5x1xf32> -> vector<5x1xf32>
    %106 = vector.broadcast %105 : vector<5x1xf32> to vector<5x5xf32>
    %107 = arith.mulf %102, %106 : vector<5x5xf32>
    %108 = arith.truncf %107 : vector<5x5xf32> to vector<5x5xbf16>
    %cst_48 = arith.constant dense<0.000000e+00> : vector<5x16xf32>
    %109 = tpu.matmul %108, %94, %cst_48 {dimension_numbers = #tpu.dot_dimension_numbers<[1], [0], [0], [1], [0, 0, 1, 1], [], []>} : vector<5x5xbf16>, vector<5x16xbf16>, vector<5x16xf32> -> vector<5x16xf32>
    %110 = vector.extract_strided_slice %67 {offsets = [0, 32], sizes = [5, 16], strides = [1, 1]} : vector<5x192xf32> to vector<5x16xf32>
    %111 = arith.truncf %110 : vector<5x16xf32> to vector<5x16xbf16>
    %112 = vector.extract_strided_slice %67 {offsets = [0, 96], sizes = [5, 16], strides = [1, 1]} : vector<5x192xf32> to vector<5x16xf32>
    %113 = arith.truncf %112 : vector<5x16xf32> to vector<5x16xbf16>
    %114 = vector.extract_strided_slice %67 {offsets = [0, 160], sizes = [5, 16], strides = [1, 1]} : vector<5x192xf32> to vector<5x16xf32>
    %115 = arith.truncf %114 : vector<5x16xf32> to vector<5x16xbf16>
    %cst_49 = arith.constant dense<0.000000e+00> : vector<5x5xf32>
    %116 = tpu.matmul %111, %113, %cst_49 {dimension_numbers = #tpu.dot_dimension_numbers<[1], [1], [0], [0], [0, 0, 1, 0], [], []>} : vector<5x16xbf16>, vector<5x16xbf16>, vector<5x5xf32> -> vector<5x5xf32>
    %cst_50 = arith.constant 2.500000e-01 : f32
    %117 = vector.broadcast %cst_50 : f32 to vector<5x5xf32>
    %118 = arith.mulf %116, %117 : vector<5x5xf32>
    %cst_51 = arith.constant dense<0xFF800000> : vector<5xf32>
    %119 = vector.multi_reduction <maximumf>, %118, %cst_51 [1] : vector<5x5xf32> to vector<5xf32>
    %120 = vector.shape_cast %119 : vector<5xf32> to vector<5x1xf32>
    %121 = vector.broadcast %120 : vector<5x1xf32> to vector<5x5xf32>
    %122 = arith.subf %118, %121 : vector<5x5xf32>
    %123 = math.exp %122 : vector<5x5xf32>
    %cst_52 = arith.constant dense<0.000000e+00> : vector<5xf32>
    %124 = vector.multi_reduction <add>, %123, %cst_52 [1] : vector<5x5xf32> to vector<5xf32>
    %125 = vector.shape_cast %124 : vector<5xf32> to vector<5x1xf32>
    %126 = tpu.reciprocal %125 {approx = true} : vector<5x1xf32> -> vector<5x1xf32>
    %127 = vector.broadcast %126 : vector<5x1xf32> to vector<5x5xf32>
    %128 = arith.mulf %123, %127 : vector<5x5xf32>
    %129 = arith.truncf %128 : vector<5x5xf32> to vector<5x5xbf16>
    %cst_53 = arith.constant dense<0.000000e+00> : vector<5x16xf32>
    %130 = tpu.matmul %129, %115, %cst_53 {dimension_numbers = #tpu.dot_dimension_numbers<[1], [0], [0], [1], [0, 0, 1, 1], [], []>} : vector<5x5xbf16>, vector<5x16xbf16>, vector<5x16xf32> -> vector<5x16xf32>
    %131 = vector.extract_strided_slice %67 {offsets = [0, 48], sizes = [5, 16], strides = [1, 1]} : vector<5x192xf32> to vector<5x16xf32>
    %132 = arith.truncf %131 : vector<5x16xf32> to vector<5x16xbf16>
    %133 = vector.extract_strided_slice %67 {offsets = [0, 112], sizes = [5, 16], strides = [1, 1]} : vector<5x192xf32> to vector<5x16xf32>
    %134 = arith.truncf %133 : vector<5x16xf32> to vector<5x16xbf16>
    %135 = vector.extract_strided_slice %67 {offsets = [0, 176], sizes = [5, 16], strides = [1, 1]} : vector<5x192xf32> to vector<5x16xf32>
    %136 = arith.truncf %135 : vector<5x16xf32> to vector<5x16xbf16>
    %cst_54 = arith.constant dense<0.000000e+00> : vector<5x5xf32>
    %137 = tpu.matmul %132, %134, %cst_54 {dimension_numbers = #tpu.dot_dimension_numbers<[1], [1], [0], [0], [0, 0, 1, 0], [], []>} : vector<5x16xbf16>, vector<5x16xbf16>, vector<5x5xf32> -> vector<5x5xf32>
    %cst_55 = arith.constant 2.500000e-01 : f32
    %138 = vector.broadcast %cst_55 : f32 to vector<5x5xf32>
    %139 = arith.mulf %137, %138 : vector<5x5xf32>
    %cst_56 = arith.constant dense<0xFF800000> : vector<5xf32>
    %140 = vector.multi_reduction <maximumf>, %139, %cst_56 [1] : vector<5x5xf32> to vector<5xf32>
    %141 = vector.shape_cast %140 : vector<5xf32> to vector<5x1xf32>
    %142 = vector.broadcast %141 : vector<5x1xf32> to vector<5x5xf32>
    %143 = arith.subf %139, %142 : vector<5x5xf32>
    %144 = math.exp %143 : vector<5x5xf32>
    %cst_57 = arith.constant dense<0.000000e+00> : vector<5xf32>
    %145 = vector.multi_reduction <add>, %144, %cst_57 [1] : vector<5x5xf32> to vector<5xf32>
    %146 = vector.shape_cast %145 : vector<5xf32> to vector<5x1xf32>
    %147 = tpu.reciprocal %146 {approx = true} : vector<5x1xf32> -> vector<5x1xf32>
    %148 = vector.broadcast %147 : vector<5x1xf32> to vector<5x5xf32>
    %149 = arith.mulf %144, %148 : vector<5x5xf32>
    %150 = arith.truncf %149 : vector<5x5xf32> to vector<5x5xbf16>
    %cst_58 = arith.constant dense<0.000000e+00> : vector<5x16xf32>
    %151 = tpu.matmul %150, %136, %cst_58 {dimension_numbers = #tpu.dot_dimension_numbers<[1], [0], [0], [1], [0, 0, 1, 1], [], []>} : vector<5x5xbf16>, vector<5x16xbf16>, vector<5x16xf32> -> vector<5x16xf32>
    %152 = tpu.concatenate %88, %109, %130, %151 in 1 : vector<5x16xf32>, vector<5x16xf32>, vector<5x16xf32>, vector<5x16xf32> -> vector<5x64xf32>
    %153 = arith.truncf %152 : vector<5x64xf32> to vector<5x64xbf16>
    %cst_59 = arith.constant dense<0.000000e+00> : vector<5x64xf32>
    %154 = tpu.matmul %153, %61, %cst_59 {dimension_numbers = #tpu.dot_dimension_numbers<[1], [0], [0], [1], [0, 0, 1, 1], [], []>} : vector<5x64xbf16>, vector<64x64xbf16>, vector<5x64xf32> -> vector<5x64xf32>
    %155 = vector.broadcast %63 : vector<1x64xf32> to vector<5x64xf32>
    %156 = arith.addf %154, %155 : vector<5x64xf32>
    %157 = arith.addf %29, %156 : vector<5x64xf32>
    %c0_60 = arith.constant 0 : index
    %c0_61 = arith.constant 0 : index
    %c0_62 = arith.constant 0 : index
    %158 = vector.load %arg12[%c0_60, %c0_61, %c0_62] : memref<2x1x64xf32, #tpu.memory_space<vmem>>, vector<1x1x64xf32>
    %159 = vector.shape_cast %158 : vector<1x1x64xf32> to vector<1x64xf32>
    %c0_63 = arith.constant 0 : index
    %c0_64 = arith.constant 0 : index
    %c0_65 = arith.constant 0 : index
    %160 = vector.load %arg13[%c0_63, %c0_64, %c0_65] : memref<2x1x64xf32, #tpu.memory_space<vmem>>, vector<1x1x64xf32>
    %161 = vector.shape_cast %160 : vector<1x1x64xf32> to vector<1x64xf32>
    %cst_66 = arith.constant dense<0.000000e+00> : vector<5xf32>
    %162 = vector.multi_reduction <add>, %157, %cst_66 [1] : vector<5x64xf32> to vector<5xf32>
    %163 = vector.shape_cast %162 : vector<5xf32> to vector<5x1xf32>
    %cst_67 = arith.constant 6.400000e+01 : f32
    %164 = vector.broadcast %cst_67 : f32 to vector<5x1xf32>
    %165 = arith.divf %163, %164 : vector<5x1xf32>
    %166 = vector.broadcast %165 : vector<5x1xf32> to vector<5x64xf32>
    %167 = arith.subf %157, %166 : vector<5x64xf32>
    %168 = arith.mulf %167, %167 : vector<5x64xf32>
    %cst_68 = arith.constant dense<0.000000e+00> : vector<5xf32>
    %169 = vector.multi_reduction <add>, %168, %cst_68 [1] : vector<5x64xf32> to vector<5xf32>
    %170 = vector.shape_cast %169 : vector<5xf32> to vector<5x1xf32>
    %cst_69 = arith.constant 6.400000e+01 : f32
    %171 = vector.broadcast %cst_69 : f32 to vector<5x1xf32>
    %172 = arith.divf %170, %171 : vector<5x1xf32>
    %173 = vector.broadcast %165 : vector<5x1xf32> to vector<5x64xf32>
    %174 = arith.subf %157, %173 : vector<5x64xf32>
    %cst_70 = arith.constant 9.99999974E-6 : f32
    %175 = vector.broadcast %cst_70 : f32 to vector<5x1xf32>
    %176 = arith.addf %172, %175 : vector<5x1xf32>
    %177 = math.rsqrt %176 : vector<5x1xf32>
    %178 = vector.broadcast %177 : vector<5x1xf32> to vector<5x64xf32>
    %179 = arith.mulf %174, %178 : vector<5x64xf32>
    %180 = vector.broadcast %159 : vector<1x64xf32> to vector<5x64xf32>
    %181 = arith.mulf %179, %180 : vector<5x64xf32>
    %182 = vector.broadcast %161 : vector<1x64xf32> to vector<5x64xf32>
    %183 = arith.addf %181, %182 : vector<5x64xf32>
    %c0_71 = arith.constant 0 : index
    %c0_72 = arith.constant 0 : index
    %c0_73 = arith.constant 0 : index
    %184 = vector.load %arg14[%c0_71, %c0_72, %c0_73] : memref<2x64x256xbf16, #tpu.memory_space<vmem>>, vector<1x64x256xbf16>
    %185 = vector.shape_cast %184 : vector<1x64x256xbf16> to vector<64x256xbf16>
    %c0_74 = arith.constant 0 : index
    %c0_75 = arith.constant 0 : index
    %c0_76 = arith.constant 0 : index
    %186 = vector.load %arg15[%c0_74, %c0_75, %c0_76] : memref<2x1x256xf32, #tpu.memory_space<vmem>>, vector<1x1x256xf32>
    %187 = vector.shape_cast %186 : vector<1x1x256xf32> to vector<1x256xf32>
    %c0_77 = arith.constant 0 : index
    %c0_78 = arith.constant 0 : index
    %c0_79 = arith.constant 0 : index
    %188 = vector.load %arg16[%c0_77, %c0_78, %c0_79] : memref<2x256x64xbf16, #tpu.memory_space<vmem>>, vector<1x256x64xbf16>
    %189 = vector.shape_cast %188 : vector<1x256x64xbf16> to vector<256x64xbf16>
    %c0_80 = arith.constant 0 : index
    %c0_81 = arith.constant 0 : index
    %c0_82 = arith.constant 0 : index
    %190 = vector.load %arg17[%c0_80, %c0_81, %c0_82] : memref<2x1x64xf32, #tpu.memory_space<vmem>>, vector<1x1x64xf32>
    %191 = vector.shape_cast %190 : vector<1x1x64xf32> to vector<1x64xf32>
    %192 = arith.truncf %183 : vector<5x64xf32> to vector<5x64xbf16>
    %cst_83 = arith.constant dense<0.000000e+00> : vector<5x256xf32>
    %193 = tpu.matmul %192, %185, %cst_83 {dimension_numbers = #tpu.dot_dimension_numbers<[1], [0], [0], [1], [0, 0, 1, 1], [], []>} : vector<5x64xbf16>, vector<64x256xbf16>, vector<5x256xf32> -> vector<5x256xf32>
    %194 = vector.broadcast %187 : vector<1x256xf32> to vector<5x256xf32>
    %195 = arith.addf %193, %194 : vector<5x256xf32>
    %cst_84 = arith.constant 1.702000e+00 : f32
    %196 = vector.broadcast %cst_84 : f32 to vector<5x256xf32>
    %197 = arith.mulf %196, %195 : vector<5x256xf32>
    %198 = arith.negf %197 : vector<5x256xf32>
    %199 = math.exp %198 : vector<5x256xf32>
    %cst_85 = arith.constant 1.000000e+00 : f32
    %200 = vector.broadcast %cst_85 : f32 to vector<5x256xf32>
    %201 = arith.addf %200, %199 : vector<5x256xf32>
    %202 = arith.divf %200, %201 : vector<5x256xf32>
    %203 = arith.mulf %195, %202 : vector<5x256xf32>
    %204 = arith.truncf %203 : vector<5x256xf32> to vector<5x256xbf16>
    %cst_86 = arith.constant dense<0.000000e+00> : vector<5x64xf32>
    %205 = tpu.matmul %204, %189, %cst_86 {dimension_numbers = #tpu.dot_dimension_numbers<[1], [0], [0], [1], [0, 0, 1, 1], [], []>} : vector<5x256xbf16>, vector<256x64xbf16>, vector<5x64xf32> -> vector<5x64xf32>
    %206 = vector.broadcast %191 : vector<1x64xf32> to vector<5x64xf32>
    %207 = arith.addf %205, %206 : vector<5x64xf32>
    %208 = arith.addf %157, %207 : vector<5x64xf32>
    %c1 = arith.constant 1 : index
    %c0_87 = arith.constant 0 : index
    %c0_88 = arith.constant 0 : index
    %209 = vector.load %arg6[%c1, %c0_87, %c0_88] : memref<2x1x64xf32, #tpu.memory_space<vmem>>, vector<1x1x64xf32>
    %210 = vector.shape_cast %209 : vector<1x1x64xf32> to vector<1x64xf32>
    %c1_89 = arith.constant 1 : index
    %c0_90 = arith.constant 0 : index
    %c0_91 = arith.constant 0 : index
    %211 = vector.load %arg7[%c1_89, %c0_90, %c0_91] : memref<2x1x64xf32, #tpu.memory_space<vmem>>, vector<1x1x64xf32>
    %212 = vector.shape_cast %211 : vector<1x1x64xf32> to vector<1x64xf32>
    %cst_92 = arith.constant dense<0.000000e+00> : vector<5xf32>
    %213 = vector.multi_reduction <add>, %208, %cst_92 [1] : vector<5x64xf32> to vector<5xf32>
    %214 = vector.shape_cast %213 : vector<5xf32> to vector<5x1xf32>
    %cst_93 = arith.constant 6.400000e+01 : f32
    %215 = vector.broadcast %cst_93 : f32 to vector<5x1xf32>
    %216 = arith.divf %214, %215 : vector<5x1xf32>
    %217 = vector.broadcast %216 : vector<5x1xf32> to vector<5x64xf32>
    %218 = arith.subf %208, %217 : vector<5x64xf32>
    %219 = arith.mulf %218, %218 : vector<5x64xf32>
    %cst_94 = arith.constant dense<0.000000e+00> : vector<5xf32>
    %220 = vector.multi_reduction <add>, %219, %cst_94 [1] : vector<5x64xf32> to vector<5xf32>
    %221 = vector.shape_cast %220 : vector<5xf32> to vector<5x1xf32>
    %cst_95 = arith.constant 6.400000e+01 : f32
    %222 = vector.broadcast %cst_95 : f32 to vector<5x1xf32>
    %223 = arith.divf %221, %222 : vector<5x1xf32>
    %224 = vector.broadcast %216 : vector<5x1xf32> to vector<5x64xf32>
    %225 = arith.subf %208, %224 : vector<5x64xf32>
    %cst_96 = arith.constant 9.99999974E-6 : f32
    %226 = vector.broadcast %cst_96 : f32 to vector<5x1xf32>
    %227 = arith.addf %223, %226 : vector<5x1xf32>
    %228 = math.rsqrt %227 : vector<5x1xf32>
    %229 = vector.broadcast %228 : vector<5x1xf32> to vector<5x64xf32>
    %230 = arith.mulf %225, %229 : vector<5x64xf32>
    %231 = vector.broadcast %210 : vector<1x64xf32> to vector<5x64xf32>
    %232 = arith.mulf %230, %231 : vector<5x64xf32>
    %233 = vector.broadcast %212 : vector<1x64xf32> to vector<5x64xf32>
    %234 = arith.addf %232, %233 : vector<5x64xf32>
    %c1_97 = arith.constant 1 : index
    %c0_98 = arith.constant 0 : index
    %c0_99 = arith.constant 0 : index
    %235 = vector.load %arg8[%c1_97, %c0_98, %c0_99] : memref<2x64x192xbf16, #tpu.memory_space<vmem>>, vector<1x64x192xbf16>
    %236 = vector.shape_cast %235 : vector<1x64x192xbf16> to vector<64x192xbf16>
    %c1_100 = arith.constant 1 : index
    %c0_101 = arith.constant 0 : index
    %c0_102 = arith.constant 0 : index
    %237 = vector.load %arg9[%c1_100, %c0_101, %c0_102] : memref<2x1x192xf32, #tpu.memory_space<vmem>>, vector<1x1x192xf32>
    %238 = vector.shape_cast %237 : vector<1x1x192xf32> to vector<1x192xf32>
    %c1_103 = arith.constant 1 : index
    %c0_104 = arith.constant 0 : index
    %c0_105 = arith.constant 0 : index
    %239 = vector.load %arg10[%c1_103, %c0_104, %c0_105] : memref<2x64x64xbf16, #tpu.memory_space<vmem>>, vector<1x64x64xbf16>
    %240 = vector.shape_cast %239 : vector<1x64x64xbf16> to vector<64x64xbf16>
    %c1_106 = arith.constant 1 : index
    %c0_107 = arith.constant 0 : index
    %c0_108 = arith.constant 0 : index
    %241 = vector.load %arg11[%c1_106, %c0_107, %c0_108] : memref<2x1x64xf32, #tpu.memory_space<vmem>>, vector<1x1x64xf32>
    %242 = vector.shape_cast %241 : vector<1x1x64xf32> to vector<1x64xf32>
    %243 = arith.truncf %234 : vector<5x64xf32> to vector<5x64xbf16>
    %cst_109 = arith.constant dense<0.000000e+00> : vector<5x192xf32>
    %244 = tpu.matmul %243, %236, %cst_109 {dimension_numbers = #tpu.dot_dimension_numbers<[1], [0], [0], [1], [0, 0, 1, 1], [], []>} : vector<5x64xbf16>, vector<64x192xbf16>, vector<5x192xf32> -> vector<5x192xf32>
    %245 = vector.broadcast %238 : vector<1x192xf32> to vector<5x192xf32>
    %246 = arith.addf %244, %245 : vector<5x192xf32>
    %247 = vector.extract_strided_slice %246 {offsets = [0, 0], sizes = [5, 16], strides = [1, 1]} : vector<5x192xf32> to vector<5x16xf32>
    %248 = arith.truncf %247 : vector<5x16xf32> to vector<5x16xbf16>
    %249 = vector.extract_strided_slice %246 {offsets = [0, 64], sizes = [5, 16], strides = [1, 1]} : vector<5x192xf32> to vector<5x16xf32>
    %250 = arith.truncf %249 : vector<5x16xf32> to vector<5x16xbf16>
    %251 = vector.extract_strided_slice %246 {offsets = [0, 128], sizes = [5, 16], strides = [1, 1]} : vector<5x192xf32> to vector<5x16xf32>
    %252 = arith.truncf %251 : vector<5x16xf32> to vector<5x16xbf16>
    %cst_110 = arith.constant dense<0.000000e+00> : vector<5x5xf32>
    %253 = tpu.matmul %248, %250, %cst_110 {dimension_numbers = #tpu.dot_dimension_numbers<[1], [1], [0], [0], [0, 0, 1, 0], [], []>} : vector<5x16xbf16>, vector<5x16xbf16>, vector<5x5xf32> -> vector<5x5xf32>
    %cst_111 = arith.constant 2.500000e-01 : f32
    %254 = vector.broadcast %cst_111 : f32 to vector<5x5xf32>
    %255 = arith.mulf %253, %254 : vector<5x5xf32>
    %cst_112 = arith.constant dense<0xFF800000> : vector<5xf32>
    %256 = vector.multi_reduction <maximumf>, %255, %cst_112 [1] : vector<5x5xf32> to vector<5xf32>
    %257 = vector.shape_cast %256 : vector<5xf32> to vector<5x1xf32>
    %258 = vector.broadcast %257 : vector<5x1xf32> to vector<5x5xf32>
    %259 = arith.subf %255, %258 : vector<5x5xf32>
    %260 = math.exp %259 : vector<5x5xf32>
    %cst_113 = arith.constant dense<0.000000e+00> : vector<5xf32>
    %261 = vector.multi_reduction <add>, %260, %cst_113 [1] : vector<5x5xf32> to vector<5xf32>
    %262 = vector.shape_cast %261 : vector<5xf32> to vector<5x1xf32>
    %263 = tpu.reciprocal %262 {approx = true} : vector<5x1xf32> -> vector<5x1xf32>
    %264 = vector.broadcast %263 : vector<5x1xf32> to vector<5x5xf32>
    %265 = arith.mulf %260, %264 : vector<5x5xf32>
    %266 = arith.truncf %265 : vector<5x5xf32> to vector<5x5xbf16>
    %cst_114 = arith.constant dense<0.000000e+00> : vector<5x16xf32>
    %267 = tpu.matmul %266, %252, %cst_114 {dimension_numbers = #tpu.dot_dimension_numbers<[1], [0], [0], [1], [0, 0, 1, 1], [], []>} : vector<5x5xbf16>, vector<5x16xbf16>, vector<5x16xf32> -> vector<5x16xf32>
    %268 = vector.extract_strided_slice %246 {offsets = [0, 16], sizes = [5, 16], strides = [1, 1]} : vector<5x192xf32> to vector<5x16xf32>
    %269 = arith.truncf %268 : vector<5x16xf32> to vector<5x16xbf16>
    %270 = vector.extract_strided_slice %246 {offsets = [0, 80], sizes = [5, 16], strides = [1, 1]} : vector<5x192xf32> to vector<5x16xf32>
    %271 = arith.truncf %270 : vector<5x16xf32> to vector<5x16xbf16>
    %272 = vector.extract_strided_slice %246 {offsets = [0, 144], sizes = [5, 16], strides = [1, 1]} : vector<5x192xf32> to vector<5x16xf32>
    %273 = arith.truncf %272 : vector<5x16xf32> to vector<5x16xbf16>
    %cst_115 = arith.constant dense<0.000000e+00> : vector<5x5xf32>
    %274 = tpu.matmul %269, %271, %cst_115 {dimension_numbers = #tpu.dot_dimension_numbers<[1], [1], [0], [0], [0, 0, 1, 0], [], []>} : vector<5x16xbf16>, vector<5x16xbf16>, vector<5x5xf32> -> vector<5x5xf32>
    %cst_116 = arith.constant 2.500000e-01 : f32
    %275 = vector.broadcast %cst_116 : f32 to vector<5x5xf32>
    %276 = arith.mulf %274, %275 : vector<5x5xf32>
    %cst_117 = arith.constant dense<0xFF800000> : vector<5xf32>
    %277 = vector.multi_reduction <maximumf>, %276, %cst_117 [1] : vector<5x5xf32> to vector<5xf32>
    %278 = vector.shape_cast %277 : vector<5xf32> to vector<5x1xf32>
    %279 = vector.broadcast %278 : vector<5x1xf32> to vector<5x5xf32>
    %280 = arith.subf %276, %279 : vector<5x5xf32>
    %281 = math.exp %280 : vector<5x5xf32>
    %cst_118 = arith.constant dense<0.000000e+00> : vector<5xf32>
    %282 = vector.multi_reduction <add>, %281, %cst_118 [1] : vector<5x5xf32> to vector<5xf32>
    %283 = vector.shape_cast %282 : vector<5xf32> to vector<5x1xf32>
    %284 = tpu.reciprocal %283 {approx = true} : vector<5x1xf32> -> vector<5x1xf32>
    %285 = vector.broadcast %284 : vector<5x1xf32> to vector<5x5xf32>
    %286 = arith.mulf %281, %285 : vector<5x5xf32>
    %287 = arith.truncf %286 : vector<5x5xf32> to vector<5x5xbf16>
    %cst_119 = arith.constant dense<0.000000e+00> : vector<5x16xf32>
    %288 = tpu.matmul %287, %273, %cst_119 {dimension_numbers = #tpu.dot_dimension_numbers<[1], [0], [0], [1], [0, 0, 1, 1], [], []>} : vector<5x5xbf16>, vector<5x16xbf16>, vector<5x16xf32> -> vector<5x16xf32>
    %289 = vector.extract_strided_slice %246 {offsets = [0, 32], sizes = [5, 16], strides = [1, 1]} : vector<5x192xf32> to vector<5x16xf32>
    %290 = arith.truncf %289 : vector<5x16xf32> to vector<5x16xbf16>
    %291 = vector.extract_strided_slice %246 {offsets = [0, 96], sizes = [5, 16], strides = [1, 1]} : vector<5x192xf32> to vector<5x16xf32>
    %292 = arith.truncf %291 : vector<5x16xf32> to vector<5x16xbf16>
    %293 = vector.extract_strided_slice %246 {offsets = [0, 160], sizes = [5, 16], strides = [1, 1]} : vector<5x192xf32> to vector<5x16xf32>
    %294 = arith.truncf %293 : vector<5x16xf32> to vector<5x16xbf16>
    %cst_120 = arith.constant dense<0.000000e+00> : vector<5x5xf32>
    %295 = tpu.matmul %290, %292, %cst_120 {dimension_numbers = #tpu.dot_dimension_numbers<[1], [1], [0], [0], [0, 0, 1, 0], [], []>} : vector<5x16xbf16>, vector<5x16xbf16>, vector<5x5xf32> -> vector<5x5xf32>
    %cst_121 = arith.constant 2.500000e-01 : f32
    %296 = vector.broadcast %cst_121 : f32 to vector<5x5xf32>
    %297 = arith.mulf %295, %296 : vector<5x5xf32>
    %cst_122 = arith.constant dense<0xFF800000> : vector<5xf32>
    %298 = vector.multi_reduction <maximumf>, %297, %cst_122 [1] : vector<5x5xf32> to vector<5xf32>
    %299 = vector.shape_cast %298 : vector<5xf32> to vector<5x1xf32>
    %300 = vector.broadcast %299 : vector<5x1xf32> to vector<5x5xf32>
    %301 = arith.subf %297, %300 : vector<5x5xf32>
    %302 = math.exp %301 : vector<5x5xf32>
    %cst_123 = arith.constant dense<0.000000e+00> : vector<5xf32>
    %303 = vector.multi_reduction <add>, %302, %cst_123 [1] : vector<5x5xf32> to vector<5xf32>
    %304 = vector.shape_cast %303 : vector<5xf32> to vector<5x1xf32>
    %305 = tpu.reciprocal %304 {approx = true} : vector<5x1xf32> -> vector<5x1xf32>
    %306 = vector.broadcast %305 : vector<5x1xf32> to vector<5x5xf32>
    %307 = arith.mulf %302, %306 : vector<5x5xf32>
    %308 = arith.truncf %307 : vector<5x5xf32> to vector<5x5xbf16>
    %cst_124 = arith.constant dense<0.000000e+00> : vector<5x16xf32>
    %309 = tpu.matmul %308, %294, %cst_124 {dimension_numbers = #tpu.dot_dimension_numbers<[1], [0], [0], [1], [0, 0, 1, 1], [], []>} : vector<5x5xbf16>, vector<5x16xbf16>, vector<5x16xf32> -> vector<5x16xf32>
    %310 = vector.extract_strided_slice %246 {offsets = [0, 48], sizes = [5, 16], strides = [1, 1]} : vector<5x192xf32> to vector<5x16xf32>
    %311 = arith.truncf %310 : vector<5x16xf32> to vector<5x16xbf16>
    %312 = vector.extract_strided_slice %246 {offsets = [0, 112], sizes = [5, 16], strides = [1, 1]} : vector<5x192xf32> to vector<5x16xf32>
    %313 = arith.truncf %312 : vector<5x16xf32> to vector<5x16xbf16>
    %314 = vector.extract_strided_slice %246 {offsets = [0, 176], sizes = [5, 16], strides = [1, 1]} : vector<5x192xf32> to vector<5x16xf32>
    %315 = arith.truncf %314 : vector<5x16xf32> to vector<5x16xbf16>
    %cst_125 = arith.constant dense<0.000000e+00> : vector<5x5xf32>
    %316 = tpu.matmul %311, %313, %cst_125 {dimension_numbers = #tpu.dot_dimension_numbers<[1], [1], [0], [0], [0, 0, 1, 0], [], []>} : vector<5x16xbf16>, vector<5x16xbf16>, vector<5x5xf32> -> vector<5x5xf32>
    %cst_126 = arith.constant 2.500000e-01 : f32
    %317 = vector.broadcast %cst_126 : f32 to vector<5x5xf32>
    %318 = arith.mulf %316, %317 : vector<5x5xf32>
    %cst_127 = arith.constant dense<0xFF800000> : vector<5xf32>
    %319 = vector.multi_reduction <maximumf>, %318, %cst_127 [1] : vector<5x5xf32> to vector<5xf32>
    %320 = vector.shape_cast %319 : vector<5xf32> to vector<5x1xf32>
    %321 = vector.broadcast %320 : vector<5x1xf32> to vector<5x5xf32>
    %322 = arith.subf %318, %321 : vector<5x5xf32>
    %323 = math.exp %322 : vector<5x5xf32>
    %cst_128 = arith.constant dense<0.000000e+00> : vector<5xf32>
    %324 = vector.multi_reduction <add>, %323, %cst_128 [1] : vector<5x5xf32> to vector<5xf32>
    %325 = vector.shape_cast %324 : vector<5xf32> to vector<5x1xf32>
    %326 = tpu.reciprocal %325 {approx = true} : vector<5x1xf32> -> vector<5x1xf32>
    %327 = vector.broadcast %326 : vector<5x1xf32> to vector<5x5xf32>
    %328 = arith.mulf %323, %327 : vector<5x5xf32>
    %329 = arith.truncf %328 : vector<5x5xf32> to vector<5x5xbf16>
    %cst_129 = arith.constant dense<0.000000e+00> : vector<5x16xf32>
    %330 = tpu.matmul %329, %315, %cst_129 {dimension_numbers = #tpu.dot_dimension_numbers<[1], [0], [0], [1], [0, 0, 1, 1], [], []>} : vector<5x5xbf16>, vector<5x16xbf16>, vector<5x16xf32> -> vector<5x16xf32>
    %331 = tpu.concatenate %267, %288, %309, %330 in 1 : vector<5x16xf32>, vector<5x16xf32>, vector<5x16xf32>, vector<5x16xf32> -> vector<5x64xf32>
    %332 = arith.truncf %331 : vector<5x64xf32> to vector<5x64xbf16>
    %cst_130 = arith.constant dense<0.000000e+00> : vector<5x64xf32>
    %333 = tpu.matmul %332, %240, %cst_130 {dimension_numbers = #tpu.dot_dimension_numbers<[1], [0], [0], [1], [0, 0, 1, 1], [], []>} : vector<5x64xbf16>, vector<64x64xbf16>, vector<5x64xf32> -> vector<5x64xf32>
    %334 = vector.broadcast %242 : vector<1x64xf32> to vector<5x64xf32>
    %335 = arith.addf %333, %334 : vector<5x64xf32>
    %336 = arith.addf %208, %335 : vector<5x64xf32>
    %c1_131 = arith.constant 1 : index
    %c0_132 = arith.constant 0 : index
    %c0_133 = arith.constant 0 : index
    %337 = vector.load %arg12[%c1_131, %c0_132, %c0_133] : memref<2x1x64xf32, #tpu.memory_space<vmem>>, vector<1x1x64xf32>
    %338 = vector.shape_cast %337 : vector<1x1x64xf32> to vector<1x64xf32>
    %c1_134 = arith.constant 1 : index
    %c0_135 = arith.constant 0 : index
    %c0_136 = arith.constant 0 : index
    %339 = vector.load %arg13[%c1_134, %c0_135, %c0_136] : memref<2x1x64xf32, #tpu.memory_space<vmem>>, vector<1x1x64xf32>
    %340 = vector.shape_cast %339 : vector<1x1x64xf32> to vector<1x64xf32>
    %cst_137 = arith.constant dense<0.000000e+00> : vector<5xf32>
    %341 = vector.multi_reduction <add>, %336, %cst_137 [1] : vector<5x64xf32> to vector<5xf32>
    %342 = vector.shape_cast %341 : vector<5xf32> to vector<5x1xf32>
    %cst_138 = arith.constant 6.400000e+01 : f32
    %343 = vector.broadcast %cst_138 : f32 to vector<5x1xf32>
    %344 = arith.divf %342, %343 : vector<5x1xf32>
    %345 = vector.broadcast %344 : vector<5x1xf32> to vector<5x64xf32>
    %346 = arith.subf %336, %345 : vector<5x64xf32>
    %347 = arith.mulf %346, %346 : vector<5x64xf32>
    %cst_139 = arith.constant dense<0.000000e+00> : vector<5xf32>
    %348 = vector.multi_reduction <add>, %347, %cst_139 [1] : vector<5x64xf32> to vector<5xf32>
    %349 = vector.shape_cast %348 : vector<5xf32> to vector<5x1xf32>
    %cst_140 = arith.constant 6.400000e+01 : f32
    %350 = vector.broadcast %cst_140 : f32 to vector<5x1xf32>
    %351 = arith.divf %349, %350 : vector<5x1xf32>
    %352 = vector.broadcast %344 : vector<5x1xf32> to vector<5x64xf32>
    %353 = arith.subf %336, %352 : vector<5x64xf32>
    %cst_141 = arith.constant 9.99999974E-6 : f32
    %354 = vector.broadcast %cst_141 : f32 to vector<5x1xf32>
    %355 = arith.addf %351, %354 : vector<5x1xf32>
    %356 = math.rsqrt %355 : vector<5x1xf32>
    %357 = vector.broadcast %356 : vector<5x1xf32> to vector<5x64xf32>
    %358 = arith.mulf %353, %357 : vector<5x64xf32>
    %359 = vector.broadcast %338 : vector<1x64xf32> to vector<5x64xf32>
    %360 = arith.mulf %358, %359 : vector<5x64xf32>
    %361 = vector.broadcast %340 : vector<1x64xf32> to vector<5x64xf32>
    %362 = arith.addf %360, %361 : vector<5x64xf32>
    %c1_142 = arith.constant 1 : index
    %c0_143 = arith.constant 0 : index
    %c0_144 = arith.constant 0 : index
    %363 = vector.load %arg14[%c1_142, %c0_143, %c0_144] : memref<2x64x256xbf16, #tpu.memory_space<vmem>>, vector<1x64x256xbf16>
    %364 = vector.shape_cast %363 : vector<1x64x256xbf16> to vector<64x256xbf16>
    %c1_145 = arith.constant 1 : index
    %c0_146 = arith.constant 0 : index
    %c0_147 = arith.constant 0 : index
    %365 = vector.load %arg15[%c1_145, %c0_146, %c0_147] : memref<2x1x256xf32, #tpu.memory_space<vmem>>, vector<1x1x256xf32>
    %366 = vector.shape_cast %365 : vector<1x1x256xf32> to vector<1x256xf32>
    %c1_148 = arith.constant 1 : index
    %c0_149 = arith.constant 0 : index
    %c0_150 = arith.constant 0 : index
    %367 = vector.load %arg16[%c1_148, %c0_149, %c0_150] : memref<2x256x64xbf16, #tpu.memory_space<vmem>>, vector<1x256x64xbf16>
    %368 = vector.shape_cast %367 : vector<1x256x64xbf16> to vector<256x64xbf16>
    %c1_151 = arith.constant 1 : index
    %c0_152 = arith.constant 0 : index
    %c0_153 = arith.constant 0 : index
    %369 = vector.load %arg17[%c1_151, %c0_152, %c0_153] : memref<2x1x64xf32, #tpu.memory_space<vmem>>, vector<1x1x64xf32>
    %370 = vector.shape_cast %369 : vector<1x1x64xf32> to vector<1x64xf32>
    %371 = arith.truncf %362 : vector<5x64xf32> to vector<5x64xbf16>
    %cst_154 = arith.constant dense<0.000000e+00> : vector<5x256xf32>
    %372 = tpu.matmul %371, %364, %cst_154 {dimension_numbers = #tpu.dot_dimension_numbers<[1], [0], [0], [1], [0, 0, 1, 1], [], []>} : vector<5x64xbf16>, vector<64x256xbf16>, vector<5x256xf32> -> vector<5x256xf32>
    %373 = vector.broadcast %366 : vector<1x256xf32> to vector<5x256xf32>
    %374 = arith.addf %372, %373 : vector<5x256xf32>
    %cst_155 = arith.constant 1.702000e+00 : f32
    %375 = vector.broadcast %cst_155 : f32 to vector<5x256xf32>
    %376 = arith.mulf %375, %374 : vector<5x256xf32>
    %377 = arith.negf %376 : vector<5x256xf32>
    %378 = math.exp %377 : vector<5x256xf32>
    %cst_156 = arith.constant 1.000000e+00 : f32
    %379 = vector.broadcast %cst_156 : f32 to vector<5x256xf32>
    %380 = arith.addf %379, %378 : vector<5x256xf32>
    %381 = arith.divf %379, %380 : vector<5x256xf32>
    %382 = arith.mulf %374, %381 : vector<5x256xf32>
    %383 = arith.truncf %382 : vector<5x256xf32> to vector<5x256xbf16>
    %cst_157 = arith.constant dense<0.000000e+00> : vector<5x64xf32>
    %384 = tpu.matmul %383, %368, %cst_157 {dimension_numbers = #tpu.dot_dimension_numbers<[1], [0], [0], [1], [0, 0, 1, 1], [], []>} : vector<5x256xbf16>, vector<256x64xbf16>, vector<5x64xf32> -> vector<5x64xf32>
    %385 = vector.broadcast %370 : vector<1x64xf32> to vector<5x64xf32>
    %386 = arith.addf %384, %385 : vector<5x64xf32>
    %387 = arith.addf %336, %386 : vector<5x64xf32>
    %388 = vector.extract_strided_slice %387 {offsets = [0, 0], sizes = [1, 64], strides = [1, 1]} : vector<5x64xf32> to vector<1x64xf32>
    %c0_158 = arith.constant 0 : index
    %c0_159 = arith.constant 0 : index
    %389 = vector.load %arg18[%c0_158, %c0_159] : memref<1x64xf32, #tpu.memory_space<vmem>>, vector<1x64xf32>
    %c0_160 = arith.constant 0 : index
    %c0_161 = arith.constant 0 : index
    %390 = vector.load %arg19[%c0_160, %c0_161] : memref<1x64xf32, #tpu.memory_space<vmem>>, vector<1x64xf32>
    %cst_162 = arith.constant dense<0.000000e+00> : vector<1xf32>
    %391 = vector.multi_reduction <add>, %388, %cst_162 [1] : vector<1x64xf32> to vector<1xf32>
    %392 = vector.shape_cast %391 : vector<1xf32> to vector<1x1xf32>
    %cst_163 = arith.constant 6.400000e+01 : f32
    %393 = vector.broadcast %cst_163 : f32 to vector<1x1xf32>
    %394 = arith.divf %392, %393 : vector<1x1xf32>
    %395 = vector.broadcast %394 : vector<1x1xf32> to vector<1x64xf32>
    %396 = arith.subf %388, %395 : vector<1x64xf32>
    %397 = arith.mulf %396, %396 : vector<1x64xf32>
    %cst_164 = arith.constant dense<0.000000e+00> : vector<1xf32>
    %398 = vector.multi_reduction <add>, %397, %cst_164 [1] : vector<1x64xf32> to vector<1xf32>
    %399 = vector.shape_cast %398 : vector<1xf32> to vector<1x1xf32>
    %cst_165 = arith.constant 6.400000e+01 : f32
    %400 = vector.broadcast %cst_165 : f32 to vector<1x1xf32>
    %401 = arith.divf %399, %400 : vector<1x1xf32>
    %402 = vector.broadcast %394 : vector<1x1xf32> to vector<1x64xf32>
    %403 = arith.subf %388, %402 : vector<1x64xf32>
    %cst_166 = arith.constant 9.99999974E-6 : f32
    %404 = vector.broadcast %cst_166 : f32 to vector<1x1xf32>
    %405 = arith.addf %401, %404 : vector<1x1xf32>
    %406 = math.rsqrt %405 : vector<1x1xf32>
    %407 = vector.broadcast %406 : vector<1x1xf32> to vector<1x64xf32>
    %408 = arith.mulf %403, %407 : vector<1x64xf32>
    %409 = arith.mulf %408, %389 : vector<1x64xf32>
    %410 = arith.addf %409, %390 : vector<1x64xf32>
    %411 = arith.truncf %410 : vector<1x64xf32> to vector<1x64xbf16>
    %c0_167 = arith.constant 0 : index
    %c0_168 = arith.constant 0 : index
    %412 = vector.load %arg20[%c0_167, %c0_168] : memref<64x32xbf16, #tpu.memory_space<vmem>>, vector<64x32xbf16>
    %cst_169 = arith.constant dense<0.000000e+00> : vector<1x32xf32>
    %413 = tpu.matmul %411, %412, %cst_169 {dimension_numbers = #tpu.dot_dimension_numbers<[1], [0], [0], [1], [0, 0, 1, 1], [], []>} : vector<1x64xbf16>, vector<64x32xbf16>, vector<1x32xf32> -> vector<1x32xf32>
    %c0_170 = arith.constant 0 : index
    %c0_171 = arith.constant 0 : index
    %c0_172 = arith.constant 0 : index
    %414 = vector.load %arg21[%c0_170, %c0_171, %c0_172] : memref<1x1x32xf32, #tpu.memory_space<vmem>>, vector<1x1x32xf32>
    %415 = vector.shape_cast %414 : vector<1x1x32xf32> to vector<1x32xf32>
    %416 = vector.shape_cast %413 : vector<1x32xf32> to vector<1x1x32xf32>
    tpu.vector_store %arg21[%c0_170, %c0_171, %c0_172], %416 {strides = array<i32>} : memref<1x1x32xf32, #tpu.memory_space<vmem>>, vector<1x1x32xf32>,
    return
  }
  func.func @transform_0(%arg0: i32) -> (i32, i32, i32) {
    %c0_i32 = arith.constant 0 : i32
    %c0_i32_0 = arith.constant 0 : i32
    %c0_i32_1 = arith.constant 0 : i32
    return %arg0, %c0_i32, %c0_i32_0 : i32, i32, i32
  }
  func.func @transform_1(%arg0: i32) -> (i32, i32) {
    %c0_i32 = arith.constant 0 : i32
    %c0_i32_0 = arith.constant 0 : i32
    %c0_i32_1 = arith.constant 0 : i32
    return %c0_i32, %c0_i32_0 : i32, i32
  }
  func.func @transform_2(%arg0: i32) -> (i32, i32) {
    %c0_i32 = arith.constant 0 : i32
    %c0_i32_0 = arith.constant 0 : i32
    %c0_i32_1 = arith.constant 0 : i32
    return %c0_i32, %c0_i32_0 : i32, i32
  }
  func.func @transform_3(%arg0: i32) -> (i32, i32) {
    %c0_i32 = arith.constant 0 : i32
    %c0_i32_0 = arith.constant 0 : i32
    %c0_i32_1 = arith.constant 0 : i32
    return %c0_i32, %c0_i32_0 : i32, i32
  }
  func.func @transform_4(%arg0: i32) -> (i32, i32) {
    %c0_i32 = arith.constant 0 : i32
    %c0_i32_0 = arith.constant 0 : i32
    %c0_i32_1 = arith.constant 0 : i32
    return %c0_i32, %c0_i32_0 : i32, i32
  }
  func.func @transform_5(%arg0: i32) -> (i32, i32, i32) {
    %c0_i32 = arith.constant 0 : i32
    %c0_i32_0 = arith.constant 0 : i32
    %c0_i32_1 = arith.constant 0 : i32
    %c0_i32_2 = arith.constant 0 : i32
    return %c0_i32, %c0_i32_0, %c0_i32_1 : i32, i32, i32
  }
  func.func @transform_6(%arg0: i32) -> (i32, i32, i32) {
    %c0_i32 = arith.constant 0 : i32
    %c0_i32_0 = arith.constant 0 : i32
    %c0_i32_1 = arith.constant 0 : i32
    %c0_i32_2 = arith.constant 0 : i32
    return %c0_i32, %c0_i32_0, %c0_i32_1 : i32, i32, i32
  }
  func.func @transform_7(%arg0: i32) -> (i32, i32, i32) {
    %c0_i32 = arith.constant 0 : i32
    %c0_i32_0 = arith.constant 0 : i32
    %c0_i32_1 = arith.constant 0 : i32
    %c0_i32_2 = arith.constant 0 : i32
    return %c0_i32, %c0_i32_0, %c0_i32_1 : i32, i32, i32
  }
  func.func @transform_8(%arg0: i32) -> (i32, i32, i32) {
    %c0_i32 = arith.constant 0 : i32
    %c0_i32_0 = arith.constant 0 : i32
    %c0_i32_1 = arith.constant 0 : i32
    %c0_i32_2 = arith.constant 0 : i32
    return %c0_i32, %c0_i32_0, %c0_i32_1 : i32, i32, i32
  }
  func.func @transform_9(%arg0: i32) -> (i32, i32, i32) {
    %c0_i32 = arith.constant 0 : i32
    %c0_i32_0 = arith.constant 0 : i32
    %c0_i32_1 = arith.constant 0 : i32
    %c0_i32_2 = arith.constant 0 : i32
    return %c0_i32, %c0_i32_0, %c0_i32_1 : i32, i32, i32
  }
  func.func @transform_10(%arg0: i32) -> (i32, i32, i32) {
    %c0_i32 = arith.constant 0 : i32
    %c0_i32_0 = arith.constant 0 : i32
    %c0_i32_1 = arith.constant 0 : i32
    %c0_i32_2 = arith.constant 0 : i32
    return %c0_i32, %c0_i32_0, %c0_i32_1 : i32, i32, i32
  }
  func.func @transform_11(%arg0: i32) -> (i32, i32, i32) {
    %c0_i32 = arith.constant 0 : i32
    %c0_i32_0 = arith.constant 0 : i32
    %c0_i32_1 = arith.constant 0 : i32
    %c0_i32_2 = arith.constant 0 : i32
    return %c0_i32, %c0_i32_0, %c0_i32_1 : i32, i32, i32
  }
  func.func @transform_12(%arg0: i32) -> (i32, i32, i32) {
    %c0_i32 = arith.constant 0 : i32
    %c0_i32_0 = arith.constant 0 : i32
    %c0_i32_1 = arith.constant 0 : i32
    %c0_i32_2 = arith.constant 0 : i32
    return %c0_i32, %c0_i32_0, %c0_i32_1 : i32, i32, i32
  }
  func.func @transform_13(%arg0: i32) -> (i32, i32, i32) {
    %c0_i32 = arith.constant 0 : i32
    %c0_i32_0 = arith.constant 0 : i32
    %c0_i32_1 = arith.constant 0 : i32
    %c0_i32_2 = arith.constant 0 : i32
    return %c0_i32, %c0_i32_0, %c0_i32_1 : i32, i32, i32
  }
  func.func @transform_14(%arg0: i32) -> (i32, i32, i32) {
    %c0_i32 = arith.constant 0 : i32
    %c0_i32_0 = arith.constant 0 : i32
    %c0_i32_1 = arith.constant 0 : i32
    %c0_i32_2 = arith.constant 0 : i32
    return %c0_i32, %c0_i32_0, %c0_i32_1 : i32, i32, i32
  }
  func.func @transform_15(%arg0: i32) -> (i32, i32, i32) {
    %c0_i32 = arith.constant 0 : i32
    %c0_i32_0 = arith.constant 0 : i32
    %c0_i32_1 = arith.constant 0 : i32
    %c0_i32_2 = arith.constant 0 : i32
    return %c0_i32, %c0_i32_0, %c0_i32_1 : i32, i32, i32
  }
  func.func @transform_16(%arg0: i32) -> (i32, i32, i32) {
    %c0_i32 = arith.constant 0 : i32
    %c0_i32_0 = arith.constant 0 : i32
    %c0_i32_1 = arith.constant 0 : i32
    %c0_i32_2 = arith.constant 0 : i32
    return %c0_i32, %c0_i32_0, %c0_i32_1 : i32, i32, i32
  }
  func.func @transform_17(%arg0: i32) -> (i32, i32) {
    %c0_i32 = arith.constant 0 : i32
    %c0_i32_0 = arith.constant 0 : i32
    %c0_i32_1 = arith.constant 0 : i32
    return %c0_i32, %c0_i32_0 : i32, i32
  }
  func.func @transform_18(%arg0: i32) -> (i32, i32) {
    %c0_i32 = arith.constant 0 : i32
    %c0_i32_0 = arith.constant 0 : i32
    %c0_i32_1 = arith.constant 0 : i32
    return %c0_i32, %c0_i32_0 : i32, i32
  }
  func.func @transform_19(%arg0: i32) -> (i32, i32) {
    %c0_i32 = arith.constant 0 : i32
    %c0_i32_0 = arith.constant 0 : i32
    %c0_i32_1 = arith.constant 0 : i32
    return %c0_i32, %c0_i32_0 : i32, i32
  }
  func.func @transform_20(%arg0: i32) -> (i32, i32, i32) {
    %c0_i32 = arith.constant 0 : i32
    %c0_i32_0 = arith.constant 0 : i32
    %c0_i32_1 = arith.constant 0 : i32
    return %arg0, %c0_i32, %c0_i32_0 : i32, i32, i32
  }
}

module attributes {stable_mosaic.version = 11 : i64} {
  func.func @_text_kernel(%arg0: i32, %arg1: memref<32x64xf32, #tpu.memory_space<vmem>>, %arg2: memref<2x1x16xf32, #tpu.memory_space<vmem>>, %arg3: memref<2x1x64xf32, #tpu.memory_space<vmem>>, %arg4: memref<2x1x64xf32, #tpu.memory_space<vmem>>, %arg5: memref<2x64x192xbf16, #tpu.memory_space<vmem>>, %arg6: memref<2x1x192xf32, #tpu.memory_space<vmem>>, %arg7: memref<2x64x64xbf16, #tpu.memory_space<vmem>>, %arg8: memref<2x1x64xf32, #tpu.memory_space<vmem>>, %arg9: memref<2x1x64xf32, #tpu.memory_space<vmem>>, %arg10: memref<2x1x64xf32, #tpu.memory_space<vmem>>, %arg11: memref<2x64x256xbf16, #tpu.memory_space<vmem>>, %arg12: memref<2x1x256xf32, #tpu.memory_space<vmem>>, %arg13: memref<2x256x64xbf16, #tpu.memory_space<vmem>>, %arg14: memref<2x1x64xf32, #tpu.memory_space<vmem>>, %arg15: memref<1x64xf32, #tpu.memory_space<vmem>>, %arg16: memref<1x64xf32, #tpu.memory_space<vmem>>, %arg17: memref<64x32xbf16, #tpu.memory_space<vmem>>, %arg18: memref<1x2x32xf32, #tpu.memory_space<vmem>>) attributes {dimension_semantics = [#tpu.dimension_semantics<parallel>], iteration_bounds = array<i64: 2>, scalar_prefetch = 0 : i64, scratch_operands = 0 : i64, tpu.core_type = #tpu.core_type<tc>, window_params = [{transform_indices = @transform_0, window_bounds = array<i64: 32, 64>}, {transform_indices = @transform_1, window_bounds = array<i64: 2, 1, 16>}, {pipeline_mode = #tpu.pipeline_mode<synchronous>, transform_indices = @transform_2, window_bounds = array<i64: 2, 1, 64>}, {pipeline_mode = #tpu.pipeline_mode<synchronous>, transform_indices = @transform_3, window_bounds = array<i64: 2, 1, 64>}, {pipeline_mode = #tpu.pipeline_mode<synchronous>, transform_indices = @transform_4, window_bounds = array<i64: 2, 64, 192>}, {pipeline_mode = #tpu.pipeline_mode<synchronous>, transform_indices = @transform_5, window_bounds = array<i64: 2, 1, 192>}, {pipeline_mode = #tpu.pipeline_mode<synchronous>, transform_indices = @transform_6, window_bounds = array<i64: 2, 64, 64>}, {pipeline_mode = #tpu.pipeline_mode<synchronous>, transform_indices = @transform_7, window_bounds = array<i64: 2, 1, 64>}, {pipeline_mode = #tpu.pipeline_mode<synchronous>, transform_indices = @transform_8, window_bounds = array<i64: 2, 1, 64>}, {pipeline_mode = #tpu.pipeline_mode<synchronous>, transform_indices = @transform_9, window_bounds = array<i64: 2, 1, 64>}, {pipeline_mode = #tpu.pipeline_mode<synchronous>, transform_indices = @transform_10, window_bounds = array<i64: 2, 64, 256>}, {pipeline_mode = #tpu.pipeline_mode<synchronous>, transform_indices = @transform_11, window_bounds = array<i64: 2, 1, 256>}, {pipeline_mode = #tpu.pipeline_mode<synchronous>, transform_indices = @transform_12, window_bounds = array<i64: 2, 256, 64>}, {pipeline_mode = #tpu.pipeline_mode<synchronous>, transform_indices = @transform_13, window_bounds = array<i64: 2, 1, 64>}, {pipeline_mode = #tpu.pipeline_mode<synchronous>, transform_indices = @transform_14, window_bounds = array<i64: 1, 64>}, {pipeline_mode = #tpu.pipeline_mode<synchronous>, transform_indices = @transform_15, window_bounds = array<i64: 1, 64>}, {pipeline_mode = #tpu.pipeline_mode<synchronous>, transform_indices = @transform_16, window_bounds = array<i64: 64, 32>}, {transform_indices = @transform_17, window_bounds = array<i64: 1, 2, 32>}]} {
    %c0 = arith.constant 0 : index
    %c0_0 = arith.constant 0 : index
    %0 = vector.load %arg1[%c0, %c0_0] : memref<32x64xf32, #tpu.memory_space<vmem>>, vector<32x64xf32>
    %1 = tpu.iota {dimensions = array<i32: 0>} : vector<16x16xi32>
    %2 = tpu.iota {dimensions = array<i32: 1>} : vector<16x16xi32>
    %3 = arith.cmpi sle, %2, %1 : vector<16x16xi32>
    %cst = arith.constant 0.000000e+00 : f32
    %cst_1 = arith.constant -1.000000e+09 : f32
    %4 = vector.broadcast %cst : f32 to vector<16x16xf32>
    %5 = vector.broadcast %cst_1 : f32 to vector<16x16xf32>
    %6 = arith.select %3, %4, %5 : vector<16x16xi1>, vector<16x16xf32>
    %c0_2 = arith.constant 0 : index
    %c0_3 = arith.constant 0 : index
    %c0_4 = arith.constant 0 : index
    %7 = vector.load %arg3[%c0_2, %c0_3, %c0_4] : memref<2x1x64xf32, #tpu.memory_space<vmem>>, vector<1x1x64xf32>
    %8 = vector.shape_cast %7 : vector<1x1x64xf32> to vector<1x64xf32>
    %c0_5 = arith.constant 0 : index
    %c0_6 = arith.constant 0 : index
    %c0_7 = arith.constant 0 : index
    %9 = vector.load %arg4[%c0_5, %c0_6, %c0_7] : memref<2x1x64xf32, #tpu.memory_space<vmem>>, vector<1x1x64xf32>
    %10 = vector.shape_cast %9 : vector<1x1x64xf32> to vector<1x64xf32>
    %cst_8 = arith.constant dense<0.000000e+00> : vector<32xf32>
    %11 = vector.multi_reduction <add>, %0, %cst_8 [1] : vector<32x64xf32> to vector<32xf32>
    %12 = vector.shape_cast %11 : vector<32xf32> to vector<32x1xf32>
    %cst_9 = arith.constant 6.400000e+01 : f32
    %13 = vector.broadcast %cst_9 : f32 to vector<32x1xf32>
    %14 = arith.divf %12, %13 : vector<32x1xf32>
    %15 = vector.broadcast %14 : vector<32x1xf32> to vector<32x64xf32>
    %16 = arith.subf %0, %15 : vector<32x64xf32>
    %17 = arith.mulf %16, %16 : vector<32x64xf32>
    %cst_10 = arith.constant dense<0.000000e+00> : vector<32xf32>
    %18 = vector.multi_reduction <add>, %17, %cst_10 [1] : vector<32x64xf32> to vector<32xf32>
    %19 = vector.shape_cast %18 : vector<32xf32> to vector<32x1xf32>
    %cst_11 = arith.constant 6.400000e+01 : f32
    %20 = vector.broadcast %cst_11 : f32 to vector<32x1xf32>
    %21 = arith.divf %19, %20 : vector<32x1xf32>
    %22 = vector.broadcast %14 : vector<32x1xf32> to vector<32x64xf32>
    %23 = arith.subf %0, %22 : vector<32x64xf32>
    %cst_12 = arith.constant 9.99999974E-6 : f32
    %24 = vector.broadcast %cst_12 : f32 to vector<32x1xf32>
    %25 = arith.addf %21, %24 : vector<32x1xf32>
    %26 = math.rsqrt %25 : vector<32x1xf32>
    %27 = vector.broadcast %26 : vector<32x1xf32> to vector<32x64xf32>
    %28 = arith.mulf %23, %27 : vector<32x64xf32>
    %29 = vector.broadcast %8 : vector<1x64xf32> to vector<32x64xf32>
    %30 = arith.mulf %28, %29 : vector<32x64xf32>
    %31 = vector.broadcast %10 : vector<1x64xf32> to vector<32x64xf32>
    %32 = arith.addf %30, %31 : vector<32x64xf32>
    %c0_13 = arith.constant 0 : index
    %c0_14 = arith.constant 0 : index
    %c0_15 = arith.constant 0 : index
    %33 = vector.load %arg5[%c0_13, %c0_14, %c0_15] : memref<2x64x192xbf16, #tpu.memory_space<vmem>>, vector<1x64x192xbf16>
    %34 = vector.shape_cast %33 : vector<1x64x192xbf16> to vector<64x192xbf16>
    %c0_16 = arith.constant 0 : index
    %c0_17 = arith.constant 0 : index
    %c0_18 = arith.constant 0 : index
    %35 = vector.load %arg6[%c0_16, %c0_17, %c0_18] : memref<2x1x192xf32, #tpu.memory_space<vmem>>, vector<1x1x192xf32>
    %36 = vector.shape_cast %35 : vector<1x1x192xf32> to vector<1x192xf32>
    %c0_19 = arith.constant 0 : index
    %c0_20 = arith.constant 0 : index
    %c0_21 = arith.constant 0 : index
    %37 = vector.load %arg7[%c0_19, %c0_20, %c0_21] : memref<2x64x64xbf16, #tpu.memory_space<vmem>>, vector<1x64x64xbf16>
    %38 = vector.shape_cast %37 : vector<1x64x64xbf16> to vector<64x64xbf16>
    %c0_22 = arith.constant 0 : index
    %c0_23 = arith.constant 0 : index
    %c0_24 = arith.constant 0 : index
    %39 = vector.load %arg8[%c0_22, %c0_23, %c0_24] : memref<2x1x64xf32, #tpu.memory_space<vmem>>, vector<1x1x64xf32>
    %40 = vector.shape_cast %39 : vector<1x1x64xf32> to vector<1x64xf32>
    %41 = arith.truncf %32 : vector<32x64xf32> to vector<32x64xbf16>
    %cst_25 = arith.constant dense<0.000000e+00> : vector<32x192xf32>
    %42 = tpu.matmul %41, %34, %cst_25 {dimension_numbers = #tpu.dot_dimension_numbers<[1], [0], [0], [1], [0, 0, 1, 1], [], []>} : vector<32x64xbf16>, vector<64x192xbf16>, vector<32x192xf32> -> vector<32x192xf32>
    %43 = vector.broadcast %36 : vector<1x192xf32> to vector<32x192xf32>
    %44 = arith.addf %42, %43 : vector<32x192xf32>
    %45 = vector.extract_strided_slice %44 {offsets = [0, 0], sizes = [16, 192], strides = [1, 1]} : vector<32x192xf32> to vector<16x192xf32>
    %46 = vector.extract_strided_slice %45 {offsets = [0, 0], sizes = [16, 16], strides = [1, 1]} : vector<16x192xf32> to vector<16x16xf32>
    %47 = arith.truncf %46 : vector<16x16xf32> to vector<16x16xbf16>
    %48 = vector.extract_strided_slice %45 {offsets = [0, 64], sizes = [16, 16], strides = [1, 1]} : vector<16x192xf32> to vector<16x16xf32>
    %49 = arith.truncf %48 : vector<16x16xf32> to vector<16x16xbf16>
    %50 = vector.extract_strided_slice %45 {offsets = [0, 128], sizes = [16, 16], strides = [1, 1]} : vector<16x192xf32> to vector<16x16xf32>
    %51 = arith.truncf %50 : vector<16x16xf32> to vector<16x16xbf16>
    %cst_26 = arith.constant dense<0.000000e+00> : vector<16x16xf32>
    %52 = tpu.matmul %47, %49, %cst_26 {dimension_numbers = #tpu.dot_dimension_numbers<[1], [1], [0], [0], [0, 0, 1, 0], [], []>} : vector<16x16xbf16>, vector<16x16xbf16>, vector<16x16xf32> -> vector<16x16xf32>
    %cst_27 = arith.constant 2.500000e-01 : f32
    %53 = vector.broadcast %cst_27 : f32 to vector<16x16xf32>
    %54 = arith.mulf %52, %53 : vector<16x16xf32>
    %55 = arith.addf %54, %6 : vector<16x16xf32>
    %cst_28 = arith.constant dense<0xFF800000> : vector<16xf32>
    %56 = vector.multi_reduction <maximumf>, %55, %cst_28 [1] : vector<16x16xf32> to vector<16xf32>
    %57 = vector.shape_cast %56 : vector<16xf32> to vector<16x1xf32>
    %58 = vector.broadcast %57 : vector<16x1xf32> to vector<16x16xf32>
    %59 = arith.subf %55, %58 : vector<16x16xf32>
    %60 = math.exp %59 : vector<16x16xf32>
    %cst_29 = arith.constant dense<0.000000e+00> : vector<16xf32>
    %61 = vector.multi_reduction <add>, %60, %cst_29 [1] : vector<16x16xf32> to vector<16xf32>
    %62 = vector.shape_cast %61 : vector<16xf32> to vector<16x1xf32>
    %63 = tpu.reciprocal %62 {approx = true} : vector<16x1xf32> -> vector<16x1xf32>
    %64 = vector.broadcast %63 : vector<16x1xf32> to vector<16x16xf32>
    %65 = arith.mulf %60, %64 : vector<16x16xf32>
    %66 = arith.truncf %65 : vector<16x16xf32> to vector<16x16xbf16>
    %cst_30 = arith.constant dense<0.000000e+00> : vector<16x16xf32>
    %67 = tpu.matmul %66, %51, %cst_30 {dimension_numbers = #tpu.dot_dimension_numbers<[1], [0], [0], [1], [0, 0, 1, 1], [], []>} : vector<16x16xbf16>, vector<16x16xbf16>, vector<16x16xf32> -> vector<16x16xf32>
    %68 = vector.extract_strided_slice %45 {offsets = [0, 16], sizes = [16, 16], strides = [1, 1]} : vector<16x192xf32> to vector<16x16xf32>
    %69 = arith.truncf %68 : vector<16x16xf32> to vector<16x16xbf16>
    %70 = vector.extract_strided_slice %45 {offsets = [0, 80], sizes = [16, 16], strides = [1, 1]} : vector<16x192xf32> to vector<16x16xf32>
    %71 = arith.truncf %70 : vector<16x16xf32> to vector<16x16xbf16>
    %72 = vector.extract_strided_slice %45 {offsets = [0, 144], sizes = [16, 16], strides = [1, 1]} : vector<16x192xf32> to vector<16x16xf32>
    %73 = arith.truncf %72 : vector<16x16xf32> to vector<16x16xbf16>
    %cst_31 = arith.constant dense<0.000000e+00> : vector<16x16xf32>
    %74 = tpu.matmul %69, %71, %cst_31 {dimension_numbers = #tpu.dot_dimension_numbers<[1], [1], [0], [0], [0, 0, 1, 0], [], []>} : vector<16x16xbf16>, vector<16x16xbf16>, vector<16x16xf32> -> vector<16x16xf32>
    %cst_32 = arith.constant 2.500000e-01 : f32
    %75 = vector.broadcast %cst_32 : f32 to vector<16x16xf32>
    %76 = arith.mulf %74, %75 : vector<16x16xf32>
    %77 = arith.addf %76, %6 : vector<16x16xf32>
    %cst_33 = arith.constant dense<0xFF800000> : vector<16xf32>
    %78 = vector.multi_reduction <maximumf>, %77, %cst_33 [1] : vector<16x16xf32> to vector<16xf32>
    %79 = vector.shape_cast %78 : vector<16xf32> to vector<16x1xf32>
    %80 = vector.broadcast %79 : vector<16x1xf32> to vector<16x16xf32>
    %81 = arith.subf %77, %80 : vector<16x16xf32>
    %82 = math.exp %81 : vector<16x16xf32>
    %cst_34 = arith.constant dense<0.000000e+00> : vector<16xf32>
    %83 = vector.multi_reduction <add>, %82, %cst_34 [1] : vector<16x16xf32> to vector<16xf32>
    %84 = vector.shape_cast %83 : vector<16xf32> to vector<16x1xf32>
    %85 = tpu.reciprocal %84 {approx = true} : vector<16x1xf32> -> vector<16x1xf32>
    %86 = vector.broadcast %85 : vector<16x1xf32> to vector<16x16xf32>
    %87 = arith.mulf %82, %86 : vector<16x16xf32>
    %88 = arith.truncf %87 : vector<16x16xf32> to vector<16x16xbf16>
    %cst_35 = arith.constant dense<0.000000e+00> : vector<16x16xf32>
    %89 = tpu.matmul %88, %73, %cst_35 {dimension_numbers = #tpu.dot_dimension_numbers<[1], [0], [0], [1], [0, 0, 1, 1], [], []>} : vector<16x16xbf16>, vector<16x16xbf16>, vector<16x16xf32> -> vector<16x16xf32>
    %90 = vector.extract_strided_slice %45 {offsets = [0, 32], sizes = [16, 16], strides = [1, 1]} : vector<16x192xf32> to vector<16x16xf32>
    %91 = arith.truncf %90 : vector<16x16xf32> to vector<16x16xbf16>
    %92 = vector.extract_strided_slice %45 {offsets = [0, 96], sizes = [16, 16], strides = [1, 1]} : vector<16x192xf32> to vector<16x16xf32>
    %93 = arith.truncf %92 : vector<16x16xf32> to vector<16x16xbf16>
    %94 = vector.extract_strided_slice %45 {offsets = [0, 160], sizes = [16, 16], strides = [1, 1]} : vector<16x192xf32> to vector<16x16xf32>
    %95 = arith.truncf %94 : vector<16x16xf32> to vector<16x16xbf16>
    %cst_36 = arith.constant dense<0.000000e+00> : vector<16x16xf32>
    %96 = tpu.matmul %91, %93, %cst_36 {dimension_numbers = #tpu.dot_dimension_numbers<[1], [1], [0], [0], [0, 0, 1, 0], [], []>} : vector<16x16xbf16>, vector<16x16xbf16>, vector<16x16xf32> -> vector<16x16xf32>
    %cst_37 = arith.constant 2.500000e-01 : f32
    %97 = vector.broadcast %cst_37 : f32 to vector<16x16xf32>
    %98 = arith.mulf %96, %97 : vector<16x16xf32>
    %99 = arith.addf %98, %6 : vector<16x16xf32>
    %cst_38 = arith.constant dense<0xFF800000> : vector<16xf32>
    %100 = vector.multi_reduction <maximumf>, %99, %cst_38 [1] : vector<16x16xf32> to vector<16xf32>
    %101 = vector.shape_cast %100 : vector<16xf32> to vector<16x1xf32>
    %102 = vector.broadcast %101 : vector<16x1xf32> to vector<16x16xf32>
    %103 = arith.subf %99, %102 : vector<16x16xf32>
    %104 = math.exp %103 : vector<16x16xf32>
    %cst_39 = arith.constant dense<0.000000e+00> : vector<16xf32>
    %105 = vector.multi_reduction <add>, %104, %cst_39 [1] : vector<16x16xf32> to vector<16xf32>
    %106 = vector.shape_cast %105 : vector<16xf32> to vector<16x1xf32>
    %107 = tpu.reciprocal %106 {approx = true} : vector<16x1xf32> -> vector<16x1xf32>
    %108 = vector.broadcast %107 : vector<16x1xf32> to vector<16x16xf32>
    %109 = arith.mulf %104, %108 : vector<16x16xf32>
    %110 = arith.truncf %109 : vector<16x16xf32> to vector<16x16xbf16>
    %cst_40 = arith.constant dense<0.000000e+00> : vector<16x16xf32>
    %111 = tpu.matmul %110, %95, %cst_40 {dimension_numbers = #tpu.dot_dimension_numbers<[1], [0], [0], [1], [0, 0, 1, 1], [], []>} : vector<16x16xbf16>, vector<16x16xbf16>, vector<16x16xf32> -> vector<16x16xf32>
    %112 = vector.extract_strided_slice %45 {offsets = [0, 48], sizes = [16, 16], strides = [1, 1]} : vector<16x192xf32> to vector<16x16xf32>
    %113 = arith.truncf %112 : vector<16x16xf32> to vector<16x16xbf16>
    %114 = vector.extract_strided_slice %45 {offsets = [0, 112], sizes = [16, 16], strides = [1, 1]} : vector<16x192xf32> to vector<16x16xf32>
    %115 = arith.truncf %114 : vector<16x16xf32> to vector<16x16xbf16>
    %116 = vector.extract_strided_slice %45 {offsets = [0, 176], sizes = [16, 16], strides = [1, 1]} : vector<16x192xf32> to vector<16x16xf32>
    %117 = arith.truncf %116 : vector<16x16xf32> to vector<16x16xbf16>
    %cst_41 = arith.constant dense<0.000000e+00> : vector<16x16xf32>
    %118 = tpu.matmul %113, %115, %cst_41 {dimension_numbers = #tpu.dot_dimension_numbers<[1], [1], [0], [0], [0, 0, 1, 0], [], []>} : vector<16x16xbf16>, vector<16x16xbf16>, vector<16x16xf32> -> vector<16x16xf32>
    %cst_42 = arith.constant 2.500000e-01 : f32
    %119 = vector.broadcast %cst_42 : f32 to vector<16x16xf32>
    %120 = arith.mulf %118, %119 : vector<16x16xf32>
    %121 = arith.addf %120, %6 : vector<16x16xf32>
    %cst_43 = arith.constant dense<0xFF800000> : vector<16xf32>
    %122 = vector.multi_reduction <maximumf>, %121, %cst_43 [1] : vector<16x16xf32> to vector<16xf32>
    %123 = vector.shape_cast %122 : vector<16xf32> to vector<16x1xf32>
    %124 = vector.broadcast %123 : vector<16x1xf32> to vector<16x16xf32>
    %125 = arith.subf %121, %124 : vector<16x16xf32>
    %126 = math.exp %125 : vector<16x16xf32>
    %cst_44 = arith.constant dense<0.000000e+00> : vector<16xf32>
    %127 = vector.multi_reduction <add>, %126, %cst_44 [1] : vector<16x16xf32> to vector<16xf32>
    %128 = vector.shape_cast %127 : vector<16xf32> to vector<16x1xf32>
    %129 = tpu.reciprocal %128 {approx = true} : vector<16x1xf32> -> vector<16x1xf32>
    %130 = vector.broadcast %129 : vector<16x1xf32> to vector<16x16xf32>
    %131 = arith.mulf %126, %130 : vector<16x16xf32>
    %132 = arith.truncf %131 : vector<16x16xf32> to vector<16x16xbf16>
    %cst_45 = arith.constant dense<0.000000e+00> : vector<16x16xf32>
    %133 = tpu.matmul %132, %117, %cst_45 {dimension_numbers = #tpu.dot_dimension_numbers<[1], [0], [0], [1], [0, 0, 1, 1], [], []>} : vector<16x16xbf16>, vector<16x16xbf16>, vector<16x16xf32> -> vector<16x16xf32>
    %134 = tpu.concatenate %67, %89, %111, %133 in 1 : vector<16x16xf32>, vector<16x16xf32>, vector<16x16xf32>, vector<16x16xf32> -> vector<16x64xf32>
    %135 = vector.extract_strided_slice %44 {offsets = [16, 0], sizes = [16, 192], strides = [1, 1]} : vector<32x192xf32> to vector<16x192xf32>
    %136 = vector.extract_strided_slice %135 {offsets = [0, 0], sizes = [16, 16], strides = [1, 1]} : vector<16x192xf32> to vector<16x16xf32>
    %137 = arith.truncf %136 : vector<16x16xf32> to vector<16x16xbf16>
    %138 = vector.extract_strided_slice %135 {offsets = [0, 64], sizes = [16, 16], strides = [1, 1]} : vector<16x192xf32> to vector<16x16xf32>
    %139 = arith.truncf %138 : vector<16x16xf32> to vector<16x16xbf16>
    %140 = vector.extract_strided_slice %135 {offsets = [0, 128], sizes = [16, 16], strides = [1, 1]} : vector<16x192xf32> to vector<16x16xf32>
    %141 = arith.truncf %140 : vector<16x16xf32> to vector<16x16xbf16>
    %cst_46 = arith.constant dense<0.000000e+00> : vector<16x16xf32>
    %142 = tpu.matmul %137, %139, %cst_46 {dimension_numbers = #tpu.dot_dimension_numbers<[1], [1], [0], [0], [0, 0, 1, 0], [], []>} : vector<16x16xbf16>, vector<16x16xbf16>, vector<16x16xf32> -> vector<16x16xf32>
    %cst_47 = arith.constant 2.500000e-01 : f32
    %143 = vector.broadcast %cst_47 : f32 to vector<16x16xf32>
    %144 = arith.mulf %142, %143 : vector<16x16xf32>
    %145 = arith.addf %144, %6 : vector<16x16xf32>
    %cst_48 = arith.constant dense<0xFF800000> : vector<16xf32>
    %146 = vector.multi_reduction <maximumf>, %145, %cst_48 [1] : vector<16x16xf32> to vector<16xf32>
    %147 = vector.shape_cast %146 : vector<16xf32> to vector<16x1xf32>
    %148 = vector.broadcast %147 : vector<16x1xf32> to vector<16x16xf32>
    %149 = arith.subf %145, %148 : vector<16x16xf32>
    %150 = math.exp %149 : vector<16x16xf32>
    %cst_49 = arith.constant dense<0.000000e+00> : vector<16xf32>
    %151 = vector.multi_reduction <add>, %150, %cst_49 [1] : vector<16x16xf32> to vector<16xf32>
    %152 = vector.shape_cast %151 : vector<16xf32> to vector<16x1xf32>
    %153 = tpu.reciprocal %152 {approx = true} : vector<16x1xf32> -> vector<16x1xf32>
    %154 = vector.broadcast %153 : vector<16x1xf32> to vector<16x16xf32>
    %155 = arith.mulf %150, %154 : vector<16x16xf32>
    %156 = arith.truncf %155 : vector<16x16xf32> to vector<16x16xbf16>
    %cst_50 = arith.constant dense<0.000000e+00> : vector<16x16xf32>
    %157 = tpu.matmul %156, %141, %cst_50 {dimension_numbers = #tpu.dot_dimension_numbers<[1], [0], [0], [1], [0, 0, 1, 1], [], []>} : vector<16x16xbf16>, vector<16x16xbf16>, vector<16x16xf32> -> vector<16x16xf32>
    %158 = vector.extract_strided_slice %135 {offsets = [0, 16], sizes = [16, 16], strides = [1, 1]} : vector<16x192xf32> to vector<16x16xf32>
    %159 = arith.truncf %158 : vector<16x16xf32> to vector<16x16xbf16>
    %160 = vector.extract_strided_slice %135 {offsets = [0, 80], sizes = [16, 16], strides = [1, 1]} : vector<16x192xf32> to vector<16x16xf32>
    %161 = arith.truncf %160 : vector<16x16xf32> to vector<16x16xbf16>
    %162 = vector.extract_strided_slice %135 {offsets = [0, 144], sizes = [16, 16], strides = [1, 1]} : vector<16x192xf32> to vector<16x16xf32>
    %163 = arith.truncf %162 : vector<16x16xf32> to vector<16x16xbf16>
    %cst_51 = arith.constant dense<0.000000e+00> : vector<16x16xf32>
    %164 = tpu.matmul %159, %161, %cst_51 {dimension_numbers = #tpu.dot_dimension_numbers<[1], [1], [0], [0], [0, 0, 1, 0], [], []>} : vector<16x16xbf16>, vector<16x16xbf16>, vector<16x16xf32> -> vector<16x16xf32>
    %cst_52 = arith.constant 2.500000e-01 : f32
    %165 = vector.broadcast %cst_52 : f32 to vector<16x16xf32>
    %166 = arith.mulf %164, %165 : vector<16x16xf32>
    %167 = arith.addf %166, %6 : vector<16x16xf32>
    %cst_53 = arith.constant dense<0xFF800000> : vector<16xf32>
    %168 = vector.multi_reduction <maximumf>, %167, %cst_53 [1] : vector<16x16xf32> to vector<16xf32>
    %169 = vector.shape_cast %168 : vector<16xf32> to vector<16x1xf32>
    %170 = vector.broadcast %169 : vector<16x1xf32> to vector<16x16xf32>
    %171 = arith.subf %167, %170 : vector<16x16xf32>
    %172 = math.exp %171 : vector<16x16xf32>
    %cst_54 = arith.constant dense<0.000000e+00> : vector<16xf32>
    %173 = vector.multi_reduction <add>, %172, %cst_54 [1] : vector<16x16xf32> to vector<16xf32>
    %174 = vector.shape_cast %173 : vector<16xf32> to vector<16x1xf32>
    %175 = tpu.reciprocal %174 {approx = true} : vector<16x1xf32> -> vector<16x1xf32>
    %176 = vector.broadcast %175 : vector<16x1xf32> to vector<16x16xf32>
    %177 = arith.mulf %172, %176 : vector<16x16xf32>
    %178 = arith.truncf %177 : vector<16x16xf32> to vector<16x16xbf16>
    %cst_55 = arith.constant dense<0.000000e+00> : vector<16x16xf32>
    %179 = tpu.matmul %178, %163, %cst_55 {dimension_numbers = #tpu.dot_dimension_numbers<[1], [0], [0], [1], [0, 0, 1, 1], [], []>} : vector<16x16xbf16>, vector<16x16xbf16>, vector<16x16xf32> -> vector<16x16xf32>
    %180 = vector.extract_strided_slice %135 {offsets = [0, 32], sizes = [16, 16], strides = [1, 1]} : vector<16x192xf32> to vector<16x16xf32>
    %181 = arith.truncf %180 : vector<16x16xf32> to vector<16x16xbf16>
    %182 = vector.extract_strided_slice %135 {offsets = [0, 96], sizes = [16, 16], strides = [1, 1]} : vector<16x192xf32> to vector<16x16xf32>
    %183 = arith.truncf %182 : vector<16x16xf32> to vector<16x16xbf16>
    %184 = vector.extract_strided_slice %135 {offsets = [0, 160], sizes = [16, 16], strides = [1, 1]} : vector<16x192xf32> to vector<16x16xf32>
    %185 = arith.truncf %184 : vector<16x16xf32> to vector<16x16xbf16>
    %cst_56 = arith.constant dense<0.000000e+00> : vector<16x16xf32>
    %186 = tpu.matmul %181, %183, %cst_56 {dimension_numbers = #tpu.dot_dimension_numbers<[1], [1], [0], [0], [0, 0, 1, 0], [], []>} : vector<16x16xbf16>, vector<16x16xbf16>, vector<16x16xf32> -> vector<16x16xf32>
    %cst_57 = arith.constant 2.500000e-01 : f32
    %187 = vector.broadcast %cst_57 : f32 to vector<16x16xf32>
    %188 = arith.mulf %186, %187 : vector<16x16xf32>
    %189 = arith.addf %188, %6 : vector<16x16xf32>
    %cst_58 = arith.constant dense<0xFF800000> : vector<16xf32>
    %190 = vector.multi_reduction <maximumf>, %189, %cst_58 [1] : vector<16x16xf32> to vector<16xf32>
    %191 = vector.shape_cast %190 : vector<16xf32> to vector<16x1xf32>
    %192 = vector.broadcast %191 : vector<16x1xf32> to vector<16x16xf32>
    %193 = arith.subf %189, %192 : vector<16x16xf32>
    %194 = math.exp %193 : vector<16x16xf32>
    %cst_59 = arith.constant dense<0.000000e+00> : vector<16xf32>
    %195 = vector.multi_reduction <add>, %194, %cst_59 [1] : vector<16x16xf32> to vector<16xf32>
    %196 = vector.shape_cast %195 : vector<16xf32> to vector<16x1xf32>
    %197 = tpu.reciprocal %196 {approx = true} : vector<16x1xf32> -> vector<16x1xf32>
    %198 = vector.broadcast %197 : vector<16x1xf32> to vector<16x16xf32>
    %199 = arith.mulf %194, %198 : vector<16x16xf32>
    %200 = arith.truncf %199 : vector<16x16xf32> to vector<16x16xbf16>
    %cst_60 = arith.constant dense<0.000000e+00> : vector<16x16xf32>
    %201 = tpu.matmul %200, %185, %cst_60 {dimension_numbers = #tpu.dot_dimension_numbers<[1], [0], [0], [1], [0, 0, 1, 1], [], []>} : vector<16x16xbf16>, vector<16x16xbf16>, vector<16x16xf32> -> vector<16x16xf32>
    %202 = vector.extract_strided_slice %135 {offsets = [0, 48], sizes = [16, 16], strides = [1, 1]} : vector<16x192xf32> to vector<16x16xf32>
    %203 = arith.truncf %202 : vector<16x16xf32> to vector<16x16xbf16>
    %204 = vector.extract_strided_slice %135 {offsets = [0, 112], sizes = [16, 16], strides = [1, 1]} : vector<16x192xf32> to vector<16x16xf32>
    %205 = arith.truncf %204 : vector<16x16xf32> to vector<16x16xbf16>
    %206 = vector.extract_strided_slice %135 {offsets = [0, 176], sizes = [16, 16], strides = [1, 1]} : vector<16x192xf32> to vector<16x16xf32>
    %207 = arith.truncf %206 : vector<16x16xf32> to vector<16x16xbf16>
    %cst_61 = arith.constant dense<0.000000e+00> : vector<16x16xf32>
    %208 = tpu.matmul %203, %205, %cst_61 {dimension_numbers = #tpu.dot_dimension_numbers<[1], [1], [0], [0], [0, 0, 1, 0], [], []>} : vector<16x16xbf16>, vector<16x16xbf16>, vector<16x16xf32> -> vector<16x16xf32>
    %cst_62 = arith.constant 2.500000e-01 : f32
    %209 = vector.broadcast %cst_62 : f32 to vector<16x16xf32>
    %210 = arith.mulf %208, %209 : vector<16x16xf32>
    %211 = arith.addf %210, %6 : vector<16x16xf32>
    %cst_63 = arith.constant dense<0xFF800000> : vector<16xf32>
    %212 = vector.multi_reduction <maximumf>, %211, %cst_63 [1] : vector<16x16xf32> to vector<16xf32>
    %213 = vector.shape_cast %212 : vector<16xf32> to vector<16x1xf32>
    %214 = vector.broadcast %213 : vector<16x1xf32> to vector<16x16xf32>
    %215 = arith.subf %211, %214 : vector<16x16xf32>
    %216 = math.exp %215 : vector<16x16xf32>
    %cst_64 = arith.constant dense<0.000000e+00> : vector<16xf32>
    %217 = vector.multi_reduction <add>, %216, %cst_64 [1] : vector<16x16xf32> to vector<16xf32>
    %218 = vector.shape_cast %217 : vector<16xf32> to vector<16x1xf32>
    %219 = tpu.reciprocal %218 {approx = true} : vector<16x1xf32> -> vector<16x1xf32>
    %220 = vector.broadcast %219 : vector<16x1xf32> to vector<16x16xf32>
    %221 = arith.mulf %216, %220 : vector<16x16xf32>
    %222 = arith.truncf %221 : vector<16x16xf32> to vector<16x16xbf16>
    %cst_65 = arith.constant dense<0.000000e+00> : vector<16x16xf32>
    %223 = tpu.matmul %222, %207, %cst_65 {dimension_numbers = #tpu.dot_dimension_numbers<[1], [0], [0], [1], [0, 0, 1, 1], [], []>} : vector<16x16xbf16>, vector<16x16xbf16>, vector<16x16xf32> -> vector<16x16xf32>
    %224 = tpu.concatenate %157, %179, %201, %223 in 1 : vector<16x16xf32>, vector<16x16xf32>, vector<16x16xf32>, vector<16x16xf32> -> vector<16x64xf32>
    %225 = tpu.concatenate %134, %224 in 0 : vector<16x64xf32>, vector<16x64xf32> -> vector<32x64xf32>
    %226 = arith.truncf %225 : vector<32x64xf32> to vector<32x64xbf16>
    %cst_66 = arith.constant dense<0.000000e+00> : vector<32x64xf32>
    %227 = tpu.matmul %226, %38, %cst_66 {dimension_numbers = #tpu.dot_dimension_numbers<[1], [0], [0], [1], [0, 0, 1, 1], [], []>} : vector<32x64xbf16>, vector<64x64xbf16>, vector<32x64xf32> -> vector<32x64xf32>
    %228 = vector.broadcast %40 : vector<1x64xf32> to vector<32x64xf32>
    %229 = arith.addf %227, %228 : vector<32x64xf32>
    %230 = arith.addf %0, %229 : vector<32x64xf32>
    %c0_67 = arith.constant 0 : index
    %c0_68 = arith.constant 0 : index
    %c0_69 = arith.constant 0 : index
    %231 = vector.load %arg9[%c0_67, %c0_68, %c0_69] : memref<2x1x64xf32, #tpu.memory_space<vmem>>, vector<1x1x64xf32>
    %232 = vector.shape_cast %231 : vector<1x1x64xf32> to vector<1x64xf32>
    %c0_70 = arith.constant 0 : index
    %c0_71 = arith.constant 0 : index
    %c0_72 = arith.constant 0 : index
    %233 = vector.load %arg10[%c0_70, %c0_71, %c0_72] : memref<2x1x64xf32, #tpu.memory_space<vmem>>, vector<1x1x64xf32>
    %234 = vector.shape_cast %233 : vector<1x1x64xf32> to vector<1x64xf32>
    %cst_73 = arith.constant dense<0.000000e+00> : vector<32xf32>
    %235 = vector.multi_reduction <add>, %230, %cst_73 [1] : vector<32x64xf32> to vector<32xf32>
    %236 = vector.shape_cast %235 : vector<32xf32> to vector<32x1xf32>
    %cst_74 = arith.constant 6.400000e+01 : f32
    %237 = vector.broadcast %cst_74 : f32 to vector<32x1xf32>
    %238 = arith.divf %236, %237 : vector<32x1xf32>
    %239 = vector.broadcast %238 : vector<32x1xf32> to vector<32x64xf32>
    %240 = arith.subf %230, %239 : vector<32x64xf32>
    %241 = arith.mulf %240, %240 : vector<32x64xf32>
    %cst_75 = arith.constant dense<0.000000e+00> : vector<32xf32>
    %242 = vector.multi_reduction <add>, %241, %cst_75 [1] : vector<32x64xf32> to vector<32xf32>
    %243 = vector.shape_cast %242 : vector<32xf32> to vector<32x1xf32>
    %cst_76 = arith.constant 6.400000e+01 : f32
    %244 = vector.broadcast %cst_76 : f32 to vector<32x1xf32>
    %245 = arith.divf %243, %244 : vector<32x1xf32>
    %246 = vector.broadcast %238 : vector<32x1xf32> to vector<32x64xf32>
    %247 = arith.subf %230, %246 : vector<32x64xf32>
    %cst_77 = arith.constant 9.99999974E-6 : f32
    %248 = vector.broadcast %cst_77 : f32 to vector<32x1xf32>
    %249 = arith.addf %245, %248 : vector<32x1xf32>
    %250 = math.rsqrt %249 : vector<32x1xf32>
    %251 = vector.broadcast %250 : vector<32x1xf32> to vector<32x64xf32>
    %252 = arith.mulf %247, %251 : vector<32x64xf32>
    %253 = vector.broadcast %232 : vector<1x64xf32> to vector<32x64xf32>
    %254 = arith.mulf %252, %253 : vector<32x64xf32>
    %255 = vector.broadcast %234 : vector<1x64xf32> to vector<32x64xf32>
    %256 = arith.addf %254, %255 : vector<32x64xf32>
    %c0_78 = arith.constant 0 : index
    %c0_79 = arith.constant 0 : index
    %c0_80 = arith.constant 0 : index
    %257 = vector.load %arg11[%c0_78, %c0_79, %c0_80] : memref<2x64x256xbf16, #tpu.memory_space<vmem>>, vector<1x64x256xbf16>
    %258 = vector.shape_cast %257 : vector<1x64x256xbf16> to vector<64x256xbf16>
    %c0_81 = arith.constant 0 : index
    %c0_82 = arith.constant 0 : index
    %c0_83 = arith.constant 0 : index
    %259 = vector.load %arg12[%c0_81, %c0_82, %c0_83] : memref<2x1x256xf32, #tpu.memory_space<vmem>>, vector<1x1x256xf32>
    %260 = vector.shape_cast %259 : vector<1x1x256xf32> to vector<1x256xf32>
    %c0_84 = arith.constant 0 : index
    %c0_85 = arith.constant 0 : index
    %c0_86 = arith.constant 0 : index
    %261 = vector.load %arg13[%c0_84, %c0_85, %c0_86] : memref<2x256x64xbf16, #tpu.memory_space<vmem>>, vector<1x256x64xbf16>
    %262 = vector.shape_cast %261 : vector<1x256x64xbf16> to vector<256x64xbf16>
    %c0_87 = arith.constant 0 : index
    %c0_88 = arith.constant 0 : index
    %c0_89 = arith.constant 0 : index
    %263 = vector.load %arg14[%c0_87, %c0_88, %c0_89] : memref<2x1x64xf32, #tpu.memory_space<vmem>>, vector<1x1x64xf32>
    %264 = vector.shape_cast %263 : vector<1x1x64xf32> to vector<1x64xf32>
    %265 = arith.truncf %256 : vector<32x64xf32> to vector<32x64xbf16>
    %cst_90 = arith.constant dense<0.000000e+00> : vector<32x256xf32>
    %266 = tpu.matmul %265, %258, %cst_90 {dimension_numbers = #tpu.dot_dimension_numbers<[1], [0], [0], [1], [0, 0, 1, 1], [], []>} : vector<32x64xbf16>, vector<64x256xbf16>, vector<32x256xf32> -> vector<32x256xf32>
    %267 = vector.broadcast %260 : vector<1x256xf32> to vector<32x256xf32>
    %268 = arith.addf %266, %267 : vector<32x256xf32>
    %cst_91 = arith.constant 1.702000e+00 : f32
    %269 = vector.broadcast %cst_91 : f32 to vector<32x256xf32>
    %270 = arith.mulf %269, %268 : vector<32x256xf32>
    %271 = arith.negf %270 : vector<32x256xf32>
    %272 = math.exp %271 : vector<32x256xf32>
    %cst_92 = arith.constant 1.000000e+00 : f32
    %273 = vector.broadcast %cst_92 : f32 to vector<32x256xf32>
    %274 = arith.addf %273, %272 : vector<32x256xf32>
    %275 = arith.divf %273, %274 : vector<32x256xf32>
    %276 = arith.mulf %268, %275 : vector<32x256xf32>
    %277 = arith.truncf %276 : vector<32x256xf32> to vector<32x256xbf16>
    %cst_93 = arith.constant dense<0.000000e+00> : vector<32x64xf32>
    %278 = tpu.matmul %277, %262, %cst_93 {dimension_numbers = #tpu.dot_dimension_numbers<[1], [0], [0], [1], [0, 0, 1, 1], [], []>} : vector<32x256xbf16>, vector<256x64xbf16>, vector<32x64xf32> -> vector<32x64xf32>
    %279 = vector.broadcast %264 : vector<1x64xf32> to vector<32x64xf32>
    %280 = arith.addf %278, %279 : vector<32x64xf32>
    %281 = arith.addf %230, %280 : vector<32x64xf32>
    %c1 = arith.constant 1 : index
    %c0_94 = arith.constant 0 : index
    %c0_95 = arith.constant 0 : index
    %282 = vector.load %arg3[%c1, %c0_94, %c0_95] : memref<2x1x64xf32, #tpu.memory_space<vmem>>, vector<1x1x64xf32>
    %283 = vector.shape_cast %282 : vector<1x1x64xf32> to vector<1x64xf32>
    %c1_96 = arith.constant 1 : index
    %c0_97 = arith.constant 0 : index
    %c0_98 = arith.constant 0 : index
    %284 = vector.load %arg4[%c1_96, %c0_97, %c0_98] : memref<2x1x64xf32, #tpu.memory_space<vmem>>, vector<1x1x64xf32>
    %285 = vector.shape_cast %284 : vector<1x1x64xf32> to vector<1x64xf32>
    %cst_99 = arith.constant dense<0.000000e+00> : vector<32xf32>
    %286 = vector.multi_reduction <add>, %281, %cst_99 [1] : vector<32x64xf32> to vector<32xf32>
    %287 = vector.shape_cast %286 : vector<32xf32> to vector<32x1xf32>
    %cst_100 = arith.constant 6.400000e+01 : f32
    %288 = vector.broadcast %cst_100 : f32 to vector<32x1xf32>
    %289 = arith.divf %287, %288 : vector<32x1xf32>
    %290 = vector.broadcast %289 : vector<32x1xf32> to vector<32x64xf32>
    %291 = arith.subf %281, %290 : vector<32x64xf32>
    %292 = arith.mulf %291, %291 : vector<32x64xf32>
    %cst_101 = arith.constant dense<0.000000e+00> : vector<32xf32>
    %293 = vector.multi_reduction <add>, %292, %cst_101 [1] : vector<32x64xf32> to vector<32xf32>
    %294 = vector.shape_cast %293 : vector<32xf32> to vector<32x1xf32>
    %cst_102 = arith.constant 6.400000e+01 : f32
    %295 = vector.broadcast %cst_102 : f32 to vector<32x1xf32>
    %296 = arith.divf %294, %295 : vector<32x1xf32>
    %297 = vector.broadcast %289 : vector<32x1xf32> to vector<32x64xf32>
    %298 = arith.subf %281, %297 : vector<32x64xf32>
    %cst_103 = arith.constant 9.99999974E-6 : f32
    %299 = vector.broadcast %cst_103 : f32 to vector<32x1xf32>
    %300 = arith.addf %296, %299 : vector<32x1xf32>
    %301 = math.rsqrt %300 : vector<32x1xf32>
    %302 = vector.broadcast %301 : vector<32x1xf32> to vector<32x64xf32>
    %303 = arith.mulf %298, %302 : vector<32x64xf32>
    %304 = vector.broadcast %283 : vector<1x64xf32> to vector<32x64xf32>
    %305 = arith.mulf %303, %304 : vector<32x64xf32>
    %306 = vector.broadcast %285 : vector<1x64xf32> to vector<32x64xf32>
    %307 = arith.addf %305, %306 : vector<32x64xf32>
    %c1_104 = arith.constant 1 : index
    %c0_105 = arith.constant 0 : index
    %c0_106 = arith.constant 0 : index
    %308 = vector.load %arg5[%c1_104, %c0_105, %c0_106] : memref<2x64x192xbf16, #tpu.memory_space<vmem>>, vector<1x64x192xbf16>
    %309 = vector.shape_cast %308 : vector<1x64x192xbf16> to vector<64x192xbf16>
    %c1_107 = arith.constant 1 : index
    %c0_108 = arith.constant 0 : index
    %c0_109 = arith.constant 0 : index
    %310 = vector.load %arg6[%c1_107, %c0_108, %c0_109] : memref<2x1x192xf32, #tpu.memory_space<vmem>>, vector<1x1x192xf32>
    %311 = vector.shape_cast %310 : vector<1x1x192xf32> to vector<1x192xf32>
    %c1_110 = arith.constant 1 : index
    %c0_111 = arith.constant 0 : index
    %c0_112 = arith.constant 0 : index
    %312 = vector.load %arg7[%c1_110, %c0_111, %c0_112] : memref<2x64x64xbf16, #tpu.memory_space<vmem>>, vector<1x64x64xbf16>
    %313 = vector.shape_cast %312 : vector<1x64x64xbf16> to vector<64x64xbf16>
    %c1_113 = arith.constant 1 : index
    %c0_114 = arith.constant 0 : index
    %c0_115 = arith.constant 0 : index
    %314 = vector.load %arg8[%c1_113, %c0_114, %c0_115] : memref<2x1x64xf32, #tpu.memory_space<vmem>>, vector<1x1x64xf32>
    %315 = vector.shape_cast %314 : vector<1x1x64xf32> to vector<1x64xf32>
    %316 = arith.truncf %307 : vector<32x64xf32> to vector<32x64xbf16>
    %cst_116 = arith.constant dense<0.000000e+00> : vector<32x192xf32>
    %317 = tpu.matmul %316, %309, %cst_116 {dimension_numbers = #tpu.dot_dimension_numbers<[1], [0], [0], [1], [0, 0, 1, 1], [], []>} : vector<32x64xbf16>, vector<64x192xbf16>, vector<32x192xf32> -> vector<32x192xf32>
    %318 = vector.broadcast %311 : vector<1x192xf32> to vector<32x192xf32>
    %319 = arith.addf %317, %318 : vector<32x192xf32>
    %320 = vector.extract_strided_slice %319 {offsets = [0, 0], sizes = [16, 192], strides = [1, 1]} : vector<32x192xf32> to vector<16x192xf32>
    %321 = vector.extract_strided_slice %320 {offsets = [0, 0], sizes = [16, 16], strides = [1, 1]} : vector<16x192xf32> to vector<16x16xf32>
    %322 = arith.truncf %321 : vector<16x16xf32> to vector<16x16xbf16>
    %323 = vector.extract_strided_slice %320 {offsets = [0, 64], sizes = [16, 16], strides = [1, 1]} : vector<16x192xf32> to vector<16x16xf32>
    %324 = arith.truncf %323 : vector<16x16xf32> to vector<16x16xbf16>
    %325 = vector.extract_strided_slice %320 {offsets = [0, 128], sizes = [16, 16], strides = [1, 1]} : vector<16x192xf32> to vector<16x16xf32>
    %326 = arith.truncf %325 : vector<16x16xf32> to vector<16x16xbf16>
    %cst_117 = arith.constant dense<0.000000e+00> : vector<16x16xf32>
    %327 = tpu.matmul %322, %324, %cst_117 {dimension_numbers = #tpu.dot_dimension_numbers<[1], [1], [0], [0], [0, 0, 1, 0], [], []>} : vector<16x16xbf16>, vector<16x16xbf16>, vector<16x16xf32> -> vector<16x16xf32>
    %cst_118 = arith.constant 2.500000e-01 : f32
    %328 = vector.broadcast %cst_118 : f32 to vector<16x16xf32>
    %329 = arith.mulf %327, %328 : vector<16x16xf32>
    %330 = arith.addf %329, %6 : vector<16x16xf32>
    %cst_119 = arith.constant dense<0xFF800000> : vector<16xf32>
    %331 = vector.multi_reduction <maximumf>, %330, %cst_119 [1] : vector<16x16xf32> to vector<16xf32>
    %332 = vector.shape_cast %331 : vector<16xf32> to vector<16x1xf32>
    %333 = vector.broadcast %332 : vector<16x1xf32> to vector<16x16xf32>
    %334 = arith.subf %330, %333 : vector<16x16xf32>
    %335 = math.exp %334 : vector<16x16xf32>
    %cst_120 = arith.constant dense<0.000000e+00> : vector<16xf32>
    %336 = vector.multi_reduction <add>, %335, %cst_120 [1] : vector<16x16xf32> to vector<16xf32>
    %337 = vector.shape_cast %336 : vector<16xf32> to vector<16x1xf32>
    %338 = tpu.reciprocal %337 {approx = true} : vector<16x1xf32> -> vector<16x1xf32>
    %339 = vector.broadcast %338 : vector<16x1xf32> to vector<16x16xf32>
    %340 = arith.mulf %335, %339 : vector<16x16xf32>
    %341 = arith.truncf %340 : vector<16x16xf32> to vector<16x16xbf16>
    %cst_121 = arith.constant dense<0.000000e+00> : vector<16x16xf32>
    %342 = tpu.matmul %341, %326, %cst_121 {dimension_numbers = #tpu.dot_dimension_numbers<[1], [0], [0], [1], [0, 0, 1, 1], [], []>} : vector<16x16xbf16>, vector<16x16xbf16>, vector<16x16xf32> -> vector<16x16xf32>
    %343 = vector.extract_strided_slice %320 {offsets = [0, 16], sizes = [16, 16], strides = [1, 1]} : vector<16x192xf32> to vector<16x16xf32>
    %344 = arith.truncf %343 : vector<16x16xf32> to vector<16x16xbf16>
    %345 = vector.extract_strided_slice %320 {offsets = [0, 80], sizes = [16, 16], strides = [1, 1]} : vector<16x192xf32> to vector<16x16xf32>
    %346 = arith.truncf %345 : vector<16x16xf32> to vector<16x16xbf16>
    %347 = vector.extract_strided_slice %320 {offsets = [0, 144], sizes = [16, 16], strides = [1, 1]} : vector<16x192xf32> to vector<16x16xf32>
    %348 = arith.truncf %347 : vector<16x16xf32> to vector<16x16xbf16>
    %cst_122 = arith.constant dense<0.000000e+00> : vector<16x16xf32>
    %349 = tpu.matmul %344, %346, %cst_122 {dimension_numbers = #tpu.dot_dimension_numbers<[1], [1], [0], [0], [0, 0, 1, 0], [], []>} : vector<16x16xbf16>, vector<16x16xbf16>, vector<16x16xf32> -> vector<16x16xf32>
    %cst_123 = arith.constant 2.500000e-01 : f32
    %350 = vector.broadcast %cst_123 : f32 to vector<16x16xf32>
    %351 = arith.mulf %349, %350 : vector<16x16xf32>
    %352 = arith.addf %351, %6 : vector<16x16xf32>
    %cst_124 = arith.constant dense<0xFF800000> : vector<16xf32>
    %353 = vector.multi_reduction <maximumf>, %352, %cst_124 [1] : vector<16x16xf32> to vector<16xf32>
    %354 = vector.shape_cast %353 : vector<16xf32> to vector<16x1xf32>
    %355 = vector.broadcast %354 : vector<16x1xf32> to vector<16x16xf32>
    %356 = arith.subf %352, %355 : vector<16x16xf32>
    %357 = math.exp %356 : vector<16x16xf32>
    %cst_125 = arith.constant dense<0.000000e+00> : vector<16xf32>
    %358 = vector.multi_reduction <add>, %357, %cst_125 [1] : vector<16x16xf32> to vector<16xf32>
    %359 = vector.shape_cast %358 : vector<16xf32> to vector<16x1xf32>
    %360 = tpu.reciprocal %359 {approx = true} : vector<16x1xf32> -> vector<16x1xf32>
    %361 = vector.broadcast %360 : vector<16x1xf32> to vector<16x16xf32>
    %362 = arith.mulf %357, %361 : vector<16x16xf32>
    %363 = arith.truncf %362 : vector<16x16xf32> to vector<16x16xbf16>
    %cst_126 = arith.constant dense<0.000000e+00> : vector<16x16xf32>
    %364 = tpu.matmul %363, %348, %cst_126 {dimension_numbers = #tpu.dot_dimension_numbers<[1], [0], [0], [1], [0, 0, 1, 1], [], []>} : vector<16x16xbf16>, vector<16x16xbf16>, vector<16x16xf32> -> vector<16x16xf32>
    %365 = vector.extract_strided_slice %320 {offsets = [0, 32], sizes = [16, 16], strides = [1, 1]} : vector<16x192xf32> to vector<16x16xf32>
    %366 = arith.truncf %365 : vector<16x16xf32> to vector<16x16xbf16>
    %367 = vector.extract_strided_slice %320 {offsets = [0, 96], sizes = [16, 16], strides = [1, 1]} : vector<16x192xf32> to vector<16x16xf32>
    %368 = arith.truncf %367 : vector<16x16xf32> to vector<16x16xbf16>
    %369 = vector.extract_strided_slice %320 {offsets = [0, 160], sizes = [16, 16], strides = [1, 1]} : vector<16x192xf32> to vector<16x16xf32>
    %370 = arith.truncf %369 : vector<16x16xf32> to vector<16x16xbf16>
    %cst_127 = arith.constant dense<0.000000e+00> : vector<16x16xf32>
    %371 = tpu.matmul %366, %368, %cst_127 {dimension_numbers = #tpu.dot_dimension_numbers<[1], [1], [0], [0], [0, 0, 1, 0], [], []>} : vector<16x16xbf16>, vector<16x16xbf16>, vector<16x16xf32> -> vector<16x16xf32>
    %cst_128 = arith.constant 2.500000e-01 : f32
    %372 = vector.broadcast %cst_128 : f32 to vector<16x16xf32>
    %373 = arith.mulf %371, %372 : vector<16x16xf32>
    %374 = arith.addf %373, %6 : vector<16x16xf32>
    %cst_129 = arith.constant dense<0xFF800000> : vector<16xf32>
    %375 = vector.multi_reduction <maximumf>, %374, %cst_129 [1] : vector<16x16xf32> to vector<16xf32>
    %376 = vector.shape_cast %375 : vector<16xf32> to vector<16x1xf32>
    %377 = vector.broadcast %376 : vector<16x1xf32> to vector<16x16xf32>
    %378 = arith.subf %374, %377 : vector<16x16xf32>
    %379 = math.exp %378 : vector<16x16xf32>
    %cst_130 = arith.constant dense<0.000000e+00> : vector<16xf32>
    %380 = vector.multi_reduction <add>, %379, %cst_130 [1] : vector<16x16xf32> to vector<16xf32>
    %381 = vector.shape_cast %380 : vector<16xf32> to vector<16x1xf32>
    %382 = tpu.reciprocal %381 {approx = true} : vector<16x1xf32> -> vector<16x1xf32>
    %383 = vector.broadcast %382 : vector<16x1xf32> to vector<16x16xf32>
    %384 = arith.mulf %379, %383 : vector<16x16xf32>
    %385 = arith.truncf %384 : vector<16x16xf32> to vector<16x16xbf16>
    %cst_131 = arith.constant dense<0.000000e+00> : vector<16x16xf32>
    %386 = tpu.matmul %385, %370, %cst_131 {dimension_numbers = #tpu.dot_dimension_numbers<[1], [0], [0], [1], [0, 0, 1, 1], [], []>} : vector<16x16xbf16>, vector<16x16xbf16>, vector<16x16xf32> -> vector<16x16xf32>
    %387 = vector.extract_strided_slice %320 {offsets = [0, 48], sizes = [16, 16], strides = [1, 1]} : vector<16x192xf32> to vector<16x16xf32>
    %388 = arith.truncf %387 : vector<16x16xf32> to vector<16x16xbf16>
    %389 = vector.extract_strided_slice %320 {offsets = [0, 112], sizes = [16, 16], strides = [1, 1]} : vector<16x192xf32> to vector<16x16xf32>
    %390 = arith.truncf %389 : vector<16x16xf32> to vector<16x16xbf16>
    %391 = vector.extract_strided_slice %320 {offsets = [0, 176], sizes = [16, 16], strides = [1, 1]} : vector<16x192xf32> to vector<16x16xf32>
    %392 = arith.truncf %391 : vector<16x16xf32> to vector<16x16xbf16>
    %cst_132 = arith.constant dense<0.000000e+00> : vector<16x16xf32>
    %393 = tpu.matmul %388, %390, %cst_132 {dimension_numbers = #tpu.dot_dimension_numbers<[1], [1], [0], [0], [0, 0, 1, 0], [], []>} : vector<16x16xbf16>, vector<16x16xbf16>, vector<16x16xf32> -> vector<16x16xf32>
    %cst_133 = arith.constant 2.500000e-01 : f32
    %394 = vector.broadcast %cst_133 : f32 to vector<16x16xf32>
    %395 = arith.mulf %393, %394 : vector<16x16xf32>
    %396 = arith.addf %395, %6 : vector<16x16xf32>
    %cst_134 = arith.constant dense<0xFF800000> : vector<16xf32>
    %397 = vector.multi_reduction <maximumf>, %396, %cst_134 [1] : vector<16x16xf32> to vector<16xf32>
    %398 = vector.shape_cast %397 : vector<16xf32> to vector<16x1xf32>
    %399 = vector.broadcast %398 : vector<16x1xf32> to vector<16x16xf32>
    %400 = arith.subf %396, %399 : vector<16x16xf32>
    %401 = math.exp %400 : vector<16x16xf32>
    %cst_135 = arith.constant dense<0.000000e+00> : vector<16xf32>
    %402 = vector.multi_reduction <add>, %401, %cst_135 [1] : vector<16x16xf32> to vector<16xf32>
    %403 = vector.shape_cast %402 : vector<16xf32> to vector<16x1xf32>
    %404 = tpu.reciprocal %403 {approx = true} : vector<16x1xf32> -> vector<16x1xf32>
    %405 = vector.broadcast %404 : vector<16x1xf32> to vector<16x16xf32>
    %406 = arith.mulf %401, %405 : vector<16x16xf32>
    %407 = arith.truncf %406 : vector<16x16xf32> to vector<16x16xbf16>
    %cst_136 = arith.constant dense<0.000000e+00> : vector<16x16xf32>
    %408 = tpu.matmul %407, %392, %cst_136 {dimension_numbers = #tpu.dot_dimension_numbers<[1], [0], [0], [1], [0, 0, 1, 1], [], []>} : vector<16x16xbf16>, vector<16x16xbf16>, vector<16x16xf32> -> vector<16x16xf32>
    %409 = tpu.concatenate %342, %364, %386, %408 in 1 : vector<16x16xf32>, vector<16x16xf32>, vector<16x16xf32>, vector<16x16xf32> -> vector<16x64xf32>
    %410 = vector.extract_strided_slice %319 {offsets = [16, 0], sizes = [16, 192], strides = [1, 1]} : vector<32x192xf32> to vector<16x192xf32>
    %411 = vector.extract_strided_slice %410 {offsets = [0, 0], sizes = [16, 16], strides = [1, 1]} : vector<16x192xf32> to vector<16x16xf32>
    %412 = arith.truncf %411 : vector<16x16xf32> to vector<16x16xbf16>
    %413 = vector.extract_strided_slice %410 {offsets = [0, 64], sizes = [16, 16], strides = [1, 1]} : vector<16x192xf32> to vector<16x16xf32>
    %414 = arith.truncf %413 : vector<16x16xf32> to vector<16x16xbf16>
    %415 = vector.extract_strided_slice %410 {offsets = [0, 128], sizes = [16, 16], strides = [1, 1]} : vector<16x192xf32> to vector<16x16xf32>
    %416 = arith.truncf %415 : vector<16x16xf32> to vector<16x16xbf16>
    %cst_137 = arith.constant dense<0.000000e+00> : vector<16x16xf32>
    %417 = tpu.matmul %412, %414, %cst_137 {dimension_numbers = #tpu.dot_dimension_numbers<[1], [1], [0], [0], [0, 0, 1, 0], [], []>} : vector<16x16xbf16>, vector<16x16xbf16>, vector<16x16xf32> -> vector<16x16xf32>
    %cst_138 = arith.constant 2.500000e-01 : f32
    %418 = vector.broadcast %cst_138 : f32 to vector<16x16xf32>
    %419 = arith.mulf %417, %418 : vector<16x16xf32>
    %420 = arith.addf %419, %6 : vector<16x16xf32>
    %cst_139 = arith.constant dense<0xFF800000> : vector<16xf32>
    %421 = vector.multi_reduction <maximumf>, %420, %cst_139 [1] : vector<16x16xf32> to vector<16xf32>
    %422 = vector.shape_cast %421 : vector<16xf32> to vector<16x1xf32>
    %423 = vector.broadcast %422 : vector<16x1xf32> to vector<16x16xf32>
    %424 = arith.subf %420, %423 : vector<16x16xf32>
    %425 = math.exp %424 : vector<16x16xf32>
    %cst_140 = arith.constant dense<0.000000e+00> : vector<16xf32>
    %426 = vector.multi_reduction <add>, %425, %cst_140 [1] : vector<16x16xf32> to vector<16xf32>
    %427 = vector.shape_cast %426 : vector<16xf32> to vector<16x1xf32>
    %428 = tpu.reciprocal %427 {approx = true} : vector<16x1xf32> -> vector<16x1xf32>
    %429 = vector.broadcast %428 : vector<16x1xf32> to vector<16x16xf32>
    %430 = arith.mulf %425, %429 : vector<16x16xf32>
    %431 = arith.truncf %430 : vector<16x16xf32> to vector<16x16xbf16>
    %cst_141 = arith.constant dense<0.000000e+00> : vector<16x16xf32>
    %432 = tpu.matmul %431, %416, %cst_141 {dimension_numbers = #tpu.dot_dimension_numbers<[1], [0], [0], [1], [0, 0, 1, 1], [], []>} : vector<16x16xbf16>, vector<16x16xbf16>, vector<16x16xf32> -> vector<16x16xf32>
    %433 = vector.extract_strided_slice %410 {offsets = [0, 16], sizes = [16, 16], strides = [1, 1]} : vector<16x192xf32> to vector<16x16xf32>
    %434 = arith.truncf %433 : vector<16x16xf32> to vector<16x16xbf16>
    %435 = vector.extract_strided_slice %410 {offsets = [0, 80], sizes = [16, 16], strides = [1, 1]} : vector<16x192xf32> to vector<16x16xf32>
    %436 = arith.truncf %435 : vector<16x16xf32> to vector<16x16xbf16>
    %437 = vector.extract_strided_slice %410 {offsets = [0, 144], sizes = [16, 16], strides = [1, 1]} : vector<16x192xf32> to vector<16x16xf32>
    %438 = arith.truncf %437 : vector<16x16xf32> to vector<16x16xbf16>
    %cst_142 = arith.constant dense<0.000000e+00> : vector<16x16xf32>
    %439 = tpu.matmul %434, %436, %cst_142 {dimension_numbers = #tpu.dot_dimension_numbers<[1], [1], [0], [0], [0, 0, 1, 0], [], []>} : vector<16x16xbf16>, vector<16x16xbf16>, vector<16x16xf32> -> vector<16x16xf32>
    %cst_143 = arith.constant 2.500000e-01 : f32
    %440 = vector.broadcast %cst_143 : f32 to vector<16x16xf32>
    %441 = arith.mulf %439, %440 : vector<16x16xf32>
    %442 = arith.addf %441, %6 : vector<16x16xf32>
    %cst_144 = arith.constant dense<0xFF800000> : vector<16xf32>
    %443 = vector.multi_reduction <maximumf>, %442, %cst_144 [1] : vector<16x16xf32> to vector<16xf32>
    %444 = vector.shape_cast %443 : vector<16xf32> to vector<16x1xf32>
    %445 = vector.broadcast %444 : vector<16x1xf32> to vector<16x16xf32>
    %446 = arith.subf %442, %445 : vector<16x16xf32>
    %447 = math.exp %446 : vector<16x16xf32>
    %cst_145 = arith.constant dense<0.000000e+00> : vector<16xf32>
    %448 = vector.multi_reduction <add>, %447, %cst_145 [1] : vector<16x16xf32> to vector<16xf32>
    %449 = vector.shape_cast %448 : vector<16xf32> to vector<16x1xf32>
    %450 = tpu.reciprocal %449 {approx = true} : vector<16x1xf32> -> vector<16x1xf32>
    %451 = vector.broadcast %450 : vector<16x1xf32> to vector<16x16xf32>
    %452 = arith.mulf %447, %451 : vector<16x16xf32>
    %453 = arith.truncf %452 : vector<16x16xf32> to vector<16x16xbf16>
    %cst_146 = arith.constant dense<0.000000e+00> : vector<16x16xf32>
    %454 = tpu.matmul %453, %438, %cst_146 {dimension_numbers = #tpu.dot_dimension_numbers<[1], [0], [0], [1], [0, 0, 1, 1], [], []>} : vector<16x16xbf16>, vector<16x16xbf16>, vector<16x16xf32> -> vector<16x16xf32>
    %455 = vector.extract_strided_slice %410 {offsets = [0, 32], sizes = [16, 16], strides = [1, 1]} : vector<16x192xf32> to vector<16x16xf32>
    %456 = arith.truncf %455 : vector<16x16xf32> to vector<16x16xbf16>
    %457 = vector.extract_strided_slice %410 {offsets = [0, 96], sizes = [16, 16], strides = [1, 1]} : vector<16x192xf32> to vector<16x16xf32>
    %458 = arith.truncf %457 : vector<16x16xf32> to vector<16x16xbf16>
    %459 = vector.extract_strided_slice %410 {offsets = [0, 160], sizes = [16, 16], strides = [1, 1]} : vector<16x192xf32> to vector<16x16xf32>
    %460 = arith.truncf %459 : vector<16x16xf32> to vector<16x16xbf16>
    %cst_147 = arith.constant dense<0.000000e+00> : vector<16x16xf32>
    %461 = tpu.matmul %456, %458, %cst_147 {dimension_numbers = #tpu.dot_dimension_numbers<[1], [1], [0], [0], [0, 0, 1, 0], [], []>} : vector<16x16xbf16>, vector<16x16xbf16>, vector<16x16xf32> -> vector<16x16xf32>
    %cst_148 = arith.constant 2.500000e-01 : f32
    %462 = vector.broadcast %cst_148 : f32 to vector<16x16xf32>
    %463 = arith.mulf %461, %462 : vector<16x16xf32>
    %464 = arith.addf %463, %6 : vector<16x16xf32>
    %cst_149 = arith.constant dense<0xFF800000> : vector<16xf32>
    %465 = vector.multi_reduction <maximumf>, %464, %cst_149 [1] : vector<16x16xf32> to vector<16xf32>
    %466 = vector.shape_cast %465 : vector<16xf32> to vector<16x1xf32>
    %467 = vector.broadcast %466 : vector<16x1xf32> to vector<16x16xf32>
    %468 = arith.subf %464, %467 : vector<16x16xf32>
    %469 = math.exp %468 : vector<16x16xf32>
    %cst_150 = arith.constant dense<0.000000e+00> : vector<16xf32>
    %470 = vector.multi_reduction <add>, %469, %cst_150 [1] : vector<16x16xf32> to vector<16xf32>
    %471 = vector.shape_cast %470 : vector<16xf32> to vector<16x1xf32>
    %472 = tpu.reciprocal %471 {approx = true} : vector<16x1xf32> -> vector<16x1xf32>
    %473 = vector.broadcast %472 : vector<16x1xf32> to vector<16x16xf32>
    %474 = arith.mulf %469, %473 : vector<16x16xf32>
    %475 = arith.truncf %474 : vector<16x16xf32> to vector<16x16xbf16>
    %cst_151 = arith.constant dense<0.000000e+00> : vector<16x16xf32>
    %476 = tpu.matmul %475, %460, %cst_151 {dimension_numbers = #tpu.dot_dimension_numbers<[1], [0], [0], [1], [0, 0, 1, 1], [], []>} : vector<16x16xbf16>, vector<16x16xbf16>, vector<16x16xf32> -> vector<16x16xf32>
    %477 = vector.extract_strided_slice %410 {offsets = [0, 48], sizes = [16, 16], strides = [1, 1]} : vector<16x192xf32> to vector<16x16xf32>
    %478 = arith.truncf %477 : vector<16x16xf32> to vector<16x16xbf16>
    %479 = vector.extract_strided_slice %410 {offsets = [0, 112], sizes = [16, 16], strides = [1, 1]} : vector<16x192xf32> to vector<16x16xf32>
    %480 = arith.truncf %479 : vector<16x16xf32> to vector<16x16xbf16>
    %481 = vector.extract_strided_slice %410 {offsets = [0, 176], sizes = [16, 16], strides = [1, 1]} : vector<16x192xf32> to vector<16x16xf32>
    %482 = arith.truncf %481 : vector<16x16xf32> to vector<16x16xbf16>
    %cst_152 = arith.constant dense<0.000000e+00> : vector<16x16xf32>
    %483 = tpu.matmul %478, %480, %cst_152 {dimension_numbers = #tpu.dot_dimension_numbers<[1], [1], [0], [0], [0, 0, 1, 0], [], []>} : vector<16x16xbf16>, vector<16x16xbf16>, vector<16x16xf32> -> vector<16x16xf32>
    %cst_153 = arith.constant 2.500000e-01 : f32
    %484 = vector.broadcast %cst_153 : f32 to vector<16x16xf32>
    %485 = arith.mulf %483, %484 : vector<16x16xf32>
    %486 = arith.addf %485, %6 : vector<16x16xf32>
    %cst_154 = arith.constant dense<0xFF800000> : vector<16xf32>
    %487 = vector.multi_reduction <maximumf>, %486, %cst_154 [1] : vector<16x16xf32> to vector<16xf32>
    %488 = vector.shape_cast %487 : vector<16xf32> to vector<16x1xf32>
    %489 = vector.broadcast %488 : vector<16x1xf32> to vector<16x16xf32>
    %490 = arith.subf %486, %489 : vector<16x16xf32>
    %491 = math.exp %490 : vector<16x16xf32>
    %cst_155 = arith.constant dense<0.000000e+00> : vector<16xf32>
    %492 = vector.multi_reduction <add>, %491, %cst_155 [1] : vector<16x16xf32> to vector<16xf32>
    %493 = vector.shape_cast %492 : vector<16xf32> to vector<16x1xf32>
    %494 = tpu.reciprocal %493 {approx = true} : vector<16x1xf32> -> vector<16x1xf32>
    %495 = vector.broadcast %494 : vector<16x1xf32> to vector<16x16xf32>
    %496 = arith.mulf %491, %495 : vector<16x16xf32>
    %497 = arith.truncf %496 : vector<16x16xf32> to vector<16x16xbf16>
    %cst_156 = arith.constant dense<0.000000e+00> : vector<16x16xf32>
    %498 = tpu.matmul %497, %482, %cst_156 {dimension_numbers = #tpu.dot_dimension_numbers<[1], [0], [0], [1], [0, 0, 1, 1], [], []>} : vector<16x16xbf16>, vector<16x16xbf16>, vector<16x16xf32> -> vector<16x16xf32>
    %499 = tpu.concatenate %432, %454, %476, %498 in 1 : vector<16x16xf32>, vector<16x16xf32>, vector<16x16xf32>, vector<16x16xf32> -> vector<16x64xf32>
    %500 = tpu.concatenate %409, %499 in 0 : vector<16x64xf32>, vector<16x64xf32> -> vector<32x64xf32>
    %501 = arith.truncf %500 : vector<32x64xf32> to vector<32x64xbf16>
    %cst_157 = arith.constant dense<0.000000e+00> : vector<32x64xf32>
    %502 = tpu.matmul %501, %313, %cst_157 {dimension_numbers = #tpu.dot_dimension_numbers<[1], [0], [0], [1], [0, 0, 1, 1], [], []>} : vector<32x64xbf16>, vector<64x64xbf16>, vector<32x64xf32> -> vector<32x64xf32>
    %503 = vector.broadcast %315 : vector<1x64xf32> to vector<32x64xf32>
    %504 = arith.addf %502, %503 : vector<32x64xf32>
    %505 = arith.addf %281, %504 : vector<32x64xf32>
    %c1_158 = arith.constant 1 : index
    %c0_159 = arith.constant 0 : index
    %c0_160 = arith.constant 0 : index
    %506 = vector.load %arg9[%c1_158, %c0_159, %c0_160] : memref<2x1x64xf32, #tpu.memory_space<vmem>>, vector<1x1x64xf32>
    %507 = vector.shape_cast %506 : vector<1x1x64xf32> to vector<1x64xf32>
    %c1_161 = arith.constant 1 : index
    %c0_162 = arith.constant 0 : index
    %c0_163 = arith.constant 0 : index
    %508 = vector.load %arg10[%c1_161, %c0_162, %c0_163] : memref<2x1x64xf32, #tpu.memory_space<vmem>>, vector<1x1x64xf32>
    %509 = vector.shape_cast %508 : vector<1x1x64xf32> to vector<1x64xf32>
    %cst_164 = arith.constant dense<0.000000e+00> : vector<32xf32>
    %510 = vector.multi_reduction <add>, %505, %cst_164 [1] : vector<32x64xf32> to vector<32xf32>
    %511 = vector.shape_cast %510 : vector<32xf32> to vector<32x1xf32>
    %cst_165 = arith.constant 6.400000e+01 : f32
    %512 = vector.broadcast %cst_165 : f32 to vector<32x1xf32>
    %513 = arith.divf %511, %512 : vector<32x1xf32>
    %514 = vector.broadcast %513 : vector<32x1xf32> to vector<32x64xf32>
    %515 = arith.subf %505, %514 : vector<32x64xf32>
    %516 = arith.mulf %515, %515 : vector<32x64xf32>
    %cst_166 = arith.constant dense<0.000000e+00> : vector<32xf32>
    %517 = vector.multi_reduction <add>, %516, %cst_166 [1] : vector<32x64xf32> to vector<32xf32>
    %518 = vector.shape_cast %517 : vector<32xf32> to vector<32x1xf32>
    %cst_167 = arith.constant 6.400000e+01 : f32
    %519 = vector.broadcast %cst_167 : f32 to vector<32x1xf32>
    %520 = arith.divf %518, %519 : vector<32x1xf32>
    %521 = vector.broadcast %513 : vector<32x1xf32> to vector<32x64xf32>
    %522 = arith.subf %505, %521 : vector<32x64xf32>
    %cst_168 = arith.constant 9.99999974E-6 : f32
    %523 = vector.broadcast %cst_168 : f32 to vector<32x1xf32>
    %524 = arith.addf %520, %523 : vector<32x1xf32>
    %525 = math.rsqrt %524 : vector<32x1xf32>
    %526 = vector.broadcast %525 : vector<32x1xf32> to vector<32x64xf32>
    %527 = arith.mulf %522, %526 : vector<32x64xf32>
    %528 = vector.broadcast %507 : vector<1x64xf32> to vector<32x64xf32>
    %529 = arith.mulf %527, %528 : vector<32x64xf32>
    %530 = vector.broadcast %509 : vector<1x64xf32> to vector<32x64xf32>
    %531 = arith.addf %529, %530 : vector<32x64xf32>
    %c1_169 = arith.constant 1 : index
    %c0_170 = arith.constant 0 : index
    %c0_171 = arith.constant 0 : index
    %532 = vector.load %arg11[%c1_169, %c0_170, %c0_171] : memref<2x64x256xbf16, #tpu.memory_space<vmem>>, vector<1x64x256xbf16>
    %533 = vector.shape_cast %532 : vector<1x64x256xbf16> to vector<64x256xbf16>
    %c1_172 = arith.constant 1 : index
    %c0_173 = arith.constant 0 : index
    %c0_174 = arith.constant 0 : index
    %534 = vector.load %arg12[%c1_172, %c0_173, %c0_174] : memref<2x1x256xf32, #tpu.memory_space<vmem>>, vector<1x1x256xf32>
    %535 = vector.shape_cast %534 : vector<1x1x256xf32> to vector<1x256xf32>
    %c1_175 = arith.constant 1 : index
    %c0_176 = arith.constant 0 : index
    %c0_177 = arith.constant 0 : index
    %536 = vector.load %arg13[%c1_175, %c0_176, %c0_177] : memref<2x256x64xbf16, #tpu.memory_space<vmem>>, vector<1x256x64xbf16>
    %537 = vector.shape_cast %536 : vector<1x256x64xbf16> to vector<256x64xbf16>
    %c1_178 = arith.constant 1 : index
    %c0_179 = arith.constant 0 : index
    %c0_180 = arith.constant 0 : index
    %538 = vector.load %arg14[%c1_178, %c0_179, %c0_180] : memref<2x1x64xf32, #tpu.memory_space<vmem>>, vector<1x1x64xf32>
    %539 = vector.shape_cast %538 : vector<1x1x64xf32> to vector<1x64xf32>
    %540 = arith.truncf %531 : vector<32x64xf32> to vector<32x64xbf16>
    %cst_181 = arith.constant dense<0.000000e+00> : vector<32x256xf32>
    %541 = tpu.matmul %540, %533, %cst_181 {dimension_numbers = #tpu.dot_dimension_numbers<[1], [0], [0], [1], [0, 0, 1, 1], [], []>} : vector<32x64xbf16>, vector<64x256xbf16>, vector<32x256xf32> -> vector<32x256xf32>
    %542 = vector.broadcast %535 : vector<1x256xf32> to vector<32x256xf32>
    %543 = arith.addf %541, %542 : vector<32x256xf32>
    %cst_182 = arith.constant 1.702000e+00 : f32
    %544 = vector.broadcast %cst_182 : f32 to vector<32x256xf32>
    %545 = arith.mulf %544, %543 : vector<32x256xf32>
    %546 = arith.negf %545 : vector<32x256xf32>
    %547 = math.exp %546 : vector<32x256xf32>
    %cst_183 = arith.constant 1.000000e+00 : f32
    %548 = vector.broadcast %cst_183 : f32 to vector<32x256xf32>
    %549 = arith.addf %548, %547 : vector<32x256xf32>
    %550 = arith.divf %548, %549 : vector<32x256xf32>
    %551 = arith.mulf %543, %550 : vector<32x256xf32>
    %552 = arith.truncf %551 : vector<32x256xf32> to vector<32x256xbf16>
    %cst_184 = arith.constant dense<0.000000e+00> : vector<32x64xf32>
    %553 = tpu.matmul %552, %537, %cst_184 {dimension_numbers = #tpu.dot_dimension_numbers<[1], [0], [0], [1], [0, 0, 1, 1], [], []>} : vector<32x256xbf16>, vector<256x64xbf16>, vector<32x64xf32> -> vector<32x64xf32>
    %554 = vector.broadcast %539 : vector<1x64xf32> to vector<32x64xf32>
    %555 = arith.addf %553, %554 : vector<32x64xf32>
    %556 = arith.addf %505, %555 : vector<32x64xf32>
    %c0_185 = arith.constant 0 : index
    %c0_186 = arith.constant 0 : index
    %557 = vector.load %arg15[%c0_185, %c0_186] : memref<1x64xf32, #tpu.memory_space<vmem>>, vector<1x64xf32>
    %c0_187 = arith.constant 0 : index
    %c0_188 = arith.constant 0 : index
    %558 = vector.load %arg16[%c0_187, %c0_188] : memref<1x64xf32, #tpu.memory_space<vmem>>, vector<1x64xf32>
    %cst_189 = arith.constant dense<0.000000e+00> : vector<32xf32>
    %559 = vector.multi_reduction <add>, %556, %cst_189 [1] : vector<32x64xf32> to vector<32xf32>
    %560 = vector.shape_cast %559 : vector<32xf32> to vector<32x1xf32>
    %cst_190 = arith.constant 6.400000e+01 : f32
    %561 = vector.broadcast %cst_190 : f32 to vector<32x1xf32>
    %562 = arith.divf %560, %561 : vector<32x1xf32>
    %563 = vector.broadcast %562 : vector<32x1xf32> to vector<32x64xf32>
    %564 = arith.subf %556, %563 : vector<32x64xf32>
    %565 = arith.mulf %564, %564 : vector<32x64xf32>
    %cst_191 = arith.constant dense<0.000000e+00> : vector<32xf32>
    %566 = vector.multi_reduction <add>, %565, %cst_191 [1] : vector<32x64xf32> to vector<32xf32>
    %567 = vector.shape_cast %566 : vector<32xf32> to vector<32x1xf32>
    %cst_192 = arith.constant 6.400000e+01 : f32
    %568 = vector.broadcast %cst_192 : f32 to vector<32x1xf32>
    %569 = arith.divf %567, %568 : vector<32x1xf32>
    %570 = vector.broadcast %562 : vector<32x1xf32> to vector<32x64xf32>
    %571 = arith.subf %556, %570 : vector<32x64xf32>
    %cst_193 = arith.constant 9.99999974E-6 : f32
    %572 = vector.broadcast %cst_193 : f32 to vector<32x1xf32>
    %573 = arith.addf %569, %572 : vector<32x1xf32>
    %574 = math.rsqrt %573 : vector<32x1xf32>
    %575 = vector.broadcast %574 : vector<32x1xf32> to vector<32x64xf32>
    %576 = arith.mulf %571, %575 : vector<32x64xf32>
    %577 = vector.broadcast %557 : vector<1x64xf32> to vector<32x64xf32>
    %578 = arith.mulf %576, %577 : vector<32x64xf32>
    %579 = vector.broadcast %558 : vector<1x64xf32> to vector<32x64xf32>
    %580 = arith.addf %578, %579 : vector<32x64xf32>
    %581 = vector.extract_strided_slice %580 {offsets = [0, 0], sizes = [16, 64], strides = [1, 1]} : vector<32x64xf32> to vector<16x64xf32>
    %c0_194 = arith.constant 0 : index
    %c0_195 = arith.constant 0 : index
    %c0_196 = arith.constant 0 : index
    %582 = vector.load %arg2[%c0_194, %c0_195, %c0_196] : memref<2x1x16xf32, #tpu.memory_space<vmem>>, vector<1x1x16xf32>
    %583 = vector.shape_cast %582 : vector<1x1x16xf32> to vector<1x16xf32>
    %cst_197 = arith.constant dense<0.000000e+00> : vector<1x64xf32>
    %584 = tpu.matmul %583, %581, %cst_197 {dimension_numbers = #tpu.dot_dimension_numbers<[1], [0], [0], [1], [0, 0, 1, 1], [], []>} : vector<1x16xf32>, vector<16x64xf32>, vector<1x64xf32> -> vector<1x64xf32>
    %585 = vector.extract_strided_slice %580 {offsets = [16, 0], sizes = [16, 64], strides = [1, 1]} : vector<32x64xf32> to vector<16x64xf32>
    %c1_198 = arith.constant 1 : index
    %c0_199 = arith.constant 0 : index
    %c0_200 = arith.constant 0 : index
    %586 = vector.load %arg2[%c1_198, %c0_199, %c0_200] : memref<2x1x16xf32, #tpu.memory_space<vmem>>, vector<1x1x16xf32>
    %587 = vector.shape_cast %586 : vector<1x1x16xf32> to vector<1x16xf32>
    %cst_201 = arith.constant dense<0.000000e+00> : vector<1x64xf32>
    %588 = tpu.matmul %587, %585, %cst_201 {dimension_numbers = #tpu.dot_dimension_numbers<[1], [0], [0], [1], [0, 0, 1, 1], [], []>} : vector<1x16xf32>, vector<16x64xf32>, vector<1x64xf32> -> vector<1x64xf32>
    %589 = tpu.concatenate %584, %588 in 0 : vector<1x64xf32>, vector<1x64xf32> -> vector<2x64xf32>
    %590 = arith.truncf %589 : vector<2x64xf32> to vector<2x64xbf16>
    %c0_202 = arith.constant 0 : index
    %c0_203 = arith.constant 0 : index
    %591 = vector.load %arg17[%c0_202, %c0_203] : memref<64x32xbf16, #tpu.memory_space<vmem>>, vector<64x32xbf16>
    %cst_204 = arith.constant dense<0.000000e+00> : vector<2x32xf32>
    %592 = tpu.matmul %590, %591, %cst_204 {dimension_numbers = #tpu.dot_dimension_numbers<[1], [0], [0], [1], [0, 0, 1, 1], [], []>} : vector<2x64xbf16>, vector<64x32xbf16>, vector<2x32xf32> -> vector<2x32xf32>
    %c0_205 = arith.constant 0 : index
    %c0_206 = arith.constant 0 : index
    %c0_207 = arith.constant 0 : index
    %593 = vector.load %arg18[%c0_205, %c0_206, %c0_207] : memref<1x2x32xf32, #tpu.memory_space<vmem>>, vector<1x2x32xf32>
    %594 = vector.shape_cast %593 : vector<1x2x32xf32> to vector<2x32xf32>
    %595 = vector.shape_cast %592 : vector<2x32xf32> to vector<1x2x32xf32>
    tpu.vector_store %arg18[%c0_205, %c0_206, %c0_207], %595 {strides = array<i32>} : memref<1x2x32xf32, #tpu.memory_space<vmem>>, vector<1x2x32xf32>,
    return
  }
  func.func @transform_0(%arg0: i32) -> (i32, i32) {
    %c0_i32 = arith.constant 0 : i32
    %c0_i32_0 = arith.constant 0 : i32
    return %arg0, %c0_i32 : i32, i32
  }
  func.func @transform_1(%arg0: i32) -> (i32, i32, i32) {
    %c0_i32 = arith.constant 0 : i32
    %c0_i32_0 = arith.constant 0 : i32
    %c0_i32_1 = arith.constant 0 : i32
    return %arg0, %c0_i32, %c0_i32_0 : i32, i32, i32
  }
  func.func @transform_2(%arg0: i32) -> (i32, i32, i32) {
    %c0_i32 = arith.constant 0 : i32
    %c0_i32_0 = arith.constant 0 : i32
    %c0_i32_1 = arith.constant 0 : i32
    %c0_i32_2 = arith.constant 0 : i32
    return %c0_i32, %c0_i32_0, %c0_i32_1 : i32, i32, i32
  }
  func.func @transform_3(%arg0: i32) -> (i32, i32, i32) {
    %c0_i32 = arith.constant 0 : i32
    %c0_i32_0 = arith.constant 0 : i32
    %c0_i32_1 = arith.constant 0 : i32
    %c0_i32_2 = arith.constant 0 : i32
    return %c0_i32, %c0_i32_0, %c0_i32_1 : i32, i32, i32
  }
  func.func @transform_4(%arg0: i32) -> (i32, i32, i32) {
    %c0_i32 = arith.constant 0 : i32
    %c0_i32_0 = arith.constant 0 : i32
    %c0_i32_1 = arith.constant 0 : i32
    %c0_i32_2 = arith.constant 0 : i32
    return %c0_i32, %c0_i32_0, %c0_i32_1 : i32, i32, i32
  }
  func.func @transform_5(%arg0: i32) -> (i32, i32, i32) {
    %c0_i32 = arith.constant 0 : i32
    %c0_i32_0 = arith.constant 0 : i32
    %c0_i32_1 = arith.constant 0 : i32
    %c0_i32_2 = arith.constant 0 : i32
    return %c0_i32, %c0_i32_0, %c0_i32_1 : i32, i32, i32
  }
  func.func @transform_6(%arg0: i32) -> (i32, i32, i32) {
    %c0_i32 = arith.constant 0 : i32
    %c0_i32_0 = arith.constant 0 : i32
    %c0_i32_1 = arith.constant 0 : i32
    %c0_i32_2 = arith.constant 0 : i32
    return %c0_i32, %c0_i32_0, %c0_i32_1 : i32, i32, i32
  }
  func.func @transform_7(%arg0: i32) -> (i32, i32, i32) {
    %c0_i32 = arith.constant 0 : i32
    %c0_i32_0 = arith.constant 0 : i32
    %c0_i32_1 = arith.constant 0 : i32
    %c0_i32_2 = arith.constant 0 : i32
    return %c0_i32, %c0_i32_0, %c0_i32_1 : i32, i32, i32
  }
  func.func @transform_8(%arg0: i32) -> (i32, i32, i32) {
    %c0_i32 = arith.constant 0 : i32
    %c0_i32_0 = arith.constant 0 : i32
    %c0_i32_1 = arith.constant 0 : i32
    %c0_i32_2 = arith.constant 0 : i32
    return %c0_i32, %c0_i32_0, %c0_i32_1 : i32, i32, i32
  }
  func.func @transform_9(%arg0: i32) -> (i32, i32, i32) {
    %c0_i32 = arith.constant 0 : i32
    %c0_i32_0 = arith.constant 0 : i32
    %c0_i32_1 = arith.constant 0 : i32
    %c0_i32_2 = arith.constant 0 : i32
    return %c0_i32, %c0_i32_0, %c0_i32_1 : i32, i32, i32
  }
  func.func @transform_10(%arg0: i32) -> (i32, i32, i32) {
    %c0_i32 = arith.constant 0 : i32
    %c0_i32_0 = arith.constant 0 : i32
    %c0_i32_1 = arith.constant 0 : i32
    %c0_i32_2 = arith.constant 0 : i32
    return %c0_i32, %c0_i32_0, %c0_i32_1 : i32, i32, i32
  }
  func.func @transform_11(%arg0: i32) -> (i32, i32, i32) {
    %c0_i32 = arith.constant 0 : i32
    %c0_i32_0 = arith.constant 0 : i32
    %c0_i32_1 = arith.constant 0 : i32
    %c0_i32_2 = arith.constant 0 : i32
    return %c0_i32, %c0_i32_0, %c0_i32_1 : i32, i32, i32
  }
  func.func @transform_12(%arg0: i32) -> (i32, i32, i32) {
    %c0_i32 = arith.constant 0 : i32
    %c0_i32_0 = arith.constant 0 : i32
    %c0_i32_1 = arith.constant 0 : i32
    %c0_i32_2 = arith.constant 0 : i32
    return %c0_i32, %c0_i32_0, %c0_i32_1 : i32, i32, i32
  }
  func.func @transform_13(%arg0: i32) -> (i32, i32, i32) {
    %c0_i32 = arith.constant 0 : i32
    %c0_i32_0 = arith.constant 0 : i32
    %c0_i32_1 = arith.constant 0 : i32
    %c0_i32_2 = arith.constant 0 : i32
    return %c0_i32, %c0_i32_0, %c0_i32_1 : i32, i32, i32
  }
  func.func @transform_14(%arg0: i32) -> (i32, i32) {
    %c0_i32 = arith.constant 0 : i32
    %c0_i32_0 = arith.constant 0 : i32
    %c0_i32_1 = arith.constant 0 : i32
    return %c0_i32, %c0_i32_0 : i32, i32
  }
  func.func @transform_15(%arg0: i32) -> (i32, i32) {
    %c0_i32 = arith.constant 0 : i32
    %c0_i32_0 = arith.constant 0 : i32
    %c0_i32_1 = arith.constant 0 : i32
    return %c0_i32, %c0_i32_0 : i32, i32
  }
  func.func @transform_16(%arg0: i32) -> (i32, i32) {
    %c0_i32 = arith.constant 0 : i32
    %c0_i32_0 = arith.constant 0 : i32
    %c0_i32_1 = arith.constant 0 : i32
    return %c0_i32, %c0_i32_0 : i32, i32
  }
  func.func @transform_17(%arg0: i32) -> (i32, i32, i32) {
    %c0_i32 = arith.constant 0 : i32
    %c0_i32_0 = arith.constant 0 : i32
    %c0_i32_1 = arith.constant 0 : i32
    return %arg0, %c0_i32, %c0_i32_0 : i32, i32, i32
  }
}

</mosaic_0001>

<bundles_post_ra>
// kernel: custom_clip_forward.5
= control target key start
LH: loop header
LB: loop body
LE: loop exit
PB: predicated region body
PF: predicated region fallthrough
CT: control target
= control target key end

     0   :  { %vm27_vm0 = vcmask 257024   ;;  %s214_s0 = inlined_call_operand.<no memory space> [shape: f32[1], index: 0, kind: input, shape index: {}]   ;;  %s215_s1 = inlined_call_operand.vmem [shape: f32[2,32], index: 1, kind: input, shape index: {}]   ;;  %s216_s2 = inlined_call_operand.vmem [shape: f32[4,32], index: 2, kind: input, shape index: {}]   ;;  %s217_s3 = inlined_call_operand.hbm [shape: f32[2,4], index: 3, kind: output, shape index: {}]  }
   0x1   :  { %v17_v0 = vld [vmem:[%s216_s2] sm:$0xf] }
   0x2   :  { %v16_v1 = vld [vmem:[%s215_s1] sm:$0x3]  ;;  %v26_v2 = vmul.f32 %v17_v0, %v17_v0 }
   0x3   :  { %v18_v3 = vmul.f32 %v16_v1, %v16_v1 }
   0x4   :  { %9 = vsyncpa [#allocation4], 0  ;;  %vm19_vm1 = vcmask 254976   ;;  %v28_v4 = vsel %vm27_vm0, %v26_v2, 0.0  ;;  %v170_v6 = vmov 0.0   ;;  %vm171_vm2 = vmmov 0  }
   0x5   :  { %29 = vadd.xlane.f32.xlu0 %v28_v4  ;;  %v20_v5 = vsel %vm19_vm1, %v18_v3, 0.0  ;;  %134 = vmatprep.subr.mxu0 %v170_v6  ;;  %vm35_vm3 = vcmask 261120   ;;  %v112_v15 = vstv %s214_s0  ;;  %s172_s16 = smov [#allocation3]   ;;  %vm114_vm4 = vcmask 25600  }
   0x6   :  { %136 = vmatprep.mubr.msk.f32.mxu0 %vm171_vm2, %v170_v6  ;;  %s122_s17 = sshll.u32 %s172_s16, 4  ;;  %s123_s17 = int_to_ptr.vmem [resolvable:$true] %s122_s17 }
   0x7   :  { %s146_s18 = scalar_lea.vmem %s123_s17, 32  ;;  %p151_p1 = scmp.lt.s32.totalorder %s123_s17, %s123_s17 }
   0x8   :  { %p147_p0 = scmp.ne.s32.totalorder %s123_s17, %s146_s18  ;;  %p152_p2 = scmp.lt.s32.totalorder %s146_s18, %s146_s18 }
   0x9   :  { %21 = vadd.xlane.f32.xlu0 %v20_v5 }
   0xa   :  { %p153_p3 = por %p152_p2, %p151_p1 }
   0xc   :  { %p154_p4 = pnand %p153_p3, %p147_p0 }
  0x92   :  { %v30_v7 = vpop.xlane.xlu0 %29 }
  0x93   :  { %v31_v8 = vadd.f32 1e-12, %v30_v7 }
  0x95   :  { %142 = vrsqrt.f32 %v31_v8 }
  0x96   :  { %v22_v9 = vpop.xlane.xlu0 %21 }
  0x97   :  { %v23_v10 = vadd.f32 1e-12, %v22_v9 }
  0x99   :  { %144 = vrsqrt.f32 %v23_v10 }
  0x9f   :  { %v143_v11 = vpop.eup %142 }
  0xa0   :  { %v33_v12 = vmul.f32 %v143_v11, %v17_v0 }
  0xa2   :  { %135 = vmatpush3.xpose.msk.msra.mxu0 %vm35_vm3, %v33_v12 }
  0xa3   :  { %v145_v13 = vpop.eup %144 }
  0xa4   :  { %v25_v14 = vmul.f32 %v145_v13, %v16_v1 }
  0xa6   :  { %137 = vmatmul.mubr.msk.f32.vlgmr.msra.gmra.mrb[0].mxu0 %vm35_vm3, %v25_v14 }
 0x179   :  { %v108_v16 = vpop.f32.mrb[0].mxu0 }
 0x17a   :  { %v113_v17 = vmul.f32 %v112_v15, %v108_v16  ;;  %v138_v18 = vpop.f32.mrb[1].mxu0 }
 0x17c   :  { %115 = vst.msk [vmem:[#allocation3] sm:$0x3] %vm114_vm4, %v113_v17 }
 0x17d   :  { %157 = shalt.err (!%p154_p4)
}
 0x17e   :  { %s158_s21 = scalar_lea.hbm %s217_s3, 32 }
 0x17f   :  { %p159_p5 = scmp.ne.s32.totalorder %s217_s3, %s158_s21  ;;  %p162_p6 = scmp.lt.u32.totalorder %s158_s21, %s217_s3 }
 0x181   :  { %p164_p7 = pnand %p162_p6, %p159_p5 }
 0x183   :  { %167 = shalt.err (!%p164_p7)
}
 0x184   :  { %125 = dma.vmem_to_hbm [thread:$0]  %s123_s17, 32, %s217_s3, [#allocation4]  }
 0x185   :  { %168 = dma.done.wait [#allocation4], 32  }
 0x186   :  { %169 = vsyncadd [#allocation4], 4294967264 }
 0x187   :  { %129 = vsyncpa [#allocation4], 1 }

// kernel: custom_clip_forward.3
= control target key start
LH: loop header
LB: loop body
LE: loop exit
PB: predicated region body
PF: predicated region fallthrough
CT: control target
= control target key end

     0   :  { %s4305_s0 = inlined_call_operand.vmem [shape: bf16[2,5,192], index: 0, kind: input, shape index: {}]   ;;  %s4306_s1 = inlined_call_operand.vmem [shape: bf16[192,64], index: 1, kind: input, shape index: {}]   ;;  %s4307_s2 = inlined_call_operand.vmem [shape: f32[5,64], index: 2, kind: input, shape index: {}]   ;;  %s4308_s3 = inlined_call_operand.vmem [shape: f32[1,64], index: 3, kind: input, shape index: {}]   ;;  %s4309_s4 = inlined_call_operand.vmem [shape: f32[1,64], index: 4, kind: input, shape index: {}]   ;;  %s4310_s5 = inlined_call_operand.vmem [shape: f32[2,1,64], index: 5, kind: input, shape index: {}]   ;;  %s4311_s6 = inlined_call_operand.vmem [shape: f32[2,1,64], index: 6, kind: input, shape index: {}]   ;;  %s4312_s7 = inlined_call_operand.vmem [shape: bf16[2,64,192], index: 7, kind: input, shape index: {}]   ;;  %s4313_s8 = inlined_call_operand.vmem [shape: f32[2,1,192], index: 8, kind: input, shape index: {}]   ;;  %s4314_s9 = inlined_call_operand.vmem [shape: bf16[2,64,64], index: 9, kind: input, shape index: {}]   ;;  %s4315_s10 = inlined_call_operand.vmem [shape: f32[2,1,64], index: 10, kind: input, shape index: {}]   ;;  %s4316_s11 = inlined_call_operand.vmem [shape: f32[2,1,64], index: 11, kind: input, shape index: {}]   ;;  %s4317_s12 = inlined_call_operand.vmem [shape: f32[2,1,64], index: 12, kind: input, shape index: {}]   ;;  %s4318_s13 = inlined_call_operand.vmem [shape: bf16[2,64,256], index: 13, kind: input, shape index: {}]   ;;  %s4319_s14 = inlined_call_operand.vmem [shape: f32[2,1,256], index: 14, kind: input, shape index: {}]   ;;  %s4320_s15 = inlined_call_operand.vmem [shape: bf16[2,256,64], index: 15, kind: input, shape index: {}]   ;;  %s4321_s16 = inlined_call_operand.vmem [shape: f32[2,1,64], index: 16, kind: input, shape index: {}]   ;;  %s4322_s17 = inlined_call_operand.vmem [shape: f32[1,64], index: 17, kind: input, shape index: {}]   ;;  %s4323_s18 = inlined_call_operand.vmem [shape: f32[1,64], index: 18, kind: input, shape index: {}]   ;;  %s4324_s19 = inlined_call_operand.vmem [shape: bf16[64,32], index: 19, kind: input, shape index: {}]   ;;  %s4325_s20 = inlined_call_operand.vmem [shape: f32[2,1,32], index: 20, kind: output, shape index: {}]  }
   0x1   :  { %4337 = sst [smem:[#allocation2_spill]] %s4305_s0 }
   0x2   :  { %4338 = sst [smem:[#allocation3_spill]] %s4306_s1  ;;  %s3718_s1 = smov 0  }
   0x3   :  { %4339 = sst [smem:[#allocation4_spill]] %s4307_s2 }
   0x4   :  { %4340 = sst [smem:[#allocation5_spill]] %s4308_s3 }
   0x5   :  { %4341 = sst [smem:[#allocation6_spill]] %s4309_s4 }
   0x6 LB: > { %s2980_s22 = sadd.s32 4294967295, %s3600_s1   ;;  %p2984_p0 = scmp.ge.s32.totalorder %s3600_s1, 1  ;;  %s3600_s1 = sphi %s3718_s1, %s30_s1  }
   0x7   : > { %p562_p1 = scmp.lt.s32.totalorder %s3600_s1, 3 }
   0x9   : > { %p563_p2 = pnand %p2984_p0, %p562_p1 }
   0xa   : > { %s4342_s2 = sld [smem:[#allocation3_spill]] (!%p563_p2)  ;;  %v3602_v1 = vmov (!%p563_p2), 0   ;;  %p618_p3 = scmp.lt.s32.totalorder (!%p563_p2), %s2980_s22, 1  ;;  %vm731_vm0 = vcmask (!%p563_p2), 523264   ;;  %vm777_vm1 = vcmask (!%p563_p2), 520192   ;;  %v855_v61 = vlaneseq (!%p563_p2) }
   0xb   : > { %566 = sbr.rel (%p563_p2) target bundleno = 7283 (0x1c73), region = 100  ;;  %735 = vmatprep.subr.bf16.mxu0 (!%p563_p2), %v3602_v1  ;;  %940 = vmatprep.mubr.bf16.mxu1 (!%p563_p2), %v3602_v1  ;;  %s4343_s30 = sld [smem:[#allocation2_spill]] (!%p563_p2)  ;;  %v3442_v43 = vld [vmem:[%s4312_s7 + $0x4] ss:$8 sps:$4 sm:$0xff] (!%p563_p2)   ;;  %v3444_v44 = vld [vmem:[%s4312_s7] ss:$8 sps:$4 sm:$0xff] (!%p563_p2)  }
   0xc   : > { %s4344_s4 = sld [smem:[#allocation4_spill]] (!%p563_p2)  ;;  %s4346_s24 = sld [smem:[#allocation6_spill]] (!%p563_p2)  ;;  %v3445_v45 = vld [vmem:[%s4312_s7 + $0x14] ss:$8 sps:$4 sm:$0xff] (!%p563_p2)   ;;  %908 = vmatprep.subr.bf16.mxu1 (!%p563_p2), %v3442_v43  ;;  %v3447_v46 = vld [vmem:[%s4312_s7 + $0x10] ss:$8 sps:$4 sm:$0xff] (!%p563_p2)  }
   0xd   : > { %909 = vmatpush1.bf16.msra.mxu1 (!%p563_p2), %v3444_v44  ;;  %v3448_v47 = vld [vmem:[%s4312_s7 + $0x24] ss:$8 sps:$4 sm:$0xff] (!%p563_p2)   ;;  %v3450_v48 = vld [vmem:[%s4312_s7 + $0x20] ss:$8 sps:$4 sm:$0xff] (!%p563_p2)   ;;  %v3451_v49 = vld [vmem:[%s4312_s7 + $0x34] ss:$8 sps:$4 sm:$0xff] (!%p563_p2)  }
   0xe   : > { %910 = vmatprep.subr.bf16.mxu1 (!%p563_p2), %v3445_v45  ;;  %v3453_v50 = vld [vmem:[%s4312_s7 + $0x30] ss:$8 sps:$4 sm:$0xff] (!%p563_p2)   ;;  %v3004_v55 = vld [vmem:[%s4310_s5] ss:$0 sm:$0xff] (!%p563_p2)  ;;  %v856_v62 = vshrl.u32 (!%p563_p2), %v855_v61, 7  ;;  %v3603_v63 = vmov (!%p563_p2), 0.0  }
   0xf   : > { %v3005_v57 = vld [vmem:[%s4311_s6] ss:$0 sm:$0xff] (!%p563_p2)  ;;  %vm3604_vm2 = vmmov (!%p563_p2), 0   ;;  %s3605_s23 = smov (!%p563_p2), 64   ;;  %vm954_vm3 = vcmask (!%p563_p2), 130048   ;;  %vm1019_vm4 = vcmask (!%p563_p2), 1041408  }
  0x10   : > { %v3428_v0 = vld [vmem:[%s4342_s2] sm:$0xff] (!%p563_p2)   ;;  %v3429_v2 = vld [vmem:[%s4342_s2 + $0x8] sm:$0xff] (!%p563_p2)   ;;  %v3430_v3 = vld [vmem:[%s4342_s2 + $0x10] sm:$0xff] (!%p563_p2)   ;;  %vm1020_vm5 = vcmask (!%p563_p2), 1042432   ;;  %vm1002_vm6 = vcmask (!%p563_p2), 36864   ;;  %s3608_s25 = smov (!%p563_p2), 48  }
  0x11   : > { %736 = vmatpush1.bf16.msra.mxu0 (!%p563_p2), %v3428_v0  ;;  %v3431_v4 = vld [vmem:[%s4342_s2 + $0x18] sm:$0xff] (!%p563_p2)   ;;  %v3432_v5 = vld [vmem:[%s4342_s2 + $0x20] sm:$0xff] (!%p563_p2)   ;;  %v3433_v8 = vld [vmem:[%s4342_s2 + $0x28] sm:$0xff] (!%p563_p2)   ;;  %911 = vmatpush1.bf16.msra.mxu1 (!%p563_p2), %v3447_v46  ;;  %v3832_v0 = vsub.s32 (!%p563_p2), 0, %v856_v62  ;;  %vm1015_vm7 = vcmask (!%p563_p2), 39936   ;;  %s4331_s3 = smov (!%p563_p2), 32  }
  0x12   : > { %737 = vmatprep.subr.bf16.mxu0 %v3602_v1  ;;  %s4353_s22 = smov (!%p618_p3, %s2980_s22), 1  ;;  %v3434_v9 = vld [vmem:[%s4342_s2 + $0x30] sm:$0xff]   ;;  %v3435_v10 = vld [vmem:[%s4342_s2 + $0x38] sm:$0xff]   ;;  %v3436_v11 = vld [vmem:[%s4342_s2 + $0x40] sm:$0xff]   ;;  %912 = vmatprep.subr.bf16.mxu1 %v3448_v47  ;;  %s4329_s26 = smov 96   ;;  %vm1413_vm8 = vcmask 261120  }
  0x13   : > { %s3185_s28 = sshll.u32 %s4353_s22, 3  ;;  %v3437_v12 = vld [vmem:[%s4342_s2 + $0x48] sm:$0xff]   ;;  %v3438_v13 = vld [vmem:[%s4342_s2 + $0x50] sm:$0xff]   ;;  %v3439_v14 = vld [vmem:[%s4342_s2 + $0x58] sm:$0xff]   ;;  %s4327_s27 = smov 80   ;;  %vm1415_vm9 = vcmask 392192  }
  0x14   : > { %s622_s0 = scalar_lea.vmem %s4343_s30, %s3185_s28  ;;  %v652_v16 = vld [vmem:[%s4344_s4] sm:$0x1f]  ;;  %s4335_s28 = smov 16   ;;  %vm2839_vm10 = vcmask 516096   ;;  %vm2931_vm11 = vcmask 253952  }
  0x15   : > { %738 = vmatpush1.bf16.msra.mxu0 %v3429_v2  ;;  %v627_v6 = vld [vmem:[%s622_s0] sm:$0x77]  ;;  %s4345_s0 = sld [smem:[#allocation5_spill]]  ;;  %913 = vmatpush1.bf16.msra.mxu1 %v3450_v48  ;;  %s4349_s29 = smov 32  }
  0x16   : > { %739 = vmatprep.subr.bf16.mxu0 %v3602_v1  ;;  %v2988_v7 = vcombine.high %v627_v6, %v627_v6  ;;  %v2987_v15 = vcombine.low %v627_v6, %v627_v6  ;;  %v3003_v34 = vld [vmem:[%s4346_s24] ss:$0 sm:$0xff]  ;;  %914 = vmatprep.subr.bf16.mxu1 %v3451_v49  ;;  %s4333_s24 = smov 112   ;;  %s4350_s30 = smov 96  }
  0x17   : > { %v843_v2 = vld [vmem:[%s4313_s8] sm:$0x3] }
  0x18   : > { %3001 = vmatprep.mubr.msk.bf16.mxu0 %vm731_vm0, %v2988_v7 }
  0x19   : > { %740 = vmatpush1.bf16.msra.mxu0 %v3430_v3  ;;  %915 = vmatpush1.bf16.msra.mxu1 %v3453_v50  ;;  %v858_v3 = vrot.slane %v843_v2, %v3832_v0 }
  0x1a   : > { %741 = vmatprep.subr.bf16.mxu0 %v3602_v1  ;;  %3277 = vmatprep.subr.bf16.mxu1 %v3603_v63 }
  0x1b   : > { %v3002_v32 = vld [vmem:[%s4345_s0] ss:$0 sm:$0xff]  ;;  %s4351_s0 = smov 80  }
  0x1d   : > { %742 = vmatpush1.bf16.msra.mxu0 %v3431_v4 }
  0x1e   : > { %743 = vmatprep.subr.bf16.mxu0 %v3602_v1 }
  0x21   : > { %744 = vmatpush1.bf16.msra.mxu0 %v3432_v5 }
  0x22   : > { %745 = vmatprep.subr.bf16.mxu0 %v3602_v1 }
  0x25   : > { %746 = vmatpush1.bf16.msra.mxu0 %v3433_v8 }
  0x26   : > { %747 = vmatprep.subr.bf16.mxu0 %v3602_v1 }
  0x29   : > { %748 = vmatpush1.bf16.msra.mxu0 %v3434_v9 }
  0x2a   : > { %749 = vmatprep.subr.bf16.mxu0 %v3602_v1 }
  0x2d   : > { %750 = vmatpush1.bf16.msra.mxu0 %v3435_v10  ;;  %v3848_v10 = vsub.s32 1, %v856_v62 }
  0x2e   : > { %751 = vmatprep.subr.bf16.mxu0 %v3602_v1 }
  0x31   : > { %752 = vmatpush1.bf16.msra.mxu0 %v3436_v11  ;;  %v862_v11 = vrot.slane %v843_v2, %v3848_v10 }
  0x32   : > { %753 = vmatprep.subr.bf16.mxu0 %v3602_v1 }
  0x35   : > { %754 = vmatpush1.bf16.msra.mxu0 %v3437_v12 }
  0x36   : > { %755 = vmatprep.subr.bf16.mxu0 %v3602_v1 }
  0x39   : > { %756 = vmatpush1.bf16.msra.mxu0 %v3438_v13 }
  0x3a   : > { %757 = vmatprep.subr.bf16.mxu0 %v3602_v1 }
  0x3d   : > { %758 = vmatpush1.bf16.msra.mxu0 %v3439_v14 }
  0x3e   : > { %3313 = vmatprep.subr.bf16.mxu0 %v3603_v63 }
  0x40   : > { %768 = vmatmul.mubr.bf16.vlgmr.msra.gmra.mrb[0].mxu0 %v2987_v15  ;;  %v3607_v15 = vmov 65535  }
  0x41   : > { %3315 = vmatprep.mubr.msk.bf16.mxu0 %vm3604_vm2, %v3603_v63 }
 0x113   : > { %v769_v17 = vpop.f32.mrb[0].mxu0 }
 0x114   : > { %v770_v18 = vadd.f32 %v769_v17, %v652_v16  ;;  %v771_v19 = vpop.f32.mrb[1].mxu0  ;;  %v1021_v16 = vsel %vm1019_vm4, 4294967295, %v3607_v15 }
 0x115   : > { %v772_v20 = vpop.f32.mrb[2].mxu0 }
 0x116   : > { %v773_v21 = vpop.f32.mrb[3].mxu0  ;;  %v778_v22 = vsel %vm777_vm1, %v770_v18, 0.0 }
 0x117   : > { %779 = vadd.xlane.f32.xlu0 %v778_v22 }
 0x1a4   : > { %v780_v23 = vpop.xlane.xlu0 %779 }
 0x1a5   : > { %v782_v24 = vmul.f32 0.015625, %v780_v23 }
 0x1a7   : > { %v783_v25 = vsub.f32 %v770_v18, %v782_v24  ;;  %v3855_v18 = vsel %vm1020_vm5, %v1021_v16, 0 }
 0x1a9   : > { %v784_v26 = vmul.f32 %v783_v25, %v783_v25 }
 0x1ab   : > { %v785_v27 = vsel %vm777_vm1, %v784_v26, 0.0 }
 0x1ac   : > { %786 = vadd.xlane.f32.xlu0 %v785_v27 }
 0x239   : > { %v787_v28 = vpop.xlane.xlu0 %786 }
 0x23a   : > { %v788_v29 = vmul.f32 0.015625, %v787_v28 }
 0x23c   : > { %v789_v30 = vadd.f32 1e-05, %v788_v29 }
 0x23e   : > { %3534 = vrsqrt.f32 %v789_v30 }
 0x248   : > { %v3535_v31 = vpop.eup %3534 }
 0x249   : > { %v791_v33 = vmul.f32 %v3535_v31, %v783_v25 }
 0x24b   : > { %v798_v35 = vmul.f32 %v3002_v32, %v791_v33 }
 0x24d   : > { %v3793_v36 = vadd.f32 %v3003_v34, %v798_v35 }
 0x24f   : > { %v808_v37 = vsel %vm777_vm1, %v3793_v36, 0.0 }
 0x250   : > { %809 = vadd.xlane.f32.xlu1 %v808_v37 }
 0x2dd   : > { %v810_v38 = vpop.xlane.xlu1 %809 }
 0x2de   : > { %v811_v39 = vmul.f32 0.015625, %v810_v38 }
 0x2e0   : > { %v812_v40 = vsub.f32 %v3793_v36, %v811_v39 }
 0x2e2   : > { %v813_v41 = vmul.f32 %v812_v40, %v812_v40 }
 0x2e4   : > { %v814_v42 = vsel %vm777_vm1, %v813_v41, 0.0 }
 0x2e5   : > { %815 = vadd.xlane.f32.xlu1 %v814_v42 }
 0x372   : > { %v816_v51 = vpop.xlane.xlu1 %815 }
 0x373   : > { %v817_v52 = vmul.f32 0.015625, %v816_v51 }
 0x375   : > { %v818_v53 = vadd.f32 1e-05, %v817_v52 }
 0x377   : > { %3536 = vrsqrt.f32 %v818_v53 }
 0x381   : > { %v3537_v54 = vpop.eup %3536 }
 0x382   : > { %v820_v56 = vmul.f32 %v3537_v54, %v812_v40 }
 0x384   : > { %v827_v58 = vmul.f32 %v3004_v55, %v820_v56 }
 0x386   : > { %v834_v59 = vadd.f32 %v3005_v57, %v827_v58 }
 0x388   : > { %v853_v60 = vpack.c.bf16 %v834_v59, %v834_v59 }
 0x38a   : > { %3014 = vmatmul.mubr.msk.bf16.vlgmr.msra.gmra.mrb[0].mxu1 %vm731_vm0, %v853_v60 }
 0x38b   : > { %3279 = vmatprep.mubr.msk.bf16.mxu1 %vm3604_vm2, %v3603_v63 }
 0x45d   : > { %v942_v4 = vpop.f32.mrb[0].mxu1 }
 0x45e   : > { %v943_v5 = vadd.f32 %v942_v4, %v858_v3  ;;  %v944_v6 = vpop.f32.mrb[1].mxu1 }
 0x45f   : > { %v946_v7 = vpop.f32.mrb[2].mxu1  ;;  %v945_v12 = vadd.f32 %v944_v6, %v862_v11 }
 0x460   : > { %v3842_v8 = vpack.c.bf16 %v943_v5, %v943_v5  ;;  %v947_v9 = vpop.f32.mrb[3].mxu1 }
 0x461   : > { %v3853_v17 = vpack.c.bf16 %v945_v12, %v945_v12 }
 0x462   : > { %952 = vrot.lane.b32.xlu0 %v3842_v8, %s3605_s23 }
 0x463   : > { %v1024_v19 = vand.u32 %v3855_v18, %v3853_v17 }
 0x466   : > { %1066 = vrot.lane.b32.xlu0 %v3842_v8, %s4333_s24 }
 0x4d4   : > { %v953_v13 = vpop.permute.xlu0 %952 }
 0x4d5   : > { %v959_v14 = vsel %vm954_vm3, %v953_v13, 0 }
 0x4d6   : > { %3278 = vmatpush3.bf16.xpose.msra.mxu1 %v959_v14 }
 0x4d7   : > { %3283 = vmatprep.subr.bf16.mxu1 %v3603_v63 }
 0x4d8   : > { %v1067_v38 = vpop.permute.xlu0 %1066 }
 0x4dd   : > { %3280 = vmatmul.mubr.msk.bf16.vlgmr.msra.gmra.mrb[4].mxu1 %vm954_vm3, %v3842_v8 }
 0x4de   : > { %3284 = vmatpush3.bf16.msra.mxu1 %v1024_v19  ;;  %3285 = vmatprep.mubr.msk.bf16.mxu1 %vm3604_vm2, %v3603_v63 }
 0x4df   : > { %3289 = vmatprep.subr.bf16.mxu1 %v3603_v63 }
 0x5b0   : > { %v995_v20 = vpop.f32.mrb[4].mxu1 }
 0x5b1   : > { %v1001_v21 = vmul.f32 0.25, %v995_v20  ;;  %v3281_v22 = vpop.f32.mrb[5].mxu1 }
 0x5b2   : > { %v998_v23 = vpop.f32.mrb[6].mxu1 }
 0x5b3   : > { %v3282_v24 = vpop.f32.mrb[7].mxu1  ;;  %v1003_v25 = vsel %vm1002_vm6, %v1001_v21, -inf }
 0x5b4   : > { %1004 = vmax.xlane.f32.xlu1 %v1003_v25 }
 0x641   : > { %v1005_v26 = vpop.xlane.xlu1 %1004 }
 0x642   : > { %v1006_v27 = vsub.f32 %v1001_v21, %v1005_v26 }
 0x644   : > { %v1007_v28 = vmul.f32 1.442695, %v1006_v27 }
 0x646   : > { %3538 = vpow2.f32 %v1007_v28 }
 0x650   : > { %v3539_v29 = vpop.eup %3538 }
 0x651   : > { %v1009_v30 = vsel %vm1002_vm6, %v3539_v29, 0.0 }
 0x652   : > { %1010 = vadd.xlane.f32.xlu1 %v1009_v30 }
 0x663   : > { %1068 = vrot.lane.b32.xlu1 %v3842_v8, %s3608_s25 }
 0x6df   : > { %v1011_v31 = vpop.xlane.xlu1 %1010 }
 0x6e0   : > { %3540 = vrcp.f32 %v1011_v31 }
 0x6e3   : > { %v1069_v34 = vpop.permute.xlu1 %1068 }
 0x6e4   : > { %v1074_v37 = vsel %vm954_vm3, %v1069_v34, 0 }
 0x6ea   : > { %v3541_v32 = vpop.eup %3540 }
 0x6eb   : > { %v1013_v33 = vmul.f32 %v3541_v32, %v3539_v29 }
 0x6ed   : > { %v1014_v35 = vpack.c.bf16 %v1013_v33, %v1013_v33 }
 0x6ef   : > { %3286 = vmatmul.mubr.msk.bf16.vlgmr.msra.gmra.mrb[8].mxu1 %vm1015_vm7, %v1014_v35 }
 0x6f0   : > { %3290 = vmatpush3.bf16.xpose.msra.mxu1 %v1074_v37  ;;  %3291 = vmatprep.mubr.msk.bf16.mxu1 %vm3604_vm2, %v3603_v63 }
 0x6f1   : > { %3295 = vmatprep.subr.bf16.mxu1 %v3603_v63 }
 0x6f7   : > { %3292 = vmatmul.mubr.msk.bf16.vlgmr.msra.gmra.mrb[12].mxu1 %vm954_vm3, %v1067_v38 }
 0x6f8   : > { %3297 = vmatprep.mubr.msk.bf16.mxu1 %vm3604_vm2, %v3603_v63 }
 0x7c2   : > { %v3876_v39 = vpop.f32.mrb[8].mxu1 }
 0x7c3   : > { %v3287_v40 = vpop.f32.mrb[9].mxu1 }
 0x7c4   : > { %v1063_v41 = vpop.f32.mrb[10].mxu1 }
 0x7c5   : > { %v3288_v42 = vpop.f32.mrb[11].mxu1 }
 0x7ca   : > { %v1110_v43 = vpop.f32.mrb[12].mxu1 }
 0x7cb   : > { %v1116_v44 = vmul.f32 0.25, %v1110_v43  ;;  %v3293_v45 = vpop.f32.mrb[13].mxu1 }
 0x7cc   : > { %v1113_v46 = vpop.f32.mrb[14].mxu1 }
 0x7cd   : > { %v3294_v47 = vpop.f32.mrb[15].mxu1  ;;  %v1117_v48 = vsel %vm1002_vm6, %v1116_v44, -inf }
 0x7ce   : > { %1118 = vmax.xlane.f32.xlu1 %v1117_v48  ;;  %v3454_v47 = vld [vmem:[%s4314_s9] sm:$0xff]   ;;  %v3455_v48 = vld [vmem:[%s4314_s9 + $0x8] sm:$0xff]  }
 0x7df   : > { %1180 = vrot.lane.b32.xlu1 %v3842_v8, %s4331_s3 }
 0x7e3   : > { %1178 = vrot.lane.b32.xlu1 %v3842_v8, %s4329_s26 }
 0x7e7   : > { %1289 = vrot.lane.b32.xlu1 %v3842_v8, %s4327_s27 }
 0x85b   : > { %v1119_v49 = vpop.xlane.xlu1 %1118 }
 0x85c   : > { %v1120_v50 = vsub.f32 %v1116_v44, %v1119_v49  ;;  %v3456_v49 = vld [vmem:[%s4314_s9 + $0x10] sm:$0xff]  }
 0x85e   : > { %v1121_v51 = vmul.f32 1.442695, %v1120_v50  ;;  %v3457_v50 = vld [vmem:[%s4314_s9 + $0x18] sm:$0xff]  }
 0x85f   : > { %v1181_v55 = vpop.permute.xlu1 %1180 }
 0x860   : > { %3542 = vpow2.f32 %v1121_v51  ;;  %v1186_v3 = vsel %vm954_vm3, %v1181_v55, 0 }
 0x863   : > { %v1179_v60 = vpop.permute.xlu1 %1178 }
 0x867   : > { %v1290_v4 = vpop.permute.xlu1 %1289 }
 0x86a   : > { %v3543_v52 = vpop.eup %3542 }
 0x86b   : > { %v1123_v53 = vsel %vm1002_vm6, %v3543_v52, 0.0 }
 0x86c   : > { %1124 = vadd.xlane.f32.xlu0 %v1123_v53 }
 0x882   : > { %1130 = vrot.lane.b32.xlu0 %v3853_v17, %s4333_s24 }
 0x886   : > { %1291 = vrot.lane.b32.xlu0 %v3842_v8, %s4335_s28 }
 0x8f9   : > { %v1125_v54 = vpop.xlane.xlu0 %1124 }
 0x8fa   : > { %3544 = vrcp.f32 %v1125_v54 }
 0x8fd   : > { %v1131_v56 = vpop.permute.xlu0 %1130 }
 0x8fe   : > { %v1136_v57 = vand.u32 %v1131_v56, %v3855_v18 }
 0x900   : > { %3296 = vmatpush3.bf16.msra.mxu1 %v1136_v57 }
 0x901   : > { %v1292_v58 = vpop.permute.xlu0 %1291  ;;  %3301 = vmatprep.subr.bf16.mxu1 %v3603_v63 }
 0x902   : > { %v1297_v59 = vsel %vm954_vm3, %v1292_v58, 0 }
 0x903   : > { %3314 = vmatpush3.bf16.xpose.msra.mxu0 %v1297_v59 }
 0x904   : > { %v3545_v61 = vpop.eup %3544  ;;  %3325 = vmatprep.subr.bf16.mxu0 %v3603_v63 }
 0x905   : > { %v1127_v62 = vmul.f32 %v3545_v61, %v3543_v52 }
 0x907   : > { %v1128_v2 = vpack.c.bf16 %v1127_v62, %v1127_v62 }
 0x909   : > { %3298 = vmatmul.mubr.msk.bf16.vlgmr.msra.gmra.mrb[16].mxu1 %vm1015_vm7, %v1128_v2 }
 0x90a   : > { %3302 = vmatpush3.bf16.xpose.msra.mxu1 %v1186_v3  ;;  %3316 = vmatmul.mubr.msk.bf16.vlgmr.msra.gmra.mrb[4].mxu0 %vm954_vm3, %v1290_v4 }
 0x90b   : > { %3303 = vmatprep.mubr.msk.bf16.mxu1 %vm3604_vm2, %v3603_v63  ;;  %3307 = vmatprep.subr.bf16.mxu1 %v3603_v63 }
 0x90c   : > { %3333 = vmatprep.mubr.msk.bf16.mxu0 %vm3604_vm2, %v3603_v63  ;;  %3326 = vmatpush3.bf16.msra.mxu0 %v3454_v47  ;;  %v3479_v47 = vld [vmem:[%s4320_s15 + $0x20] sm:$0xff]  }
 0x90d   : > { %3327 = vmatprep.subr.bf16.mxu0 %v3603_v63 }
 0x910   : > { %3328 = vmatpush3.bf16.msra.mxu0 %v3455_v48  ;;  %v3480_v48 = vld [vmem:[%s4320_s15 + $0x68] sm:$0xff]  }
 0x911   : > { %3304 = vmatmul.mubr.msk.bf16.vlgmr.msra.gmra.mrb[20].mxu1 %vm954_vm3, %v1179_v60  ;;  %3329 = vmatprep.subr.bf16.mxu0 %v3603_v63 }
 0x912   : > { %3309 = vmatprep.mubr.msk.bf16.mxu1 %vm3604_vm2, %v3603_v63 }
 0x914   : > { %3330 = vmatpush3.bf16.msra.mxu0 %v3456_v49  ;;  %v3481_v49 = vld [vmem:[%s4320_s15 + $0x28] sm:$0xff]  }
 0x915   : > { %3331 = vmatprep.subr.bf16.mxu0 %v3603_v63 }
 0x918   : > { %3332 = vmatpush3.bf16.msra.mxu0 %v3457_v50  ;;  %v3482_v50 = vld [vmem:[%s4320_s15 + $0x70] sm:$0xff]  }
 0x9dc   : > { %v1172_v5 = vpop.f32.mrb[16].mxu1 }
 0x9dd   : > { %v3299_v6 = vpop.f32.mrb[17].mxu1  ;;  %v1333_v7 = vpop.f32.mrb[4].mxu0 }
 0x9de   : > { %v1339_v8 = vmul.f32 0.25, %v1333_v7  ;;  %v1175_v9 = vpop.f32.mrb[18].mxu1  ;;  %v3317_v11 = vpop.f32.mrb[5].mxu0 }
 0x9df   : > { %v3300_v12 = vpop.f32.mrb[19].mxu1  ;;  %v1336_v13 = vpop.f32.mrb[6].mxu0 }
 0x9e0   : > { %v3318_v14 = vpop.f32.mrb[7].mxu0  ;;  %v1340_v15 = vsel %vm1002_vm6, %v1339_v8, -inf }
 0x9e1   : > { %1341 = vmax.xlane.f32.xlu1 %v1340_v15 }
 0x9e4   : > { %v1222_v16 = vpop.f32.mrb[20].mxu1 }
 0x9e5   : > { %v1228_v19 = vmul.f32 0.25, %v1222_v16  ;;  %v3305_v20 = vpop.f32.mrb[21].mxu1 }
 0x9e6   : > { %v1225_v21 = vpop.f32.mrb[22].mxu1  ;;  %v3460_v20 = vld [vmem:[%s4318_s13 + $0x4] ss:$8 sps:$4 sm:$0xff]  }
 0x9e7   : > { %v3306_v22 = vpop.f32.mrb[23].mxu1  ;;  %v1229_v23 = vsel %vm1002_vm6, %v1228_v19, -inf  ;;  %v3463_v21 = vld [vmem:[%s4318_s13 + $0x14] ss:$8 sps:$4 sm:$0xff]  }
 0x9e8   : > { %1230 = vmax.xlane.f32.xlu0 %v1229_v23  ;;  %v3461_v22 = vld [vmem:[%s4318_s13 + $0x10] ss:$8 sps:$4 sm:$0xff]   ;;  %v3466_v23 = vld [vmem:[%s4318_s13 + $0x24] ss:$8 sps:$4 sm:$0xff]  }
 0x9f2   : > { %1352 = vrot.lane.b32.xlu1 %v3853_v17, %s4327_s27  ;;  %s4348_s27 = smov 112  }
 0x9f6   : > { %1401 = vrot.lane.b32.xlu1 %v1172_v5, %s4335_s28  ;;  %v3023_v5 = vld [vmem:[%s4315_s10] ss:$0 sm:$0xff]  ;;  %s4347_s28 = smov 16  }
 0xa6e   : > { %v1342_v24 = vpop.xlane.xlu1 %1341 }
 0xa6f   : > { %v1343_v25 = vsub.f32 %v1339_v8, %v1342_v24  ;;  %v3464_v24 = vld [vmem:[%s4318_s13 + $0x20] ss:$8 sps:$4 sm:$0xff]  }
 0xa71   : > { %v1344_v26 = vmul.f32 1.442695, %v1343_v25  ;;  %v3469_v25 = vld [vmem:[%s4318_s13 + $0x34] ss:$8 sps:$4 sm:$0xff]  }
 0xa72   : > { %v1353_v41 = vpop.permute.xlu1 %1352 }
 0xa73   : > { %3546 = vpow2.f32 %v1344_v26  ;;  %v1358_v45 = vand.u32 %v1353_v41, %v3855_v18  ;;  %v3467_v26 = vld [vmem:[%s4318_s13 + $0x30] ss:$8 sps:$4 sm:$0xff]   ;;  %v3472_v41 = vld [vmem:[%s4320_s15 + $0x48] sm:$0xff]  }
 0xa75   : > { %v1231_v27 = vpop.xlane.xlu0 %1230 }
 0xa76   : > { %v1232_v28 = vsub.f32 %v1228_v19, %v1231_v27  ;;  %v1402_v59 = vpop.permute.xlu1 %1401 }
 0xa77   : > { %v1412_v61 = vsel %vm954_vm3, %v3876_v39, %v1402_v59 }
 0xa78   : > { %v1233_v29 = vmul.f32 1.442695, %v1232_v28 }
 0xa7a   : > { %3548 = vpow2.f32 %v1233_v29 }
 0xa7d   : > { %v3547_v30 = vpop.eup %3546 }
 0xa7e   : > { %v1346_v31 = vsel %vm1002_vm6, %v3547_v30, 0.0 }
 0xa7f   : > { %1347 = vadd.xlane.f32.xlu0 %v1346_v31  ;;  %v3029_v31 = vld [vmem:[%s4316_s11] ss:$0 sm:$0xff] }
 0xa84   : > { %v3549_v32 = vpop.eup %3548 }
 0xa85   : > { %v1235_v33 = vsel %vm1002_vm6, %v3549_v32, 0.0 }
 0xa86   : > { %1236 = vadd.xlane.f32.xlu0 %v1235_v33  ;;  %v3030_v33 = vld [vmem:[%s4317_s12] ss:$0 sm:$0xff] }
 0xa9c   : > { %1241 = vrot.lane.b32.xlu0 %v3853_v17, %s4329_s26 }
 0xb0c   : > { %v1348_v34 = vpop.xlane.xlu0 %1347 }
 0xb13   : > { %v1237_v35 = vpop.xlane.xlu0 %1236 }
 0xb14   : > { %3550 = vrcp.f32 %v1237_v35 }
 0xb15   : > { %3552 = vrcp.f32 %v1348_v34 }
 0xb17   : > { %v1242_v37 = vpop.permute.xlu0 %1241 }
 0xb18   : > { %v1247_v38 = vand.u32 %v1242_v37, %v3855_v18 }
 0xb1a   : > { %3308 = vmatpush3.bf16.msra.mxu1 %v1247_v38  ;;  %v3470_v38 = vld [vmem:[%s4320_s15 + $0x40] sm:$0xff]  }
 0xb1b   : > { %3319 = vmatprep.subr.bf16.mxu1 %v3603_v63  ;;  %3207 = vmatprep.subr.bf16.mxu0 %v3470_v38  ;;  %v3497_v38 = vld [vmem:[%s4312_s7 + $0x74] ss:$8 sps:$4 sm:$0xff]  }
 0xb1e   : > { %v3551_v40 = vpop.eup %3550 }
 0xb1f   : > { %v1239_v42 = vmul.f32 %v3551_v40, %v3549_v32  ;;  %v3553_v44 = vpop.eup %3552  ;;  %v3471_v40 = vld [vmem:[%s4320_s15] sm:$0xff]  }
 0xb20   : > { %v1350_v17 = vmul.f32 %v3553_v44, %v3547_v30  ;;  %v3475_v44 = vld [vmem:[%s4320_s15 + $0x10] sm:$0xff]  }
 0xb21   : > { %v1240_v43 = vpack.c.bf16 %v1239_v42, %v1239_v42  ;;  %v3473_v42 = vld [vmem:[%s4320_s15 + $0x8] sm:$0xff]  }
 0xb22   : > { %v1351_v46 = vpack.c.bf16 %v1350_v17, %v1350_v17  ;;  %v3477_v17 = vld [vmem:[%s4320_s15 + $0x18] sm:$0xff]  }
 0xb23   : > { %3310 = vmatmul.mubr.msk.bf16.vlgmr.msra.gmra.mrb[24].mxu1 %vm1015_vm7, %v1240_v43  ;;  %v3474_v43 = vld [vmem:[%s4320_s15 + $0x50] sm:$0xff]  }
 0xb24   : > { %3320 = vmatpush3.bf16.msra.mxu1 %v1358_v45  ;;  %3321 = vmatprep.mubr.msk.bf16.mxu1 %vm3604_vm2, %v3603_v63  ;;  %v3476_v45 = vld [vmem:[%s4320_s15 + $0x58] sm:$0xff]  }
 0xb25   : > { %1618 = vmatprep.subr.bf16.mxu1 %v3460_v20  ;;  %v3042_v20 = vld [vmem:[%s4321_s16] ss:$0 sm:$0xff] }
 0xb2b   : > { %3322 = vmatmul.mubr.msk.bf16.vlgmr.msra.gmra.mrb[28].mxu1 %vm1015_vm7, %v1351_v46  ;;  %v3478_v46 = vld [vmem:[%s4320_s15 + $0x60] sm:$0xff]  }
 0xb2c   : > { %1650 = vmatprep.mubr.bf16.mxu1 %v3602_v1 }
 0xbf6   : > { %v1283_v51 = vpop.f32.mrb[24].mxu1 }
 0xbf7   : > { %1405 = vrot.lane.b32.xlu1 %v1283_v51, %s4331_s3  ;;  %v3311_v52 = vpop.f32.mrb[25].mxu1  ;;  %v3483_v51 = vld [vmem:[%s4320_s15 + $0x30] sm:$0xff]  }
 0xbf8   : > { %v1286_v53 = vpop.f32.mrb[26].mxu1  ;;  %v3484_v52 = vld [vmem:[%s4320_s15 + $0x78] sm:$0xff]  }
 0xbf9   : > { %v3312_v54 = vpop.f32.mrb[27].mxu1  ;;  %v3485_v53 = vld [vmem:[%s4320_s15 + $0x38] sm:$0xff]  }
 0xbfa   : > { %v1529_v54 = vld [vmem:[%s4319_s14] sm:$0x3] }
 0xbfe   : > { %v1394_v55 = vpop.f32.mrb[28].mxu1 }
 0xbff   : > { %1409 = vrot.lane.b32.xlu0 %v1394_v55, %s3608_s25  ;;  %v3323_v56 = vpop.f32.mrb[29].mxu1  ;;  %v1568_v55 = vrot.slane %v1529_v54, %v3832_v0 }
 0xc00   : > { %v1397_v57 = vpop.f32.mrb[30].mxu1  ;;  %v1572_v56 = vrot.slane %v1529_v54, %v3848_v10 }
 0xc01   : > { %v3324_v58 = vpop.f32.mrb[31].mxu1 }
 0xc69   : > { %v1406_v60 = vpop.permute.xlu1 %1405 }
 0xc6a   : > { %v1414_v62 = vsel %vm1413_vm8, %v1412_v61, %v1406_v60 }
 0xc71   : > { %v1410_v2 = vpop.permute.xlu0 %1409 }
 0xc72   : > { %v1416_v3 = vsel %vm1415_vm9, %v1414_v62, %v1410_v2 }
 0xc73   : > { %v1417_v4 = vpack.c.bf16 %v1416_v3, %v1416_v3 }
 0xc75   : > { %3334 = vmatmul.mubr.msk.bf16.vlgmr.msra.gmra.mrb[8].mxu0 %vm731_vm0, %v1417_v4 }
 0xc76   : > { %3208 = vmatpush3.bf16.msra.mxu0 %v3471_v40  ;;  %v3495_v40 = vld [vmem:[%s4312_s7 + $0x70] ss:$8 sps:$4 sm:$0xff]  }
 0xc77   : > { %3209 = vmatprep.subr.bf16.mxu0 %v3472_v41 }
 0xc7a   : > { %3210 = vmatpush3.bf16.msra.mxu0 %v3473_v42 }
 0xc7b   : > { %3211 = vmatprep.subr.bf16.mxu0 %v3474_v43 }
 0xc7e   : > { %3212 = vmatpush3.bf16.msra.mxu0 %v3475_v44 }
 0xc7f   : > { %3213 = vmatprep.subr.bf16.mxu0 %v3476_v45  ;;  %v3061_v45 = vld [vmem:[%s4310_s5 + $0x1] ss:$0 sm:$0xff] }
 0xc82   : > { %3214 = vmatpush3.bf16.msra.mxu0 %v3477_v17 }
 0xc83   : > { %3215 = vmatprep.subr.bf16.mxu0 %v3478_v46  ;;  %v3062_v46 = vld [vmem:[%s4311_s6 + $0x1] ss:$0 sm:$0xff] }
 0xc86   : > { %3216 = vmatpush3.bf16.msra.mxu0 %v3479_v47 }
 0xc87   : > { %3217 = vmatprep.subr.bf16.mxu0 %v3480_v48 }
 0xc8a   : > { %3218 = vmatpush3.bf16.msra.mxu0 %v3481_v49 }
 0xc8b   : > { %3219 = vmatprep.subr.bf16.mxu0 %v3482_v50  ;;  %v3071_v50 = vld [vmem:[%s4313_s8 + $0x2] sm:$0x3] }
 0xc8e   : > { %3220 = vmatpush3.bf16.msra.mxu0 %v3483_v51  ;;  %v1878_v51 = vrot.slane %v3071_v50, %v3832_v0 }
 0xc8f   : > { %3221 = vmatprep.subr.bf16.mxu0 %v3484_v52 }
 0xc92   : > { %3222 = vmatpush3.bf16.msra.mxu0 %v3485_v53 }
 0xc93   : > { %3349 = vmatprep.subr.bf16.mxu0 %v3603_v63 }
 0xd48   : > { %v1485_v6 = vpop.f32.mrb[8].mxu0 }
 0xd49   : > { %v1486_v7 = vadd.f32 %v3023_v5, %v1485_v6  ;;  %v3335_v8 = vpop.f32.mrb[9].mxu0 }
 0xd4a   : > { %v1488_v9 = vpop.f32.mrb[10].mxu0 }
 0xd4b   : > { %v3948_v11 = vadd.f32 %v1486_v7, %v3793_v36  ;;  %v3336_v39 = vpop.f32.mrb[11].mxu0  ;;  %v3458_v36 = vld [vmem:[%s4318_s13] ss:$8 sps:$4 sm:$0xff]  }
 0xd4c   : > { %1619 = vmatpush1.bf16.msra.mxu1 %v3458_v36 }
 0xd4d   : > { %v1494_v12 = vsel %vm777_vm1, %v3948_v11, 0.0  ;;  %1620 = vmatprep.subr.bf16.mxu1 %v3463_v21 }
 0xd4e   : > { %1495 = vadd.xlane.f32.xlu1 %v1494_v12 }
 0xd50   : > { %1621 = vmatpush1.bf16.msra.mxu1 %v3461_v22 }
 0xd51   : > { %1622 = vmatprep.subr.bf16.mxu1 %v3466_v23 }
 0xd54   : > { %1623 = vmatpush1.bf16.msra.mxu1 %v3464_v24 }
 0xd55   : > { %1624 = vmatprep.subr.bf16.mxu1 %v3469_v25 }
 0xd58   : > { %1625 = vmatpush1.bf16.msra.mxu1 %v3467_v26 }
 0xddb   : > { %v1496_v13 = vpop.xlane.xlu1 %1495 }
 0xddc   : > { %v1497_v14 = vmul.f32 0.015625, %v1496_v13 }
 0xdde   : > { %v1498_v15 = vsub.f32 %v3948_v11, %v1497_v14 }
 0xde0   : > { %v1499_v16 = vmul.f32 %v1498_v15, %v1498_v15 }
 0xde2   : > { %v1500_v19 = vsel %vm777_vm1, %v1499_v16, 0.0 }
 0xde3   : > { %1501 = vadd.xlane.f32.xlu0 %v1500_v19 }
 0xe70   : > { %v1502_v27 = vpop.xlane.xlu0 %1501 }
 0xe71   : > { %v1503_v28 = vmul.f32 0.015625, %v1502_v27 }
 0xe73   : > { %v1504_v29 = vadd.f32 1e-05, %v1503_v28 }
 0xe75   : > { %3554 = vrsqrt.f32 %v1504_v29 }
 0xe7f   : > { %v3555_v30 = vpop.eup %3554 }
 0xe80   : > { %v1506_v32 = vmul.f32 %v3555_v30, %v1498_v15 }
 0xe82   : > { %v1513_v34 = vmul.f32 %v3029_v31, %v1506_v32  ;;  %v3488_v32 = vld [vmem:[%s4312_s7 + $0x44] ss:$8 sps:$4 sm:$0xff]  }
 0xe83   : > { %1928 = vmatprep.subr.bf16.mxu1 %v3488_v32 }
 0xe84   : > { %v1520_v35 = vadd.f32 %v3030_v33, %v1513_v34  ;;  %v3491_v33 = vld [vmem:[%s4312_s7 + $0x54] ss:$8 sps:$4 sm:$0xff]   ;;  %v3489_v34 = vld [vmem:[%s4312_s7 + $0x50] ss:$8 sps:$4 sm:$0xff]  }
 0xe86   : > { %v1563_v37 = vpack.c.bf16 %v1520_v35, %v1520_v35  ;;  %v3494_v35 = vld [vmem:[%s4312_s7 + $0x64] ss:$8 sps:$4 sm:$0xff]  }
 0xe88   : > { %3039 = vmatmul.mubr.msk.bf16.vlgmr.msra.gmra.mrb[32].mxu1 %vm731_vm0, %v1563_v37  ;;  %v3492_v37 = vld [vmem:[%s4312_s7 + $0x60] ss:$8 sps:$4 sm:$0xff]  }
 0xe89   : > { %1960 = vmatprep.mubr.bf16.mxu1 %v3602_v1 }
 0xf5b   : > { %v1652_v57 = vpop.f32.mrb[32].mxu1 }
 0xf5c   : > { %v1653_v58 = vadd.f32 %v1652_v57, %v1568_v55  ;;  %v1654_v59 = vpop.f32.mrb[33].mxu1 }
 0xf5d   : > { %v1655_v60 = vadd.f32 %v1654_v59, %v1572_v56  ;;  %v1656_v61 = vpop.f32.mrb[34].mxu1 }
 0xf5e   : > { %v3040_v62 = vmul.f32 -1.702, %v1653_v58  ;;  %v1657_v2 = vpop.f32.mrb[35].mxu1 }
 0xf5f   : > { %v3041_v3 = vmul.f32 -1.702, %v1655_v60 }
 0xf60   : > { %v1663_v4 = vmul.f32 1.442695, %v3040_v62 }
 0xf61   : > { %v1665_v5 = vmul.f32 1.442695, %v3041_v3 }
 0xf62   : > { %3556 = vpow2.f32 %v1663_v4 }
 0xf63   : > { %3558 = vpow2.f32 %v1665_v5 }
 0xf6c   : > { %v3557_v6 = vpop.eup %3556 }
 0xf6d   : > { %v3559_v7 = vpop.eup %3558  ;;  %v1667_v8 = vadd.f32 1.0, %v3557_v6 }
 0xf6e   : > { %v1668_v9 = vadd.f32 1.0, %v3559_v7 }
 0xf6f   : > { %3560 = vrcp.f32 %v1667_v8 }
 0xf70   : > { %3562 = vrcp.f32 %v1668_v9 }
 0xf79   : > { %v3561_v39 = vpop.eup %3560 }
 0xf7a   : > { %v3563_v12 = vpop.eup %3562  ;;  %v1673_v13 = vmul.f32 %v3561_v39, %v1653_v58  ;;  %v1882_v58 = vrot.slane %v3071_v50, %v3848_v10 }
 0xf7b   : > { %v1674_v14 = vmul.f32 %v3563_v12, %v1655_v60 }
 0xf7c   : > { %v1675_v16 = vpack.c.bf16 %v1673_v13, %v1673_v13 }
 0xf7d   : > { %v1676_v15 = vpack.c.bf16 %v1674_v14, %v1674_v14 }
 0xf7f   : > { %1811 = vmatprep.mubr.bf16.mxu0 %v1676_v15 }
 0xf80   : > { %1812 = vmatmul.mubr.bf16.vlgmr.msra.gmra.mrb[12].mxu0 %v1675_v16 }
 0xf81   : > { %3351 = vmatprep.mubr.msk.bf16.mxu0 %vm3604_vm2, %v3603_v63 }
0x1053   : > { %v3223_v19 = vpop.f32.mrb[12].mxu0 }
0x1054   : > { %v3224_v36 = vpop.f32.mrb[13].mxu0 }
0x1055   : > { %v3225_v21 = vadd.f32 %v3224_v36, %v3223_v19  ;;  %v3226_v22 = vpop.f32.mrb[14].mxu0 }
0x1056   : > { %v3227_v23 = vpop.f32.mrb[15].mxu0 }
0x1057   : > { %v1814_v24 = vadd.f32 %v3225_v21, %v3042_v20 }
0x1059   : > { %v4046_v25 = vadd.f32 %v1814_v24, %v3948_v11  ;;  %v3486_v11 = vld [vmem:[%s4312_s7 + $0x40] ss:$8 sps:$4 sm:$0xff]  }
0x105a   : > { %1929 = vmatpush1.bf16.msra.mxu1 %v3486_v11 }
0x105b   : > { %v1824_v26 = vsel %vm777_vm1, %v4046_v25, 0.0  ;;  %1930 = vmatprep.subr.bf16.mxu1 %v3491_v33 }
0x105c   : > { %1825 = vadd.xlane.f32.xlu0 %v1824_v26 }
0x105e   : > { %1931 = vmatpush1.bf16.msra.mxu1 %v3489_v34 }
0x105f   : > { %1932 = vmatprep.subr.bf16.mxu1 %v3494_v35 }
0x1062   : > { %1933 = vmatpush1.bf16.msra.mxu1 %v3492_v37 }
0x1063   : > { %1934 = vmatprep.subr.bf16.mxu1 %v3497_v38 }
0x1066   : > { %1935 = vmatpush1.bf16.msra.mxu1 %v3495_v40 }
0x1067   : > { %3337 = vmatprep.subr.bf16.mxu1 %v3603_v63 }
0x10e9   : > { %v1826_v27 = vpop.xlane.xlu0 %1825 }
0x10ea   : > { %v1827_v28 = vmul.f32 0.015625, %v1826_v27 }
0x10ec   : > { %v1828_v29 = vsub.f32 %v4046_v25, %v1827_v28 }
0x10ee   : > { %v1829_v30 = vmul.f32 %v1828_v29, %v1828_v29 }
0x10f0   : > { %v1830_v31 = vsel %vm777_vm1, %v1829_v30, 0.0 }
0x10f1   : > { %1831 = vadd.xlane.f32.xlu0 %v1830_v31 }
0x117e   : > { %v1832_v41 = vpop.xlane.xlu0 %1831 }
0x117f   : > { %v1833_v42 = vmul.f32 0.015625, %v1832_v41 }
0x1181   : > { %v1834_v43 = vadd.f32 1e-05, %v1833_v42 }
0x1183   : > { %3564 = vrsqrt.f32 %v1834_v43 }
0x118d   : > { %v3565_v44 = vpop.eup %3564 }
0x118e   : > { %v1836_v17 = vmul.f32 %v3565_v44, %v1828_v29 }
0x1190   : > { %v1843_v47 = vmul.f32 %v3061_v45, %v1836_v17 }
0x1192   : > { %v1850_v48 = vadd.f32 %v3062_v46, %v1843_v47 }
0x1194   : > { %v1873_v49 = vpack.c.bf16 %v1850_v48, %v1850_v48 }
0x1196   : > { %3089 = vmatmul.mubr.msk.bf16.vlgmr.msra.gmra.mrb[36].mxu1 %vm731_vm0, %v1873_v49 }
0x1197   : > { %3339 = vmatprep.mubr.msk.bf16.mxu1 %vm3604_vm2, %v3603_v63 }
0x1269   : > { %v1962_v52 = vpop.f32.mrb[36].mxu1 }
0x126a   : > { %v1963_v53 = vadd.f32 %v1962_v52, %v1878_v51  ;;  %v1964_v54 = vpop.f32.mrb[37].mxu1 }
0x126b   : > { %v1966_v55 = vpop.f32.mrb[38].mxu1  ;;  %v1965_v59 = vadd.f32 %v1964_v54, %v1882_v58 }
0x126c   : > { %v1969_v56 = vpack.c.bf16 %v1963_v53, %v1963_v53  ;;  %v1967_v57 = vpop.f32.mrb[39].mxu1 }
0x126d   : > { %v4102_v3 = vpack.c.bf16 %v1965_v59, %v1965_v59 }
0x126e   : > { %2081 = vrot.lane.b32.xlu0 %v1969_v56, %s3608_s25  ;;  %1972 = vrot.lane.b32.xlu1 %v1969_v56, %s3605_s23 }
0x126f   : > { %v2037_v6 = vand.u32 %v4102_v3, %v3855_v18 }
0x1272   : > { %2304 = vrot.lane.b32.xlu0 %v1969_v56, %s4347_s28  ;;  %2079 = vrot.lane.b32.xlu1 %v1969_v56, %s4348_s27 }
0x1276   : > { %2193 = vrot.lane.b32.xlu1 %v1969_v56, %s4349_s29 }
0x127a   : > { %2191 = vrot.lane.b32.xlu1 %v1969_v56, %s4350_s30 }
0x127e   : > { %2302 = vrot.lane.b32.xlu1 %v1969_v56, %s4351_s0 }
0x12e0   : > { %v2082_v60 = vpop.permute.xlu0 %2081  ;;  %v1973_v61 = vpop.permute.xlu1 %1972 }
0x12e1   : > { %v2087_v62 = vsel %vm954_vm3, %v2082_v60, 0  ;;  %v1978_v2 = vsel %vm954_vm3, %v1973_v61, 0 }
0x12e2   : > { %3338 = vmatpush3.bf16.xpose.msra.mxu1 %v1978_v2  ;;  %3350 = vmatpush3.bf16.xpose.msra.mxu0 %v2087_v62 }
0x12e3   : > { %3343 = vmatprep.subr.bf16.mxu1 %v3603_v63  ;;  %3361 = vmatprep.subr.bf16.mxu0 %v3603_v63 }
0x12e4   : > { %v2080_v4 = vpop.permute.xlu1 %2079  ;;  %v2305_v8 = vpop.permute.xlu0 %2304 }
0x12e5   : > { %v2310_v39 = vsel %vm954_vm3, %v2305_v8, 0 }
0x12e8   : > { %v2194_v5 = vpop.permute.xlu1 %2193 }
0x12e9   : > { %v2199_v7 = vsel %vm954_vm3, %v2194_v5, 0  ;;  %3340 = vmatmul.mubr.msk.bf16.vlgmr.msra.gmra.mrb[40].mxu1 %vm954_vm3, %v1969_v56  ;;  %3352 = vmatmul.mubr.msk.bf16.vlgmr.msra.gmra.mrb[16].mxu0 %vm954_vm3, %v2080_v4 }
0x12ea   : > { %3344 = vmatpush3.bf16.msra.mxu1 %v2037_v6  ;;  %3362 = vmatpush3.bf16.xpose.msra.mxu0 %v2199_v7 }
0x12eb   : > { %3363 = vmatprep.mubr.msk.bf16.mxu0 %vm3604_vm2, %v3603_v63  ;;  %3373 = vmatprep.subr.bf16.mxu0 %v3603_v63 }
0x12ec   : > { %3345 = vmatprep.mubr.msk.bf16.mxu1 %vm3604_vm2, %v3603_v63  ;;  %3355 = vmatprep.subr.bf16.mxu1 %v3603_v63  ;;  %v2192_v9 = vpop.permute.xlu1 %2191 }
0x12f0   : > { %v2303_v12 = vpop.permute.xlu1 %2302 }
0x12f1   : > { %3364 = vmatmul.mubr.msk.bf16.vlgmr.msra.gmra.mrb[20].mxu0 %vm954_vm3, %v2192_v9 }
0x12f2   : > { %3374 = vmatpush3.bf16.xpose.msra.mxu0 %v2310_v39  ;;  %3375 = vmatprep.mubr.msk.bf16.mxu0 %vm3604_vm2, %v3603_v63 }
0x12f3   : > { %3385 = vmatprep.subr.bf16.mxu0 %v3603_v63 }
0x12f9   : > { %3376 = vmatmul.mubr.msk.bf16.vlgmr.msra.gmra.mrb[24].mxu0 %vm954_vm3, %v2303_v12 }
0x12fa   : > { %3393 = vmatprep.mubr.msk.bf16.mxu0 %vm3604_vm2, %v3603_v63 }
0x13bc   : > { %v2014_v13 = vpop.f32.mrb[40].mxu1  ;;  %v2123_v14 = vpop.f32.mrb[16].mxu0 }
0x13bd   : > { %v2020_v15 = vmul.f32 0.25, %v2014_v13  ;;  %v2129_v16 = vmul.f32 0.25, %v2123_v14  ;;  %v3341_v19 = vpop.f32.mrb[41].mxu1  ;;  %v3353_v20 = vpop.f32.mrb[17].mxu0 }
0x13be   : > { %v2017_v36 = vpop.f32.mrb[42].mxu1  ;;  %v2126_v21 = vpop.f32.mrb[18].mxu0 }
0x13bf   : > { %v3342_v22 = vpop.f32.mrb[43].mxu1  ;;  %v3354_v23 = vpop.f32.mrb[19].mxu0  ;;  %v2021_v24 = vsel %vm1002_vm6, %v2020_v15, -inf  ;;  %v2130_v26 = vsel %vm1002_vm6, %v2129_v16, -inf }
0x13c0   : > { %2022 = vmax.xlane.f32.xlu0 %v2021_v24  ;;  %2131 = vmax.xlane.f32.xlu1 %v2130_v26 }
0x13c4   : > { %v2235_v27 = vpop.f32.mrb[20].mxu0 }
0x13c5   : > { %v2241_v28 = vmul.f32 0.25, %v2235_v27  ;;  %v3365_v29 = vpop.f32.mrb[21].mxu0  ;;  %v3498_v27 = vld [vmem:[%s4314_s9 + $0x20] sm:$0xff]  }
0x13c6   : > { %v2238_v30 = vpop.f32.mrb[22].mxu0  ;;  %3386 = vmatpush3.bf16.msra.mxu0 %v3498_v27  ;;  %v3521_v27 = vld [vmem:[%s4320_s15 + $0x98] sm:$0xff]  }
0x13c7   : > { %v3366_v31 = vpop.f32.mrb[23].mxu0  ;;  %v2242_v32 = vsel %vm1002_vm6, %v2241_v28, -inf  ;;  %3387 = vmatprep.subr.bf16.mxu0 %v3603_v63  ;;  %v3500_v30 = vld [vmem:[%s4314_s9 + $0x30] sm:$0xff]  }
0x13c8   : > { %2243 = vmax.xlane.f32.xlu0 %v2242_v32 }
0x13cc   : > { %v2346_v11 = vpop.f32.mrb[24].mxu0 }
0x13cd   : > { %v2352_v33 = vmul.f32 0.25, %v2346_v11  ;;  %v3377_v34 = vpop.f32.mrb[25].mxu0 }
0x13ce   : > { %v2349_v35 = vpop.f32.mrb[26].mxu0 }
0x13cf   : > { %v3378_v37 = vpop.f32.mrb[27].mxu0  ;;  %v2353_v38 = vsel %vm1002_vm6, %v2352_v33, -inf  ;;  %v3501_v35 = vld [vmem:[%s4314_s9 + $0x38] sm:$0xff]  }
0x13d0   : > { %2354 = vmax.xlane.f32.xlu0 %v2353_v38 }
0x144d   : > { %v2023_v40 = vpop.xlane.xlu0 %2022  ;;  %v2132_v41 = vpop.xlane.xlu1 %2131 }
0x144e   : > { %v2024_v42 = vsub.f32 %v2020_v15, %v2023_v40  ;;  %v2133_v43 = vsub.f32 %v2129_v16, %v2132_v41 }
0x1450   : > { %v2025_v44 = vmul.f32 1.442695, %v2024_v42  ;;  %v2134_v45 = vmul.f32 1.442695, %v2133_v43 }
0x1452   : > { %3566 = vpow2.f32 %v2025_v44 }
0x1453   : > { %3568 = vpow2.f32 %v2134_v45 }
0x1455   : > { %v2244_v17 = vpop.xlane.xlu0 %2243 }
0x1456   : > { %v2245_v46 = vsub.f32 %v2241_v28, %v2244_v17 }
0x1458   : > { %v2246_v47 = vmul.f32 1.442695, %v2245_v46 }
0x145a   : > { %3570 = vpow2.f32 %v2246_v47 }
0x145c   : > { %v3567_v48 = vpop.eup %3566 }
0x145d   : > { %v3569_v49 = vpop.eup %3568  ;;  %v2027_v50 = vsel %vm1002_vm6, %v3567_v48, 0.0  ;;  %v2355_v54 = vpop.xlane.xlu0 %2354 }
0x145e   : > { %2028 = vadd.xlane.f32.xlu0 %v2027_v50  ;;  %v2136_v51 = vsel %vm1002_vm6, %v3569_v49, 0.0  ;;  %v2356_v55 = vsub.f32 %v2352_v33, %v2355_v54 }
0x145f   : > { %2137 = vadd.xlane.f32.xlu1 %v2136_v51 }
0x1460   : > { %v2357_v56 = vmul.f32 1.442695, %v2356_v55 }
0x1462   : > { %3572 = vpow2.f32 %v2357_v56 }
0x1464   : > { %v3571_v52 = vpop.eup %3570 }
0x1465   : > { %v2248_v53 = vsel %vm1002_vm6, %v3571_v52, 0.0 }
0x1466   : > { %2249 = vadd.xlane.f32.xlu0 %v2248_v53 }
0x146c   : > { %v3573_v57 = vpop.eup %3572 }
0x146d   : > { %v2359_v58 = vsel %vm1002_vm6, %v3573_v57, 0.0 }
0x1470   : > { %2254 = vrot.lane.b32.xlu1 %v4102_v3, %s4350_s30 }
0x147c   : > { %2143 = vrot.lane.b32.xlu0 %v4102_v3, %s4348_s27 }
0x1494   : > { %2360 = vadd.xlane.f32.xlu1 %v2359_v58 }
0x14a5   : > { %2365 = vrot.lane.b32.xlu1 %v4102_v3, %s4351_s0 }
0x14eb   : > { %v2029_v59 = vpop.xlane.xlu0 %2028 }
0x14ec   : > { %3574 = vrcp.f32 %v2029_v59  ;;  %v2138_v60 = vpop.xlane.xlu1 %2137 }
0x14ed   : > { %3576 = vrcp.f32 %v2138_v60 }
0x14f0   : > { %v2255_v8 = vpop.permute.xlu1 %2254 }
0x14f1   : > { %v2260_v12 = vand.u32 %v2255_v8, %v3855_v18 }
0x14f3   : > { %v2250_v61 = vpop.xlane.xlu0 %2249 }
0x14f4   : > { %3578 = vrcp.f32 %v2250_v61  ;;  %v3504_v61 = vld [vmem:[%s4318_s13 + $0x44] ss:$8 sps:$4 sm:$0xff]  }
0x14f6   : > { %v3575_v62 = vpop.eup %3574 }
0x14f7   : > { %v2031_v2 = vmul.f32 %v3575_v62, %v3567_v48  ;;  %v2144_v4 = vpop.permute.xlu0 %2143  ;;  %v3577_v7 = vpop.eup %3576  ;;  %v3098_v48 = vld [vmem:[%s4315_s10 + $0x1] ss:$0 sm:$0xff]  ;;  %v3507_v62 = vld [vmem:[%s4318_s13 + $0x54] ss:$8 sps:$4 sm:$0xff]  }
0x14f8   : > { %v2149_v5 = vand.u32 %v2144_v4, %v3855_v18  ;;  %v2140_v3 = vmul.f32 %v3577_v7, %v3569_v49  ;;  %v3510_v4 = vld [vmem:[%s4318_s13 + $0x64] ss:$8 sps:$4 sm:$0xff]   ;;  %v3513_v7 = vld [vmem:[%s4318_s13 + $0x74] ss:$8 sps:$4 sm:$0xff]  }
0x14f9   : > { %v2032_v6 = vpack.c.bf16 %v2031_v2, %v2031_v2  ;;  %v3505_v2 = vld [vmem:[%s4318_s13 + $0x50] ss:$8 sps:$4 sm:$0xff]  }
0x14fa   : > { %v2141_v9 = vpack.c.bf16 %v2140_v3, %v2140_v3 }
0x14fb   : > { %3346 = vmatmul.mubr.msk.bf16.vlgmr.msra.gmra.mrb[44].mxu1 %vm1015_vm7, %v2032_v6  ;;  %v3511_v6 = vld [vmem:[%s4318_s13 + $0x70] ss:$8 sps:$4 sm:$0xff]  }
0x14fc   : > { %3356 = vmatpush3.bf16.msra.mxu1 %v2149_v5  ;;  %3357 = vmatprep.mubr.msk.bf16.mxu1 %vm3604_vm2, %v3603_v63  ;;  %v3508_v5 = vld [vmem:[%s4318_s13 + $0x60] ss:$8 sps:$4 sm:$0xff]  }
0x14fd   : > { %3367 = vmatprep.subr.bf16.mxu1 %v3603_v63 }
0x14fe   : > { %v3579_v39 = vpop.eup %3578 }
0x14ff   : > { %v2252_v13 = vmul.f32 %v3579_v39, %v3571_v52 }
0x1501   : > { %v2253_v14 = vpack.c.bf16 %v2252_v13, %v2252_v13 }
0x1503   : > { %3358 = vmatmul.mubr.msk.bf16.vlgmr.msra.gmra.mrb[48].mxu1 %vm1015_vm7, %v2141_v9 }
0x1504   : > { %3368 = vmatpush3.bf16.msra.mxu1 %v2260_v12  ;;  %3369 = vmatprep.mubr.msk.bf16.mxu1 %vm3604_vm2, %v3603_v63  ;;  %v3106_v12 = vld [vmem:[%s4316_s11 + $0x1] ss:$0 sm:$0xff] }
0x1505   : > { %3379 = vmatprep.subr.bf16.mxu1 %v3603_v63 }
0x150b   : > { %3370 = vmatmul.mubr.msk.bf16.vlgmr.msra.gmra.mrb[52].mxu1 %vm1015_vm7, %v2253_v14  ;;  %v3107_v14 = vld [vmem:[%s4317_s12 + $0x1] ss:$0 sm:$0xff] }
0x150c   : > { %3381 = vmatprep.mubr.msk.bf16.mxu1 %vm3604_vm2, %v3603_v63 }
0x1521   : > { %v2361_v15 = vpop.xlane.xlu1 %2360 }
0x1522   : > { %3580 = vrcp.f32 %v2361_v15 }
0x1525   : > { %v2366_v16 = vpop.permute.xlu1 %2365 }
0x1526   : > { %v2371_v19 = vand.u32 %v2366_v16, %v3855_v18  ;;  %v3499_v18 = vld [vmem:[%s4314_s9 + $0x28] sm:$0xff]  }
0x1527   : > { %3388 = vmatpush3.bf16.msra.mxu0 %v3499_v18  ;;  %v3522_v18 = vld [vmem:[%s4320_s15 + $0xe0] sm:$0xff]  }
0x1528   : > { %3380 = vmatpush3.bf16.msra.mxu1 %v2371_v19  ;;  %3389 = vmatprep.subr.bf16.mxu0 %v3603_v63 }
0x1529   : > { %2635 = vmatprep.subr.bf16.mxu1 %v3504_v61 }
0x152b   : > { %3390 = vmatpush3.bf16.msra.mxu0 %v3500_v30  ;;  %v3526_v30 = vld [vmem:[%s4320_s15 + $0xf0] sm:$0xff]  }
0x152c   : > { %v3581_v20 = vpop.eup %3580  ;;  %3391 = vmatprep.subr.bf16.mxu0 %v3603_v63 }
0x152d   : > { %v2363_v36 = vmul.f32 %v3581_v20, %v3573_v57  ;;  %v3514_v20 = vld [vmem:[%s4320_s15 + $0xc0] sm:$0xff]  }
0x152f   : > { %v2364_v21 = vpack.c.bf16 %v2363_v36, %v2363_v36  ;;  %3392 = vmatpush3.bf16.msra.mxu0 %v3501_v35  ;;  %v3515_v36 = vld [vmem:[%s4320_s15 + $0x80] sm:$0xff]  }
0x1530   : > { %3250 = vmatprep.subr.bf16.mxu0 %v3514_v20  ;;  %v2838_v20 = vld [vmem:[%s4323_s18] sm:$0x1] }
0x1531   : > { %3382 = vmatmul.mubr.msk.bf16.vlgmr.msra.gmra.mrb[56].mxu1 %vm1015_vm7, %v2364_v21  ;;  %v3516_v21 = vld [vmem:[%s4320_s15 + $0xc8] sm:$0xff]  }
0x1532   : > { %2667 = vmatprep.mubr.bf16.mxu1 %v3602_v1 }
0x15ce   : > { %v2073_v22 = vpop.f32.mrb[44].mxu1 }
0x15cf   : > { %v3347_v23 = vpop.f32.mrb[45].mxu1 }
0x15d0   : > { %v2076_v24 = vpop.f32.mrb[46].mxu1  ;;  %v3518_v23 = vld [vmem:[%s4320_s15 + $0xd0] sm:$0xff]  }
0x15d1   : > { %v3348_v26 = vpop.f32.mrb[47].mxu1  ;;  %v3519_v24 = vld [vmem:[%s4320_s15 + $0x90] sm:$0xff]  }
0x15d2   : > { %v3520_v26 = vld [vmem:[%s4320_s15 + $0xd8] sm:$0xff]  }
0x15d6   : > { %v2185_v28 = vpop.f32.mrb[48].mxu1 }
0x15d7   : > { %2414 = vrot.lane.b32.xlu1 %v2185_v28, %s4347_s28  ;;  %v3359_v29 = vpop.f32.mrb[49].mxu1  ;;  %v3523_v28 = vld [vmem:[%s4320_s15 + $0xa0] sm:$0xff]  }
0x15d8   : > { %v2188_v1 = vpop.f32.mrb[50].mxu1  ;;  %v3524_v29 = vld [vmem:[%s4320_s15 + $0xe8] sm:$0xff]  }
0x15d9   : > { %v3360_v31 = vpop.f32.mrb[51].mxu1  ;;  %v3525_v1 = vld [vmem:[%s4320_s15 + $0xa8] sm:$0xff]  }
0x15da   : > { %v3527_v31 = vld [vmem:[%s4320_s15 + $0xb0] sm:$0xff]  }
0x15de   : > { %v2296_v32 = vpop.f32.mrb[52].mxu1 }
0x15df   : > { %2418 = vrot.lane.b32.xlu0 %v2296_v32, %s4349_s29  ;;  %v3371_v11 = vpop.f32.mrb[53].mxu1  ;;  %v3528_v32 = vld [vmem:[%s4320_s15 + $0xf8] sm:$0xff]   ;;  %s625_s29 = scalar_lea.vmem %s4325_s20, %s4353_s22 }
0x15e0   : > { %v2299_v33 = vpop.f32.mrb[54].mxu1  ;;  %v3529_v11 = vld [vmem:[%s4320_s15 + $0xb8] sm:$0xff]  }
0x15e1   : > { %v3372_v34 = vpop.f32.mrb[55].mxu1  ;;  %v3116_v33 = vld [vmem:[%s4319_s14 + $0x2] sm:$0x3] }
0x15e2   : > { %v2585_v34 = vrot.slane %v3116_v33, %v3832_v0  ;;  %v2589_v35 = vrot.slane %v3116_v33, %v3848_v10 }
0x1604   : > { %v2407_v37 = vpop.f32.mrb[56].mxu1 }
0x1605   : > { %2422 = vrot.lane.b32.xlu1 %v2407_v37, %s3608_s25  ;;  %v3383_v38 = vpop.f32.mrb[57].mxu1 }
0x1606   : > { %v2410_v40 = vpop.f32.mrb[58].mxu1 }
0x1607   : > { %v3384_v41 = vpop.f32.mrb[59].mxu1 }
0x1649   : > { %v2415_v42 = vpop.permute.xlu1 %2414 }
0x164a   : > { %v2425_v44 = vsel %vm954_vm3, %v2073_v22, %v2415_v42  ;;  %v3517_v22 = vld [vmem:[%s4320_s15 + $0x88] sm:$0xff]  }
0x1651   : > { %v2419_v43 = vpop.permute.xlu0 %2418 }
0x1652   : > { %v2426_v45 = vsel %vm1413_vm8, %v2425_v44, %v2419_v43 }
0x1677   : > { %v2423_v17 = vpop.permute.xlu1 %2422 }
0x1678   : > { %v2427_v46 = vsel %vm1415_vm9, %v2426_v45, %v2423_v17 }
0x1679   : > { %v2428_v47 = vpack.c.bf16 %v2427_v46, %v2427_v46 }
0x167b   : > { %3394 = vmatmul.mubr.msk.bf16.vlgmr.msra.gmra.mrb[28].mxu0 %vm731_vm0, %v2428_v47 }
0x167c   : > { %3251 = vmatpush3.bf16.msra.mxu0 %v3515_v36 }
0x167d   : > { %3252 = vmatprep.subr.bf16.mxu0 %v3516_v21 }
0x1680   : > { %3253 = vmatpush3.bf16.msra.mxu0 %v3517_v22 }
0x1681   : > { %3254 = vmatprep.subr.bf16.mxu0 %v3518_v23 }
0x1684   : > { %3255 = vmatpush3.bf16.msra.mxu0 %v3519_v24 }
0x1685   : > { %3256 = vmatprep.subr.bf16.mxu0 %v3520_v26 }
0x1688   : > { %3257 = vmatpush3.bf16.msra.mxu0 %v3521_v27 }
0x1689   : > { %3258 = vmatprep.subr.bf16.mxu0 %v3522_v18 }
0x168c   : > { %3259 = vmatpush3.bf16.msra.mxu0 %v3523_v28 }
0x168d   : > { %3260 = vmatprep.subr.bf16.mxu0 %v3524_v29 }
0x1690   : > { %3261 = vmatpush3.bf16.msra.mxu0 %v3525_v1 }
0x1691   : > { %3262 = vmatprep.subr.bf16.mxu0 %v3526_v30 }
0x1694   : > { %3263 = vmatpush3.bf16.msra.mxu0 %v3527_v31 }
0x1695   : > { %3264 = vmatprep.subr.bf16.mxu0 %v3528_v32 }
0x1698   : > { %3265 = vmatpush3.bf16.msra.mxu0 %v3529_v11 }
0x174e   : > { %v2496_v49 = vpop.f32.mrb[28].mxu0 }
0x174f   : > { %v2497_v50 = vadd.f32 %v3098_v48, %v2496_v49  ;;  %v3395_v51 = vpop.f32.mrb[29].mxu0 }
0x1750   : > { %v2499_v52 = vpop.f32.mrb[30].mxu0 }
0x1751   : > { %v4179_v53 = vadd.f32 %v2497_v50, %v4046_v25  ;;  %v3396_v54 = vpop.f32.mrb[31].mxu0  ;;  %v3502_v25 = vld [vmem:[%s4318_s13 + $0x40] ss:$8 sps:$4 sm:$0xff]  }
0x1752   : > { %2636 = vmatpush1.bf16.msra.mxu1 %v3502_v25 }
0x1753   : > { %v2507_v55 = vsel %vm777_vm1, %v4179_v53, 0.0  ;;  %2637 = vmatprep.subr.bf16.mxu1 %v3507_v62 }
0x1754   : > { %2508 = vadd.xlane.f32.xlu0 %v2507_v55 }
0x1756   : > { %2638 = vmatpush1.bf16.msra.mxu1 %v3505_v2 }
0x1757   : > { %2639 = vmatprep.subr.bf16.mxu1 %v3510_v4 }
0x175a   : > { %2640 = vmatpush1.bf16.msra.mxu1 %v3508_v5 }
0x175b   : > { %2641 = vmatprep.subr.bf16.mxu1 %v3513_v7 }
0x175e   : > { %2642 = vmatpush1.bf16.msra.mxu1 %v3511_v6 }
0x175f   : > { %3397 = vmatprep.subr.bf16.mxu1 %v3603_v63 }
0x17e1   : > { %v2509_v56 = vpop.xlane.xlu0 %2508 }
0x17e2   : > { %v2510_v57 = vmul.f32 0.015625, %v2509_v56 }
0x17e4   : > { %v2511_v58 = vsub.f32 %v4179_v53, %v2510_v57  ;;  %v3161_v57 = vld [vmem:[%s4321_s16 + $0x1] ss:$0 sm:$0xff] }
0x17e6   : > { %v2512_v59 = vmul.f32 %v2511_v58, %v2511_v58 }
0x17e8   : > { %v2513_v60 = vsel %vm777_vm1, %v2512_v59, 0.0 }
0x17e9   : > { %2514 = vadd.xlane.f32.xlu1 %v2513_v60 }
0x1876   : > { %v2515_v3 = vpop.xlane.xlu1 %2514 }
0x1877   : > { %v2516_v8 = vmul.f32 0.015625, %v2515_v3 }
0x1879   : > { %v2517_v9 = vadd.f32 1e-05, %v2516_v8  ;;  %v3530_v8 = vld [vmem:[%s4324_s19] sm:$0xff]  }
0x187b   : > { %3582 = vrsqrt.f32 %v2517_v9  ;;  %v3531_v9 = vld [vmem:[%s4324_s19 + $0x8] sm:$0xff]  }
0x1885   : > { %v3583_v39 = vpop.eup %3582 }
0x1886   : > { %v2519_v13 = vmul.f32 %v3583_v39, %v2511_v58  ;;  %v3533_v39 = vld [vmem:[%s4324_s19 + $0x18] sm:$0xff]  }
0x1888   : > { %v2526_v15 = vmul.f32 %v3106_v12, %v2519_v13 }
0x188a   : > { %v2533_v16 = vadd.f32 %v3107_v14, %v2526_v15 }
0x188c   : > { %v2580_v19 = vpack.c.bf16 %v2533_v16, %v2533_v16  ;;  %v2837_v16 = vld [vmem:[%s4322_s17] sm:$0x1] }
0x188e   : > { %3158 = vmatmul.mubr.msk.bf16.vlgmr.msra.gmra.mrb[60].mxu1 %vm731_vm0, %v2580_v19 }
0x188f   : > { %3405 = vmatprep.mubr.msk.bf16.mxu1 %vm3604_vm2, %v3603_v63  ;;  %3398 = vmatpush3.bf16.msra.mxu1 %v3530_v8 }
0x1890   : > { %3399 = vmatprep.subr.bf16.mxu1 %v3603_v63 }
0x1893   : > { %3400 = vmatpush3.bf16.msra.mxu1 %v3531_v9 }
0x1894   : > { %3401 = vmatprep.subr.bf16.mxu1 %v3603_v63 }
0x1961   : > { %v2669_v37 = vpop.f32.mrb[60].mxu1 }
0x1962   : > { %v2670_v38 = vadd.f32 %v2669_v37, %v2585_v34  ;;  %v2671_v40 = vpop.f32.mrb[61].mxu1 }
0x1963   : > { %v2672_v41 = vadd.f32 %v2671_v40, %v2589_v35  ;;  %v2673_v42 = vpop.f32.mrb[62].mxu1 }
0x1964   : > { %v3159_v43 = vmul.f32 -1.702, %v2670_v38  ;;  %v2674_v44 = vpop.f32.mrb[63].mxu1 }
0x1965   : > { %v3160_v45 = vmul.f32 -1.702, %v2672_v41 }
0x1966   : > { %v2680_v17 = vmul.f32 1.442695, %v3159_v43 }
0x1967   : > { %v2682_v46 = vmul.f32 1.442695, %v3160_v45 }
0x1968   : > { %3584 = vpow2.f32 %v2680_v17 }
0x1969   : > { %3586 = vpow2.f32 %v2682_v46 }
0x1972   : > { %v3585_v47 = vpop.eup %3584 }
0x1973   : > { %v3587_v48 = vpop.eup %3586  ;;  %v2684_v49 = vadd.f32 1.0, %v3585_v47 }
0x1974   : > { %v2685_v50 = vadd.f32 1.0, %v3587_v48 }
0x1975   : > { %3588 = vrcp.f32 %v2684_v49 }
0x1976   : > { %3590 = vrcp.f32 %v2685_v50 }
0x197f   : > { %v3589_v0 = vpop.eup %3588 }
0x1980   : > { %v3591_v10 = vpop.eup %3590  ;;  %v2690_v51 = vmul.f32 %v3589_v0, %v2670_v38 }
0x1981   : > { %v2691_v52 = vmul.f32 %v3591_v10, %v2672_v41 }
0x1982   : > { %v2692_v55 = vpack.c.bf16 %v2690_v51, %v2690_v51 }
0x1983   : > { %v2693_v54 = vpack.c.bf16 %v2691_v52, %v2691_v52 }
0x1985   : > { %2828 = vmatprep.mubr.bf16.mxu0 %v2693_v54 }
0x1986   : > { %2829 = vmatmul.mubr.bf16.vlgmr.msra.gmra.mrb[32].mxu0 %v2692_v55 }
0x1a59   : > { %v3266_v56 = vpop.f32.mrb[32].mxu0 }
0x1a5a   : > { %v3267_v58 = vpop.f32.mrb[33].mxu0 }
0x1a5b   : > { %v3268_v59 = vadd.f32 %v3267_v58, %v3266_v56  ;;  %v3269_v60 = vpop.f32.mrb[34].mxu0 }
0x1a5c   : > { %v3270_v61 = vpop.f32.mrb[35].mxu0 }
0x1a5d   : > { %v2831_v25 = vadd.f32 %v3268_v59, %v3161_v57 }
0x1a5f   : > { %v2836_v62 = vadd.f32 %v2831_v25, %v4179_v53  ;;  %v3532_v53 = vld [vmem:[%s4324_s19 + $0x10] sm:$0xff]  }
0x1a60   : > { %3402 = vmatpush3.bf16.msra.mxu1 %v3532_v53 }
0x1a61   : > { %v2840_v2 = vsel %vm2839_vm10, %v2836_v62, 0.0  ;;  %3403 = vmatprep.subr.bf16.mxu1 %v3603_v63 }
0x1a62   : > { %2841 = vadd.xlane.f32.xlu0 %v2840_v2 }
0x1a64   : > { %3404 = vmatpush3.bf16.msra.mxu1 %v3533_v39 }
0x1aef   : > { %v2842_v4 = vpop.xlane.xlu0 %2841 }
0x1af0   : > { %v2843_v5 = vmul.f32 0.015625, %v2842_v4 }
0x1af2   : > { %v2844_v6 = vsub.f32 %v2836_v62, %v2843_v5 }
0x1af4   : > { %v2845_v7 = vmul.f32 %v2844_v6, %v2844_v6 }
0x1af6   : > { %v2846_v3 = vsel %vm2839_vm10, %v2845_v7, 0.0 }
0x1af7   : > { %2847 = vadd.xlane.f32.xlu0 %v2846_v3 }
0x1b84   : > { %v2848_v12 = vpop.xlane.xlu0 %2847 }
0x1b85   : > { %v2849_v13 = vmul.f32 0.015625, %v2848_v12 }
0x1b87   : > { %v2850_v14 = vadd.f32 1e-05, %v2849_v13 }
0x1b89   : > { %3592 = vrsqrt.f32 %v2850_v14 }
0x1b93   : > { %v3593_v15 = vpop.eup %3592 }
0x1b94   : > { %v2852_v19 = vmul.f32 %v3593_v15, %v2844_v6 }
0x1b96   : > { %v2853_v63 = vmul.f32 %v2852_v19, %v2837_v16 }
0x1b98   : > { %v2854_v36 = vadd.f32 %v2853_v63, %v2838_v20 }
0x1b9a   : > { %v2855_v21 = vpack.c.bf16 %v2854_v36, %v2854_v36 }
0x1b9c   : > { %3406 = vmatmul.mubr.msk.bf16.vlgmr.msra.gmra.mrb[64].mxu1 %vm731_vm0, %v2855_v21 }
0x1c6f   : > { %v2925_v22 = vpop.f32.mrb[64].mxu1 }
0x1c70   : > { %2932 = vst.msk [vmem:[%s625_s29] sm:$0x1] %vm2931_vm11, %v2925_v22  ;;  %v3407_v23 = vpop.f32.mrb[65].mxu1 }
0x1c71   : > { %v2928_v24 = vpop.f32.mrb[66].mxu1 }
0x1c72   : > { %v3408_v26 = vpop.f32.mrb[67].mxu1 }
0x1c73 PF: > { %s30_s1 = sadd.s32 1, %s3600_s1  }
0x1c74   : > { %p27_p4 = scmp.ge.s32.totalorder %s30_s1, 4  }
0x1c76   :  { %29 = sbr.rel (!%p27_p4) target bundleno = 6 (0x6), region = 142 }

// kernel: custom_clip_forward.4
= control target key start
LH: loop header
LB: loop body
LE: loop exit
PB: predicated region body
PF: predicated region fallthrough
CT: control target
= control target key end

     0   :  { %s5713_s24 = smov 0   ;;  %s6819_s0 = inlined_call_operand.vmem [shape: f32[64,64], index: 0, kind: input, shape index: {}]   ;;  %s6820_s1 = inlined_call_operand.vmem [shape: f32[4,1,16], index: 1, kind: input, shape index: {}]   ;;  %s6821_s2 = inlined_call_operand.vmem [shape: f32[2,1,64], index: 2, kind: input, shape index: {}]   ;;  %s6822_s3 = inlined_call_operand.vmem [shape: f32[2,1,64], index: 3, kind: input, shape index: {}]   ;;  %s6823_s4 = inlined_call_operand.vmem [shape: bf16[2,64,192], index: 4, kind: input, shape index: {}]   ;;  %s6824_s5 = inlined_call_operand.vmem [shape: f32[2,1,192], index: 5, kind: input, shape index: {}]   ;;  %s6825_s6 = inlined_call_operand.vmem [shape: bf16[2,64,64], index: 6, kind: input, shape index: {}]   ;;  %s6826_s7 = inlined_call_operand.vmem [shape: f32[2,1,64], index: 7, kind: input, shape index: {}]   ;;  %s6827_s8 = inlined_call_operand.vmem [shape: f32[2,1,64], index: 8, kind: input, shape index: {}]   ;;  %s6828_s9 = inlined_call_operand.vmem [shape: f32[2,1,64], index: 9, kind: input, shape index: {}]   ;;  %s6829_s10 = inlined_call_operand.vmem [shape: bf16[2,64,256], index: 10, kind: input, shape index: {}]   ;;  %s6830_s11 = inlined_call_operand.vmem [shape: f32[2,1,256], index: 11, kind: input, shape index: {}]   ;;  %s6831_s12 = inlined_call_operand.vmem [shape: bf16[2,256,64], index: 12, kind: input, shape index: {}]   ;;  %s6832_s13 = inlined_call_operand.vmem [shape: f32[2,1,64], index: 13, kind: input, shape index: {}]   ;;  %s6833_s14 = inlined_call_operand.vmem [shape: f32[1,64], index: 14, kind: input, shape index: {}]   ;;  %s6834_s15 = inlined_call_operand.vmem [shape: f32[1,64], index: 15, kind: input, shape index: {}]   ;;  %s6835_s16 = inlined_call_operand.vmem [shape: bf16[64,32], index: 16, kind: input, shape index: {}]   ;;  %s6836_s17 = inlined_call_operand.vmem [shape: f32[2,2,32], index: 17, kind: output, shape index: {}]  }
   0x1   :  { %6845 = sst [smem:[#allocation2_spill]] %s6819_s0 }
   0x2   :  { %6846 = sst [smem:[#allocation3_spill]] %s6820_s1 }
   0x3 LB: > { %s5719_s25 = sadd.s32 4294967295, %s5609_s24   ;;  %p4579_p0 = scmp.ge.s32.totalorder %s5609_s24, 1  ;;  %s5609_s24 = sphi %s5713_s24, %s27_s24  }
   0x4   : > { %p498_p1 = scmp.lt.s32.totalorder %s5609_s24, 3 }
   0x6   : > { %p499_p2 = pnand %p4579_p0, %p498_p1 }
   0x7   : > { %s4580_s26 = sshll.u32 (!%p499_p2), %s5719_s25, 2  ;;  %vm584_vm0 = vcmask (!%p499_p2), 523264   ;;  %s6847_s0 = sld [smem:[#allocation2_spill]] (!%p499_p2)  ;;  %v5275_v14 = vld [vmem:[%s6823_s4 + $0x4] ss:$8 sps:$4 sm:$0xff] (!%p499_p2)   ;;  %v5611_v18 = vmov (!%p499_p2), 0   ;;  %v573_v54 = vlaneseq (!%p499_p2) }
   0x8   : > { %502 = sbr.rel (%p499_p2) target bundleno = 6553 (0x1999), region = 88  ;;  %p554_p3 = scmp.lt.s32.totalorder (!%p499_p2), %s4580_s26, 7  ;;  %v5277_v15 = vld [vmem:[%s6823_s4] ss:$8 sps:$4 sm:$0xff] (!%p499_p2)   ;;  %v5278_v16 = vld [vmem:[%s6823_s4 + $0x14] ss:$8 sps:$4 sm:$0xff] (!%p499_p2)   ;;  %735 = vmatprep.subr.bf16.mxu0 (!%p499_p2), %v5275_v14  ;;  %767 = vmatprep.mubr.bf16.mxu0 (!%p499_p2), %v5611_v18 }
   0x9   : > { %736 = vmatpush1.bf16.msra.mxu0 (!%p499_p2), %v5277_v15  ;;  %v5280_v17 = vld [vmem:[%s6823_s4 + $0x10] ss:$8 sps:$4 sm:$0xff] (!%p499_p2)   ;;  %v5281_v19 = vld [vmem:[%s6823_s4 + $0x24] ss:$8 sps:$4 sm:$0xff] (!%p499_p2)   ;;  %v5283_v20 = vld [vmem:[%s6823_s4 + $0x20] ss:$8 sps:$4 sm:$0xff] (!%p499_p2)  }
   0xa   : > { %737 = vmatprep.subr.bf16.mxu0 (!%p499_p2), %v5278_v16  ;;  %v5284_v21 = vld [vmem:[%s6823_s4 + $0x34] ss:$8 sps:$4 sm:$0xff] (!%p499_p2)   ;;  %v5286_v22 = vld [vmem:[%s6823_s4 + $0x30] ss:$8 sps:$4 sm:$0xff] (!%p499_p2)   ;;  %v4584_v35 = vld [vmem:[%s6821_s2] ss:$0 sm:$0xff] (!%p499_p2) }
   0xb   : > { %v4585_v39 = vld [vmem:[%s6822_s3] ss:$0 sm:$0xff] (!%p499_p2)  ;;  %v5774_v55 = vshrl.u32 (!%p499_p2), %v573_v54, 7  ;;  %v5612_v56 = vmov (!%p499_p2), 0.0   ;;  %vm5613_vm1 = vmmov (!%p499_p2), 0   ;;  %s5614_s29 = smov (!%p499_p2), 64  }
   0xc   : > { %4947 = vmatprep.subr.bf16.mxu1 (!%p499_p2), %v5612_v56  ;;  %v666_v58 = vld [vmem:[%s6824_s5] sm:$0x3] (!%p499_p2)  ;;  %4949 = vmatprep.mubr.msk.bf16.mxu1 (!%p499_p2), %vm5613_vm1, %v5612_v56  ;;  %vm793_vm2 = vcmask (!%p499_p2), 130048   ;;  %s5617_s18 = smov (!%p499_p2), 112   ;;  %s6841_s19 = smov (!%p499_p2), 96   ;;  %vm1314_vm5 = vcmask (!%p499_p2), 261120  }
   0xd   : > { %738 = vmatpush1.bf16.msra.mxu0 (!%p499_p2), %v5280_v17  ;;  %v5779_v57 = vsub.s32 (!%p499_p2), 0, %v5774_v55  ;;  %v5785_v59 = vsub.s32 (!%p499_p2), 1, %v5774_v55  ;;  %s6843_s1 = smov (!%p499_p2), 32   ;;  %s6839_s20 = smov (!%p499_p2), 16   ;;  %vm1317_vm6 = vcmask (!%p499_p2), 392192   ;;  %vm4433_vm7 = vcmask (!%p499_p2), 1040384  }
   0xe   : > { %739 = vmatprep.subr.bf16.mxu0 (!%p499_p2), %v5281_v19  ;;  %s6837_s21 = smov (!%p499_p2), 80   ;;  %p564_p5 = scmp.lt.s32.totalorder (!%p499_p2), %s5719_s25, 1  ;;  %vm4511_vm8 = vcmask (!%p499_p2), 254976  }
   0xf   : > { %s6854_s26 = smov (!%p554_p3, %s4580_s26), 7  ;;  %v682_v60 = vrot.slane %v666_v58, %v5779_v57  ;;  %v686_v62 = vrot.slane %v666_v58, %v5785_v59 }
  0x10   : > { %s4581_s27 = sshll.u32 %s6854_s26, 3  ;;  %s6849_s26 = smov 96  }
  0x11   : > { %s5727_s30 = scalar_lea.vmem %s6847_s0, %s4581_s27  ;;  %740 = vmatpush1.bf16.msra.mxu0 %v5283_v20  ;;  %s5616_s0 = smov 48  }
  0x12   : > { %v569_v0 = vld [vmem:[%s5727_s30] sm:$0xff]  ;;  %v570_v1 = vld [vmem:[%s5727_s30 + $0x8] sm:$0xff]  ;;  %741 = vmatprep.subr.bf16.mxu0 %v5284_v21  ;;  %v571_v23 = vld [vmem:[%s5727_s30 + $0x10] sm:$0xff]  ;;  %s6851_s27 = smov 80  }
  0x13   : > { %v585_v2 = vsel %vm584_vm0, %v569_v0, 0.0  ;;  %v588_v3 = vsel %vm584_vm0, %v570_v1, 0.0  ;;  %v572_v24 = vld [vmem:[%s5727_s30 + $0x18] sm:$0xff]  ;;  %v591_v25 = vsel %vm584_vm0, %v571_v23, 0.0 }
  0x14   : > { %586 = vadd.xlane.f32.xlu0 %v585_v2  ;;  %v594_v26 = vsel %vm584_vm0, %v572_v24, 0.0 }
  0x15   : > { %742 = vmatpush1.bf16.msra.mxu0 %v5286_v22 }
  0x16   : > { %4965 = vmatprep.subr.bf16.mxu0 %v5612_v56 }
  0x18   : > { %589 = vadd.xlane.f32.xlu0 %v588_v3 }
  0xa1   : > { %v587_v4 = vpop.xlane.xlu0 %586 }
  0xa2   : > { %v598_v5 = vmul.f32 0.015625, %v587_v4 }
  0xa4   : > { %v602_v6 = vsub.f32 %v569_v0, %v598_v5 }
  0xa5   : > { %v590_v7 = vpop.xlane.xlu0 %589 }
  0xa6   : > { %v599_v8 = vmul.f32 0.015625, %v590_v7  ;;  %v606_v9 = vmul.f32 %v602_v6, %v602_v6 }
  0xa8   : > { %v603_v10 = vsub.f32 %v570_v1, %v599_v8  ;;  %v610_v11 = vsel %vm584_vm0, %v606_v9, 0.0 }
  0xa9   : > { %611 = vadd.xlane.f32.xlu1 %v610_v11 }
  0xaa   : > { %v607_v12 = vmul.f32 %v603_v10, %v603_v10 }
  0xac   : > { %v613_v13 = vsel %vm584_vm0, %v607_v12, 0.0 }
  0xad   : > { %614 = vadd.xlane.f32.xlu1 %v613_v13 }
  0xb1   : > { %592 = vadd.xlane.f32.xlu1 %v591_v25 }
  0xb5   : > { %595 = vadd.xlane.f32.xlu1 %v594_v26 }
 0x136   : > { %v612_v27 = vpop.xlane.xlu1 %611 }
 0x137   : > { %v622_v28 = vmul.f32 0.015625, %v612_v27 }
 0x139   : > { %v626_v29 = vadd.f32 1e-05, %v622_v28 }
 0x13a   : > { %v615_v30 = vpop.xlane.xlu1 %614 }
 0x13b   : > { %5367 = vrsqrt.f32 %v626_v29  ;;  %v623_v31 = vmul.f32 0.015625, %v615_v30 }
 0x13d   : > { %v627_v32 = vadd.f32 1e-05, %v623_v31 }
 0x13e   : > { %v593_v44 = vpop.xlane.xlu1 %592 }
 0x13f   : > { %5369 = vrsqrt.f32 %v627_v32  ;;  %v600_v45 = vmul.f32 0.015625, %v593_v44 }
 0x141   : > { %v604_v46 = vsub.f32 %v571_v23, %v600_v45 }
 0x142   : > { %v596_v47 = vpop.xlane.xlu1 %595 }
 0x143   : > { %v601_v48 = vmul.f32 0.015625, %v596_v47  ;;  %v608_v49 = vmul.f32 %v604_v46, %v604_v46 }
 0x145   : > { %v5368_v33 = vpop.eup %5367  ;;  %v605_v50 = vsub.f32 %v572_v24, %v601_v48  ;;  %v616_v51 = vsel %vm584_vm0, %v608_v49, 0.0 }
 0x146   : > { %v634_v34 = vmul.f32 %v5368_v33, %v602_v6  ;;  %617 = vadd.xlane.f32.xlu1 %v616_v51 }
 0x147   : > { %v609_v52 = vmul.f32 %v605_v50, %v605_v50 }
 0x148   : > { %v644_v38 = vmul.f32 %v4584_v35, %v634_v34 }
 0x149   : > { %v5370_v36 = vpop.eup %5369  ;;  %v619_v53 = vsel %vm584_vm0, %v609_v52, 0.0 }
 0x14a   : > { %v635_v37 = vmul.f32 %v5370_v36, %v603_v10  ;;  %v654_v41 = vadd.f32 %v4585_v39, %v644_v38  ;;  %620 = vadd.xlane.f32.xlu1 %v619_v53  ;;  %v577_v36 = vand.u32 127, %v573_v54  ;;  %v5615_v38 = vmov -1e+09  }
 0x14c   : > { %v645_v40 = vmul.f32 %v4584_v35, %v635_v37  ;;  %v575_v37 = vadd.s32 8, %v5774_v55  ;;  %vm578_vm3 = vcmp.le.s32.totalorder %v577_v36, %v5774_v55 }
 0x14e   : > { %v655_v42 = vadd.f32 %v4585_v39, %v645_v40  ;;  %vm579_vm4 = vcmp.le.s32.totalorder %v577_v36, %v575_v37 }
 0x150   : > { %v676_v43 = vpack.c.bf16 %v655_v42, %v654_v41 }
 0x152   : > { %4594 = vmatmul.mubr.msk.bf16.vlgmr.msra.gmra.mrb[0].mxu0 %vm584_vm0, %v676_v43  ;;  %v5816_v43 = vsel %vm579_vm4, 0.0, %v5615_v38 }
 0x153   : > { %777 = vmatprep.mubr.bf16.mxu0 %v5611_v18 }
 0x1d3   : > { %v618_v8 = vpop.xlane.xlu1 %617 }
 0x1d4   : > { %v624_v9 = vmul.f32 0.015625, %v618_v8 }
 0x1d6   : > { %v628_v10 = vadd.f32 1e-05, %v624_v9 }
 0x1d7   : > { %v621_v11 = vpop.xlane.xlu1 %620 }
 0x1d8   : > { %5371 = vrsqrt.f32 %v628_v10  ;;  %v625_v12 = vmul.f32 0.015625, %v621_v11 }
 0x1da   : > { %v629_v13 = vadd.f32 1e-05, %v625_v12 }
 0x1dc   : > { %5373 = vrsqrt.f32 %v629_v13 }
 0x1e2   : > { %v5372_v14 = vpop.eup %5371 }
 0x1e3   : > { %v636_v15 = vmul.f32 %v5372_v14, %v604_v46 }
 0x1e5   : > { %v646_v16 = vmul.f32 %v4584_v35, %v636_v15 }
 0x1e6   : > { %v5374_v17 = vpop.eup %5373 }
 0x1e7   : > { %v637_v19 = vmul.f32 %v5374_v17, %v605_v50  ;;  %v656_v21 = vadd.f32 %v4585_v39, %v646_v16 }
 0x1e9   : > { %v647_v20 = vmul.f32 %v4584_v35, %v637_v19 }
 0x1eb   : > { %v657_v22 = vadd.f32 %v4585_v39, %v647_v20  ;;  %v5814_v39 = vsel %vm578_vm3, 0.0, %v5615_v38 }
 0x1ed   : > { %v677_v23 = vpack.c.bf16 %v657_v22, %v656_v21 }
 0x1ef   : > { %4595 = vmatmul.mubr.msk.bf16.gmra.mrb[4].mxu0 %vm584_vm0, %v677_v23 }
 0x1f0   : > { %4967 = vmatprep.mubr.msk.bf16.mxu0 %vm5613_vm1, %v5612_v56 }
 0x225   : > { %v769_v61 = vpop.f32.mrb[0].mxu0 }
 0x226   : > { %v771_v63 = vpop.f32.mrb[1].mxu0  ;;  %v770_v1 = vadd.f32 %v769_v61, %v682_v60 }
 0x227   : > { %v773_v0 = vpop.f32.mrb[2].mxu0  ;;  %v772_v4 = vadd.f32 %v771_v63, %v686_v62 }
 0x228   : > { %v774_v2 = vadd.f32 %v773_v0, %v682_v60  ;;  %v775_v3 = vpop.f32.mrb[3].mxu0 }
 0x229   : > { %v776_v5 = vadd.f32 %v775_v3, %v686_v62 }
 0x22a   : > { %v5791_v6 = vpack.c.bf16 %v774_v2, %v770_v1 }
 0x22b   : > { %v5793_v7 = vpack.c.bf16 %v776_v5, %v772_v4 }
 0x22c   : > { %791 = vrot.lane.b32.xlu0 %v5791_v6, %s5614_s29 }
 0x29e   : > { %v792_v24 = vpop.permute.xlu0 %791 }
 0x29f   : > { %v798_v25 = vsel %vm793_vm2, %v792_v24, 0 }
 0x2a0   : > { %4948 = vmatpush3.bf16.xpose.msra.mxu1 %v798_v25 }
 0x2a1   : > { %4953 = vmatprep.subr.bf16.mxu1 %v5612_v56 }
 0x2a7   : > { %4950 = vmatmul.mubr.msk.bf16.vlgmr.msra.gmra.mrb[0].mxu1 %vm793_vm2, %v5791_v6 }
 0x2a8   : > { %4954 = vmatpush3.bf16.msra.mxu1 %v5793_v7  ;;  %4955 = vmatprep.mubr.msk.bf16.mxu1 %vm5613_vm1, %v5612_v56 }
 0x2a9   : > { %4959 = vmatprep.subr.bf16.mxu1 %v5612_v56 }
 0x2c2   : > { %v779_v26 = vpop.f32.mrb[4].mxu0 }
 0x2c3   : > { %v780_v27 = vadd.f32 %v779_v26, %v682_v60  ;;  %v781_v28 = vpop.f32.mrb[5].mxu0 }
 0x2c4   : > { %v782_v29 = vadd.f32 %v781_v28, %v686_v62  ;;  %v783_v30 = vpop.f32.mrb[6].mxu0 }
 0x2c5   : > { %v784_v31 = vadd.f32 %v783_v30, %v682_v60  ;;  %v785_v32 = vpop.f32.mrb[7].mxu0 }
 0x2c6   : > { %v786_v33 = vadd.f32 %v785_v32, %v686_v62 }
 0x2c7   : > { %v5808_v34 = vpack.c.bf16 %v784_v31, %v780_v27 }
 0x2c8   : > { %v5810_v35 = vpack.c.bf16 %v786_v33, %v782_v29 }
 0x37a   : > { %v834_v40 = vpop.f32.mrb[0].mxu1 }
 0x37b   : > { %v841_v41 = vmul.f32 0.25, %v834_v40  ;;  %v4951_v42 = vpop.f32.mrb[1].mxu1 }
 0x37c   : > { %v837_v44 = vpop.f32.mrb[2].mxu1 }
 0x37d   : > { %v842_v45 = vmul.f32 0.25, %v837_v44  ;;  %v4952_v46 = vpop.f32.mrb[3].mxu1  ;;  %v843_v47 = vadd.f32 %v841_v41, %v5814_v39 }
 0x37f   : > { %v845_v48 = vsel %vm793_vm2, %v843_v47, -inf  ;;  %v844_v49 = vadd.f32 %v842_v45, %v5816_v43 }
 0x380   : > { %846 = vmax.xlane.f32.xlu1 %v845_v48 }
 0x381   : > { %v848_v50 = vsel %vm793_vm2, %v844_v49, -inf }
 0x384   : > { %849 = vmax.xlane.f32.xlu1 %v848_v50 }
 0x395   : > { %914 = vrot.lane.b32.xlu1 %v5791_v6, %s5616_s0 }
 0x40d   : > { %v847_v51 = vpop.xlane.xlu1 %846 }
 0x40e   : > { %v851_v52 = vsub.f32 %v843_v47, %v847_v51 }
 0x410   : > { %v853_v53 = vmul.f32 1.442695, %v851_v52 }
 0x411   : > { %v850_v54 = vpop.xlane.xlu1 %849 }
 0x412   : > { %5375 = vpow2.f32 %v853_v53  ;;  %v852_v55 = vsub.f32 %v844_v49, %v850_v54 }
 0x414   : > { %v855_v58 = vmul.f32 1.442695, %v852_v55 }
 0x415   : > { %v915_v0 = vpop.permute.xlu1 %914 }
 0x416   : > { %5377 = vpow2.f32 %v855_v58  ;;  %v920_v10 = vsel %vm793_vm2, %v915_v0, 0 }
 0x41c   : > { %v5376_v60 = vpop.eup %5375 }
 0x41d   : > { %v857_v61 = vsel %vm793_vm2, %v5376_v60, 0.0 }
 0x41e   : > { %858 = vadd.xlane.f32.xlu0 %v857_v61 }
 0x420   : > { %v5378_v62 = vpop.eup %5377 }
 0x421   : > { %v860_v63 = vsel %vm793_vm2, %v5378_v62, 0.0 }
 0x422   : > { %861 = vadd.xlane.f32.xlu1 %v860_v63 }
 0x433   : > { %912 = vrot.lane.b32.xlu1 %v5791_v6, %s5617_s18 }
 0x434   : > { %1038 = vrot.lane.b32.xlu0 %v5791_v6, %s6841_s19 }
 0x437   : > { %1040 = vrot.lane.b32.xlu1 %v5791_v6, %s6843_s1 }
 0x438   : > { %1569 = vrot.lane.b32.xlu0 %v5808_v34, %s6841_s19 }
 0x43b   : > { %1165 = vrot.lane.b32.xlu1 %v5791_v6, %s6839_s20 }
 0x43c   : > { %1694 = vrot.lane.b32.xlu0 %v5808_v34, %s6837_s21 }
 0x43f   : > { %1163 = vrot.lane.b32.xlu1 %v5791_v6, %s6837_s21 }
 0x443   : > { %1323 = vrot.lane.b32.xlu1 %v5808_v34, %s5614_s29 }
 0x447   : > { %1445 = vrot.lane.b32.xlu1 %v5808_v34, %s5616_s0 }
 0x44b   : > { %1443 = vrot.lane.b32.xlu1 %v5808_v34, %s5617_s18 }
 0x44f   : > { %1571 = vrot.lane.b32.xlu1 %v5808_v34, %s6843_s1 }
 0x453   : > { %1696 = vrot.lane.b32.xlu1 %v5808_v34, %s6839_s20 }
 0x4ab   : > { %v859_v1 = vpop.xlane.xlu0 %858 }
 0x4ac   : > { %5379 = vrcp.f32 %v859_v1 }
 0x4af   : > { %v862_v2 = vpop.xlane.xlu1 %861  ;;  %v1039_v15 = vpop.permute.xlu0 %1038 }
 0x4b0   : > { %5381 = vrcp.f32 %v862_v2 }
 0x4b3   : > { %v913_v5 = vpop.permute.xlu1 %912  ;;  %v1570_v26 = vpop.permute.xlu0 %1569 }
 0x4b6   : > { %v5380_v3 = vpop.eup %5379 }
 0x4b7   : > { %v865_v6 = vmul.f32 %v5380_v3, %v5376_v60  ;;  %v1041_v11 = vpop.permute.xlu1 %1040  ;;  %v1695_v28 = vpop.permute.xlu0 %1694 }
 0x4b8   : > { %v1046_v13 = vsel %vm793_vm2, %v1041_v11, 0 }
 0x4ba   : > { %v5382_v4 = vpop.eup %5381 }
 0x4bb   : > { %v866_v8 = vmul.f32 %v5382_v4, %v5378_v62  ;;  %v1166_v12 = vpop.permute.xlu1 %1165 }
 0x4bc   : > { %v1171_v16 = vsel %vm793_vm2, %v1166_v12, 0 }
 0x4bd   : > { %v867_v9 = vpack.c.bf16 %v866_v8, %v865_v6 }
 0x4bf   : > { %4956 = vmatmul.mubr.msk.bf16.vlgmr.msra.gmra.mrb[4].mxu1 %vm793_vm2, %v867_v9  ;;  %v1164_v14 = vpop.permute.xlu1 %1163 }
 0x4c0   : > { %4960 = vmatpush3.bf16.xpose.msra.mxu1 %v920_v10  ;;  %4961 = vmatprep.mubr.msk.bf16.mxu1 %vm5613_vm1, %v5612_v56 }
 0x4c1   : > { %4971 = vmatprep.subr.bf16.mxu1 %v5612_v56 }
 0x4c3   : > { %v1324_v17 = vpop.permute.xlu1 %1323 }
 0x4c4   : > { %v1329_v19 = vsel %vm793_vm2, %v1324_v17, 0 }
 0x4c7   : > { %4962 = vmatmul.mubr.msk.bf16.vlgmr.msra.gmra.mrb[8].mxu1 %vm793_vm2, %v913_v5  ;;  %v1446_v20 = vpop.permute.xlu1 %1445 }
 0x4c8   : > { %4972 = vmatpush3.bf16.xpose.msra.mxu1 %v1046_v13  ;;  %4973 = vmatprep.mubr.msk.bf16.mxu1 %vm5613_vm1, %v5612_v56  ;;  %v1451_v22 = vsel %vm793_vm2, %v1446_v20, 0 }
 0x4c9   : > { %4983 = vmatprep.subr.bf16.mxu1 %v5612_v56 }
 0x4cb   : > { %v1444_v21 = vpop.permute.xlu1 %1443 }
 0x4cf   : > { %4974 = vmatmul.mubr.msk.bf16.vlgmr.msra.gmra.mrb[12].mxu1 %vm793_vm2, %v1039_v15  ;;  %v1572_v23 = vpop.permute.xlu1 %1571 }
 0x4d0   : > { %4984 = vmatpush3.bf16.xpose.msra.mxu1 %v1171_v16  ;;  %4985 = vmatprep.mubr.msk.bf16.mxu1 %vm5613_vm1, %v5612_v56  ;;  %v1577_v24 = vsel %vm793_vm2, %v1572_v23, 0 }
 0x4d1   : > { %4995 = vmatprep.subr.bf16.mxu1 %v5612_v56 }
 0x4d3   : > { %v1697_v25 = vpop.permute.xlu1 %1696 }
 0x4d4   : > { %v1702_v27 = vsel %vm793_vm2, %v1697_v25, 0 }
 0x4d7   : > { %4986 = vmatmul.mubr.msk.bf16.vlgmr.msra.gmra.mrb[16].mxu1 %vm793_vm2, %v1164_v14 }
 0x4d8   : > { %4996 = vmatpush3.bf16.xpose.msra.mxu1 %v1329_v19  ;;  %4997 = vmatprep.mubr.msk.bf16.mxu1 %vm5613_vm1, %v5612_v56 }
 0x4d9   : > { %5007 = vmatprep.subr.bf16.mxu1 %v5612_v56 }
 0x4df   : > { %4998 = vmatmul.mubr.msk.bf16.vlgmr.msra.gmra.mrb[20].mxu1 %vm793_vm2, %v5808_v34 }
 0x4e0   : > { %5008 = vmatpush3.bf16.xpose.msra.mxu1 %v1451_v22  ;;  %5009 = vmatprep.mubr.msk.bf16.mxu1 %vm5613_vm1, %v5612_v56 }
 0x4e1   : > { %5019 = vmatprep.subr.bf16.mxu1 %v5612_v56 }
 0x4e7   : > { %5010 = vmatmul.mubr.msk.bf16.vlgmr.msra.gmra.mrb[24].mxu1 %vm793_vm2, %v1444_v21 }
 0x4e8   : > { %5020 = vmatpush3.bf16.xpose.msra.mxu1 %v1577_v24  ;;  %5021 = vmatprep.mubr.msk.bf16.mxu1 %vm5613_vm1, %v5612_v56 }
 0x4e9   : > { %5031 = vmatprep.subr.bf16.mxu1 %v5612_v56 }
 0x4ef   : > { %5022 = vmatmul.mubr.msk.bf16.vlgmr.msra.gmra.mrb[28].mxu1 %vm793_vm2, %v1570_v26 }
 0x4f0   : > { %5032 = vmatpush3.bf16.xpose.msra.mxu1 %v1702_v27  ;;  %5033 = vmatprep.mubr.msk.bf16.mxu1 %vm5613_vm1, %v5612_v56 }
 0x4f7   : > { %5034 = vmatmul.mubr.msk.bf16.vlgmr.msra.gmra.mrb[32].mxu1 %vm793_vm2, %v1695_v28 }
 0x592   : > { %v5886_v29 = vpop.f32.mrb[4].mxu1 }
 0x593   : > { %v4957_v30 = vpop.f32.mrb[5].mxu1 }
 0x594   : > { %v5888_v31 = vpop.f32.mrb[6].mxu1 }
 0x595   : > { %v4958_v32 = vpop.f32.mrb[7].mxu1 }
 0x59a   : > { %v956_v33 = vpop.f32.mrb[8].mxu1 }
 0x59b   : > { %v963_v34 = vmul.f32 0.25, %v956_v33  ;;  %v4963_v36 = vpop.f32.mrb[9].mxu1 }
 0x59c   : > { %v959_v37 = vpop.f32.mrb[10].mxu1 }
 0x59d   : > { %v964_v38 = vmul.f32 0.25, %v959_v37  ;;  %v4964_v40 = vpop.f32.mrb[11].mxu1  ;;  %v5891_v41 = vadd.f32 %v963_v34, %v5814_v39 }
 0x59f   : > { %v967_v42 = vsel %vm793_vm2, %v5891_v41, -inf  ;;  %v5896_v44 = vadd.f32 %v964_v38, %v5816_v43 }
 0x5a0   : > { %968 = vmax.xlane.f32.xlu1 %v967_v42 }
 0x5a1   : > { %v970_v45 = vsel %vm793_vm2, %v5896_v44, -inf }
 0x5a2   : > { %971 = vmax.xlane.f32.xlu0 %v970_v45  ;;  %v1082_v46 = vpop.f32.mrb[12].mxu1 }
 0x5a3   : > { %v1089_v47 = vmul.f32 0.25, %v1082_v46  ;;  %v4975_v48 = vpop.f32.mrb[13].mxu1 }
 0x5a4   : > { %v1085_v49 = vpop.f32.mrb[14].mxu1 }
 0x5a5   : > { %v1090_v50 = vmul.f32 0.25, %v1085_v49  ;;  %v4976_v51 = vpop.f32.mrb[15].mxu1  ;;  %v5901_v52 = vadd.f32 %v1089_v47, %v5814_v39 }
 0x5a7   : > { %v1093_v53 = vsel %vm793_vm2, %v5901_v52, -inf  ;;  %v5906_v54 = vadd.f32 %v1090_v50, %v5816_v43 }
 0x5a8   : > { %1094 = vmax.xlane.f32.xlu0 %v1093_v53 }
 0x5a9   : > { %v1096_v55 = vsel %vm793_vm2, %v5906_v54, -inf }
 0x5aa   : > { %1097 = vmax.xlane.f32.xlu1 %v1096_v55  ;;  %v1207_v58 = vpop.f32.mrb[16].mxu1 }
 0x5ab   : > { %v1214_v60 = vmul.f32 0.25, %v1207_v58  ;;  %v4987_v61 = vpop.f32.mrb[17].mxu1 }
 0x5ac   : > { %v1210_v62 = vpop.f32.mrb[18].mxu1 }
 0x5ad   : > { %v1215_v63 = vmul.f32 0.25, %v1210_v62  ;;  %v4988_v0 = vpop.f32.mrb[19].mxu1  ;;  %v5911_v1 = vadd.f32 %v1214_v60, %v5814_v39 }
 0x5af   : > { %v1218_v2 = vsel %vm793_vm2, %v5911_v1, -inf  ;;  %v5916_v3 = vadd.f32 %v1215_v63, %v5816_v43 }
 0x5b0   : > { %1219 = vmax.xlane.f32.xlu0 %v1218_v2 }
 0x5b1   : > { %v1221_v4 = vsel %vm793_vm2, %v5916_v3, -inf }
 0x5b2   : > { %1222 = vmax.xlane.f32.xlu1 %v1221_v4  ;;  %v1365_v5 = vpop.f32.mrb[20].mxu1 }
 0x5b3   : > { %v1372_v6 = vmul.f32 0.25, %v1365_v5  ;;  %v4999_v8 = vpop.f32.mrb[21].mxu1 }
 0x5b4   : > { %v1368_v9 = vpop.f32.mrb[22].mxu1 }
 0x5b5   : > { %v1373_v10 = vmul.f32 0.25, %v1368_v9  ;;  %v5000_v11 = vpop.f32.mrb[23].mxu1  ;;  %v5921_v12 = vadd.f32 %v1372_v6, %v5814_v39 }
 0x5b7   : > { %v1376_v13 = vsel %vm793_vm2, %v5921_v12, -inf  ;;  %v5926_v14 = vadd.f32 %v1373_v10, %v5816_v43 }
 0x5b8   : > { %1377 = vmax.xlane.f32.xlu0 %v1376_v13 }
 0x5b9   : > { %v1379_v15 = vsel %vm793_vm2, %v5926_v14, -inf }
 0x5ba   : > { %1380 = vmax.xlane.f32.xlu1 %v1379_v15  ;;  %v1487_v16 = vpop.f32.mrb[24].mxu1 }
 0x5bb   : > { %v1494_v17 = vmul.f32 0.25, %v1487_v16  ;;  %v5011_v19 = vpop.f32.mrb[25].mxu1 }
 0x5bc   : > { %v1490_v20 = vpop.f32.mrb[26].mxu1 }
 0x5bd   : > { %v1495_v21 = vmul.f32 0.25, %v1490_v20  ;;  %v5012_v22 = vpop.f32.mrb[27].mxu1  ;;  %v5931_v23 = vadd.f32 %v1494_v17, %v5814_v39 }
 0x5bf   : > { %v1498_v24 = vsel %vm793_vm2, %v5931_v23, -inf  ;;  %v5936_v25 = vadd.f32 %v1495_v21, %v5816_v43 }
 0x5c0   : > { %1499 = vmax.xlane.f32.xlu0 %v1498_v24 }
 0x5c1   : > { %v1501_v26 = vsel %vm793_vm2, %v5936_v25, -inf }
 0x5c2   : > { %1502 = vmax.xlane.f32.xlu1 %v1501_v26  ;;  %v1613_v27 = vpop.f32.mrb[28].mxu1 }
 0x5c3   : > { %v1620_v28 = vmul.f32 0.25, %v1613_v27  ;;  %v5023_v30 = vpop.f32.mrb[29].mxu1 }
 0x5c4   : > { %v1616_v32 = vpop.f32.mrb[30].mxu1 }
 0x5c5   : > { %v1621_v33 = vmul.f32 0.25, %v1616_v32  ;;  %v5024_v34 = vpop.f32.mrb[31].mxu1  ;;  %v5941_v36 = vadd.f32 %v1620_v28, %v5814_v39 }
 0x5c7   : > { %v1624_v37 = vsel %vm793_vm2, %v5941_v36, -inf  ;;  %v5946_v38 = vadd.f32 %v1621_v33, %v5816_v43 }
 0x5c8   : > { %1625 = vmax.xlane.f32.xlu0 %v1624_v37 }
 0x5c9   : > { %v1627_v40 = vsel %vm793_vm2, %v5946_v38, -inf }
 0x5ca   : > { %1628 = vmax.xlane.f32.xlu1 %v1627_v40  ;;  %v1738_v42 = vpop.f32.mrb[32].mxu1 }
 0x5cb   : > { %v1745_v45 = vmul.f32 0.25, %v1738_v42  ;;  %v5035_v46 = vpop.f32.mrb[33].mxu1 }
 0x5cc   : > { %v1741_v47 = vpop.f32.mrb[34].mxu1 }
 0x5cd   : > { %v1746_v48 = vmul.f32 0.25, %v1741_v47  ;;  %v5036_v49 = vpop.f32.mrb[35].mxu1  ;;  %v5951_v50 = vadd.f32 %v1745_v45, %v5814_v39 }
 0x5cf   : > { %v1749_v51 = vsel %vm793_vm2, %v5951_v50, -inf  ;;  %v5956_v53 = vadd.f32 %v1746_v48, %v5816_v43 }
 0x5d0   : > { %1750 = vmax.xlane.f32.xlu0 %v1749_v51 }
 0x5d1   : > { %v1752_v55 = vsel %vm793_vm2, %v5956_v53, -inf }
 0x5d2   : > { %1753 = vmax.xlane.f32.xlu1 %v1752_v55 }
 0x5e3   : > { %1116 = vrot.lane.b32.xlu1 %v5793_v7, %s6841_s19 }
 0x5e6   : > { %991 = vrot.lane.b32.xlu0 %v5793_v7, %s5617_s18 }
 0x62d   : > { %v969_v58 = vpop.xlane.xlu1 %968 }
 0x62e   : > { %v973_v60 = vsub.f32 %v5891_v41, %v969_v58 }
 0x62f   : > { %v972_v61 = vpop.xlane.xlu0 %971 }
 0x630   : > { %v975_v62 = vmul.f32 1.442695, %v973_v60  ;;  %v974_v63 = vsub.f32 %v5896_v44, %v972_v61 }
 0x632   : > { %5383 = vpow2.f32 %v975_v62  ;;  %v977_v0 = vmul.f32 1.442695, %v974_v63 }
 0x634   : > { %5385 = vpow2.f32 %v977_v0 }
 0x635   : > { %v1095_v2 = vpop.xlane.xlu0 %1094 }
 0x636   : > { %v1099_v4 = vsub.f32 %v5901_v52, %v1095_v2 }
 0x637   : > { %v1098_v5 = vpop.xlane.xlu1 %1097 }
 0x638   : > { %v1101_v6 = vmul.f32 1.442695, %v1099_v4  ;;  %v1100_v8 = vsub.f32 %v5906_v54, %v1098_v5 }
 0x63a   : > { %5387 = vpow2.f32 %v1101_v6  ;;  %v1103_v9 = vmul.f32 1.442695, %v1100_v8 }
 0x63c   : > { %v5968_v10 = vpop.eup %5383  ;;  %5389 = vpow2.f32 %v1103_v9 }
 0x63d   : > { %v1220_v41 = vpop.xlane.xlu0 %1219  ;;  %v979_v11 = vsel %vm793_vm2, %v5968_v10, 0.0 }
 0x63e   : > { %v5972_v44 = vpop.eup %5385  ;;  %v1224_v13 = vsub.f32 %v5911_v1, %v1220_v41  ;;  %980 = vadd.xlane.f32.xlu0 %v979_v11 }
 0x63f   : > { %v1223_v15 = vpop.xlane.xlu1 %1222  ;;  %v982_v52 = vsel %vm793_vm2, %v5972_v44, 0.0 }
 0x640   : > { %v1226_v16 = vmul.f32 1.442695, %v1224_v13  ;;  %v1225_v54 = vsub.f32 %v5916_v3, %v1223_v15  ;;  %983 = vadd.xlane.f32.xlu1 %v982_v52 }
 0x642   : > { %5391 = vpow2.f32 %v1226_v16  ;;  %v1228_v17 = vmul.f32 1.442695, %v1225_v54 }
 0x644   : > { %v5978_v19 = vpop.eup %5387  ;;  %5393 = vpow2.f32 %v1228_v17 }
 0x645   : > { %v1378_v20 = vpop.xlane.xlu0 %1377  ;;  %v1105_v21 = vsel %vm793_vm2, %v5978_v19, 0.0 }
 0x646   : > { %v5982_v22 = vpop.eup %5389  ;;  %v1382_v1 = vsub.f32 %v5921_v12, %v1378_v20  ;;  %1106 = vadd.xlane.f32.xlu0 %v1105_v21 }
 0x647   : > { %v1381_v24 = vpop.xlane.xlu1 %1380  ;;  %v1108_v26 = vsel %vm793_vm2, %v5982_v22, 0.0 }
 0x648   : > { %v1384_v3 = vmul.f32 1.442695, %v1382_v1  ;;  %v1383_v27 = vsub.f32 %v5926_v14, %v1381_v24  ;;  %1109 = vadd.xlane.f32.xlu1 %v1108_v26 }
 0x64a   : > { %5395 = vpow2.f32 %v1384_v3  ;;  %v1386_v28 = vmul.f32 1.442695, %v1383_v27 }
 0x64c   : > { %v5988_v30 = vpop.eup %5391  ;;  %5397 = vpow2.f32 %v1386_v28 }
 0x64d   : > { %v1500_v32 = vpop.xlane.xlu0 %1499  ;;  %v1230_v33 = vsel %vm793_vm2, %v5988_v30, 0.0 }
 0x64e   : > { %v5992_v34 = vpop.eup %5393  ;;  %v1504_v12 = vsub.f32 %v5931_v23, %v1500_v32  ;;  %1231 = vadd.xlane.f32.xlu0 %v1230_v33 }
 0x64f   : > { %v1503_v37 = vpop.xlane.xlu1 %1502  ;;  %v1233_v40 = vsel %vm793_vm2, %v5992_v34, 0.0 }
 0x650   : > { %v1506_v14 = vmul.f32 1.442695, %v1504_v12  ;;  %v1505_v42 = vsub.f32 %v5936_v25, %v1503_v37  ;;  %1234 = vadd.xlane.f32.xlu1 %v1233_v40 }
 0x652   : > { %5399 = vpow2.f32 %v1506_v14  ;;  %v1508_v45 = vmul.f32 1.442695, %v1505_v42 }
 0x654   : > { %v5998_v46 = vpop.eup %5395  ;;  %5401 = vpow2.f32 %v1508_v45 }
 0x655   : > { %v1388_v47 = vsel %vm793_vm2, %v5998_v46, 0.0  ;;  %v1626_v25 = vpop.xlane.xlu0 %1625 }
 0x656   : > { %v6002_v48 = vpop.eup %5397  ;;  %1389 = vadd.xlane.f32.xlu0 %v1388_v47  ;;  %v1630_v13 = vsub.f32 %v5941_v36, %v1626_v25 }
 0x657   : > { %v1629_v23 = vpop.xlane.xlu1 %1628  ;;  %v1391_v49 = vsel %vm793_vm2, %v6002_v48, 0.0 }
 0x658   : > { %v1631_v51 = vsub.f32 %v5946_v38, %v1629_v23  ;;  %1392 = vadd.xlane.f32.xlu1 %v1391_v49  ;;  %v1632_v15 = vmul.f32 1.442695, %v1630_v13 }
 0x65a   : > { %v1634_v55 = vmul.f32 1.442695, %v1631_v51 }
 0x65c   : > { %v6007_v58 = vpop.eup %5399  ;;  %5403 = vpow2.f32 %v1634_v55 }
 0x65d   : > { %v1751_v60 = vpop.xlane.xlu0 %1750  ;;  %v1510_v61 = vsel %vm793_vm2, %v6007_v58, 0.0 }
 0x65e   : > { %v6011_v62 = vpop.eup %5401  ;;  %v1755_v63 = vsub.f32 %v5951_v50, %v1751_v60  ;;  %1511 = vadd.xlane.f32.xlu1 %v1510_v61 }
 0x65f   : > { %v1754_v0 = vpop.xlane.xlu1 %1753  ;;  %v1513_v5 = vsel %vm793_vm2, %v6011_v62, 0.0 }
 0x660   : > { %v1757_v2 = vmul.f32 1.442695, %v1755_v63  ;;  %v1756_v4 = vsub.f32 %v5956_v53, %v1754_v0 }
 0x661   : > { %v992_v38 = vpop.permute.xlu0 %991 }
 0x662   : > { %5405 = vpow2.f32 %v1757_v2  ;;  %v1759_v6 = vmul.f32 1.442695, %v1756_v4  ;;  %4966 = vmatpush3.bf16.msra.mxu0 %v992_v38  ;;  %1514 = vadd.xlane.f32.xlu1 %v1513_v5 }
 0x663   : > { %4977 = vmatprep.subr.bf16.mxu0 %v5612_v56  ;;  %v1117_v16 = vpop.permute.xlu1 %1116 }
 0x664   : > { %5407 = vpow2.f32 %v1759_v6 }
 0x665   : > { %5409 = vpow2.f32 %v1632_v15 }
 0x666   : > { %v6018_v8 = vpop.eup %5403 }
 0x667   : > { %v1639_v50 = vsel %vm793_vm2, %v6018_v8, 0.0 }
 0x668   : > { %1640 = vadd.xlane.f32.xlu1 %v1639_v50 }
 0x66c   : > { %v6022_v9 = vpop.eup %5405  ;;  %1241 = vrot.lane.b32.xlu0 %v5793_v7, %s6837_s21 }
 0x66d   : > { %v1761_v53 = vsel %vm793_vm2, %v6022_v9, 0.0 }
 0x66e   : > { %v6028_v41 = vpop.eup %5407  ;;  %1762 = vadd.xlane.f32.xlu1 %v1761_v53 }
 0x66f   : > { %v1764_v11 = vsel %vm793_vm2, %v6028_v41, 0.0  ;;  %v6035_v52 = vpop.eup %5409 }
 0x670   : > { %v1636_v7 = vsel %vm793_vm2, %v6035_v52, 0.0 }
 0x672   : > { %1765 = vadd.xlane.f32.xlu1 %v1764_v11 }
 0x683   : > { %1522 = vrot.lane.b32.xlu1 %v5810_v35, %s5617_s18 }
 0x68b   : > { %1637 = vadd.xlane.f32.xlu0 %v1636_v7 }
 0x6a1   : > { %1647 = vrot.lane.b32.xlu0 %v5810_v35, %s6841_s19 }
 0x6a5   : > { %1772 = vrot.lane.b32.xlu0 %v5810_v35, %s6837_s21 }
 0x6cb   : > { %v981_v54 = vpop.xlane.xlu0 %980 }
 0x6cc   : > { %5411 = vrcp.f32 %v981_v54 }
 0x6cd   : > { %v984_v36 = vpop.xlane.xlu1 %983 }
 0x6ce   : > { %5413 = vrcp.f32 %v984_v36 }
 0x6d3   : > { %v1107_v17 = vpop.xlane.xlu0 %1106 }
 0x6d4   : > { %5415 = vrcp.f32 %v1107_v17 }
 0x6d5   : > { %v1110_v20 = vpop.xlane.xlu1 %1109 }
 0x6d6   : > { %v5412_v21 = vpop.eup %5411  ;;  %5417 = vrcp.f32 %v1110_v20 }
 0x6d7   : > { %v987_v24 = vmul.f32 %v5412_v21, %v5968_v10 }
 0x6d8   : > { %v5414_v1 = vpop.eup %5413 }
 0x6d9   : > { %v988_v26 = vmul.f32 %v5414_v1, %v5972_v44 }
 0x6db   : > { %v989_v3 = vpack.c.bf16 %v988_v26, %v987_v24  ;;  %v1232_v27 = vpop.xlane.xlu0 %1231 }
 0x6dc   : > { %5419 = vrcp.f32 %v1232_v27 }
 0x6dd   : > { %4968 = vmatmul.mubr.msk.bf16.vlgmr.msra.gmra.mrb[8].mxu0 %vm793_vm2, %v989_v3  ;;  %v1235_v28 = vpop.xlane.xlu1 %1234 }
 0x6de   : > { %v5416_v32 = vpop.eup %5415  ;;  %4978 = vmatpush3.bf16.msra.mxu0 %v1117_v16  ;;  %5421 = vrcp.f32 %v1235_v28  ;;  %4979 = vmatprep.mubr.msk.bf16.mxu0 %vm5613_vm1, %v5612_v56 }
 0x6df   : > { %4989 = vmatprep.subr.bf16.mxu0 %v5612_v56  ;;  %v1113_v12 = vmul.f32 %v5416_v32, %v5978_v19 }
 0x6e0   : > { %v5418_v33 = vpop.eup %5417 }
 0x6e1   : > { %v1114_v10 = vmul.f32 %v5418_v33, %v5982_v22 }
 0x6e3   : > { %v1390_v44 = vpop.xlane.xlu0 %1389  ;;  %v1115_v37 = vpack.c.bf16 %v1114_v10, %v1113_v12 }
 0x6e4   : > { %5423 = vrcp.f32 %v1390_v44 }
 0x6e5   : > { %4980 = vmatmul.mubr.msk.bf16.vlgmr.msra.gmra.mrb[12].mxu0 %vm793_vm2, %v1115_v37  ;;  %v1393_v40 = vpop.xlane.xlu1 %1392  ;;  %v5287_v37 = vld [vmem:[%s6825_s6] sm:$0xff]  }
 0x6e6   : > { %v5420_v14 = vpop.eup %5419  ;;  %5425 = vrcp.f32 %v1393_v40  ;;  %4991 = vmatprep.mubr.msk.bf16.mxu0 %vm5613_vm1, %v5612_v56  ;;  %5043 = vmatprep.subr.bf16.mxu1 %v5287_v37 }
 0x6e7   : > { %v1242_v42 = vpop.permute.xlu0 %1241  ;;  %v1238_v47 = vmul.f32 %v5420_v14, %v5988_v30  ;;  %5044 = vmatpush3.bf16.msra.mxu1 %v5287_v37 }
 0x6e8   : > { %v5422_v45 = vpop.eup %5421  ;;  %4990 = vmatpush3.bf16.msra.mxu0 %v1242_v42 }
 0x6e9   : > { %v1239_v19 = vmul.f32 %v5422_v45, %v5992_v34  ;;  %5001 = vmatprep.subr.bf16.mxu0 %v5612_v56 }
 0x6eb   : > { %v1512_v22 = vpop.xlane.xlu1 %1511  ;;  %v1240_v23 = vpack.c.bf16 %v1239_v19, %v1238_v47  ;;  %v5288_v19 = vld [vmem:[%s6825_s6 + $0x8] sm:$0xff]  }
 0x6ec   : > { %5045 = vmatprep.subr.bf16.mxu1 %v5288_v19 }
 0x6ed   : > { %4992 = vmatmul.mubr.msk.bf16.vlgmr.msra.gmra.mrb[16].mxu0 %vm793_vm2, %v1240_v23  ;;  %5046 = vmatpush3.bf16.msra.mxu1 %v5288_v19  ;;  %v5601_v19 = vld [vmem:[%s5727_s30 + $0x8] sm:$0xff] }
 0x6ee   : > { %v5424_v49 = vpop.eup %5423  ;;  %5002 = vmatpush3.bf16.msra.mxu0 %v5810_v35  ;;  %5003 = vmatprep.mubr.msk.bf16.mxu0 %vm5613_vm1, %v5612_v56 }
 0x6ef   : > { %5013 = vmatprep.subr.bf16.mxu0 %v5612_v56  ;;  %v1396_v25 = vmul.f32 %v5424_v49, %v5998_v46  ;;  %v1515_v34 = vpop.xlane.xlu1 %1514  ;;  %v5290_v49 = vld [vmem:[%s6825_s6 + $0x18] sm:$0xff]  }
 0x6f0   : > { %v5426_v51 = vpop.eup %5425  ;;  %5427 = vrcp.f32 %v1515_v34 }
 0x6f1   : > { %v1397_v30 = vmul.f32 %v5426_v51, %v6002_v48  ;;  %5429 = vrcp.f32 %v1512_v22  ;;  %v5289_v22 = vld [vmem:[%s6825_s6 + $0x10] sm:$0xff]  }
 0x6f2   : > { %5047 = vmatprep.subr.bf16.mxu1 %v5289_v22 }
 0x6f3   : > { %v1398_v55 = vpack.c.bf16 %v1397_v30, %v1396_v25  ;;  %5048 = vmatpush3.bf16.msra.mxu1 %v5289_v22 }
 0x6f4   : > { %5049 = vmatprep.subr.bf16.mxu1 %v5290_v49 }
 0x6f5   : > { %5004 = vmatmul.mubr.msk.bf16.vlgmr.msra.gmra.mrb[20].mxu0 %vm793_vm2, %v1398_v55  ;;  %v1641_v35 = vpop.xlane.xlu1 %1640 }
 0x6f6   : > { %5015 = vmatprep.mubr.msk.bf16.mxu0 %vm5613_vm1, %v5612_v56  ;;  %5431 = vrcp.f32 %v1641_v35 }
 0x6f7   : > { %5050 = vmatpush3.bf16.msra.mxu1 %v5290_v49  ;;  %v5602_v49 = vld [vmem:[%s5727_s30 + $0x10] sm:$0xff] }
 0x6fa   : > { %v5428_v61 = vpop.eup %5427 }
 0x6fb   : > { %v1763_v60 = vpop.xlane.xlu1 %1762  ;;  %v5430_v0 = vpop.eup %5429  ;;  %v1519_v2 = vmul.f32 %v5428_v61, %v6011_v62 }
 0x6fc   : > { %v1518_v46 = vmul.f32 %v5430_v0, %v6007_v58 }
 0x6fe   : > { %v1520_v48 = vpack.c.bf16 %v1519_v2, %v1518_v46 }
 0x6ff   : > { %v1766_v63 = vpop.xlane.xlu1 %1765 }
 0x700   : > { %v5432_v58 = vpop.eup %5431 }
 0x701   : > { %v1645_v6 = vmul.f32 %v5432_v58, %v6018_v8 }
 0x703   : > { %v1523_v4 = vpop.permute.xlu1 %1522 }
 0x704   : > { %5014 = vmatpush3.bf16.msra.mxu0 %v1523_v4 }
 0x705   : > { %5025 = vmatprep.subr.bf16.mxu0 %v5612_v56 }
 0x707   : > { %5016 = vmatmul.mubr.msk.bf16.vlgmr.msra.gmra.mrb[24].mxu0 %vm793_vm2, %v1520_v48 }
 0x708   : > { %5027 = vmatprep.mubr.msk.bf16.mxu0 %vm5613_vm1, %v5612_v56 }
 0x718   : > { %v1638_v38 = vpop.xlane.xlu0 %1637 }
 0x719   : > { %5433 = vrcp.f32 %v1638_v38 }
 0x71a   : > { %5435 = vrcp.f32 %v1766_v63 }
 0x71b   : > { %5437 = vrcp.f32 %v1763_v60 }
 0x71c   : > { %v1648_v5 = vpop.permute.xlu0 %1647 }
 0x71d   : > { %5026 = vmatpush3.bf16.msra.mxu0 %v1648_v5 }
 0x71e   : > { %5037 = vmatprep.subr.bf16.mxu0 %v5612_v56 }
 0x720   : > { %v1773_v13 = vpop.permute.xlu0 %1772 }
 0x723   : > { %v5434_v62 = vpop.eup %5433 }
 0x724   : > { %v1644_v50 = vmul.f32 %v5434_v62, %v6035_v52  ;;  %v5436_v11 = vpop.eup %5435 }
 0x725   : > { %v5438_v15 = vpop.eup %5437  ;;  %v1770_v7 = vmul.f32 %v5436_v11, %v6028_v41 }
 0x726   : > { %v1646_v53 = vpack.c.bf16 %v1645_v6, %v1644_v50  ;;  %v1769_v16 = vmul.f32 %v5438_v15, %v6022_v9 }
 0x728   : > { %5028 = vmatmul.mubr.msk.bf16.vlgmr.msra.gmra.mrb[28].mxu0 %vm793_vm2, %v1646_v53  ;;  %v1771_v54 = vpack.c.bf16 %v1770_v7, %v1769_v16 }
 0x729   : > { %5038 = vmatpush3.bf16.msra.mxu0 %v1773_v13  ;;  %5039 = vmatprep.mubr.msk.bf16.mxu0 %vm5613_vm1, %v5612_v56 }
 0x730   : > { %5040 = vmatmul.mubr.msk.bf16.vlgmr.msra.gmra.mrb[32].mxu0 %vm793_vm2, %v1771_v54 }
 0x731   : > { %2147 = vmatprep.mubr.bf16.mxu0 %v5611_v18 }
 0x7b0   : > { %v1031_v8 = vpop.f32.mrb[8].mxu0 }
 0x7b1   : > { %v4969_v52 = vpop.f32.mrb[9].mxu0 }
 0x7b2   : > { %v1034_v36 = vpop.f32.mrb[10].mxu0 }
 0x7b3   : > { %v5215_v17 = vpack.i.bf16 %v1034_v36, %v1031_v8  ;;  %v4970_v20 = vpop.f32.mrb[11].mxu0 }
 0x7b5   : > { %5216 = vrot.lane.b32.xlu0 %v5215_v17, %s6839_s20 }
 0x7b8   : > { %v1156_v21 = vpop.f32.mrb[12].mxu0 }
 0x7b9   : > { %v4981_v1 = vpop.f32.mrb[13].mxu0 }
 0x7ba   : > { %v1159_v24 = vpop.f32.mrb[14].mxu0 }
 0x7bb   : > { %v5220_v26 = vpack.i.bf16 %v1159_v24, %v1156_v21  ;;  %v4982_v3 = vpop.f32.mrb[15].mxu0 }
 0x7bd   : > { %5221 = vrot.lane.b32.xlu0 %v5220_v26, %s6843_s1 }
 0x7c0   : > { %v1281_v9 = vpop.f32.mrb[16].mxu0 }
 0x7c1   : > { %v4993_v41 = vpop.f32.mrb[17].mxu0 }
 0x7c2   : > { %v1284_v27 = vpop.f32.mrb[18].mxu0 }
 0x7c3   : > { %v5225_v28 = vpack.i.bf16 %v1284_v27, %v1281_v9  ;;  %v4994_v32 = vpop.f32.mrb[19].mxu0  ;;  %v4612_v27 = vld [vmem:[%s6826_s7] ss:$0 sm:$0xff] }
 0x7c5   : > { %5226 = vrot.lane.b32.xlu0 %v5225_v28, %s5616_s0 }
 0x7c8   : > { %v1436_v33 = vpop.f32.mrb[20].mxu0 }
 0x7c9   : > { %v5005_v12 = vpop.f32.mrb[21].mxu0 }
 0x7ca   : > { %v1439_v10 = vpop.f32.mrb[22].mxu0 }
 0x7cb   : > { %v5006_v44 = vpop.f32.mrb[23].mxu0 }
 0x7da   : > { %v1562_v40 = vpop.f32.mrb[24].mxu0 }
 0x7db   : > { %v5017_v14 = vpop.f32.mrb[25].mxu0 }
 0x7dc   : > { %v1565_v42 = vpop.f32.mrb[26].mxu0 }
 0x7dd   : > { %v5230_v45 = vpack.i.bf16 %v1565_v42, %v1562_v40  ;;  %v5018_v47 = vpop.f32.mrb[27].mxu0  ;;  %v5599_v40 = vld [vmem:[%s5727_s30] sm:$0xff] }
 0x7df   : > { %5231 = vrot.lane.b32.xlu1 %v5230_v45, %s6839_s20  ;;  %v5600_v45 = vld [vmem:[%s5727_s30 + $0x18] sm:$0xff]  ;;  %s6848_s20 = smov 32   ;;  %s6850_s30 = smov 16  }
 0x7fb   : > { %v1687_v23 = vpop.f32.mrb[28].mxu0 }
 0x7fc   : > { %v5029_v51 = vpop.f32.mrb[29].mxu0 }
 0x7fd   : > { %v1690_v25 = vpop.f32.mrb[30].mxu0 }
 0x7fe   : > { %v5235_v30 = vpack.i.bf16 %v1690_v25, %v1687_v23  ;;  %v5030_v34 = vpop.f32.mrb[31].mxu0 }
 0x800   : > { %5236 = vrot.lane.b32.xlu1 %v5235_v30, %s6843_s1 }
 0x803   : > { %v1812_v55 = vpop.f32.mrb[32].mxu0 }
 0x804   : > { %v5041_v35 = vpop.f32.mrb[33].mxu0 }
 0x805   : > { %v1815_v60 = vpop.f32.mrb[34].mxu0 }
 0x806   : > { %v5240_v61 = vpack.i.bf16 %v1815_v60, %v1812_v55  ;;  %v5042_v63 = vpop.f32.mrb[35].mxu0 }
 0x808   : > { %5241 = vrot.lane.b32.xlu0 %v5240_v61, %s5616_s0 }
 0x827   : > { %v5217_v0 = vpop.permute.xlu0 %5216 }
 0x828   : > { %v5219_v46 = vunpack.i.h.bf16 %v5217_v0  ;;  %v5218_v4 = vunpack.i.l.bf16 %v5217_v0 }
 0x82a   : > { %v1313_v58 = vsel %vm793_vm2, %v5888_v31, %v5219_v46  ;;  %v1312_v62 = vsel %vm793_vm2, %v5886_v29, %v5218_v4 }
 0x82f   : > { %v5222_v2 = vpop.permute.xlu0 %5221 }
 0x830   : > { %v5224_v48 = vunpack.i.h.bf16 %v5222_v2  ;;  %v5223_v38 = vunpack.i.l.bf16 %v5222_v2 }
 0x832   : > { %v1316_v53 = vsel %vm1314_vm5, %v1313_v58, %v5224_v48  ;;  %v1315_v11 = vsel %vm1314_vm5, %v1312_v62, %v5223_v38 }
 0x837   : > { %v5227_v5 = vpop.permute.xlu0 %5226 }
 0x838   : > { %v5229_v6 = vunpack.i.h.bf16 %v5227_v5  ;;  %v5228_v50 = vunpack.i.l.bf16 %v5227_v5 }
 0x83a   : > { %v1319_v13 = vsel %vm1317_vm6, %v1316_v53, %v5229_v6  ;;  %v1318_v15 = vsel %vm1317_vm6, %v1315_v11, %v5228_v50 }
 0x83b   : > { %v1849_v7 = vpack.c.bf16 %v1319_v13, %v1318_v15 }
 0x83d   : > { %5051 = vmatprep.mubr.msk.bf16.mxu1 %vm584_vm0, %v1849_v7  ;;  %v5293_v7 = vld [vmem:[%s6829_s10 + $0x4] ss:$8 sps:$4 sm:$0xff]  }
 0x83e   : > { %2115 = vmatprep.subr.bf16.mxu0 %v5293_v7  ;;  %v5317_v7 = vld [vmem:[%s6831_s12 + $0x78] sm:$0xff]  }
 0x851   : > { %v5232_v16 = vpop.permute.xlu1 %5231 }
 0x852   : > { %v5234_v8 = vunpack.i.h.bf16 %v5232_v16  ;;  %v5233_v31 = vunpack.i.l.bf16 %v5232_v16  ;;  %v5291_v16 = vld [vmem:[%s6829_s10] ss:$8 sps:$4 sm:$0xff]  }
 0x853   : > { %2116 = vmatpush1.bf16.msra.mxu0 %v5291_v16  ;;  %v5318_v16 = vld [vmem:[%s6831_s12 + $0x38] sm:$0xff]  }
 0x854   : > { %v1844_v17 = vsel %vm793_vm2, %v1439_v10, %v5234_v8  ;;  %v1843_v20 = vsel %vm793_vm2, %v1436_v33, %v5233_v31  ;;  %v5294_v8 = vld [vmem:[%s6829_s10 + $0x10] ss:$8 sps:$4 sm:$0xff]   ;;  %v5299_v31 = vld [vmem:[%s6829_s10 + $0x24] ss:$8 sps:$4 sm:$0xff]  }
 0x872   : > { %v5237_v54 = vpop.permute.xlu1 %5236 }
 0x873   : > { %v5239_v52 = vunpack.i.h.bf16 %v5237_v54  ;;  %v5238_v36 = vunpack.i.l.bf16 %v5237_v54  ;;  %v5296_v54 = vld [vmem:[%s6829_s10 + $0x14] ss:$8 sps:$4 sm:$0xff]  }
 0x874   : > { %2117 = vmatprep.subr.bf16.mxu0 %v5296_v54  ;;  %v2022_v54 = vld [vmem:[%s6830_s11] sm:$0x3] }
 0x875   : > { %v1846_v24 = vsel %vm1314_vm5, %v1844_v17, %v5239_v52  ;;  %v1845_v26 = vsel %vm1314_vm5, %v1843_v20, %v5238_v36  ;;  %2118 = vmatpush1.bf16.msra.mxu0 %v5294_v8  ;;  %v5297_v52 = vld [vmem:[%s6829_s10 + $0x20] ss:$8 sps:$4 sm:$0xff]   ;;  %v5302_v36 = vld [vmem:[%s6829_s10 + $0x34] ss:$8 sps:$4 sm:$0xff]   ;;  %v2062_v8 = vrot.slane %v2022_v54, %v5779_v57 }
 0x876   : > { %2119 = vmatprep.subr.bf16.mxu0 %v5299_v31  ;;  %v2066_v31 = vrot.slane %v2022_v54, %v5785_v59 }
 0x879   : > { %2120 = vmatpush1.bf16.msra.mxu0 %v5297_v52 }
 0x87a   : > { %v5242_v29 = vpop.permute.xlu0 %5241  ;;  %2121 = vmatprep.subr.bf16.mxu0 %v5302_v36 }
 0x87b   : > { %v5244_v21 = vunpack.i.h.bf16 %v5242_v29  ;;  %v5243_v1 = vunpack.i.l.bf16 %v5242_v29  ;;  %v5300_v29 = vld [vmem:[%s6829_s10 + $0x30] ss:$8 sps:$4 sm:$0xff]  }
 0x87d   : > { %v1848_v3 = vsel %vm1317_vm6, %v1846_v24, %v5244_v21  ;;  %v1847_v9 = vsel %vm1317_vm6, %v1845_v26, %v5243_v1  ;;  %2122 = vmatpush1.bf16.msra.mxu0 %v5300_v29 }
 0x87e   : > { %v1850_v41 = vpack.c.bf16 %v1848_v3, %v1847_v9 }
 0x880   : > { %5052 = vmatmul.mubr.msk.bf16.vlgmr.msra.gmra.mrb[36].mxu1 %vm584_vm0, %v1850_v41 }
 0x953   : > { %v5053_v28 = vpop.f32.mrb[36].mxu1 }
 0x954   : > { %v1921_v32 = vpop.f32.mrb[37].mxu1  ;;  %v1930_v37 = vadd.f32 %v5053_v28, %v4612_v27 }
 0x955   : > { %v1922_v33 = vadd.f32 %v4612_v27, %v1921_v32  ;;  %v5054_v12 = vpop.f32.mrb[38].mxu1 }
 0x956   : > { %v1933_v10 = vadd.f32 %v5054_v12, %v4612_v27  ;;  %v1924_v44 = vpop.f32.mrb[39].mxu1  ;;  %v6132_v51 = vadd.f32 %v5602_v49, %v1930_v37  ;;  %v4619_v12 = vld [vmem:[%s6827_s8] ss:$0 sm:$0xff] }
 0x957   : > { %v6121_v14 = vadd.f32 %v5599_v40, %v1922_v33  ;;  %v1925_v42 = vadd.f32 %v4612_v27, %v1924_v44 }
 0x958   : > { %v6124_v47 = vadd.f32 %v5600_v45, %v1933_v10  ;;  %v1948_v34 = vsel %vm584_vm0, %v6132_v51, 0.0 }
 0x959   : > { %v6127_v22 = vadd.f32 %v5601_v19, %v1925_v42  ;;  %v1942_v23 = vsel %vm584_vm0, %v6121_v14, 0.0  ;;  %v4620_v42 = vld [vmem:[%s6828_s9] ss:$0 sm:$0xff] }
 0x95a   : > { %1943 = vadd.xlane.f32.xlu1 %v1942_v23  ;;  %v1951_v30 = vsel %vm584_vm0, %v6124_v47, 0.0 }
 0x95b   : > { %v1945_v25 = vsel %vm584_vm0, %v6127_v22, 0.0 }
 0x95c   : > { %1946 = vadd.xlane.f32.xlu0 %v1945_v25 }
 0x95e   : > { %1952 = vadd.xlane.f32.xlu1 %v1951_v30 }
 0x960   : > { %1949 = vadd.xlane.f32.xlu0 %v1948_v34 }
 0x9e7   : > { %v1944_v55 = vpop.xlane.xlu1 %1943 }
 0x9e8   : > { %v1954_v35 = vmul.f32 0.015625, %v1944_v55 }
 0x9e9   : > { %v1947_v60 = vpop.xlane.xlu0 %1946 }
 0x9ea   : > { %v1958_v61 = vsub.f32 %v6121_v14, %v1954_v35  ;;  %v1955_v63 = vmul.f32 0.015625, %v1947_v60 }
 0x9eb   : > { %v1953_v0 = vpop.xlane.xlu1 %1952 }
 0x9ec   : > { %v1959_v2 = vsub.f32 %v6127_v22, %v1955_v63  ;;  %v1957_v46 = vmul.f32 0.015625, %v1953_v0  ;;  %v1962_v4 = vmul.f32 %v1958_v61, %v1958_v61 }
 0x9ed   : > { %v1950_v48 = vpop.xlane.xlu0 %1949 }
 0x9ee   : > { %v1961_v38 = vsub.f32 %v6124_v47, %v1957_v46  ;;  %v1956_v5 = vmul.f32 0.015625, %v1950_v48  ;;  %v1966_v58 = vsel %vm584_vm0, %v1962_v4, 0.0  ;;  %v1963_v62 = vmul.f32 %v1959_v2, %v1959_v2  ;;  %v5304_v46 = vld [vmem:[%s6831_s12] sm:$0xff]   ;;  %v5305_v4 = vld [vmem:[%s6831_s12 + $0x48] sm:$0xff]  }
 0x9ef   : > { %1967 = vadd.xlane.f32.xlu0 %v1966_v58  ;;  %v5306_v48 = vld [vmem:[%s6831_s12 + $0x8] sm:$0xff]   ;;  %v5309_v58 = vld [vmem:[%s6831_s12 + $0x58] sm:$0xff]  }
 0x9f0   : > { %v1960_v6 = vsub.f32 %v6132_v51, %v1956_v5  ;;  %v1969_v50 = vsel %vm584_vm0, %v1963_v62, 0.0  ;;  %v1965_v53 = vmul.f32 %v1961_v38, %v1961_v38  ;;  %v5308_v5 = vld [vmem:[%s6831_s12 + $0x10] sm:$0xff]   ;;  %v5310_v62 = vld [vmem:[%s6831_s12 + $0x18] sm:$0xff]  }
 0x9f1   : > { %1970 = vadd.xlane.f32.xlu1 %v1969_v50  ;;  %v5312_v50 = vld [vmem:[%s6831_s12 + $0x20] sm:$0xff]  }
 0x9f2   : > { %v1964_v11 = vmul.f32 %v1960_v6, %v1960_v6  ;;  %v1975_v15 = vsel %vm584_vm0, %v1965_v53, 0.0  ;;  %v5313_v53 = vld [vmem:[%s6831_s12 + $0x68] sm:$0xff]  }
 0x9f4   : > { %v1972_v13 = vsel %vm584_vm0, %v1964_v11, 0.0  ;;  %v5314_v11 = vld [vmem:[%s6831_s12 + $0x28] sm:$0xff]  }
 0x9f5   : > { %1973 = vadd.xlane.f32.xlu0 %v1972_v13  ;;  %1976 = vadd.xlane.f32.xlu1 %v1975_v15  ;;  %v5315_v13 = vld [vmem:[%s6831_s12 + $0x70] sm:$0xff]  }
 0x9f6   : > { %v5316_v15 = vld [vmem:[%s6831_s12 + $0x30] sm:$0xff]  }
 0xa7c   : > { %v1968_v17 = vpop.xlane.xlu0 %1967 }
 0xa7d   : > { %v1978_v20 = vmul.f32 0.015625, %v1968_v17 }
 0xa7e   : > { %v1971_v21 = vpop.xlane.xlu1 %1970 }
 0xa7f   : > { %v1982_v1 = vadd.f32 1e-05, %v1978_v20  ;;  %v1979_v24 = vmul.f32 0.015625, %v1971_v21 }
 0xa81   : > { %5439 = vrsqrt.f32 %v1982_v1  ;;  %v1983_v26 = vadd.f32 1e-05, %v1979_v24 }
 0xa82   : > { %v1974_v3 = vpop.xlane.xlu0 %1973  ;;  %v1977_v9 = vpop.xlane.xlu1 %1976 }
 0xa83   : > { %5441 = vrsqrt.f32 %v1983_v26  ;;  %v1980_v41 = vmul.f32 0.015625, %v1974_v3  ;;  %v1981_v27 = vmul.f32 0.015625, %v1977_v9 }
 0xa85   : > { %v1984_v28 = vadd.f32 1e-05, %v1980_v41  ;;  %v1985_v32 = vadd.f32 1e-05, %v1981_v27 }
 0xa87   : > { %5443 = vrsqrt.f32 %v1984_v28 }
 0xa88   : > { %5445 = vrsqrt.f32 %v1985_v32 }
 0xa8b   : > { %v5440_v33 = vpop.eup %5439 }
 0xa8c   : > { %v1990_v10 = vmul.f32 %v5440_v33, %v1958_v61 }
 0xa8d   : > { %v5442_v44 = vpop.eup %5441 }
 0xa8e   : > { %v2000_v37 = vmul.f32 %v4619_v12, %v1990_v10  ;;  %v1991_v40 = vmul.f32 %v5442_v44, %v1959_v2  ;;  %v5303_v2 = vld [vmem:[%s6831_s12 + $0x40] sm:$0xff]  }
 0xa8f   : > { %4842 = vmatprep.subr.bf16.mxu1 %v5303_v2 }
 0xa90   : > { %v2001_v45 = vmul.f32 %v4619_v12, %v1991_v40  ;;  %v2010_v25 = vadd.f32 %v4620_v42, %v2000_v37  ;;  %4843 = vmatpush3.bf16.msra.mxu1 %v5304_v46 }
 0xa91   : > { %v5444_v19 = vpop.eup %5443  ;;  %4844 = vmatprep.subr.bf16.mxu1 %v5305_v4 }
 0xa92   : > { %v5446_v23 = vpop.eup %5445  ;;  %v1992_v49 = vmul.f32 %v5444_v19, %v1960_v6  ;;  %v2011_v30 = vadd.f32 %v4620_v42, %v2001_v45  ;;  %v5311_v6 = vld [vmem:[%s6831_s12 + $0x60] sm:$0xff]  }
 0xa93   : > { %v1993_v34 = vmul.f32 %v5446_v23, %v1961_v38  ;;  %v5307_v38 = vld [vmem:[%s6831_s12 + $0x50] sm:$0xff]  }
 0xa94   : > { %v2056_v55 = vpack.c.bf16 %v2011_v30, %v2010_v25  ;;  %v2002_v35 = vmul.f32 %v4619_v12, %v1992_v49  ;;  %4845 = vmatpush3.bf16.msra.mxu1 %v5306_v48 }
 0xa95   : > { %v2003_v60 = vmul.f32 %v4619_v12, %v1993_v34  ;;  %4846 = vmatprep.subr.bf16.mxu1 %v5307_v38 }
 0xa96   : > { %4629 = vmatmul.mubr.msk.bf16.vlgmr.msra.gmra.mrb[36].mxu0 %vm584_vm0, %v2056_v55  ;;  %v2012_v61 = vadd.f32 %v4620_v42, %v2002_v35 }
 0xa97   : > { %2157 = vmatprep.mubr.bf16.mxu0 %v5611_v18  ;;  %v2013_v63 = vadd.f32 %v4620_v42, %v2003_v60 }
 0xa98   : > { %4847 = vmatpush3.bf16.msra.mxu1 %v5308_v5 }
 0xa99   : > { %v2057_v0 = vpack.c.bf16 %v2013_v63, %v2012_v61  ;;  %4848 = vmatprep.subr.bf16.mxu1 %v5309_v58 }
 0xa9c   : > { %4849 = vmatpush3.bf16.msra.mxu1 %v5310_v62 }
 0xa9d   : > { %4850 = vmatprep.subr.bf16.mxu1 %v5311_v6 }
 0xa9e   : > { %4630 = vmatmul.mubr.msk.bf16.gmra.mrb[40].mxu0 %vm584_vm0, %v2057_v0 }
 0xa9f   : > { %2580 = vmatprep.mubr.bf16.mxu0 %v5611_v18 }
 0xaa0   : > { %4851 = vmatpush3.bf16.msra.mxu1 %v5312_v50 }
 0xaa1   : > { %4852 = vmatprep.subr.bf16.mxu1 %v5313_v53 }
 0xaa4   : > { %4853 = vmatpush3.bf16.msra.mxu1 %v5314_v11 }
 0xaa5   : > { %4854 = vmatprep.subr.bf16.mxu1 %v5315_v13 }
 0xaa8   : > { %4855 = vmatpush3.bf16.msra.mxu1 %v5316_v15 }
 0xaa9   : > { %4856 = vmatprep.subr.bf16.mxu1 %v5317_v7 }
 0xaac   : > { %4857 = vmatpush3.bf16.msra.mxu1 %v5318_v16 }
 0xaad   : > { %5067 = vmatprep.subr.bf16.mxu1 %v5612_v56 }
 0xb69   : > { %v2149_v52 = vpop.f32.mrb[36].mxu0 }
 0xb6a   : > { %v6236_v36 = vadd.f32 %v2149_v52, %v2062_v8  ;;  %v2151_v29 = vpop.f32.mrb[37].mxu0 }
 0xb6b   : > { %v6238_v17 = vadd.f32 %v2151_v29, %v2066_v31  ;;  %v2153_v20 = vpop.f32.mrb[38].mxu0 }
 0xb6c   : > { %v4631_v21 = vmul.f32 -1.702, %v6236_v36  ;;  %v6241_v1 = vadd.f32 %v2153_v20, %v2062_v8  ;;  %v2155_v24 = vpop.f32.mrb[39].mxu0 }
 0xb6d   : > { %v4632_v26 = vmul.f32 -1.702, %v6238_v17  ;;  %v2156_v3 = vadd.f32 %v2155_v24, %v2066_v31 }
 0xb6e   : > { %v2184_v9 = vmul.f32 1.442695, %v4631_v21  ;;  %v4633_v41 = vmul.f32 -1.702, %v6241_v1 }
 0xb6f   : > { %v2186_v27 = vmul.f32 1.442695, %v4632_v26  ;;  %v4634_v28 = vmul.f32 -1.702, %v2156_v3 }
 0xb70   : > { %5447 = vpow2.f32 %v2184_v9  ;;  %v2188_v32 = vmul.f32 1.442695, %v4633_v41 }
 0xb71   : > { %5449 = vpow2.f32 %v2186_v27  ;;  %v2190_v33 = vmul.f32 1.442695, %v4634_v28  ;;  %v2159_v12 = vpop.f32.mrb[40].mxu0 }
 0xb72   : > { %5451 = vpow2.f32 %v2188_v32  ;;  %v2160_v10 = vadd.f32 %v2159_v12, %v2062_v8  ;;  %v2161_v44 = vpop.f32.mrb[41].mxu0 }
 0xb73   : > { %5453 = vpow2.f32 %v2190_v33  ;;  %v2162_v37 = vadd.f32 %v2161_v44, %v2066_v31  ;;  %v2163_v40 = vpop.f32.mrb[42].mxu0 }
 0xb74   : > { %v4635_v42 = vmul.f32 -1.702, %v2160_v10  ;;  %v2164_v45 = vadd.f32 %v2163_v40, %v2062_v8  ;;  %v2165_v19 = vpop.f32.mrb[43].mxu0 }
 0xb75   : > { %v4636_v23 = vmul.f32 -1.702, %v2162_v37  ;;  %v2166_v49 = vadd.f32 %v2165_v19, %v2066_v31 }
 0xb76   : > { %v2192_v25 = vmul.f32 1.442695, %v4635_v42  ;;  %v4637_v30 = vmul.f32 -1.702, %v2164_v45 }
 0xb77   : > { %v2194_v34 = vmul.f32 1.442695, %v4636_v23  ;;  %v4638_v55 = vmul.f32 -1.702, %v2166_v49 }
 0xb78   : > { %5455 = vpow2.f32 %v2192_v25  ;;  %v2196_v35 = vmul.f32 1.442695, %v4637_v30 }
 0xb79   : > { %5457 = vpow2.f32 %v2194_v34  ;;  %v2198_v60 = vmul.f32 1.442695, %v4638_v55 }
 0xb7a   : > { %v5448_v61 = vpop.eup %5447  ;;  %5459 = vpow2.f32 %v2196_v35 }
 0xb7b   : > { %v5450_v63 = vpop.eup %5449  ;;  %v2200_v0 = vadd.f32 1.0, %v5448_v61  ;;  %5461 = vpow2.f32 %v2198_v60 }
 0xb7c   : > { %v5452_v2 = vpop.eup %5451  ;;  %v2201_v46 = vadd.f32 1.0, %v5450_v63 }
 0xb7d   : > { %v5454_v4 = vpop.eup %5453  ;;  %5463 = vrcp.f32 %v2200_v0  ;;  %v2202_v48 = vadd.f32 1.0, %v5452_v2 }
 0xb7e   : > { %5465 = vrcp.f32 %v2201_v46  ;;  %v2203_v38 = vadd.f32 1.0, %v5454_v4 }
 0xb7f   : > { %5467 = vrcp.f32 %v2202_v48 }
 0xb80   : > { %5469 = vrcp.f32 %v2203_v38 }
 0xb82   : > { %v5456_v5 = vpop.eup %5455 }
 0xb83   : > { %v5458_v58 = vpop.eup %5457  ;;  %v2204_v62 = vadd.f32 1.0, %v5456_v5 }
 0xb84   : > { %v5460_v6 = vpop.eup %5459  ;;  %v2205_v50 = vadd.f32 1.0, %v5458_v58 }
 0xb85   : > { %v5462_v53 = vpop.eup %5461  ;;  %5471 = vrcp.f32 %v2204_v62  ;;  %v2206_v11 = vadd.f32 1.0, %v5460_v6 }
 0xb86   : > { %5473 = vrcp.f32 %v2205_v50  ;;  %v2207_v13 = vadd.f32 1.0, %v5462_v53 }
 0xb87   : > { %v5464_v15 = vpop.eup %5463  ;;  %5475 = vrcp.f32 %v2206_v11 }
 0xb88   : > { %v5466_v7 = vpop.eup %5465  ;;  %5477 = vrcp.f32 %v2207_v13  ;;  %v2224_v8 = vmul.f32 %v5464_v15, %v6236_v36 }
 0xb89   : > { %v5468_v16 = vpop.eup %5467  ;;  %v2225_v52 = vmul.f32 %v5466_v7, %v6238_v17  ;;  %v4639_v17 = vld [vmem:[%s6832_s13] ss:$0 sm:$0xff] }
 0xb8a   : > { %v5470_v54 = vpop.eup %5469  ;;  %v2226_v31 = vmul.f32 %v5468_v16, %v6241_v1 }
 0xb8b   : > { %v2227_v29 = vmul.f32 %v5470_v54, %v2156_v3 }
 0xb8c   : > { %v2232_v20 = vpack.c.bf16 %v2226_v31, %v2224_v8 }
 0xb8d   : > { %v2233_v21 = vpack.c.bf16 %v2227_v29, %v2225_v52  ;;  %v5321_v29 = vld [vmem:[%s6823_s4 + $0x44] ss:$8 sps:$4 sm:$0xff]  }
 0xb8e   : > { %2548 = vmatprep.subr.bf16.mxu0 %v5321_v29 }
 0xb8f   : > { %v5472_v24 = vpop.eup %5471  ;;  %2370 = vmatprep.mubr.bf16.mxu1 %v2233_v21  ;;  %v5324_v21 = vld [vmem:[%s6823_s4 + $0x54] ss:$8 sps:$4 sm:$0xff]  }
 0xb90   : > { %v5474_v26 = vpop.eup %5473  ;;  %2371 = vmatmul.mubr.bf16.vlgmr.msra.gmra.mrb[40].mxu1 %v2232_v20  ;;  %v2228_v27 = vmul.f32 %v5472_v24, %v2160_v10  ;;  %v5319_v20 = vld [vmem:[%s6823_s4 + $0x40] ss:$8 sps:$4 sm:$0xff]   ;;  %v5322_v24 = vld [vmem:[%s6823_s4 + $0x50] ss:$8 sps:$4 sm:$0xff]  }
 0xb91   : > { %v5476_v9 = vpop.eup %5475  ;;  %v2229_v32 = vmul.f32 %v5474_v26, %v2162_v37  ;;  %2549 = vmatpush1.bf16.msra.mxu0 %v5319_v20  ;;  %v5327_v26 = vld [vmem:[%s6823_s4 + $0x64] ss:$8 sps:$4 sm:$0xff]  }
 0xb92   : > { %v5478_v41 = vpop.eup %5477  ;;  %v2230_v28 = vmul.f32 %v5476_v9, %v2164_v45  ;;  %2550 = vmatprep.subr.bf16.mxu0 %v5324_v21  ;;  %v5325_v9 = vld [vmem:[%s6823_s4 + $0x60] ss:$8 sps:$4 sm:$0xff]  }
 0xb93   : > { %v2231_v33 = vmul.f32 %v5478_v41, %v2166_v49  ;;  %v5330_v41 = vld [vmem:[%s6823_s4 + $0x74] ss:$8 sps:$4 sm:$0xff]  }
 0xb94   : > { %v2234_v12 = vpack.c.bf16 %v2230_v28, %v2228_v27  ;;  %v5328_v27 = vld [vmem:[%s6823_s4 + $0x70] ss:$8 sps:$4 sm:$0xff]  }
 0xb95   : > { %v2235_v44 = vpack.c.bf16 %v2231_v33, %v2229_v32  ;;  %2551 = vmatpush1.bf16.msra.mxu0 %v5322_v24 }
 0xb96   : > { %2552 = vmatprep.subr.bf16.mxu0 %v5327_v26 }
 0xb97   : > { %2378 = vmatprep.mubr.bf16.mxu1 %v2235_v44 }
 0xb98   : > { %2379 = vmatmul.mubr.bf16.gmra.mrb[44].mxu1 %v2234_v12 }
 0xb99   : > { %5069 = vmatprep.mubr.msk.bf16.mxu1 %vm5613_vm1, %v5612_v56  ;;  %2553 = vmatpush1.bf16.msra.mxu0 %v5325_v9 }
 0xb9a   : > { %2554 = vmatprep.subr.bf16.mxu0 %v5330_v41 }
 0xb9d   : > { %2555 = vmatpush1.bf16.msra.mxu0 %v5328_v27 }
 0xb9e   : > { %5055 = vmatprep.subr.bf16.mxu0 %v5612_v56 }
 0xc63   : > { %v4858_v36 = vpop.f32.mrb[40].mxu1 }
 0xc64   : > { %v4859_v1 = vpop.f32.mrb[41].mxu1 }
 0xc65   : > { %v4860_v3 = vadd.f32 %v4859_v1, %v4858_v36  ;;  %v4861_v40 = vpop.f32.mrb[42].mxu1 }
 0xc66   : > { %v4862_v42 = vpop.f32.mrb[43].mxu1 }
 0xc67   : > { %v2373_v10 = vadd.f32 %v4860_v3, %v4639_v17  ;;  %v4863_v45 = vadd.f32 %v4862_v42, %v4861_v40 }
 0xc69   : > { %v6254_v37 = vadd.f32 %v2373_v10, %v6121_v14  ;;  %v2376_v19 = vadd.f32 %v4863_v45, %v4639_v17 }
 0xc6b   : > { %v6257_v23 = vadd.f32 %v2376_v19, %v6127_v22  ;;  %v4864_v49 = vpop.f32.mrb[44].mxu1  ;;  %v2395_v25 = vsel %vm584_vm0, %v6254_v37, 0.0  ;;  %v4658_v19 = vld [vmem:[%s6821_s2 + $0x1] ss:$0 sm:$0xff] }
 0xc6c   : > { %v4865_v30 = vpop.f32.mrb[45].mxu1  ;;  %2396 = vadd.xlane.f32.xlu0 %v2395_v25 }
 0xc6d   : > { %v4866_v34 = vadd.f32 %v4865_v30, %v4864_v49  ;;  %v4867_v55 = vpop.f32.mrb[46].mxu1  ;;  %v2398_v35 = vsel %vm584_vm0, %v6257_v23, 0.0 }
 0xc6e   : > { %v4868_v60 = vpop.f32.mrb[47].mxu1  ;;  %2399 = vadd.xlane.f32.xlu1 %v2398_v35 }
 0xc6f   : > { %v2381_v61 = vadd.f32 %v4866_v34, %v4639_v17  ;;  %v4869_v14 = vadd.f32 %v4868_v60, %v4867_v55  ;;  %v4659_v55 = vld [vmem:[%s6822_s3 + $0x1] ss:$0 sm:$0xff] }
 0xc71   : > { %v6264_v63 = vadd.f32 %v2381_v61, %v6132_v51  ;;  %v2384_v22 = vadd.f32 %v4869_v14, %v4639_v17 }
 0xc73   : > { %v6267_v0 = vadd.f32 %v2384_v22, %v6124_v47  ;;  %v2401_v2 = vsel %vm584_vm0, %v6264_v63, 0.0 }
 0xc74   : > { %2402 = vadd.xlane.f32.xlu0 %v2401_v2 }
 0xc75   : > { %v2404_v46 = vsel %vm584_vm0, %v6267_v0, 0.0 }
 0xc76   : > { %2405 = vadd.xlane.f32.xlu1 %v2404_v46 }
 0xcf9   : > { %v2397_v4 = vpop.xlane.xlu0 %2396 }
 0xcfa   : > { %v2407_v48 = vmul.f32 0.015625, %v2397_v4 }
 0xcfb   : > { %v2400_v38 = vpop.xlane.xlu1 %2399 }
 0xcfc   : > { %v2411_v5 = vsub.f32 %v6254_v37, %v2407_v48  ;;  %v2408_v58 = vmul.f32 0.015625, %v2400_v38 }
 0xcfe   : > { %v2412_v51 = vsub.f32 %v6257_v23, %v2408_v58  ;;  %v2415_v62 = vmul.f32 %v2411_v5, %v2411_v5 }
 0xd00   : > { %v2419_v47 = vsel %vm584_vm0, %v2415_v62, 0.0  ;;  %v2416_v6 = vmul.f32 %v2412_v51, %v2412_v51  ;;  %v4668_v62 = vld [vmem:[%s6824_s5 + $0x2] sm:$0x3] }
 0xd01   : > { %2420 = vadd.xlane.f32.xlu0 %v2419_v47  ;;  %v2403_v50 = vpop.xlane.xlu0 %2402  ;;  %v2495_v47 = vrot.slane %v4668_v62, %v5779_v57 }
 0xd02   : > { %v2409_v53 = vmul.f32 0.015625, %v2403_v50  ;;  %v2422_v11 = vsel %vm584_vm0, %v2416_v6, 0.0  ;;  %v2499_v50 = vrot.slane %v4668_v62, %v5785_v59 }
 0xd03   : > { %2423 = vadd.xlane.f32.xlu1 %v2422_v11  ;;  %v2406_v13 = vpop.xlane.xlu1 %2405 }
 0xd04   : > { %v2413_v15 = vsub.f32 %v6264_v63, %v2409_v53  ;;  %v2410_v7 = vmul.f32 0.015625, %v2406_v13 }
 0xd06   : > { %v2414_v16 = vsub.f32 %v6267_v0, %v2410_v7  ;;  %v2417_v54 = vmul.f32 %v2413_v15, %v2413_v15 }
 0xd08   : > { %v2425_v8 = vsel %vm584_vm0, %v2417_v54, 0.0  ;;  %v2418_v31 = vmul.f32 %v2414_v16, %v2414_v16 }
 0xd09   : > { %2426 = vadd.xlane.f32.xlu0 %v2425_v8 }
 0xd0a   : > { %v2428_v52 = vsel %vm584_vm0, %v2418_v31, 0.0 }
 0xd0b   : > { %2429 = vadd.xlane.f32.xlu1 %v2428_v52 }
 0xd8e   : > { %v2421_v28 = vpop.xlane.xlu0 %2420 }
 0xd8f   : > { %v2431_v32 = vmul.f32 0.015625, %v2421_v28 }
 0xd90   : > { %v2424_v33 = vpop.xlane.xlu1 %2423 }
 0xd91   : > { %v2435_v12 = vadd.f32 1e-05, %v2431_v32  ;;  %v2432_v44 = vmul.f32 0.015625, %v2424_v33 }
 0xd93   : > { %5479 = vrsqrt.f32 %v2435_v12  ;;  %v2436_v36 = vadd.f32 1e-05, %v2432_v44 }
 0xd95   : > { %5481 = vrsqrt.f32 %v2436_v36 }
 0xd96   : > { %v2427_v17 = vpop.xlane.xlu0 %2426 }
 0xd97   : > { %v2433_v1 = vmul.f32 0.015625, %v2427_v17 }
 0xd98   : > { %v2430_v3 = vpop.xlane.xlu1 %2429 }
 0xd99   : > { %v2437_v40 = vadd.f32 1e-05, %v2433_v1  ;;  %v2434_v42 = vmul.f32 0.015625, %v2430_v3 }
 0xd9b   : > { %5483 = vrsqrt.f32 %v2437_v40  ;;  %v2438_v10 = vadd.f32 1e-05, %v2434_v42 }
 0xd9d   : > { %v5480_v45 = vpop.eup %5479  ;;  %5485 = vrsqrt.f32 %v2438_v10 }
 0xd9e   : > { %v2443_v49 = vmul.f32 %v5480_v45, %v2411_v5 }
 0xd9f   : > { %v5482_v25 = vpop.eup %5481 }
 0xda0   : > { %v2453_v30 = vmul.f32 %v4658_v19, %v2443_v49  ;;  %v2444_v34 = vmul.f32 %v5482_v25, %v2412_v51 }
 0xda2   : > { %v2454_v35 = vmul.f32 %v4658_v19, %v2444_v34  ;;  %v2463_v60 = vadd.f32 %v4659_v55, %v2453_v30 }
 0xda4   : > { %v2464_v61 = vadd.f32 %v4659_v55, %v2454_v35 }
 0xda5   : > { %v5484_v14 = vpop.eup %5483 }
 0xda6   : > { %v2445_v22 = vmul.f32 %v5484_v14, %v2413_v15  ;;  %v2489_v2 = vpack.c.bf16 %v2464_v61, %v2463_v60 }
 0xda7   : > { %v5486_v46 = vpop.eup %5485 }
 0xda8   : > { %v2446_v4 = vmul.f32 %v5486_v46, %v2414_v16  ;;  %4686 = vmatmul.mubr.msk.bf16.vlgmr.msra.gmra.mrb[44].mxu0 %vm584_vm0, %v2489_v2  ;;  %v2455_v48 = vmul.f32 %v4658_v19, %v2445_v22 }
 0xda9   : > { %2590 = vmatprep.mubr.bf16.mxu0 %v5611_v18 }
 0xdaa   : > { %v2456_v38 = vmul.f32 %v4658_v19, %v2446_v4  ;;  %v2465_v5 = vadd.f32 %v4659_v55, %v2455_v48 }
 0xdac   : > { %v2466_v58 = vadd.f32 %v4659_v55, %v2456_v38 }
 0xdae   : > { %v2490_v51 = vpack.c.bf16 %v2466_v58, %v2465_v5 }
 0xdb0   : > { %4687 = vmatmul.mubr.msk.bf16.gmra.mrb[48].mxu0 %vm584_vm0, %v2490_v51 }
 0xdb1   : > { %5057 = vmatprep.mubr.msk.bf16.mxu0 %vm5613_vm1, %v5612_v56 }
 0xe7b   : > { %v2582_v6 = vpop.f32.mrb[44].mxu0 }
 0xe7c   : > { %v2584_v53 = vpop.f32.mrb[45].mxu0  ;;  %v2583_v13 = vadd.f32 %v2582_v6, %v2495_v47 }
 0xe7d   : > { %v2586_v11 = vpop.f32.mrb[46].mxu0  ;;  %v2585_v16 = vadd.f32 %v2584_v53, %v2499_v50 }
 0xe7e   : > { %v2587_v15 = vadd.f32 %v2586_v11, %v2495_v47  ;;  %v2588_v7 = vpop.f32.mrb[47].mxu0 }
 0xe7f   : > { %v2589_v54 = vadd.f32 %v2588_v7, %v2499_v50 }
 0xe80   : > { %v2601_v8 = vpack.c.bf16 %v2587_v15, %v2583_v13 }
 0xe81   : > { %v6322_v31 = vpack.c.bf16 %v2589_v54, %v2585_v16 }
 0xe82   : > { %2726 = vrot.lane.b32.xlu1 %v2601_v8, %s5616_s0  ;;  %2604 = vrot.lane.b32.xlu0 %v2601_v8, %s5614_s29 }
 0xe83   : > { %v2592_v52 = vpop.f32.mrb[48].mxu0 }
 0xe84   : > { %v2594_v29 = vpop.f32.mrb[49].mxu0  ;;  %v2593_v24 = vadd.f32 %v2592_v52, %v2495_v47 }
 0xe85   : > { %v2595_v20 = vadd.f32 %v2594_v29, %v2499_v50  ;;  %v2596_v21 = vpop.f32.mrb[50].mxu0 }
 0xe86   : > { %v2597_v26 = vadd.f32 %v2596_v21, %v2495_v47  ;;  %2724 = vrot.lane.b32.xlu1 %v2601_v8, %s5617_s18  ;;  %2852 = vrot.lane.b32.xlu0 %v2601_v8, %s6848_s20  ;;  %v2598_v9 = vpop.f32.mrb[51].mxu0 }
 0xe87   : > { %v2599_v41 = vadd.f32 %v2598_v9, %v2499_v50 }
 0xe88   : > { %v3130_v27 = vpack.c.bf16 %v2597_v26, %v2593_v24 }
 0xe89   : > { %v6328_v28 = vpack.c.bf16 %v2599_v41, %v2595_v20 }
 0xe8a   : > { %2850 = vrot.lane.b32.xlu1 %v2601_v8, %s6849_s26  ;;  %2977 = vrot.lane.b32.xlu0 %v2601_v8, %s6850_s30 }
 0xe8e   : > { %2975 = vrot.lane.b32.xlu1 %v2601_v8, %s6851_s27  ;;  %3133 = vrot.lane.b32.xlu0 %v3130_v27, %s5614_s29 }
 0xe92   : > { %3255 = vrot.lane.b32.xlu1 %v3130_v27, %s5616_s0  ;;  %3253 = vrot.lane.b32.xlu0 %v3130_v27, %s5617_s18 }
 0xe96   : > { %3381 = vrot.lane.b32.xlu1 %v3130_v27, %s6848_s20  ;;  %3379 = vrot.lane.b32.xlu0 %v3130_v27, %s6849_s26 }
 0xe9a   : > { %3506 = vrot.lane.b32.xlu1 %v3130_v27, %s6850_s30  ;;  %3504 = vrot.lane.b32.xlu0 %v3130_v27, %s6851_s27 }
 0xef4   : > { %v2727_v32 = vpop.permute.xlu1 %2726  ;;  %v2605_v33 = vpop.permute.xlu0 %2604 }
 0xef5   : > { %v2732_v12 = vsel %vm793_vm2, %v2727_v32, 0  ;;  %v2610_v44 = vsel %vm793_vm2, %v2605_v33, 0 }
 0xef6   : > { %5056 = vmatpush3.bf16.xpose.msra.mxu0 %v2610_v44  ;;  %5068 = vmatpush3.bf16.xpose.msra.mxu1 %v2732_v12 }
 0xef7   : > { %5061 = vmatprep.subr.bf16.mxu0 %v5612_v56  ;;  %5079 = vmatprep.subr.bf16.mxu1 %v5612_v56 }
 0xef8   : > { %v2853_v36 = vpop.permute.xlu0 %2852  ;;  %v2725_v17 = vpop.permute.xlu1 %2724 }
 0xef9   : > { %v2858_v1 = vsel %vm793_vm2, %v2853_v36, 0 }
 0xefc   : > { %v2978_v3 = vpop.permute.xlu0 %2977  ;;  %v2851_v40 = vpop.permute.xlu1 %2850 }
 0xefd   : > { %5058 = vmatmul.mubr.msk.bf16.vlgmr.msra.gmra.mrb[52].mxu0 %vm793_vm2, %v2601_v8  ;;  %5070 = vmatmul.mubr.msk.bf16.vlgmr.msra.gmra.mrb[48].mxu1 %vm793_vm2, %v2725_v17  ;;  %v2983_v42 = vsel %vm793_vm2, %v2978_v3, 0 }
 0xefe   : > { %5062 = vmatpush3.bf16.msra.mxu0 %v6322_v31  ;;  %5080 = vmatpush3.bf16.xpose.msra.mxu1 %v2858_v1 }
 0xeff   : > { %5081 = vmatprep.mubr.msk.bf16.mxu1 %vm5613_vm1, %v5612_v56  ;;  %5091 = vmatprep.subr.bf16.mxu1 %v5612_v56 }
 0xf00   : > { %5063 = vmatprep.mubr.msk.bf16.mxu0 %vm5613_vm1, %v5612_v56  ;;  %5073 = vmatprep.subr.bf16.mxu0 %v5612_v56  ;;  %v3134_v10 = vpop.permute.xlu0 %3133  ;;  %v2976_v45 = vpop.permute.xlu1 %2975 }
 0xf01   : > { %v3139_v19 = vsel %vm793_vm2, %v3134_v10, 0 }
 0xf04   : > { %v3256_v49 = vpop.permute.xlu1 %3255  ;;  %v3254_v34 = vpop.permute.xlu0 %3253 }
 0xf05   : > { %5082 = vmatmul.mubr.msk.bf16.vlgmr.msra.gmra.mrb[52].mxu1 %vm793_vm2, %v2851_v40  ;;  %v3261_v25 = vsel %vm793_vm2, %v3256_v49, 0 }
 0xf06   : > { %5092 = vmatpush3.bf16.xpose.msra.mxu1 %v2983_v42  ;;  %5093 = vmatprep.mubr.msk.bf16.mxu1 %vm5613_vm1, %v5612_v56 }
 0xf07   : > { %5103 = vmatprep.subr.bf16.mxu1 %v5612_v56 }
 0xf08   : > { %v3382_v30 = vpop.permute.xlu1 %3381  ;;  %v3380_v60 = vpop.permute.xlu0 %3379 }
 0xf09   : > { %v3387_v55 = vsel %vm793_vm2, %v3382_v30, 0 }
 0xf0c   : > { %v3507_v35 = vpop.permute.xlu1 %3506  ;;  %v3505_v14 = vpop.permute.xlu0 %3504 }
 0xf0d   : > { %5094 = vmatmul.mubr.msk.bf16.vlgmr.msra.gmra.mrb[56].mxu1 %vm793_vm2, %v2976_v45  ;;  %v3512_v61 = vsel %vm793_vm2, %v3507_v35, 0 }
 0xf0e   : > { %5104 = vmatpush3.bf16.xpose.msra.mxu1 %v3139_v19  ;;  %5105 = vmatprep.mubr.msk.bf16.mxu1 %vm5613_vm1, %v5612_v56 }
 0xf0f   : > { %5115 = vmatprep.subr.bf16.mxu1 %v5612_v56 }
 0xf15   : > { %5106 = vmatmul.mubr.msk.bf16.vlgmr.msra.gmra.mrb[60].mxu1 %vm793_vm2, %v3130_v27 }
 0xf16   : > { %5116 = vmatpush3.bf16.xpose.msra.mxu1 %v3261_v25  ;;  %5117 = vmatprep.mubr.msk.bf16.mxu1 %vm5613_vm1, %v5612_v56 }
 0xf17   : > { %5127 = vmatprep.subr.bf16.mxu1 %v5612_v56 }
 0xf1d   : > { %5118 = vmatmul.mubr.msk.bf16.vlgmr.msra.gmra.mrb[64].mxu1 %vm793_vm2, %v3254_v34 }
 0xf1e   : > { %5128 = vmatpush3.bf16.xpose.msra.mxu1 %v3387_v55  ;;  %5129 = vmatprep.mubr.msk.bf16.mxu1 %vm5613_vm1, %v5612_v56 }
 0xf1f   : > { %5139 = vmatprep.subr.bf16.mxu1 %v5612_v56 }
 0xf25   : > { %5130 = vmatmul.mubr.msk.bf16.vlgmr.msra.gmra.mrb[68].mxu1 %vm793_vm2, %v3380_v60 }
 0xf26   : > { %5140 = vmatpush3.bf16.xpose.msra.mxu1 %v3512_v61  ;;  %5141 = vmatprep.mubr.msk.bf16.mxu1 %vm5613_vm1, %v5612_v56 }
 0xf2d   : > { %5142 = vmatmul.mubr.msk.bf16.vlgmr.msra.gmra.mrb[72].mxu1 %vm793_vm2, %v3505_v14 }
 0xfd0   : > { %v2646_v22 = vpop.f32.mrb[52].mxu0  ;;  %v2768_v2 = vpop.f32.mrb[48].mxu1 }
 0xfd1   : > { %v2653_v46 = vmul.f32 0.25, %v2646_v22  ;;  %v2775_v4 = vmul.f32 0.25, %v2768_v2  ;;  %v5059_v48 = vpop.f32.mrb[53].mxu0  ;;  %v5071_v38 = vpop.f32.mrb[49].mxu1 }
 0xfd2   : > { %v2649_v5 = vpop.f32.mrb[54].mxu0  ;;  %v2771_v58 = vpop.f32.mrb[50].mxu1 }
 0xfd3   : > { %v6380_v51 = vadd.f32 %v2653_v46, %v5814_v39  ;;  %v2654_v62 = vmul.f32 0.25, %v2649_v5  ;;  %v2776_v47 = vmul.f32 0.25, %v2771_v58  ;;  %v5060_v6 = vpop.f32.mrb[55].mxu0  ;;  %v5072_v50 = vpop.f32.mrb[51].mxu1  ;;  %v6383_v53 = vadd.f32 %v2775_v4, %v5814_v39 }
 0xfd5   : > { %v6386_v11 = vadd.f32 %v2776_v47, %v5816_v43  ;;  %v2779_v13 = vsel %vm793_vm2, %v6383_v53, -inf  ;;  %v2657_v15 = vsel %vm793_vm2, %v6380_v51, -inf  ;;  %v6393_v7 = vadd.f32 %v2654_v62, %v5816_v43 }
 0xfd6   : > { %2780 = vmax.xlane.f32.xlu0 %v2779_v13  ;;  %2658 = vmax.xlane.f32.xlu1 %v2657_v15 }
 0xfd7   : > { %v2782_v52 = vsel %vm793_vm2, %v6386_v11, -inf  ;;  %v2660_v29 = vsel %vm793_vm2, %v6393_v7, -inf }
 0xfd8   : > { %v2894_v16 = vpop.f32.mrb[52].mxu1 }
 0xfd9   : > { %v2901_v54 = vmul.f32 0.25, %v2894_v16  ;;  %v5083_v8 = vpop.f32.mrb[53].mxu1 }
 0xfda   : > { %2783 = vmax.xlane.f32.xlu1 %v2782_v52  ;;  %2661 = vmax.xlane.f32.xlu0 %v2660_v29  ;;  %v2897_v20 = vpop.f32.mrb[54].mxu1 }
 0xfdb   : > { %v2902_v21 = vmul.f32 0.25, %v2897_v20  ;;  %v5084_v24 = vpop.f32.mrb[55].mxu1  ;;  %v6400_v26 = vadd.f32 %v2901_v54, %v5814_v39 }
 0xfdd   : > { %v6403_v9 = vadd.f32 %v2902_v21, %v5816_v43  ;;  %v2905_v41 = vsel %vm793_vm2, %v6400_v26, -inf }
 0xfde   : > { %2906 = vmax.xlane.f32.xlu0 %v2905_v41 }
 0xfdf   : > { %v2908_v27 = vsel %vm793_vm2, %v6403_v9, -inf }
 0xfe0   : > { %2909 = vmax.xlane.f32.xlu1 %v2908_v27  ;;  %v3019_v32 = vpop.f32.mrb[56].mxu1 }
 0xfe1   : > { %v3026_v33 = vmul.f32 0.25, %v3019_v32  ;;  %v5095_v12 = vpop.f32.mrb[57].mxu1 }
 0xfe2   : > { %v3022_v44 = vpop.f32.mrb[58].mxu1 }
 0xfe3   : > { %v3027_v36 = vmul.f32 0.25, %v3022_v44  ;;  %v5096_v17 = vpop.f32.mrb[59].mxu1  ;;  %v6410_v1 = vadd.f32 %v3026_v33, %v5814_v39 }
 0xfe5   : > { %v6413_v3 = vadd.f32 %v3027_v36, %v5816_v43  ;;  %v3030_v40 = vsel %vm793_vm2, %v6410_v1, -inf }
 0xfe6   : > { %3031 = vmax.xlane.f32.xlu0 %v3030_v40 }
 0xfe7   : > { %v3033_v42 = vsel %vm793_vm2, %v6413_v3, -inf }
 0xfe8   : > { %3034 = vmax.xlane.f32.xlu1 %v3033_v42  ;;  %v3175_v10 = vpop.f32.mrb[60].mxu1 }
 0xfe9   : > { %v3182_v45 = vmul.f32 0.25, %v3175_v10  ;;  %v5107_v19 = vpop.f32.mrb[61].mxu1 }
 0xfea   : > { %v3178_v49 = vpop.f32.mrb[62].mxu1 }
 0xfeb   : > { %v3183_v25 = vmul.f32 0.25, %v3178_v49  ;;  %v5108_v30 = vpop.f32.mrb[63].mxu1  ;;  %v6420_v34 = vadd.f32 %v3182_v45, %v5814_v39 }
 0xfed   : > { %v6423_v55 = vadd.f32 %v3183_v25, %v5816_v43  ;;  %v3186_v35 = vsel %vm793_vm2, %v6420_v34, -inf }
 0xfee   : > { %3187 = vmax.xlane.f32.xlu0 %v3186_v35 }
 0xfef   : > { %v3189_v60 = vsel %vm793_vm2, %v6423_v55, -inf }
 0xff0   : > { %3190 = vmax.xlane.f32.xlu1 %v3189_v60  ;;  %v3297_v61 = vpop.f32.mrb[64].mxu1 }
 0xff1   : > { %v3304_v14 = vmul.f32 0.25, %v3297_v61  ;;  %v5119_v22 = vpop.f32.mrb[65].mxu1 }
 0xff2   : > { %v3300_v2 = vpop.f32.mrb[66].mxu1 }
 0xff3   : > { %v3305_v46 = vmul.f32 0.25, %v3300_v2  ;;  %v5120_v4 = vpop.f32.mrb[67].mxu1  ;;  %v6430_v48 = vadd.f32 %v3304_v14, %v5814_v39 }
 0xff5   : > { %v6433_v38 = vadd.f32 %v3305_v46, %v5816_v43  ;;  %v3308_v5 = vsel %vm793_vm2, %v6430_v48, -inf }
 0xff6   : > { %3309 = vmax.xlane.f32.xlu0 %v3308_v5 }
 0xff7   : > { %v3311_v58 = vsel %vm793_vm2, %v6433_v38, -inf }
 0xff8   : > { %3312 = vmax.xlane.f32.xlu1 %v3311_v58  ;;  %v3423_v62 = vpop.f32.mrb[68].mxu1 }
 0xff9   : > { %v3430_v47 = vmul.f32 0.25, %v3423_v62  ;;  %v5131_v6 = vpop.f32.mrb[69].mxu1 }
 0xffa   : > { %v3426_v50 = vpop.f32.mrb[70].mxu1 }
 0xffb   : > { %v3431_v13 = vmul.f32 0.25, %v3426_v50  ;;  %v5132_v15 = vpop.f32.mrb[71].mxu1  ;;  %v6440_v16 = vadd.f32 %v3430_v47, %v5814_v39 }
 0xffd   : > { %v6443_v54 = vadd.f32 %v3431_v13, %v5816_v43  ;;  %v3434_v8 = vsel %vm793_vm2, %v6440_v16, -inf }
 0xffe   : > { %3435 = vmax.xlane.f32.xlu0 %v3434_v8 }
 0xfff   : > { %v3437_v52 = vsel %vm793_vm2, %v6443_v54, -inf }
0x1000   : > { %3438 = vmax.xlane.f32.xlu1 %v3437_v52  ;;  %v3548_v29 = vpop.f32.mrb[72].mxu1 }
0x1001   : > { %v3555_v20 = vmul.f32 0.25, %v3548_v29  ;;  %v5143_v21 = vpop.f32.mrb[73].mxu1 }
0x1002   : > { %v3551_v24 = vpop.f32.mrb[74].mxu1 }
0x1003   : > { %v6450_v41 = vadd.f32 %v3555_v20, %v5814_v39  ;;  %v3556_v27 = vmul.f32 0.25, %v3551_v24  ;;  %v5144_v32 = vpop.f32.mrb[75].mxu1 }
0x1005   : > { %v6453_v33 = vadd.f32 %v3556_v27, %v5816_v43  ;;  %v3559_v12 = vsel %vm793_vm2, %v6450_v41, -inf }
0x1006   : > { %3560 = vmax.xlane.f32.xlu0 %v3559_v12 }
0x1007   : > { %v3562_v44 = vsel %vm793_vm2, %v6453_v33, -inf }
0x1008   : > { %3563 = vmax.xlane.f32.xlu1 %v3562_v44 }
0x1019   : > { %2928 = vrot.lane.b32.xlu1 %v6322_v31, %s6849_s26 }
0x101c   : > { %2803 = vrot.lane.b32.xlu0 %v6322_v31, %s5617_s18 }
0x1063   : > { %v2659_v39 = vpop.xlane.xlu1 %2658  ;;  %v2781_v36 = vpop.xlane.xlu0 %2780 }
0x1064   : > { %v2663_v17 = vsub.f32 %v6380_v51, %v2659_v39  ;;  %v2785_v43 = vsub.f32 %v6383_v53, %v2781_v36 }
0x1066   : > { %v2665_v40 = vmul.f32 1.442695, %v2663_v17  ;;  %v2787_v42 = vmul.f32 1.442695, %v2785_v43 }
0x1067   : > { %v2784_v10 = vpop.xlane.xlu1 %2783  ;;  %v2662_v45 = vpop.xlane.xlu0 %2661 }
0x1068   : > { %5487 = vpow2.f32 %v2665_v40  ;;  %v2786_v19 = vsub.f32 %v6386_v11, %v2784_v10  ;;  %v2664_v49 = vsub.f32 %v6393_v7, %v2662_v45 }
0x1069   : > { %5489 = vpow2.f32 %v2787_v42 }
0x106a   : > { %v2667_v25 = vmul.f32 1.442695, %v2664_v49  ;;  %v2789_v30 = vmul.f32 1.442695, %v2786_v19 }
0x106b   : > { %v2907_v35 = vpop.xlane.xlu0 %2906 }
0x106c   : > { %v2911_v60 = vsub.f32 %v6400_v26, %v2907_v35  ;;  %5491 = vpow2.f32 %v2667_v25 }
0x106d   : > { %v2910_v61 = vpop.xlane.xlu1 %2909  ;;  %5493 = vpow2.f32 %v2789_v30 }
0x106e   : > { %v2913_v51 = vmul.f32 1.442695, %v2911_v60  ;;  %v2912_v53 = vsub.f32 %v6403_v9, %v2910_v61 }
0x1070   : > { %5495 = vpow2.f32 %v2913_v51  ;;  %v2915_v14 = vmul.f32 1.442695, %v2912_v53 }
0x1072   : > { %v6469_v22 = vpop.eup %5487  ;;  %5497 = vpow2.f32 %v2915_v14 }
0x1073   : > { %v3032_v11 = vpop.xlane.xlu0 %3031  ;;  %v2669_v7 = vsel %vm793_vm2, %v6469_v22, 0.0  ;;  %v6473_v2 = vpop.eup %5489 }
0x1074   : > { %v3036_v46 = vsub.f32 %v6410_v1, %v3032_v11  ;;  %2670 = vadd.xlane.f32.xlu0 %v2669_v7  ;;  %v2791_v58 = vsel %vm793_vm2, %v6473_v2, 0.0 }
0x1075   : > { %v3035_v26 = vpop.xlane.xlu1 %3034 }
0x1076   : > { %v3038_v4 = vmul.f32 1.442695, %v3036_v46  ;;  %v3037_v5 = vsub.f32 %v6413_v3, %v3035_v26  ;;  %v6477_v9 = vpop.eup %5491 }
0x1077   : > { %v2672_v47 = vsel %vm793_vm2, %v6477_v9, 0.0  ;;  %v6483_v6 = vpop.eup %5493 }
0x1078   : > { %5499 = vpow2.f32 %v3038_v4  ;;  %v3040_v62 = vmul.f32 1.442695, %v3037_v5  ;;  %2792 = vadd.xlane.f32.xlu0 %v2791_v58  ;;  %2673 = vadd.xlane.f32.xlu1 %v2672_v47  ;;  %v2794_v15 = vsel %vm793_vm2, %v6483_v6, 0.0 }
0x107a   : > { %v6485_v1 = vpop.eup %5495  ;;  %5501 = vpow2.f32 %v3040_v62 }
0x107b   : > { %v3188_v50 = vpop.xlane.xlu0 %3187  ;;  %v2917_v3 = vsel %vm793_vm2, %v6485_v1, 0.0 }
0x107c   : > { %v3192_v13 = vsub.f32 %v6420_v34, %v3188_v50  ;;  %2918 = vadd.xlane.f32.xlu0 %v2917_v3  ;;  %v6492_v8 = vpop.eup %5497  ;;  %2795 = vadd.xlane.f32.xlu1 %v2794_v15 }
0x107d   : > { %v3191_v52 = vpop.xlane.xlu1 %3190  ;;  %v2920_v24 = vsel %vm793_vm2, %v6492_v8, 0.0 }
0x107e   : > { %v3194_v29 = vmul.f32 1.442695, %v3192_v13  ;;  %v3193_v20 = vsub.f32 %v6423_v55, %v3191_v52 }
0x1080   : > { %5503 = vpow2.f32 %v3194_v29  ;;  %v3196_v21 = vmul.f32 1.442695, %v3193_v20  ;;  %2921 = vadd.xlane.f32.xlu1 %v2920_v24 }
0x1082   : > { %v6497_v27 = vpop.eup %5499  ;;  %5505 = vpow2.f32 %v3196_v21 }
0x1083   : > { %v3310_v34 = vpop.xlane.xlu0 %3309  ;;  %v3042_v32 = vsel %vm793_vm2, %v6497_v27, 0.0 }
0x1084   : > { %v6501_v12 = vpop.eup %5501  ;;  %v3314_v44 = vsub.f32 %v6430_v48, %v3310_v34  ;;  %3043 = vadd.xlane.f32.xlu0 %v3042_v32 }
0x1085   : > { %v3313_v39 = vpop.xlane.xlu1 %3312  ;;  %v3045_v55 = vsel %vm793_vm2, %v6501_v12, 0.0 }
0x1086   : > { %v3316_v36 = vmul.f32 1.442695, %v3314_v44  ;;  %v3315_v17 = vsub.f32 %v6433_v38, %v3313_v39  ;;  %3046 = vadd.xlane.f32.xlu1 %v3045_v55 }
0x1088   : > { %5507 = vpow2.f32 %v3316_v36  ;;  %v3318_v43 = vmul.f32 1.442695, %v3315_v17 }
0x108a   : > { %v6507_v40 = vpop.eup %5503  ;;  %5509 = vpow2.f32 %v3318_v43 }
0x108b   : > { %v3198_v42 = vsel %vm793_vm2, %v6507_v40, 0.0  ;;  %v3436_v38 = vpop.xlane.xlu0 %3435 }
0x108c   : > { %v6511_v10 = vpop.eup %5505  ;;  %3199 = vadd.xlane.f32.xlu0 %v3198_v42  ;;  %v3440_v5 = vsub.f32 %v6440_v16, %v3436_v38 }
0x108d   : > { %v3439_v48 = vpop.xlane.xlu1 %3438  ;;  %v3201_v45 = vsel %vm793_vm2, %v6511_v10, 0.0 }
0x108e   : > { %v3441_v19 = vsub.f32 %v6443_v54, %v3439_v48  ;;  %3202 = vadd.xlane.f32.xlu1 %v3201_v45  ;;  %v3442_v58 = vmul.f32 1.442695, %v3440_v5 }
0x1090   : > { %v3444_v49 = vmul.f32 1.442695, %v3441_v19 }
0x1092   : > { %v6516_v25 = vpop.eup %5507  ;;  %5511 = vpow2.f32 %v3444_v49 }
0x1093   : > { %v3561_v30 = vpop.xlane.xlu0 %3560  ;;  %v3320_v35 = vsel %vm793_vm2, %v6516_v25, 0.0 }
0x1094   : > { %v6520_v60 = vpop.eup %5509  ;;  %v3565_v61 = vsub.f32 %v6450_v41, %v3561_v30  ;;  %3321 = vadd.xlane.f32.xlu1 %v3320_v35 }
0x1095   : > { %v3564_v51 = vpop.xlane.xlu1 %3563  ;;  %v3323_v54 = vsel %vm793_vm2, %v6520_v60, 0.0 }
0x1096   : > { %v3567_v53 = vmul.f32 1.442695, %v3565_v61  ;;  %v3566_v14 = vsub.f32 %v6453_v33, %v3564_v51 }
0x1097   : > { %v2804_v47 = vpop.permute.xlu0 %2803 }
0x1098   : > { %5513 = vpow2.f32 %v3567_v53  ;;  %v3569_v11 = vmul.f32 1.442695, %v3566_v14  ;;  %3324 = vadd.xlane.f32.xlu1 %v3323_v54 }
0x1099   : > { %v2929_v50 = vpop.permute.xlu1 %2928 }
0x109a   : > { %5515 = vpow2.f32 %v3569_v11 }
0x109b   : > { %5517 = vpow2.f32 %v3442_v58 }
0x109c   : > { %v6526_v7 = vpop.eup %5511 }
0x109d   : > { %v3449_v46 = vsel %vm793_vm2, %v6526_v7, 0.0 }
0x109e   : > { %3450 = vadd.xlane.f32.xlu1 %v3449_v46 }
0x10a2   : > { %v6530_v26 = vpop.eup %5513  ;;  %3053 = vrot.lane.b32.xlu0 %v6322_v31, %s6851_s27 }
0x10a3   : > { %v3571_v41 = vsel %vm793_vm2, %v6530_v26, 0.0 }
0x10a4   : > { %v6536_v33 = vpop.eup %5515  ;;  %3572 = vadd.xlane.f32.xlu1 %v3571_v41 }
0x10a5   : > { %v3574_v4 = vsel %vm793_vm2, %v6536_v33, 0.0  ;;  %v6543_v62 = vpop.eup %5517 }
0x10a6   : > { %v3446_v31 = vsel %vm793_vm2, %v6543_v62, 0.0 }
0x10a8   : > { %3575 = vadd.xlane.f32.xlu1 %v3574_v4 }
0x10b9   : > { %3332 = vrot.lane.b32.xlu1 %v6328_v28, %s5617_s18  ;;  %s4582_s18 = sshll.u32 %s5719_s25, 1  ;;  %s6858_s25 = smov (!%p564_p5, %s5719_s25), 1 }
0x10ba   : > { %p560_p4 = scmp.lt.s32.totalorder %s4582_s18, 3  ;;  %s4583_s21 = sshll.u32 %s6858_s25, 1 }
0x10bc   : > { %s6856_s18 = smov (!%p560_p4, %s4582_s18), 3 }
0x10c1   : > { %3447 = vadd.xlane.f32.xlu0 %v3446_v31 }
0x10d7   : > { %3457 = vrot.lane.b32.xlu0 %v6328_v28, %s6849_s26 }
0x10db   : > { %3582 = vrot.lane.b32.xlu0 %v6328_v28, %s6851_s27 }
0x1101   : > { %v2671_v16 = vpop.xlane.xlu0 %2670 }
0x1102   : > { %5519 = vrcp.f32 %v2671_v16 }
0x1105   : > { %v2674_v3 = vpop.xlane.xlu1 %2673  ;;  %v2793_v13 = vpop.xlane.xlu0 %2792 }
0x1106   : > { %5521 = vrcp.f32 %v2674_v3 }
0x1109   : > { %v2796_v15 = vpop.xlane.xlu1 %2795  ;;  %v2919_v34 = vpop.xlane.xlu0 %2918 }
0x110a   : > { %5523 = vrcp.f32 %v2796_v15 }
0x110b   : > { %5525 = vrcp.f32 %v2793_v13 }
0x110c   : > { %v5520_v52 = vpop.eup %5519 }
0x110d   : > { %v2922_v29 = vpop.xlane.xlu1 %2921  ;;  %v2677_v21 = vmul.f32 %v5520_v52, %v6469_v22 }
0x110e   : > { %5527 = vrcp.f32 %v2922_v29 }
0x110f   : > { %5529 = vrcp.f32 %v2919_v34 }
0x1110   : > { %v5522_v20 = vpop.eup %5521 }
0x1111   : > { %v2678_v24 = vmul.f32 %v5522_v20, %v6477_v9  ;;  %v3044_v9 = vpop.xlane.xlu0 %3043 }
0x1113   : > { %v2679_v32 = vpack.c.bf16 %v2678_v24, %v2677_v21  ;;  %v3047_v36 = vpop.xlane.xlu1 %3046 }
0x1114   : > { %v5524_v44 = vpop.eup %5523  ;;  %5531 = vrcp.f32 %v3047_v36 }
0x1115   : > { %5064 = vmatmul.mubr.msk.bf16.vlgmr.msra.gmra.mrb[56].mxu0 %vm793_vm2, %v2679_v32  ;;  %v5526_v39 = vpop.eup %5525  ;;  %v2800_v55 = vmul.f32 %v5524_v44, %v6483_v6  ;;  %5533 = vrcp.f32 %v3044_v9 }
0x1116   : > { %5074 = vmatpush3.bf16.msra.mxu0 %v2804_v47  ;;  %5075 = vmatprep.mubr.msk.bf16.mxu0 %vm5613_vm1, %v5612_v56  ;;  %v2799_v22 = vmul.f32 %v5526_v39, %v6473_v2 }
0x1117   : > { %5085 = vmatprep.subr.bf16.mxu0 %v5612_v56 }
0x1118   : > { %v2801_v17 = vpack.c.bf16 %v2800_v55, %v2799_v22  ;;  %v5528_v43 = vpop.eup %5527 }
0x1119   : > { %v5530_v48 = vpop.eup %5529  ;;  %v2926_v6 = vmul.f32 %v5528_v43, %v6492_v8  ;;  %v3200_v45 = vpop.xlane.xlu0 %3199 }
0x111a   : > { %v2925_v2 = vmul.f32 %v5530_v48, %v6485_v1 }
0x111b   : > { %v3203_v42 = vpop.xlane.xlu1 %3202 }
0x111c   : > { %5535 = vrcp.f32 %v3203_v42  ;;  %v2927_v38 = vpack.c.bf16 %v2926_v6, %v2925_v2 }
0x111d   : > { %5076 = vmatmul.mubr.msk.bf16.vlgmr.msra.gmra.mrb[60].mxu0 %vm793_vm2, %v2801_v17  ;;  %5537 = vrcp.f32 %v3200_v45  ;;  %v3054_v30 = vpop.permute.xlu0 %3053 }
0x111e   : > { %5086 = vmatpush3.bf16.msra.mxu0 %v2929_v50  ;;  %5087 = vmatprep.mubr.msk.bf16.mxu0 %vm5613_vm1, %v5612_v56  ;;  %v5532_v49 = vpop.eup %5531 }
0x111f   : > { %5097 = vmatprep.subr.bf16.mxu0 %v5612_v56  ;;  %v5534_v35 = vpop.eup %5533  ;;  %v3051_v8 = vmul.f32 %v5532_v49, %v6501_v12  ;;  %v5331_v49 = vld [vmem:[%s6825_s6 + $0x20] sm:$0xff]  }
0x1120   : > { %v3050_v1 = vmul.f32 %v5534_v35, %v6497_v27  ;;  %5151 = vmatprep.subr.bf16.mxu1 %v5331_v49 }
0x1121   : > { %v3322_v19 = vpop.xlane.xlu1 %3321  ;;  %5152 = vmatpush3.bf16.msra.mxu1 %v5331_v49 }
0x1122   : > { %v3052_v51 = vpack.c.bf16 %v3051_v8, %v3050_v1 }
0x1125   : > { %5088 = vmatmul.mubr.msk.bf16.vlgmr.msra.gmra.mrb[64].mxu0 %vm793_vm2, %v2927_v38  ;;  %v3325_v61 = vpop.xlane.xlu1 %3324 }
0x1126   : > { %5098 = vmatpush3.bf16.msra.mxu0 %v3054_v30  ;;  %5099 = vmatprep.mubr.msk.bf16.mxu0 %vm5613_vm1, %v5612_v56  ;;  %5539 = vrcp.f32 %v3325_v61  ;;  %v5536_v53 = vpop.eup %5535 }
0x1127   : > { %5109 = vmatprep.subr.bf16.mxu0 %v5612_v56  ;;  %5541 = vrcp.f32 %v3322_v19  ;;  %v5538_v54 = vpop.eup %5537  ;;  %v3207_v12 = vmul.f32 %v5536_v53, %v6511_v10  ;;  %v5332_v53 = vld [vmem:[%s6825_s6 + $0x28] sm:$0xff]  }
0x1128   : > { %v3206_v27 = vmul.f32 %v5538_v54, %v6507_v40  ;;  %5153 = vmatprep.subr.bf16.mxu1 %v5332_v53 }
0x1129   : > { %5154 = vmatpush3.bf16.msra.mxu1 %v5332_v53 }
0x112a   : > { %v3208_v46 = vpack.c.bf16 %v3207_v12, %v3206_v27 }
0x112b   : > { %v3451_v14 = vpop.xlane.xlu1 %3450 }
0x112c   : > { %5543 = vrcp.f32 %v3451_v14  ;;  %v5333_v14 = vld [vmem:[%s6825_s6 + $0x30] sm:$0xff]  }
0x112d   : > { %5100 = vmatmul.mubr.msk.bf16.vlgmr.msra.gmra.mrb[68].mxu0 %vm793_vm2, %v3052_v51  ;;  %5155 = vmatprep.subr.bf16.mxu1 %v5333_v14 }
0x112e   : > { %5110 = vmatpush3.bf16.msra.mxu0 %v6328_v28  ;;  %5111 = vmatprep.mubr.msk.bf16.mxu0 %vm5613_vm1, %v5612_v56 }
0x112f   : > { %5121 = vmatprep.subr.bf16.mxu0 %v5612_v56  ;;  %5156 = vmatpush3.bf16.msra.mxu1 %v5333_v14 }
0x1130   : > { %v5540_v41 = vpop.eup %5539 }
0x1131   : > { %v3573_v11 = vpop.xlane.xlu1 %3572  ;;  %v5542_v5 = vpop.eup %5541  ;;  %v3329_v28 = vmul.f32 %v5540_v41, %v6520_v60 }
0x1132   : > { %v3328_v31 = vmul.f32 %v5542_v5, %v6516_v25 }
0x1134   : > { %v3330_v10 = vpack.c.bf16 %v3329_v28, %v3328_v31 }
0x1135   : > { %v3576_v4 = vpop.xlane.xlu1 %3575  ;;  %5112 = vmatmul.mubr.msk.bf16.vlgmr.msra.gmra.mrb[72].mxu0 %vm793_vm2, %v3208_v46 }
0x1136   : > { %5123 = vmatprep.mubr.msk.bf16.mxu0 %vm5613_vm1, %v5612_v56  ;;  %v5544_v60 = vpop.eup %5543 }
0x1137   : > { %v3455_v50 = vmul.f32 %v5544_v60, %v6526_v7 }
0x1139   : > { %v3333_v58 = vpop.permute.xlu1 %3332 }
0x113a   : > { %5122 = vmatpush3.bf16.msra.mxu0 %v3333_v58 }
0x113b   : > { %5133 = vmatprep.subr.bf16.mxu0 %v5612_v56 }
0x113d   : > { %5124 = vmatmul.mubr.msk.bf16.vlgmr.msra.gmra.mrb[76].mxu0 %vm793_vm2, %v3330_v10 }
0x113e   : > { %5135 = vmatprep.mubr.msk.bf16.mxu0 %vm5613_vm1, %v5612_v56 }
0x114e   : > { %v3448_v40 = vpop.xlane.xlu0 %3447 }
0x114f   : > { %5545 = vrcp.f32 %v3448_v40 }
0x1150   : > { %5547 = vrcp.f32 %v3576_v4 }
0x1151   : > { %5549 = vrcp.f32 %v3573_v11  ;;  %v5334_v11 = vld [vmem:[%s6825_s6 + $0x38] sm:$0xff]  }
0x1152   : > { %v3458_v47 = vpop.permute.xlu0 %3457  ;;  %5157 = vmatprep.subr.bf16.mxu1 %v5334_v11 }
0x1153   : > { %5134 = vmatpush3.bf16.msra.mxu0 %v3458_v47  ;;  %5158 = vmatpush3.bf16.msra.mxu1 %v5334_v11 }
0x1154   : > { %5145 = vmatprep.subr.bf16.mxu0 %v5612_v56 }
0x1156   : > { %v3583_v15 = vpop.permute.xlu0 %3582 }
0x1159   : > { %v5546_v25 = vpop.eup %5545 }
0x115a   : > { %v3454_v16 = vmul.f32 %v5546_v25, %v6543_v62  ;;  %v5548_v13 = vpop.eup %5547 }
0x115b   : > { %v5550_v52 = vpop.eup %5549  ;;  %v3580_v29 = vmul.f32 %v5548_v13, %v6536_v33 }
0x115c   : > { %v3456_v3 = vpack.c.bf16 %v3455_v50, %v3454_v16  ;;  %v3579_v20 = vmul.f32 %v5550_v52, %v6530_v26 }
0x115e   : > { %5136 = vmatmul.mubr.msk.bf16.vlgmr.msra.gmra.mrb[80].mxu0 %vm793_vm2, %v3456_v3  ;;  %v3581_v21 = vpack.c.bf16 %v3580_v29, %v3579_v20 }
0x115f   : > { %5146 = vmatpush3.bf16.msra.mxu0 %v3583_v15  ;;  %5147 = vmatprep.mubr.msk.bf16.mxu0 %vm5613_vm1, %v5612_v56 }
0x1166   : > { %5148 = vmatmul.mubr.msk.bf16.vlgmr.msra.gmra.mrb[84].mxu0 %vm793_vm2, %v3581_v21 }
0x1167   : > { %3963 = vmatprep.mubr.bf16.mxu0 %v5611_v18 }
0x11e8   : > { %v6597_v7 = vpop.f32.mrb[56].mxu0 }
0x11e9   : > { %v5065_v62 = vpop.f32.mrb[57].mxu0 }
0x11ea   : > { %v2720_v24 = vpop.f32.mrb[58].mxu0 }
0x11eb   : > { %v5066_v34 = vpop.f32.mrb[59].mxu0 }
0x11f0   : > { %v2843_v32 = vpop.f32.mrb[60].mxu0 }
0x11f1   : > { %v5077_v44 = vpop.f32.mrb[61].mxu0 }
0x11f2   : > { %v2846_v39 = vpop.f32.mrb[62].mxu0 }
0x11f3   : > { %v5245_v55 = vpack.i.bf16 %v2846_v39, %v2843_v32  ;;  %v5078_v36 = vpop.f32.mrb[63].mxu0 }
0x11f5   : > { %5246 = vrot.lane.b32.xlu0 %v5245_v55, %s6850_s30 }
0x11f8   : > { %v2968_v33 = vpop.f32.mrb[64].mxu0 }
0x11f9   : > { %v5089_v22 = vpop.f32.mrb[65].mxu0 }
0x11fa   : > { %v2971_v26 = vpop.f32.mrb[66].mxu0 }
0x11fb   : > { %v5250_v9 = vpack.i.bf16 %v2971_v26, %v2968_v33  ;;  %v5090_v17 = vpop.f32.mrb[67].mxu0 }
0x11fd   : > { %5251 = vrot.lane.b32.xlu0 %v5250_v9, %s6848_s20 }
0x1200   : > { %v3093_v43 = vpop.f32.mrb[68].mxu0 }
0x1201   : > { %v5101_v42 = vpop.f32.mrb[69].mxu0 }
0x1202   : > { %v3096_v48 = vpop.f32.mrb[70].mxu0 }
0x1203   : > { %v5255_v6 = vpack.i.bf16 %v3096_v48, %v3093_v43  ;;  %v5102_v45 = vpop.f32.mrb[71].mxu0 }
0x1204   : > { %v4704_v45 = vld [vmem:[%s6826_s7 + $0x1] ss:$0 sm:$0xff] }
0x1205   : > { %5256 = vrot.lane.b32.xlu0 %v5255_v6, %s5616_s0 }
0x1208   : > { %v3246_v2 = vpop.f32.mrb[72].mxu0 }
0x1209   : > { %v5113_v19 = vpop.f32.mrb[73].mxu0 }
0x120a   : > { %v3249_v38 = vpop.f32.mrb[74].mxu0 }
0x120b   : > { %v5114_v30 = vpop.f32.mrb[75].mxu0 }
0x1210   : > { %v3372_v35 = vpop.f32.mrb[76].mxu0 }
0x1211   : > { %v5125_v8 = vpop.f32.mrb[77].mxu0 }
0x1212   : > { %v3375_v61 = vpop.f32.mrb[78].mxu0 }
0x1213   : > { %v5260_v1 = vpack.i.bf16 %v3375_v61, %v3372_v35  ;;  %v5126_v51 = vpop.f32.mrb[79].mxu0 }
0x1215   : > { %5261 = vrot.lane.b32.xlu1 %v5260_v1, %s6850_s30 }
0x1231   : > { %v3497_v54 = vpop.f32.mrb[80].mxu0 }
0x1232   : > { %v5137_v12 = vpop.f32.mrb[81].mxu0 }
0x1233   : > { %v3500_v27 = vpop.f32.mrb[82].mxu0 }
0x1234   : > { %v5265_v46 = vpack.i.bf16 %v3500_v27, %v3497_v54  ;;  %v5138_v41 = vpop.f32.mrb[83].mxu0 }
0x1236   : > { %5266 = vrot.lane.b32.xlu1 %v5265_v46, %s6848_s20 }
0x1239   : > { %v3622_v4 = vpop.f32.mrb[84].mxu0 }
0x123a   : > { %v5149_v5 = vpop.f32.mrb[85].mxu0 }
0x123b   : > { %v3625_v28 = vpop.f32.mrb[86].mxu0 }
0x123c   : > { %v5270_v58 = vpack.i.bf16 %v3625_v28, %v3622_v4  ;;  %v5150_v31 = vpop.f32.mrb[87].mxu0 }
0x123e   : > { %5271 = vrot.lane.b32.xlu0 %v5270_v58, %s5616_s0  ;;  %s6852_s0 = sld [smem:[#allocation3_spill]] }
0x1244   : > { %s562_s20 = scalar_lea.vmem %s6852_s0, %s6856_s18  ;;  %s567_s0 = scalar_lea.vmem %s6836_s17, %s4583_s21 }
0x1267   : > { %v5247_v10 = vpop.permute.xlu0 %5246 }
0x1268   : > { %v5249_v47 = vunpack.i.h.bf16 %v5247_v10  ;;  %v5248_v60 = vunpack.i.l.bf16 %v5247_v10 }
0x126a   : > { %v3125_v3 = vsel %vm793_vm2, %v2720_v24, %v5249_v47  ;;  %v3124_v13 = vsel %vm793_vm2, %v6597_v7, %v5248_v60 }
0x126f   : > { %v5252_v40 = vpop.permute.xlu0 %5251 }
0x1270   : > { %v5254_v25 = vunpack.i.h.bf16 %v5252_v40  ;;  %v5253_v50 = vunpack.i.l.bf16 %v5252_v40 }
0x1272   : > { %v3126_v29 = vsel %vm1314_vm5, %v3124_v13, %v5253_v50  ;;  %v3127_v20 = vsel %vm1314_vm5, %v3125_v3, %v5254_v25 }
0x1277   : > { %v5257_v16 = vpop.permute.xlu0 %5256 }
0x1278   : > { %v5259_v15 = vunpack.i.h.bf16 %v5257_v16  ;;  %v5258_v52 = vunpack.i.l.bf16 %v5257_v16 }
0x127a   : > { %v3128_v21 = vsel %vm1317_vm6, %v3126_v29, %v5258_v52  ;;  %v3129_v62 = vsel %vm1317_vm6, %v3127_v20, %v5259_v15  ;;  %v5337_v15 = vld [vmem:[%s6829_s10 + $0x44] ss:$8 sps:$4 sm:$0xff]   ;;  %v5335_v52 = vld [vmem:[%s6829_s10 + $0x40] ss:$8 sps:$4 sm:$0xff]   ;;  %v5340_v29 = vld [vmem:[%s6829_s10 + $0x54] ss:$8 sps:$4 sm:$0xff]  }
0x127b   : > { %v3659_v34 = vpack.c.bf16 %v3129_v62, %v3128_v21  ;;  %3931 = vmatprep.subr.bf16.mxu0 %v5337_v15  ;;  %v5338_v20 = vld [vmem:[%s6829_s10 + $0x50] ss:$8 sps:$4 sm:$0xff]   ;;  %v5343_v21 = vld [vmem:[%s6829_s10 + $0x64] ss:$8 sps:$4 sm:$0xff]   ;;  %v5341_v62 = vld [vmem:[%s6829_s10 + $0x60] ss:$8 sps:$4 sm:$0xff]  }
0x127c   : > { %3932 = vmatpush1.bf16.msra.mxu0 %v5335_v52 }
0x127d   : > { %5159 = vmatprep.mubr.msk.bf16.mxu1 %vm584_vm0, %v3659_v34  ;;  %3933 = vmatprep.subr.bf16.mxu0 %v5340_v29  ;;  %v5346_v34 = vld [vmem:[%s6829_s10 + $0x74] ss:$8 sps:$4 sm:$0xff]  }
0x1280   : > { %3934 = vmatpush1.bf16.msra.mxu0 %v5338_v20 }
0x1281   : > { %3935 = vmatprep.subr.bf16.mxu0 %v5343_v21 }
0x1284   : > { %3936 = vmatpush1.bf16.msra.mxu0 %v5341_v62 }
0x1285   : > { %3937 = vmatprep.subr.bf16.mxu0 %v5346_v34 }
0x1287   : > { %v5262_v32 = vpop.permute.xlu1 %5261 }
0x1288   : > { %v5264_v39 = vunpack.i.h.bf16 %v5262_v32  ;;  %v5263_v24 = vunpack.i.l.bf16 %v5262_v32  ;;  %v5344_v32 = vld [vmem:[%s6829_s10 + $0x70] ss:$8 sps:$4 sm:$0xff]  }
0x1289   : > { %3938 = vmatpush1.bf16.msra.mxu0 %v5344_v32 }
0x128a   : > { %v3654_v33 = vsel %vm793_vm2, %v3249_v38, %v5264_v39  ;;  %v3653_v22 = vsel %vm793_vm2, %v3246_v2, %v5263_v24 }
0x12a8   : > { %v5267_v44 = vpop.permute.xlu1 %5266 }
0x12a9   : > { %v5269_v55 = vunpack.i.h.bf16 %v5267_v44  ;;  %v5268_v36 = vunpack.i.l.bf16 %v5267_v44 }
0x12ab   : > { %v3656_v17 = vsel %vm1314_vm5, %v3654_v33, %v5269_v55  ;;  %v3655_v43 = vsel %vm1314_vm5, %v3653_v22, %v5268_v36 }
0x12b0   : > { %v5272_v7 = vpop.permute.xlu0 %5271 }
0x12b1   : > { %v5274_v26 = vunpack.i.h.bf16 %v5272_v7  ;;  %v5273_v9 = vunpack.i.l.bf16 %v5272_v7 }
0x12b3   : > { %v3658_v42 = vsel %vm1317_vm6, %v3656_v17, %v5274_v26  ;;  %v3657_v48 = vsel %vm1317_vm6, %v3655_v43, %v5273_v9 }
0x12b4   : > { %v3660_v6 = vpack.c.bf16 %v3658_v42, %v3657_v48  ;;  %v4713_v48 = vld [vmem:[%s6827_s8 + $0x1] ss:$0 sm:$0xff] }
0x12b6   : > { %5160 = vmatmul.mubr.msk.bf16.vlgmr.msra.gmra.mrb[76].mxu1 %vm584_vm0, %v3660_v6 }
0x1389   : > { %v5161_v19 = vpop.f32.mrb[76].mxu1 }
0x138a   : > { %v3731_v38 = vpop.f32.mrb[77].mxu1  ;;  %v3740_v8 = vadd.f32 %v5161_v19, %v4704_v45 }
0x138b   : > { %v3732_v2 = vadd.f32 %v4704_v45, %v3731_v38  ;;  %v5162_v49 = vpop.f32.mrb[78].mxu1 }
0x138c   : > { %v3743_v30 = vadd.f32 %v5162_v49, %v4704_v45  ;;  %v3734_v35 = vpop.f32.mrb[79].mxu1  ;;  %v6647_v54 = vadd.f32 %v3740_v8, %v6264_v63 }
0x138d   : > { %v6636_v61 = vadd.f32 %v3732_v2, %v6254_v37  ;;  %v3735_v1 = vadd.f32 %v4704_v45, %v3734_v35  ;;  %v4714_v2 = vld [vmem:[%s6828_s9 + $0x1] ss:$0 sm:$0xff] }
0x138e   : > { %v6639_v51 = vadd.f32 %v3743_v30, %v6267_v0  ;;  %v3760_v0 = vsel %vm584_vm0, %v6647_v54, 0.0 }
0x138f   : > { %v6642_v53 = vadd.f32 %v3735_v1, %v6257_v23  ;;  %v3754_v14 = vsel %vm584_vm0, %v6636_v61, 0.0 }
0x1390   : > { %3755 = vadd.xlane.f32.xlu1 %v3754_v14  ;;  %v3763_v37 = vsel %vm584_vm0, %v6639_v51, 0.0 }
0x1391   : > { %v3757_v12 = vsel %vm584_vm0, %v6642_v53, 0.0 }
0x1392   : > { %3758 = vadd.xlane.f32.xlu0 %v3757_v12 }
0x1394   : > { %3764 = vadd.xlane.f32.xlu1 %v3763_v37 }
0x1396   : > { %3761 = vadd.xlane.f32.xlu0 %v3760_v0 }
0x141d   : > { %v3756_v23 = vpop.xlane.xlu1 %3755 }
0x141e   : > { %v3766_v11 = vmul.f32 0.015625, %v3756_v23 }
0x141f   : > { %v3759_v27 = vpop.xlane.xlu0 %3758 }
0x1420   : > { %v3770_v46 = vsub.f32 %v6636_v61, %v3766_v11  ;;  %v3767_v41 = vmul.f32 0.015625, %v3759_v27 }
0x1421   : > { %v3765_v63 = vpop.xlane.xlu1 %3764 }
0x1422   : > { %v3771_v4 = vsub.f32 %v6642_v53, %v3767_v41  ;;  %v3769_v5 = vmul.f32 0.015625, %v3765_v63  ;;  %v3774_v28 = vmul.f32 %v3770_v46, %v3770_v46  ;;  %v5347_v41 = vld [vmem:[%s6831_s12 + $0xc0] sm:$0xff]  }
0x1423   : > { %v3762_v58 = vpop.xlane.xlu0 %3761  ;;  %v5348_v63 = vld [vmem:[%s6831_s12 + $0x80] sm:$0xff]   ;;  %4908 = vmatprep.subr.bf16.mxu1 %v5347_v41 }
0x1424   : > { %v3773_v31 = vsub.f32 %v6639_v51, %v3769_v5  ;;  %v3768_v10 = vmul.f32 0.015625, %v3762_v58  ;;  %v3778_v40 = vsel %vm584_vm0, %v3774_v28, 0.0  ;;  %v3775_v47 = vmul.f32 %v3771_v4, %v3771_v4  ;;  %4909 = vmatpush3.bf16.msra.mxu1 %v5348_v63  ;;  %v5351_v5 = vld [vmem:[%s6831_s12 + $0xd0] sm:$0xff]   ;;  %v5353_v58 = vld [vmem:[%s6831_s12 + $0xd8] sm:$0xff]  }
0x1425   : > { %3779 = vadd.xlane.f32.xlu0 %v3778_v40  ;;  %v5352_v28 = vld [vmem:[%s6831_s12 + $0x90] sm:$0xff]   ;;  %v5356_v40 = vld [vmem:[%s6831_s12 + $0xa0] sm:$0xff]  }
0x1426   : > { %v3772_v60 = vsub.f32 %v6647_v54, %v3768_v10  ;;  %v3781_v25 = vsel %vm584_vm0, %v3775_v47, 0.0  ;;  %v3777_v50 = vmul.f32 %v3773_v31, %v3773_v31  ;;  %v5355_v10 = vld [vmem:[%s6831_s12 + $0xe0] sm:$0xff]   ;;  %v5357_v47 = vld [vmem:[%s6831_s12 + $0xe8] sm:$0xff]  }
0x1427   : > { %3782 = vadd.xlane.f32.xlu1 %v3781_v25  ;;  %v5359_v25 = vld [vmem:[%s6831_s12 + $0xf0] sm:$0xff]  }
0x1428   : > { %v3776_v16 = vmul.f32 %v3772_v60, %v3772_v60  ;;  %v3787_v13 = vsel %vm584_vm0, %v3777_v50, 0.0  ;;  %v5360_v50 = vld [vmem:[%s6831_s12 + $0xb0] sm:$0xff]  }
0x142a   : > { %v3784_v3 = vsel %vm584_vm0, %v3776_v16, 0.0  ;;  %v5361_v16 = vld [vmem:[%s6831_s12 + $0xf8] sm:$0xff]  }
0x142b   : > { %3785 = vadd.xlane.f32.xlu0 %v3784_v3  ;;  %3788 = vadd.xlane.f32.xlu1 %v3787_v13  ;;  %v5362_v3 = vld [vmem:[%s6831_s12 + $0xb8] sm:$0xff]   ;;  %v4723_v13 = vld [vmem:[%s6830_s11 + $0x2] sm:$0x3] }
0x142c   : > { %v3878_v15 = vrot.slane %v4723_v13, %v5779_v57  ;;  %v3882_v52 = vrot.slane %v4723_v13, %v5785_v59 }
0x14b2   : > { %v3780_v44 = vpop.xlane.xlu0 %3779 }
0x14b3   : > { %v3790_v39 = vmul.f32 0.015625, %v3780_v44 }
0x14b4   : > { %v3783_v24 = vpop.xlane.xlu1 %3782 }
0x14b5   : > { %v3794_v55 = vadd.f32 1e-05, %v3790_v39  ;;  %v3791_v36 = vmul.f32 0.015625, %v3783_v24 }
0x14b7   : > { %5551 = vrsqrt.f32 %v3794_v55  ;;  %v3795_v7 = vadd.f32 1e-05, %v3791_v36 }
0x14b8   : > { %v3786_v33 = vpop.xlane.xlu0 %3785  ;;  %v3789_v22 = vpop.xlane.xlu1 %3788 }
0x14b9   : > { %5553 = vrsqrt.f32 %v3795_v7  ;;  %v3792_v26 = vmul.f32 0.015625, %v3786_v33  ;;  %v3793_v9 = vmul.f32 0.015625, %v3789_v22 }
0x14bb   : > { %v3796_v17 = vadd.f32 1e-05, %v3792_v26  ;;  %v3797_v43 = vadd.f32 1e-05, %v3793_v9 }
0x14bd   : > { %5555 = vrsqrt.f32 %v3796_v17 }
0x14be   : > { %5557 = vrsqrt.f32 %v3797_v43 }
0x14c1   : > { %v5552_v42 = vpop.eup %5551 }
0x14c2   : > { %v3802_v6 = vmul.f32 %v5552_v42, %v3770_v46 }
0x14c3   : > { %v5554_v45 = vpop.eup %5553 }
0x14c4   : > { %v3812_v19 = vmul.f32 %v4713_v48, %v3802_v6  ;;  %v3803_v38 = vmul.f32 %v5554_v45, %v3771_v4  ;;  %v5350_v4 = vld [vmem:[%s6831_s12 + $0x88] sm:$0xff]  }
0x14c6   : > { %v3813_v49 = vmul.f32 %v4713_v48, %v3803_v38  ;;  %v3822_v1 = vadd.f32 %v4714_v2, %v3812_v19 }
0x14c7   : > { %v5556_v30 = vpop.eup %5555 }
0x14c8   : > { %v5558_v35 = vpop.eup %5557  ;;  %v3804_v8 = vmul.f32 %v5556_v30, %v3772_v60  ;;  %v3823_v14 = vadd.f32 %v4714_v2, %v3813_v49  ;;  %v5358_v60 = vld [vmem:[%s6831_s12 + $0xa8] sm:$0xff]  }
0x14c9   : > { %v3805_v12 = vmul.f32 %v5558_v35, %v3773_v31  ;;  %v5354_v31 = vld [vmem:[%s6831_s12 + $0x98] sm:$0xff]  }
0x14ca   : > { %v3872_v37 = vpack.c.bf16 %v3823_v14, %v3822_v1  ;;  %v3814_v0 = vmul.f32 %v4713_v48, %v3804_v8 }
0x14cb   : > { %v3815_v23 = vmul.f32 %v4713_v48, %v3805_v12 }
0x14cc   : > { %4765 = vmatmul.mubr.msk.bf16.vlgmr.msra.gmra.mrb[88].mxu0 %vm584_vm0, %v3872_v37  ;;  %v3824_v11 = vadd.f32 %v4714_v2, %v3814_v0 }
0x14cd   : > { %3973 = vmatprep.mubr.bf16.mxu0 %v5611_v18  ;;  %v3825_v27 = vadd.f32 %v4714_v2, %v3815_v23  ;;  %v5349_v18 = vld [vmem:[%s6831_s12 + $0xc8] sm:$0xff]  }
0x14ce   : > { %4910 = vmatprep.subr.bf16.mxu1 %v5349_v18 }
0x14cf   : > { %v3873_v46 = vpack.c.bf16 %v3825_v27, %v3824_v11  ;;  %4911 = vmatpush3.bf16.msra.mxu1 %v5350_v4 }
0x14d0   : > { %4912 = vmatprep.subr.bf16.mxu1 %v5351_v5 }
0x14d3   : > { %4913 = vmatpush3.bf16.msra.mxu1 %v5352_v28 }
0x14d4   : > { %4766 = vmatmul.mubr.msk.bf16.gmra.mrb[92].mxu0 %vm584_vm0, %v3873_v46  ;;  %4914 = vmatprep.subr.bf16.mxu1 %v5353_v58 }
0x14d5   : > { %5167 = vmatprep.mubr.msk.f32.mxu0 %vm5613_vm1, %v5612_v56 }
0x14d7   : > { %4915 = vmatpush3.bf16.msra.mxu1 %v5354_v31 }
0x14d8   : > { %4916 = vmatprep.subr.bf16.mxu1 %v5355_v10 }
0x14db   : > { %4917 = vmatpush3.bf16.msra.mxu1 %v5356_v40 }
0x14dc   : > { %4918 = vmatprep.subr.bf16.mxu1 %v5357_v47 }
0x14df   : > { %4919 = vmatpush3.bf16.msra.mxu1 %v5358_v60 }
0x14e0   : > { %4920 = vmatprep.subr.bf16.mxu1 %v5359_v25 }
0x14e3   : > { %4921 = vmatpush3.bf16.msra.mxu1 %v5360_v50 }
0x14e4   : > { %4922 = vmatprep.subr.bf16.mxu1 %v5361_v16 }
0x14e7   : > { %4923 = vmatpush3.bf16.msra.mxu1 %v5362_v3 }
0x159f   : > { %v3965_v29 = vpop.f32.mrb[88].mxu0 }
0x15a0   : > { %v6751_v20 = vadd.f32 %v3965_v29, %v3878_v15  ;;  %v3967_v21 = vpop.f32.mrb[89].mxu0 }
0x15a1   : > { %v6753_v62 = vadd.f32 %v3967_v21, %v3882_v52  ;;  %v3969_v34 = vpop.f32.mrb[90].mxu0 }
0x15a2   : > { %v4767_v32 = vmul.f32 -1.702, %v6751_v20  ;;  %v6756_v44 = vadd.f32 %v3969_v34, %v3878_v15  ;;  %v3971_v39 = vpop.f32.mrb[91].mxu0 }
0x15a3   : > { %v4768_v24 = vmul.f32 -1.702, %v6753_v62  ;;  %v3972_v55 = vadd.f32 %v3971_v39, %v3882_v52 }
0x15a4   : > { %v4000_v36 = vmul.f32 1.442695, %v4767_v32  ;;  %v4769_v57 = vmul.f32 -1.702, %v6756_v44 }
0x15a5   : > { %v4002_v7 = vmul.f32 1.442695, %v4768_v24  ;;  %v4770_v59 = vmul.f32 -1.702, %v3972_v55 }
0x15a6   : > { %5559 = vpow2.f32 %v4000_v36  ;;  %v4004_v33 = vmul.f32 1.442695, %v4769_v57 }
0x15a7   : > { %5561 = vpow2.f32 %v4002_v7  ;;  %v4006_v22 = vmul.f32 1.442695, %v4770_v59  ;;  %v3975_v26 = vpop.f32.mrb[92].mxu0 }
0x15a8   : > { %5563 = vpow2.f32 %v4004_v33  ;;  %v3976_v9 = vadd.f32 %v3975_v26, %v3878_v15  ;;  %v3977_v17 = vpop.f32.mrb[93].mxu0 }
0x15a9   : > { %5565 = vpow2.f32 %v4006_v22  ;;  %v3978_v43 = vadd.f32 %v3977_v17, %v3882_v52  ;;  %v3979_v42 = vpop.f32.mrb[94].mxu0 }
0x15aa   : > { %v4771_v48 = vmul.f32 -1.702, %v3976_v9  ;;  %v3980_v6 = vadd.f32 %v3979_v42, %v3878_v15  ;;  %v3981_v45 = vpop.f32.mrb[95].mxu0 }
0x15ab   : > { %v4772_v19 = vmul.f32 -1.702, %v3978_v43  ;;  %v3982_v38 = vadd.f32 %v3981_v45, %v3882_v52 }
0x15ac   : > { %v4008_v2 = vmul.f32 1.442695, %v4771_v48  ;;  %v4773_v49 = vmul.f32 -1.702, %v3980_v6 }
0x15ad   : > { %v4010_v30 = vmul.f32 1.442695, %v4772_v19  ;;  %v4774_v35 = vmul.f32 -1.702, %v3982_v38 }
0x15ae   : > { %5567 = vpow2.f32 %v4008_v2  ;;  %v4012_v8 = vmul.f32 1.442695, %v4773_v49 }
0x15af   : > { %5569 = vpow2.f32 %v4010_v30  ;;  %v4014_v1 = vmul.f32 1.442695, %v4774_v35 }
0x15b0   : > { %v5560_v14 = vpop.eup %5559  ;;  %5571 = vpow2.f32 %v4012_v8 }
0x15b1   : > { %v5562_v12 = vpop.eup %5561  ;;  %v4016_v37 = vadd.f32 1.0, %v5560_v14  ;;  %5573 = vpow2.f32 %v4014_v1 }
0x15b2   : > { %v5564_v0 = vpop.eup %5563  ;;  %v4017_v23 = vadd.f32 1.0, %v5562_v12 }
0x15b3   : > { %v5566_v11 = vpop.eup %5565  ;;  %5575 = vrcp.f32 %v4016_v37  ;;  %v4018_v27 = vadd.f32 1.0, %v5564_v0 }
0x15b4   : > { %5577 = vrcp.f32 %v4017_v23  ;;  %v4019_v46 = vadd.f32 1.0, %v5566_v11 }
0x15b5   : > { %5579 = vrcp.f32 %v4018_v27 }
0x15b6   : > { %5581 = vrcp.f32 %v4019_v46 }
0x15b8   : > { %v5568_v41 = vpop.eup %5567 }
0x15b9   : > { %v5570_v63 = vpop.eup %5569  ;;  %v4020_v18 = vadd.f32 1.0, %v5568_v41 }
0x15ba   : > { %v5572_v4 = vpop.eup %5571  ;;  %v4021_v5 = vadd.f32 1.0, %v5570_v63 }
0x15bb   : > { %v5574_v28 = vpop.eup %5573  ;;  %5583 = vrcp.f32 %v4020_v18  ;;  %v4022_v58 = vadd.f32 1.0, %v5572_v4 }
0x15bc   : > { %5585 = vrcp.f32 %v4021_v5  ;;  %v4023_v31 = vadd.f32 1.0, %v5574_v28 }
0x15bd   : > { %v5576_v10 = vpop.eup %5575  ;;  %5587 = vrcp.f32 %v4022_v58 }
0x15be   : > { %v5578_v40 = vpop.eup %5577  ;;  %5589 = vrcp.f32 %v4023_v31  ;;  %v4040_v25 = vmul.f32 %v5576_v10, %v6751_v20 }
0x15bf   : > { %v5580_v47 = vpop.eup %5579  ;;  %v4041_v16 = vmul.f32 %v5578_v40, %v6753_v62  ;;  %v4775_v62 = vld [vmem:[%s6832_s13 + $0x1] ss:$0 sm:$0xff] }
0x15c0   : > { %v5582_v60 = vpop.eup %5581  ;;  %v4042_v50 = vmul.f32 %v5580_v47, %v6756_v44  ;;  %v5622_v47 = vmov 0.0|0.0  }
0x15c1   : > { %v4043_v3 = vmul.f32 %v5582_v60, %v3972_v55  ;;  %5189 = vmatprep.subr.bf16.mxu0 %v5622_v47 }
0x15c2   : > { %v4048_v13 = vpack.c.bf16 %v4042_v50, %v4040_v25 }
0x15c3   : > { %v4049_v15 = vpack.c.bf16 %v4043_v3, %v4041_v16 }
0x15c5   : > { %v5584_v52 = vpop.eup %5583  ;;  %4186 = vmatprep.mubr.bf16.mxu1 %v4049_v15 }
0x15c6   : > { %v5586_v29 = vpop.eup %5585  ;;  %4187 = vmatmul.mubr.bf16.vlgmr.msra.gmra.mrb[80].mxu1 %v4048_v13  ;;  %v4044_v32 = vmul.f32 %v5584_v52, %v3976_v9 }
0x15c7   : > { %v5588_v21 = vpop.eup %5587  ;;  %v4045_v24 = vmul.f32 %v5586_v29, %v3978_v43 }
0x15c8   : > { %v5590_v34 = vpop.eup %5589  ;;  %v4046_v39 = vmul.f32 %v5588_v21, %v3980_v6 }
0x15c9   : > { %v4047_v36 = vmul.f32 %v5590_v34, %v3982_v38 }
0x15ca   : > { %v4050_v57 = vpack.c.bf16 %v4046_v39, %v4044_v32 }
0x15cb   : > { %v4051_v7 = vpack.c.bf16 %v4047_v36, %v4045_v24  ;;  %v4792_v24 = vld [vmem:[%s6833_s14] ss:$0 sm:$0xff] }
0x15cd   : > { %4194 = vmatprep.mubr.bf16.mxu1 %v4051_v7 }
0x15ce   : > { %4195 = vmatmul.mubr.bf16.gmra.mrb[84].mxu1 %v4050_v57 }
0x1699   : > { %v4924_v20 = vpop.f32.mrb[80].mxu1 }
0x169a   : > { %v4925_v44 = vpop.f32.mrb[81].mxu1 }
0x169b   : > { %v4926_v55 = vadd.f32 %v4925_v44, %v4924_v20  ;;  %v4927_v59 = vpop.f32.mrb[82].mxu1 }
0x169c   : > { %v4928_v33 = vpop.f32.mrb[83].mxu1 }
0x169d   : > { %v4189_v22 = vadd.f32 %v4926_v55, %v4775_v62  ;;  %v4929_v26 = vadd.f32 %v4928_v33, %v4927_v59 }
0x169f   : > { %v4192_v17 = vadd.f32 %v4929_v26, %v4775_v62  ;;  %v4203_v9 = vadd.f32 %v4189_v22, %v6636_v61 }
0x16a1   : > { %v4930_v43 = vpop.f32.mrb[84].mxu1  ;;  %v4209_v42 = vsel %vm584_vm0, %v4203_v9, 0.0  ;;  %v4204_v48 = vadd.f32 %v4192_v17, %v6642_v53 }
0x16a2   : > { %4210 = vadd.xlane.f32.xlu0 %v4209_v42  ;;  %v4931_v6 = vpop.f32.mrb[85].mxu1 }
0x16a3   : > { %v4932_v45 = vadd.f32 %v4931_v6, %v4930_v43  ;;  %v4933_v19 = vpop.f32.mrb[86].mxu1  ;;  %v4212_v38 = vsel %vm584_vm0, %v4204_v48, 0.0  ;;  %v4281_v43 = vld [vmem:[%s562_s20] sm:$0x1] }
0x16a4   : > { %4213 = vadd.xlane.f32.xlu1 %v4212_v38  ;;  %v4934_v2 = vpop.f32.mrb[87].mxu1  ;;  %v4795_v38 = vld [vmem:[%s562_s20 + $0x1] sm:$0x1] }
0x16a5   : > { %v4197_v49 = vadd.f32 %v4932_v45, %v4775_v62  ;;  %v4935_v30 = vadd.f32 %v4934_v2, %v4933_v19  ;;  %v5363_v2 = vld [vmem:[%s6835_s16] sm:$0xff]  }
0x16a7   : > { %v4200_v35 = vadd.f32 %v4935_v30, %v4775_v62  ;;  %v4205_v8 = vadd.f32 %v4197_v49, %v6647_v54  ;;  %v4793_v62 = vld [vmem:[%s6834_s15] ss:$0 sm:$0xff]  ;;  %v5364_v49 = vld [vmem:[%s6835_s16 + $0x8] sm:$0xff]   ;;  %v5365_v30 = vld [vmem:[%s6835_s16 + $0x10] sm:$0xff]  }
0x16a9   : > { %v4215_v61 = vsel %vm584_vm0, %v4205_v8, 0.0  ;;  %v4206_v1 = vadd.f32 %v4200_v35, %v6639_v51  ;;  %v5366_v35 = vld [vmem:[%s6835_s16 + $0x18] sm:$0xff]  }
0x16aa   : > { %4216 = vadd.xlane.f32.xlu0 %v4215_v61 }
0x16ab   : > { %v4218_v53 = vsel %vm584_vm0, %v4206_v1, 0.0 }
0x16ac   : > { %4219 = vadd.xlane.f32.xlu1 %v4218_v53 }
0x172f   : > { %v4211_v14 = vpop.xlane.xlu0 %4210 }
0x1730   : > { %v4221_v12 = vmul.f32 0.015625, %v4211_v14 }
0x1731   : > { %v4214_v37 = vpop.xlane.xlu1 %4213 }
0x1732   : > { %v4225_v0 = vsub.f32 %v4203_v9, %v4221_v12  ;;  %v4222_v23 = vmul.f32 0.015625, %v4214_v37 }
0x1734   : > { %v4226_v11 = vsub.f32 %v4204_v48, %v4222_v23  ;;  %v4229_v27 = vmul.f32 %v4225_v0, %v4225_v0 }
0x1736   : > { %v4233_v46 = vsel %vm584_vm0, %v4229_v27, 0.0  ;;  %v4230_v41 = vmul.f32 %v4226_v11, %v4226_v11 }
0x1737   : > { %4234 = vadd.xlane.f32.xlu0 %v4233_v46  ;;  %v4217_v54 = vpop.xlane.xlu0 %4216 }
0x1738   : > { %v4223_v63 = vmul.f32 0.015625, %v4217_v54  ;;  %v4236_v18 = vsel %vm584_vm0, %v4230_v41, 0.0 }
0x1739   : > { %4237 = vadd.xlane.f32.xlu1 %v4236_v18  ;;  %v4220_v51 = vpop.xlane.xlu1 %4219 }
0x173a   : > { %v4227_v4 = vsub.f32 %v4205_v8, %v4223_v63  ;;  %v4224_v5 = vmul.f32 0.015625, %v4220_v51 }
0x173c   : > { %v4228_v28 = vsub.f32 %v4206_v1, %v4224_v5  ;;  %v4231_v58 = vmul.f32 %v4227_v4, %v4227_v4 }
0x173e   : > { %v4239_v31 = vsel %vm584_vm0, %v4231_v58, 0.0  ;;  %v4232_v10 = vmul.f32 %v4228_v28, %v4228_v28 }
0x173f   : > { %4240 = vadd.xlane.f32.xlu0 %v4239_v31 }
0x1740   : > { %v4242_v40 = vsel %vm584_vm0, %v4232_v10, 0.0 }
0x1741   : > { %4243 = vadd.xlane.f32.xlu1 %v4242_v40 }
0x17c4   : > { %v4235_v60 = vpop.xlane.xlu0 %4234 }
0x17c5   : > { %v4245_v25 = vmul.f32 0.015625, %v4235_v60 }
0x17c6   : > { %v4238_v50 = vpop.xlane.xlu1 %4237 }
0x17c7   : > { %v4249_v16 = vadd.f32 1e-05, %v4245_v25  ;;  %v4246_v3 = vmul.f32 0.015625, %v4238_v50 }
0x17c9   : > { %5591 = vrsqrt.f32 %v4249_v16  ;;  %v4250_v13 = vadd.f32 1e-05, %v4246_v3 }
0x17cb   : > { %5593 = vrsqrt.f32 %v4250_v13 }
0x17cc   : > { %v4241_v15 = vpop.xlane.xlu0 %4240 }
0x17cd   : > { %v4247_v52 = vmul.f32 0.015625, %v4241_v15 }
0x17ce   : > { %v4244_v29 = vpop.xlane.xlu1 %4243 }
0x17cf   : > { %v4251_v21 = vadd.f32 1e-05, %v4247_v52  ;;  %v4248_v34 = vmul.f32 0.015625, %v4244_v29 }
0x17d1   : > { %5595 = vrsqrt.f32 %v4251_v21  ;;  %v4252_v32 = vadd.f32 1e-05, %v4248_v34 }
0x17d3   : > { %v5592_v39 = vpop.eup %5591  ;;  %5597 = vrsqrt.f32 %v4252_v32 }
0x17d4   : > { %v4257_v36 = vmul.f32 %v5592_v39, %v4225_v0 }
0x17d5   : > { %v5594_v57 = vpop.eup %5593 }
0x17d6   : > { %v4258_v7 = vmul.f32 %v5594_v57, %v4226_v11  ;;  %v4267_v20 = vmul.f32 %v4792_v24, %v4257_v36 }
0x17d8   : > { %v4268_v44 = vmul.f32 %v4792_v24, %v4258_v7  ;;  %v4277_v55 = vadd.f32 %v4793_v62, %v4267_v20 }
0x17da   : > { %v4278_v59 = vadd.f32 %v4793_v62, %v4268_v44 }
0x17db   : > { %v5596_v33 = vpop.eup %5595 }
0x17dc   : > { %v4259_v22 = vmul.f32 %v5596_v33, %v4227_v4  ;;  %v5190_v26 = vpack.c.bf16 %v4278_v59, %v4277_v55 }
0x17dd   : > { %v5598_v17 = vpop.eup %5597 }
0x17de   : > { %v4260_v9 = vmul.f32 %v5598_v17, %v4228_v28  ;;  %5191 = vmatpush3.bf16.msra.mxu0 %v5190_v26  ;;  %v4269_v42 = vmul.f32 %v4792_v24, %v4259_v22 }
0x17df   : > { %5192 = vmatprep.subr.bf16.mxu0 %v5622_v47 }
0x17e0   : > { %v4270_v48 = vmul.f32 %v4792_v24, %v4260_v9  ;;  %v4279_v6 = vadd.f32 %v4793_v62, %v4269_v42 }
0x17e1   : > { %5168 = vmatmul.mubr.msk.f32.vlgmr.msra.gmra.mrb[96].mxu0 %vm793_vm2, %v4281_v43 }
0x17e2   : > { %v4280_v45 = vadd.f32 %v4793_v62, %v4270_v48  ;;  %5174 = vmatprep.mubr.msk.f32.mxu0 %vm5613_vm1, %v5612_v56 }
0x17e4   : > { %v5193_v19 = vpack.c.bf16 %v4280_v45, %v4279_v6 }
0x17e6   : > { %5194 = vmatpush3.bf16.msra.mxu0 %v5193_v19 }
0x17e7   : > { %5177 = vmatprep.subr.bf16.mxu0 %v5612_v56 }
0x17e9   : > { %5175 = vmatmul.mubr.msk.f32.vlgmr.msra.gmra.mrb[98].mxu0 %vm793_vm2, %v4795_v38 }
0x17ea   : > { %5178 = vmatpush3.bf16.msra.mxu0 %v5363_v2  ;;  %5185 = vmatprep.mubr.msk.bf16.mxu0 %vm5613_vm1, %v5612_v56 }
0x17eb   : > { %5179 = vmatprep.subr.bf16.mxu0 %v5612_v56 }
0x17ee   : > { %5180 = vmatpush3.bf16.msra.mxu0 %v5364_v49 }
0x17ef   : > { %5181 = vmatprep.subr.bf16.mxu0 %v5612_v56 }
0x17f2   : > { %5182 = vmatpush3.bf16.msra.mxu0 %v5365_v30 }
0x17f3   : > { %5183 = vmatprep.subr.bf16.mxu0 %v5612_v56 }
0x17f6   : > { %5184 = vmatpush3.bf16.msra.mxu0 %v5366_v35 }
0x18b4   : > { %v4351_v8 = vpop.f32.mrb[96].mxu0 }
0x18b5   : > { %v5169_v61 = vpop.f32.mrb[97].mxu0 }
0x18bc   : > { %v4426_v1 = vpop.f32.mrb[98].mxu0 }
0x18bd   : > { %v4431_v53 = vrot.slane %v4426_v1, 7  ;;  %v5176_v14 = vpop.f32.mrb[99].mxu0 }
0x18bf   : > { %v4434_v12 = vsel %vm4433_vm7, %v4351_v8, %v4431_v53 }
0x18c0   : > { %v4435_v37 = vpack.c.bf16 %v4434_v12, %v4434_v12 }
0x18c2   : > { %5186 = vmatmul.mubr.msk.bf16.vlgmr.msra.gmra.mrb[100].mxu0 %vm584_vm0, %v4435_v37 }
0x1995   : > { %v4505_v56 = vpop.f32.mrb[100].mxu0 }
0x1996   : > { %4512 = vst.msk [vmem:[%s567_s0] sm:$0x3] %vm4511_vm8, %v4505_v56  ;;  %v5187_v0 = vpop.f32.mrb[101].mxu0 }
0x1997   : > { %v4508_v23 = vpop.f32.mrb[102].mxu0 }
0x1998   : > { %v5188_v11 = vpop.f32.mrb[103].mxu0 }
0x1999 PF: > { %s27_s24 = sadd.s32 1, %s5609_s24  }
0x199a   : > { %p24_p6 = scmp.ge.s32.totalorder %s27_s24, 4  }
0x199c   :  { %26 = sbr.rel (!%p24_p6) target bundleno = 3 (0x3), region = 134 }

</bundles_post_ra>
